<compile_context>
chip_gen: v7x
topology: tpu7x:2x2x1
jax: 0.10.0
libtpu: 0.0.40
codegen_flags: <defaults>
</compile_context>

<pallas_src>
import jax
import jax.numpy as jnp
from jax.experimental import pallas as pl
from jax.experimental.pallas import tpu as pltpu

# ---------------- configuration --------------------------------------------------------
B = 2
C = 3
IMG = 16
PATCH = 4
DIM = 32
HEADS = 4
HEAD_DIM = DIM // HEADS
DEPTH = 2                      # block0 = "block1", blocks 1.. = "from_block2"
MLP_HIDDEN = DIM * 4
NUM_CLASSES = 10
NUM_PATCHES = (IMG // PATCH) ** 2
SEQ = NUM_PATCHES + 1          # +1 CLS token
CPP = C * PATCH * PATCH        # flattened patch size
M_TOK = B * SEQ                # flattened token rows
LN_EPS = 1e-6
ATTN_SCALE = HEAD_DIM ** -0.5
N_BLK_W = 12                   # weight tensors per transformer block

# ---------------- in-kernel math helpers ------------------------------------------------

def _ln(x, g, b):
    """LayerNorm over last dim. x:[M,D] f32, g/b:[1,D]."""
    xf = x.astype(jnp.float32)
    mu = jnp.mean(xf, axis=-1, keepdims=True)
    var = jnp.mean(jnp.square(xf - mu), axis=-1, keepdims=True)
    return (xf - mu) * jax.lax.rsqrt(var + LN_EPS) * g + b


def _gelu_tanh(y):
    # TODO(synk): timm DeiT uses exact (erf) GELU; tanh approximation kept for guaranteed
    # Mosaic lowering (difference ~1e-3).
    return 0.5 * y * (1.0 + jnp.tanh(0.7978845608028654 * (y + 0.044715 * y * y * y)))


def _block_body(x, w, neg_mask, qkv_s):
    """One pre-norm transformer block on the flat token slab.

    x        : [B*SEQ, DIM] f32 value (all batches' tokens stacked along rows).
    w        : tuple of 12 weight refs.
    neg_mask : [B*SEQ, B*SEQ] f32 additive mask (0 within an image, -1e30 across images).
    qkv_s    : VMEM scratch ref [B*SEQ, 3*DIM] f32 (reused by every block).
    """
    (ln1_g, ln1_b, qkv_w, qkv_b, proj_w, proj_b,
     ln2_g, ln2_b, fc1_w, fc1_b, fc2_w, fc2_b) = w
    m = x.shape[0]

    # ---- attention branch ----
    h = _ln(x, ln1_g[...], ln1_b[...])
    qkv_s[...] = jnp.dot(h, qkv_w[...], preferred_element_type=jnp.float32) + qkv_b[...]

    acc = jnp.zeros((m, DIM), jnp.float32)
    for hd in range(HEADS):                       # heads unrolled, everything stays in VMEM
        q = qkv_s[:, hd * HEAD_DIM:(hd + 1) * HEAD_DIM]
        k = qkv_s[:, DIM + hd * HEAD_DIM: DIM + (hd + 1) * HEAD_DIM]
        v = qkv_s[:, 2 * DIM + hd * HEAD_DIM: 2 * DIM + (hd + 1) * HEAD_DIM]
        s = jnp.dot(q * ATTN_SCALE, k.T, preferred_element_type=jnp.float32)   # [M, M]
        s = s + neg_mask
        s = s - jnp.max(s, axis=-1, keepdims=True)
        p = jnp.exp(s)
        p = p * pl.reciprocal(jnp.sum(p, axis=-1, keepdims=True), approx=True)
        o = jnp.dot(p, v, preferred_element_type=jnp.float32)                  # [M, Dh]
        # fold the output projection per head: concat(o_h) @ W == sum_h o_h @ W[h*Dh:(h+1)*Dh]
        acc = acc + jnp.dot(o, proj_w[hd * HEAD_DIM:(hd + 1) * HEAD_DIM, :],
                            preferred_element_type=jnp.float32)
    x = x + acc + proj_b[...]

    # ---- MLP branch ----
    h = _ln(x, ln2_g[...], ln2_b[...])
    h = jnp.dot(h, fc1_w[...], preferred_element_type=jnp.float32) + fc1_b[...]
    h = _gelu_tanh(h)
    h = jnp.dot(h, fc2_w[...], preferred_element_type=jnp.float32) + fc2_b[...]
    return x + h


# ---------------- the single fused kernel ----------------------------------------------

def _forward_kernel(*refs):
    # inputs: patches, 4 embed weights, 12 block0 weights, (DEPTH-1)*24 branch-block weights,
    #         4 final-norm weights, head_w, head_b. Then 1 output ref, 1 VMEM scratch.
    patches = refs[0]
    patch_w, patch_b, cls_tok, pos = refs[1:5]
    i = 5
    blk0 = refs[i:i + N_BLK_W]; i += N_BLK_W
    branch_blocks = []
    for _ in range(DEPTH - 1):
        w1 = refs[i:i + N_BLK_W]; i += N_BLK_W     # backbone1 block d
        w2 = refs[i:i + N_BLK_W]; i += N_BLK_W     # backbone2 block d
        branch_blocks.append((w1, w2))
    norm_g1, norm_b1, norm_g2, norm_b2, head_w, head_b = refs[i:i + 6]; i += 6
    out_ref = refs[i]
    qkv_s = refs[i + 1]

    # --- patch embed + CLS + pos (backbone1) ---
    tok = (jnp.dot(patches[...], patch_w[...], preferred_element_type=jnp.float32)
           + patch_b[...])                                            # [M_TOK, DIM]
    rid = jax.lax.broadcasted_iota(jnp.int32, (M_TOK, DIM), 0)
    is_cls = (rid == 0)
    for b in range(1, B):
        is_cls = is_cls | (rid == b * SEQ)
    x = jnp.where(is_cls, cls_tok[...], tok) + pos[...]               # cls + pos (eval: no drop)

    # --- block-diagonal attention mask (computed once, reused by every block) ---
    rr = jax.lax.broadcasted_iota(jnp.int32, (M_TOK, M_TOK), 0)
    cc = jax.lax.broadcasted_iota(jnp.int32, (M_TOK, M_TOK), 1)
    same = None
    for b in range(B):
        blk = ((rr >= b * SEQ) & (rr < (b + 1) * SEQ) &
               (cc >= b * SEQ) & (cc < (b + 1) * SEQ))
        same = blk if same is None else (same | blk)
    neg_mask = jnp.where(same, 0.0, -1e30)

    # --- block0 of backbone1 (forward_block1), shared by both branches ---
    mid = _block_body(x, blk0, neg_mask, qkv_s)

    # --- remaining blocks: backbone1 branch and backbone2 branch ---
    x1 = mid
    x2 = mid
    for (w1, w2) in branch_blocks:
        x1 = _block_body(x1, w1, neg_mask, qkv_s)
        x2 = _block_body(x2, w2, neg_mask, qkv_s)

    # --- CLS extraction (one-hot matmul), final norms, concat + linear head ---
    col = jax.lax.broadcasted_iota(jnp.int32, (B, M_TOK), 1)
    tgt = jax.lax.broadcasted_iota(jnp.int32, (B, M_TOK), 0) * SEQ
    sel = (col == tgt).astype(jnp.float32)                            # [B, B*SEQ] picks CLS rows
    c1 = jnp.dot(sel, x1, preferred_element_type=jnp.float32)         # [B, DIM]
    c2 = jnp.dot(sel, x2, preferred_element_type=jnp.float32)
    f1 = _ln(c1, norm_g1[...], norm_b1[...])                          # per-token LN commutes
    f2 = _ln(c2, norm_g2[...], norm_b2[...])                          #   with row selection
    # concat((out1, out2)) @ W == out1 @ W[:DIM] + out2 @ W[DIM:]
    logits = (head_b[...]
              + jnp.dot(f1, head_w[0:DIM, :], preferred_element_type=jnp.float32)
              + jnp.dot(f2, head_w[DIM:2 * DIM, :], preferred_element_type=jnp.float32))
    out_ref[...] = logits.astype(out_ref.dtype)


# ---------------- wrapper (one pallas_call per forward) --------------------------------

def patchify(x):
    # NCHW [B,C,H,W] -> [B, num_patches, C*P*P] with (c, ph, pw) flattening (Conv2d layout).
    b, c, h, w = x.shape
    gh, gw = h // PATCH, w // PATCH
    x = x.reshape(b, c, gh, PATCH, gw, PATCH).transpose(0, 2, 4, 1, 3, 5)
    return x.reshape(b, gh * gw, c * PATCH * PATCH)


def _full_spec(a):
    nd = a.ndim
    return pl.BlockSpec(a.shape, lambda i, nd=nd: (0,) * nd)


@jax.jit
def deit_attach_forward(weights, x_img):
    patches = patchify(x_img)                                   # [B, NP, CPP]  (XLA glue)
    patches = jnp.pad(patches, ((0, 0), (1, 0), (0, 0)))        # dummy row for the CLS slot
    patches = patches.reshape(M_TOK, CPP)
    args = (patches,) + tuple(weights)
    return pl.pallas_call(
        _forward_kernel,
        out_shape=jax.ShapeDtypeStruct((B, NUM_CLASSES), jnp.float32),
        grid=(1,),
        in_specs=[_full_spec(a) for a in args],
        out_specs=pl.BlockSpec((B, NUM_CLASSES), lambda i: (0, 0)),
        scratch_shapes=[pltpu.VMEM((M_TOK, 3 * DIM), jnp.float32)],
        compiler_params=pltpu.CompilerParams(dimension_semantics=("arbitrary",)),
    )(*args)


# ---------------- parameter construction (deterministic, synthetic) --------------------

def _nrm(key, shape, std=0.02):
    return jax.random.normal(key, shape, jnp.float32) * std


def init_backbone(key):
    keys = jax.random.split(key, 3 + DEPTH)
    params = {
        "patch_w": _nrm(keys[0], (CPP, DIM)),      # Conv2d(C, DIM, k=P, s=P) as a patch matmul
        "patch_b": jnp.zeros((DIM,), jnp.float32),
        "cls": _nrm(keys[1], (1, 1, DIM)),
        "pos": _nrm(keys[2], (1, SEQ, DIM)),
        "norm_g": jnp.ones((DIM,), jnp.float32),
        "norm_b": jnp.zeros((DIM,), jnp.float32),
        "blocks": [],
    }
    for d in range(DEPTH):
        bk = jax.random.split(keys[3 + d], 4)
        params["blocks"].append({
            "ln1_g": jnp.ones((DIM,), jnp.float32), "ln1_b": jnp.zeros((DIM,), jnp.float32),
            "qkv_w": _nrm(bk[0], (DIM, 3 * DIM)),   "qkv_b": jnp.zeros((3 * DIM,), jnp.float32),
            "proj_w": _nrm(bk[1], (DIM, DIM)),      "proj_b": jnp.zeros((DIM,), jnp.float32),
            "ln2_g": jnp.ones((DIM,), jnp.float32), "ln2_b": jnp.zeros((DIM,), jnp.float32),
            "fc1_w": _nrm(bk[2], (DIM, MLP_HIDDEN)), "fc1_b": jnp.zeros((MLP_HIDDEN,), jnp.float32),
            "fc2_w": _nrm(bk[3], (MLP_HIDDEN, DIM)), "fc2_b": jnp.zeros((DIM,), jnp.float32),
        })
    return params


def perturb_params(params, key):
    """backbone2 = backbone1 + 0.001 * randn_like (matches the PyTorch __init__)."""
    leaves, treedef = jax.tree_util.tree_flatten(params)
    keys = jax.random.split(key, len(leaves))
    new = [l + 0.001 * jax.random.normal(k, l.shape, l.dtype) for l, k in zip(leaves, keys)]
    return jax.tree_util.tree_unflatten(treedef, new)


def build_fused(bb1, bb2, head_w, head_b):
    """Flat, kernel-ready parameter tuple (all 2-D; biases/gains as [1, N] rows,
    pos pre-tiled to [B*SEQ, DIM]). Done once, outside jit."""
    r2 = lambda v: v.reshape(1, -1)

    def blk_list(bp):
        return [r2(bp["ln1_g"]), r2(bp["ln1_b"]), bp["qkv_w"], r2(bp["qkv_b"]),
                bp["proj_w"], r2(bp["proj_b"]), r2(bp["ln2_g"]), r2(bp["ln2_b"]),
                bp["fc1_w"], r2(bp["fc1_b"]), bp["fc2_w"], r2(bp["fc2_b"])]

    args = [bb1["patch_w"], r2(bb1["patch_b"]), bb1["cls"].reshape(1, DIM),
            jnp.tile(bb1["pos"].reshape(SEQ, DIM), (B, 1))]
    args += blk_list(bb1["blocks"][0])                         # backbone1's block0
    for d in range(1, DEPTH):                                  # branch blocks (bb1, bb2)
        args += blk_list(bb1["blocks"][d])
        args += blk_list(bb2["blocks"][d])
    args += [r2(bb1["norm_g"]), r2(bb1["norm_b"]), r2(bb2["norm_g"]), r2(bb2["norm_b"]),
             head_w, head_b.reshape(1, -1)]
    return tuple(args)


# ---------------- main ------------------------------------------------------------------

if __name__ == "__main__":
    root = jax.random.PRNGKey(0)
    k_bb1, k_noise, k_head, k_x = jax.random.split(root, 4)

    bb1 = init_backbone(k_bb1)
    bb2 = perturb_params(bb1, k_noise)
    head_w = _nrm(k_head, (2 * DIM, NUM_CLASSES))
    head_b = jnp.zeros((NUM_CLASSES,), jnp.float32)
    weights = build_fused(bb1, bb2, head_w, head_b)

    x = jax.random.normal(k_x, (B, C, IMG, IMG), jnp.float32)   # NCHW, like PyTorch

    y = deit_attach_forward(weights, x)
    y = jax.block_until_ready(y)
    assert y.shape == (B, NUM_CLASSES), y.shape
    print("KERNEL_OK")
</pallas_src>

<mosaic_0001>
module attributes {stable_mosaic.version = 11 : i64} {
  func.func @_forward_kernel(%arg0: i32, %arg1: memref<34x48xf32, #tpu.memory_space<vmem>>, %arg2: memref<48x32xf32, #tpu.memory_space<vmem>>, %arg3: memref<1x32xf32, #tpu.memory_space<vmem>>, %arg4: memref<1x32xf32, #tpu.memory_space<vmem>>, %arg5: memref<34x32xf32, #tpu.memory_space<vmem>>, %arg6: memref<1x32xf32, #tpu.memory_space<vmem>>, %arg7: memref<1x32xf32, #tpu.memory_space<vmem>>, %arg8: memref<32x96xf32, #tpu.memory_space<vmem>>, %arg9: memref<1x96xf32, #tpu.memory_space<vmem>>, %arg10: memref<32x32xf32, #tpu.memory_space<vmem>>, %arg11: memref<1x32xf32, #tpu.memory_space<vmem>>, %arg12: memref<1x32xf32, #tpu.memory_space<vmem>>, %arg13: memref<1x32xf32, #tpu.memory_space<vmem>>, %arg14: memref<32x128xf32, #tpu.memory_space<vmem>>, %arg15: memref<1x128xf32, #tpu.memory_space<vmem>>, %arg16: memref<128x32xf32, #tpu.memory_space<vmem>>, %arg17: memref<1x32xf32, #tpu.memory_space<vmem>>, %arg18: memref<1x32xf32, #tpu.memory_space<vmem>>, %arg19: memref<1x32xf32, #tpu.memory_space<vmem>>, %arg20: memref<32x96xf32, #tpu.memory_space<vmem>>, %arg21: memref<1x96xf32, #tpu.memory_space<vmem>>, %arg22: memref<32x32xf32, #tpu.memory_space<vmem>>, %arg23: memref<1x32xf32, #tpu.memory_space<vmem>>, %arg24: memref<1x32xf32, #tpu.memory_space<vmem>>, %arg25: memref<1x32xf32, #tpu.memory_space<vmem>>, %arg26: memref<32x128xf32, #tpu.memory_space<vmem>>, %arg27: memref<1x128xf32, #tpu.memory_space<vmem>>, %arg28: memref<128x32xf32, #tpu.memory_space<vmem>>, %arg29: memref<1x32xf32, #tpu.memory_space<vmem>>, %arg30: memref<1x32xf32, #tpu.memory_space<vmem>>, %arg31: memref<1x32xf32, #tpu.memory_space<vmem>>, %arg32: memref<32x96xf32, #tpu.memory_space<vmem>>, %arg33: memref<1x96xf32, #tpu.memory_space<vmem>>, %arg34: memref<32x32xf32, #tpu.memory_space<vmem>>, %arg35: memref<1x32xf32, #tpu.memory_space<vmem>>, %arg36: memref<1x32xf32, #tpu.memory_space<vmem>>, %arg37: memref<1x32xf32, #tpu.memory_space<vmem>>, %arg38: memref<32x128xf32, #tpu.memory_space<vmem>>, %arg39: memref<1x128xf32, #tpu.memory_space<vmem>>, %arg40: memref<128x32xf32, #tpu.memory_space<vmem>>, %arg41: memref<1x32xf32, #tpu.memory_space<vmem>>, %arg42: memref<1x32xf32, #tpu.memory_space<vmem>>, %arg43: memref<1x32xf32, #tpu.memory_space<vmem>>, %arg44: memref<1x32xf32, #tpu.memory_space<vmem>>, %arg45: memref<1x32xf32, #tpu.memory_space<vmem>>, %arg46: memref<64x10xf32, #tpu.memory_space<vmem>>, %arg47: memref<1x10xf32, #tpu.memory_space<vmem>>, %arg48: memref<2x10xf32, #tpu.memory_space<vmem>>, %arg49: memref<34x96xf32, #tpu.memory_space<vmem>>) attributes {dimension_semantics = [#tpu.dimension_semantics<arbitrary>], iteration_bounds = array<i64: 1>, scalar_prefetch = 0 : i64, scratch_operands = 1 : i64, tpu.core_type = #tpu.core_type<tc>, window_params = [{pipeline_mode = #tpu.pipeline_mode<synchronous>, transform_indices = @transform_0, window_bounds = array<i64: 34, 48>}, {pipeline_mode = #tpu.pipeline_mode<synchronous>, transform_indices = @transform_1, window_bounds = array<i64: 48, 32>}, {pipeline_mode = #tpu.pipeline_mode<synchronous>, transform_indices = @transform_2, window_bounds = array<i64: 1, 32>}, {pipeline_mode = #tpu.pipeline_mode<synchronous>, transform_indices = @transform_3, window_bounds = array<i64: 1, 32>}, {pipeline_mode = #tpu.pipeline_mode<synchronous>, transform_indices = @transform_4, window_bounds = array<i64: 34, 32>}, {pipeline_mode = #tpu.pipeline_mode<synchronous>, transform_indices = @transform_5, window_bounds = array<i64: 1, 32>}, {pipeline_mode = #tpu.pipeline_mode<synchronous>, transform_indices = @transform_6, window_bounds = array<i64: 1, 32>}, {pipeline_mode = #tpu.pipeline_mode<synchronous>, transform_indices = @transform_7, window_bounds = array<i64: 32, 96>}, {pipeline_mode = #tpu.pipeline_mode<synchronous>, transform_indices = @transform_8, window_bounds = array<i64: 1, 96>}, {pipeline_mode = #tpu.pipeline_mode<synchronous>, transform_indices = @transform_9, window_bounds = array<i64: 32, 32>}, {pipeline_mode = #tpu.pipeline_mode<synchronous>, transform_indices = @transform_10, window_bounds = array<i64: 1, 32>}, {pipeline_mode = #tpu.pipeline_mode<synchronous>, transform_indices = @transform_11, window_bounds = array<i64: 1, 32>}, {pipeline_mode = #tpu.pipeline_mode<synchronous>, transform_indices = @transform_12, window_bounds = array<i64: 1, 32>}, {pipeline_mode = #tpu.pipeline_mode<synchronous>, transform_indices = @transform_13, window_bounds = array<i64: 32, 128>}, {pipeline_mode = #tpu.pipeline_mode<synchronous>, transform_indices = @transform_14, window_bounds = array<i64: 1, 128>}, {pipeline_mode = #tpu.pipeline_mode<synchronous>, transform_indices = @transform_15, window_bounds = array<i64: 128, 32>}, {pipeline_mode = #tpu.pipeline_mode<synchronous>, transform_indices = @transform_16, window_bounds = array<i64: 1, 32>}, {pipeline_mode = #tpu.pipeline_mode<synchronous>, transform_indices = @transform_17, window_bounds = array<i64: 1, 32>}, {pipeline_mode = #tpu.pipeline_mode<synchronous>, transform_indices = @transform_18, window_bounds = array<i64: 1, 32>}, {pipeline_mode = #tpu.pipeline_mode<synchronous>, transform_indices = @transform_19, window_bounds = array<i64: 32, 96>}, {pipeline_mode = #tpu.pipeline_mode<synchronous>, transform_indices = @transform_20, window_bounds = array<i64: 1, 96>}, {pipeline_mode = #tpu.pipeline_mode<synchronous>, transform_indices = @transform_21, window_bounds = array<i64: 32, 32>}, {pipeline_mode = #tpu.pipeline_mode<synchronous>, transform_indices = @transform_22, window_bounds = array<i64: 1, 32>}, {pipeline_mode = #tpu.pipeline_mode<synchronous>, transform_indices = @transform_23, window_bounds = array<i64: 1, 32>}, {pipeline_mode = #tpu.pipeline_mode<synchronous>, transform_indices = @transform_24, window_bounds = array<i64: 1, 32>}, {pipeline_mode = #tpu.pipeline_mode<synchronous>, transform_indices = @transform_25, window_bounds = array<i64: 32, 128>}, {pipeline_mode = #tpu.pipeline_mode<synchronous>, transform_indices = @transform_26, window_bounds = array<i64: 1, 128>}, {pipeline_mode = #tpu.pipeline_mode<synchronous>, transform_indices = @transform_27, window_bounds = array<i64: 128, 32>}, {pipeline_mode = #tpu.pipeline_mode<synchronous>, transform_indices = @transform_28, window_bounds = array<i64: 1, 32>}, {pipeline_mode = #tpu.pipeline_mode<synchronous>, transform_indices = @transform_29, window_bounds = array<i64: 1, 32>}, {pipeline_mode = #tpu.pipeline_mode<synchronous>, transform_indices = @transform_30, window_bounds = array<i64: 1, 32>}, {pipeline_mode = #tpu.pipeline_mode<synchronous>, transform_indices = @transform_31, window_bounds = array<i64: 32, 96>}, {pipeline_mode = #tpu.pipeline_mode<synchronous>, transform_indices = @transform_32, window_bounds = array<i64: 1, 96>}, {pipeline_mode = #tpu.pipeline_mode<synchronous>, transform_indices = @transform_33, window_bounds = array<i64: 32, 32>}, {pipeline_mode = #tpu.pipeline_mode<synchronous>, transform_indices = @transform_34, window_bounds = array<i64: 1, 32>}, {pipeline_mode = #tpu.pipeline_mode<synchronous>, transform_indices = @transform_35, window_bounds = array<i64: 1, 32>}, {pipeline_mode = #tpu.pipeline_mode<synchronous>, transform_indices = @transform_36, window_bounds = array<i64: 1, 32>}, {pipeline_mode = #tpu.pipeline_mode<synchronous>, transform_indices = @transform_37, window_bounds = array<i64: 32, 128>}, {pipeline_mode = #tpu.pipeline_mode<synchronous>, transform_indices = @transform_38, window_bounds = array<i64: 1, 128>}, {pipeline_mode = #tpu.pipeline_mode<synchronous>, transform_indices = @transform_39, window_bounds = array<i64: 128, 32>}, {pipeline_mode = #tpu.pipeline_mode<synchronous>, transform_indices = @transform_40, window_bounds = array<i64: 1, 32>}, {pipeline_mode = #tpu.pipeline_mode<synchronous>, transform_indices = @transform_41, window_bounds = array<i64: 1, 32>}, {pipeline_mode = #tpu.pipeline_mode<synchronous>, transform_indices = @transform_42, window_bounds = array<i64: 1, 32>}, {pipeline_mode = #tpu.pipeline_mode<synchronous>, transform_indices = @transform_43, window_bounds = array<i64: 1, 32>}, {pipeline_mode = #tpu.pipeline_mode<synchronous>, transform_indices = @transform_44, window_bounds = array<i64: 1, 32>}, {pipeline_mode = #tpu.pipeline_mode<synchronous>, transform_indices = @transform_45, window_bounds = array<i64: 64, 10>}, {pipeline_mode = #tpu.pipeline_mode<synchronous>, transform_indices = @transform_46, window_bounds = array<i64: 1, 10>}, {pipeline_mode = #tpu.pipeline_mode<synchronous>, transform_indices = @transform_47, window_bounds = array<i64: 2, 10>}]} {
    %c0 = arith.constant 0 : index
    %c0_0 = arith.constant 0 : index
    %0 = vector.load %arg1[%c0, %c0_0] : memref<34x48xf32, #tpu.memory_space<vmem>>, vector<34x48xf32>
    %c0_1 = arith.constant 0 : index
    %c0_2 = arith.constant 0 : index
    %1 = vector.load %arg2[%c0_1, %c0_2] : memref<48x32xf32, #tpu.memory_space<vmem>>, vector<48x32xf32>
    %cst = arith.constant dense<0.000000e+00> : vector<34x32xf32>
    %2 = tpu.matmul %0, %1, %cst {dimension_numbers = #tpu.dot_dimension_numbers<[1], [0], [0], [1], [0, 0, 1, 1], [], []>} : vector<34x48xf32>, vector<48x32xf32>, vector<34x32xf32> -> vector<34x32xf32>
    %c0_3 = arith.constant 0 : index
    %c0_4 = arith.constant 0 : index
    %3 = vector.load %arg3[%c0_3, %c0_4] : memref<1x32xf32, #tpu.memory_space<vmem>>, vector<1x32xf32>
    %4 = vector.broadcast %3 : vector<1x32xf32> to vector<34x32xf32>
    %5 = arith.addf %2, %4 : vector<34x32xf32>
    %6 = tpu.iota {dimensions = array<i32: 0>} : vector<34x32xi32>
    %c0_i32 = arith.constant 0 : i32
    %7 = vector.broadcast %c0_i32 : i32 to vector<34x32xi32>
    %8 = arith.cmpi eq, %6, %7 : vector<34x32xi32>
    %c17_i32 = arith.constant 17 : i32
    %9 = vector.broadcast %c17_i32 : i32 to vector<34x32xi32>
    %10 = arith.cmpi eq, %6, %9 : vector<34x32xi32>
    %11 = arith.ori %8, %10 : vector<34x32xi1>
    %c0_5 = arith.constant 0 : index
    %c0_6 = arith.constant 0 : index
    %12 = vector.load %arg4[%c0_5, %c0_6] : memref<1x32xf32, #tpu.memory_space<vmem>>, vector<1x32xf32>
    %13 = vector.shape_cast %12 : vector<1x32xf32> to vector<1x32xf32>
    %14 = vector.broadcast %13 : vector<1x32xf32> to vector<34x32xf32>
    %15 = arith.select %11, %14, %5 : vector<34x32xi1>, vector<34x32xf32>
    %c0_7 = arith.constant 0 : index
    %c0_8 = arith.constant 0 : index
    %16 = vector.load %arg5[%c0_7, %c0_8] : memref<34x32xf32, #tpu.memory_space<vmem>>, vector<34x32xf32>
    %17 = arith.addf %15, %16 : vector<34x32xf32>
    %18 = tpu.iota {dimensions = array<i32: 0>} : vector<34x34xi32>
    %19 = tpu.iota {dimensions = array<i32: 1>} : vector<34x34xi32>
    %c0_i32_9 = arith.constant 0 : i32
    %20 = vector.broadcast %c0_i32_9 : i32 to vector<34x34xi32>
    %21 = arith.cmpi sge, %18, %20 : vector<34x34xi32>
    %c17_i32_10 = arith.constant 17 : i32
    %22 = vector.broadcast %c17_i32_10 : i32 to vector<34x34xi32>
    %23 = arith.cmpi slt, %18, %22 : vector<34x34xi32>
    %24 = arith.andi %21, %23 : vector<34x34xi1>
    %c0_i32_11 = arith.constant 0 : i32
    %25 = vector.broadcast %c0_i32_11 : i32 to vector<34x34xi32>
    %26 = arith.cmpi sge, %19, %25 : vector<34x34xi32>
    %27 = arith.andi %24, %26 : vector<34x34xi1>
    %c17_i32_12 = arith.constant 17 : i32
    %28 = vector.broadcast %c17_i32_12 : i32 to vector<34x34xi32>
    %29 = arith.cmpi slt, %19, %28 : vector<34x34xi32>
    %30 = arith.andi %27, %29 : vector<34x34xi1>
    %c17_i32_13 = arith.constant 17 : i32
    %31 = vector.broadcast %c17_i32_13 : i32 to vector<34x34xi32>
    %32 = arith.cmpi sge, %18, %31 : vector<34x34xi32>
    %c34_i32 = arith.constant 34 : i32
    %33 = vector.broadcast %c34_i32 : i32 to vector<34x34xi32>
    %34 = arith.cmpi slt, %18, %33 : vector<34x34xi32>
    %35 = arith.andi %32, %34 : vector<34x34xi1>
    %c17_i32_14 = arith.constant 17 : i32
    %36 = vector.broadcast %c17_i32_14 : i32 to vector<34x34xi32>
    %37 = arith.cmpi sge, %19, %36 : vector<34x34xi32>
    %38 = arith.andi %35, %37 : vector<34x34xi1>
    %c34_i32_15 = arith.constant 34 : i32
    %39 = vector.broadcast %c34_i32_15 : i32 to vector<34x34xi32>
    %40 = arith.cmpi slt, %19, %39 : vector<34x34xi32>
    %41 = arith.andi %38, %40 : vector<34x34xi1>
    %42 = arith.ori %30, %41 : vector<34x34xi1>
    %cst_16 = arith.constant 0.000000e+00 : f32
    %cst_17 = arith.constant -1.000000e+30 : f32
    %43 = vector.broadcast %cst_16 : f32 to vector<34x34xf32>
    %44 = vector.broadcast %cst_17 : f32 to vector<34x34xf32>
    %45 = arith.select %42, %43, %44 : vector<34x34xi1>, vector<34x34xf32>
    %c0_18 = arith.constant 0 : index
    %c0_19 = arith.constant 0 : index
    %46 = vector.load %arg6[%c0_18, %c0_19] : memref<1x32xf32, #tpu.memory_space<vmem>>, vector<1x32xf32>
    %c0_20 = arith.constant 0 : index
    %c0_21 = arith.constant 0 : index
    %47 = vector.load %arg7[%c0_20, %c0_21] : memref<1x32xf32, #tpu.memory_space<vmem>>, vector<1x32xf32>
    %cst_22 = arith.constant dense<0.000000e+00> : vector<34xf32>
    %48 = vector.multi_reduction <add>, %17, %cst_22 [1] : vector<34x32xf32> to vector<34xf32>
    %49 = vector.shape_cast %48 : vector<34xf32> to vector<34x1xf32>
    %cst_23 = arith.constant 3.200000e+01 : f32
    %50 = vector.broadcast %cst_23 : f32 to vector<34x1xf32>
    %51 = arith.divf %49, %50 : vector<34x1xf32>
    %52 = vector.broadcast %51 : vector<34x1xf32> to vector<34x32xf32>
    %53 = arith.subf %17, %52 : vector<34x32xf32>
    %54 = arith.mulf %53, %53 : vector<34x32xf32>
    %cst_24 = arith.constant dense<0.000000e+00> : vector<34xf32>
    %55 = vector.multi_reduction <add>, %54, %cst_24 [1] : vector<34x32xf32> to vector<34xf32>
    %56 = vector.shape_cast %55 : vector<34xf32> to vector<34x1xf32>
    %cst_25 = arith.constant 3.200000e+01 : f32
    %57 = vector.broadcast %cst_25 : f32 to vector<34x1xf32>
    %58 = arith.divf %56, %57 : vector<34x1xf32>
    %59 = vector.broadcast %51 : vector<34x1xf32> to vector<34x32xf32>
    %60 = arith.subf %17, %59 : vector<34x32xf32>
    %cst_26 = arith.constant 9.99999997E-7 : f32
    %61 = vector.broadcast %cst_26 : f32 to vector<34x1xf32>
    %62 = arith.addf %58, %61 : vector<34x1xf32>
    %63 = math.rsqrt %62 : vector<34x1xf32>
    %64 = vector.broadcast %63 : vector<34x1xf32> to vector<34x32xf32>
    %65 = arith.mulf %60, %64 : vector<34x32xf32>
    %66 = vector.broadcast %46 : vector<1x32xf32> to vector<34x32xf32>
    %67 = arith.mulf %65, %66 : vector<34x32xf32>
    %68 = vector.broadcast %47 : vector<1x32xf32> to vector<34x32xf32>
    %69 = arith.addf %67, %68 : vector<34x32xf32>
    %c0_27 = arith.constant 0 : index
    %c0_28 = arith.constant 0 : index
    %70 = vector.load %arg8[%c0_27, %c0_28] : memref<32x96xf32, #tpu.memory_space<vmem>>, vector<32x96xf32>
    %cst_29 = arith.constant dense<0.000000e+00> : vector<34x96xf32>
    %71 = tpu.matmul %69, %70, %cst_29 {dimension_numbers = #tpu.dot_dimension_numbers<[1], [0], [0], [1], [0, 0, 1, 1], [], []>} : vector<34x32xf32>, vector<32x96xf32>, vector<34x96xf32> -> vector<34x96xf32>
    %c0_30 = arith.constant 0 : index
    %c0_31 = arith.constant 0 : index
    %72 = vector.load %arg9[%c0_30, %c0_31] : memref<1x96xf32, #tpu.memory_space<vmem>>, vector<1x96xf32>
    %73 = vector.broadcast %72 : vector<1x96xf32> to vector<34x96xf32>
    %74 = arith.addf %71, %73 : vector<34x96xf32>
    %c0_32 = arith.constant 0 : index
    %c0_33 = arith.constant 0 : index
    %75 = vector.load %arg49[%c0_32, %c0_33] : memref<34x96xf32, #tpu.memory_space<vmem>>, vector<34x96xf32>
    tpu.vector_store %arg49[%c0_32, %c0_33], %74 {strides = array<i32>} : memref<34x96xf32, #tpu.memory_space<vmem>>, vector<34x96xf32>,
    %cst_34 = arith.constant 0.000000e+00 : f32
    %76 = vector.broadcast %cst_34 : f32 to vector<34x32xf32>
    %c0_35 = arith.constant 0 : index
    %c0_36 = arith.constant 0 : index
    %77 = vector.load %arg49[%c0_35, %c0_36] : memref<34x96xf32, #tpu.memory_space<vmem>>, vector<34x8xf32>
    %c0_37 = arith.constant 0 : index
    %c32 = arith.constant 32 : index
    %78 = vector.load %arg49[%c0_37, %c32] : memref<34x96xf32, #tpu.memory_space<vmem>>, vector<34x8xf32>
    %c0_38 = arith.constant 0 : index
    %c64 = arith.constant 64 : index
    %79 = vector.load %arg49[%c0_38, %c64] : memref<34x96xf32, #tpu.memory_space<vmem>>, vector<34x8xf32>
    %cst_39 = arith.constant 0.353553385 : f32
    %80 = vector.broadcast %cst_39 : f32 to vector<34x8xf32>
    %81 = arith.mulf %77, %80 : vector<34x8xf32>
    %82 = tpu.transpose %78, [1, 0] : vector<34x8xf32> -> vector<8x34xf32>
    %cst_40 = arith.constant dense<0.000000e+00> : vector<34x34xf32>
    %83 = tpu.matmul %81, %82, %cst_40 {dimension_numbers = #tpu.dot_dimension_numbers<[1], [0], [0], [1], [0, 0, 1, 1], [], []>} : vector<34x8xf32>, vector<8x34xf32>, vector<34x34xf32> -> vector<34x34xf32>
    %84 = arith.addf %83, %45 : vector<34x34xf32>
    %cst_41 = arith.constant dense<0xFF800000> : vector<34xf32>
    %85 = vector.multi_reduction <maximumf>, %84, %cst_41 [1] : vector<34x34xf32> to vector<34xf32>
    %86 = vector.shape_cast %85 : vector<34xf32> to vector<34x1xf32>
    %87 = vector.broadcast %86 : vector<34x1xf32> to vector<34x34xf32>
    %88 = arith.subf %84, %87 : vector<34x34xf32>
    %89 = math.exp %88 : vector<34x34xf32>
    %cst_42 = arith.constant dense<0.000000e+00> : vector<34xf32>
    %90 = vector.multi_reduction <add>, %89, %cst_42 [1] : vector<34x34xf32> to vector<34xf32>
    %91 = vector.shape_cast %90 : vector<34xf32> to vector<34x1xf32>
    %92 = tpu.reciprocal %91 {approx = true} : vector<34x1xf32> -> vector<34x1xf32>
    %93 = vector.broadcast %92 : vector<34x1xf32> to vector<34x34xf32>
    %94 = arith.mulf %89, %93 : vector<34x34xf32>
    %cst_43 = arith.constant dense<0.000000e+00> : vector<34x8xf32>
    %95 = tpu.matmul %94, %79, %cst_43 {dimension_numbers = #tpu.dot_dimension_numbers<[1], [0], [0], [1], [0, 0, 1, 1], [], []>} : vector<34x34xf32>, vector<34x8xf32>, vector<34x8xf32> -> vector<34x8xf32>
    %c0_44 = arith.constant 0 : index
    %c0_45 = arith.constant 0 : index
    %96 = vector.load %arg10[%c0_44, %c0_45] : memref<32x32xf32, #tpu.memory_space<vmem>>, vector<8x32xf32>
    %cst_46 = arith.constant dense<0.000000e+00> : vector<34x32xf32>
    %97 = tpu.matmul %95, %96, %cst_46 {dimension_numbers = #tpu.dot_dimension_numbers<[1], [0], [0], [1], [0, 0, 1, 1], [], []>} : vector<34x8xf32>, vector<8x32xf32>, vector<34x32xf32> -> vector<34x32xf32>
    %98 = arith.addf %76, %97 : vector<34x32xf32>
    %c0_47 = arith.constant 0 : index
    %c8 = arith.constant 8 : index
    %99 = vector.load %arg49[%c0_47, %c8] : memref<34x96xf32, #tpu.memory_space<vmem>>, vector<34x8xf32>
    %c0_48 = arith.constant 0 : index
    %c40 = arith.constant 40 : index
    %100 = vector.load %arg49[%c0_48, %c40] : memref<34x96xf32, #tpu.memory_space<vmem>>, vector<34x8xf32>
    %c0_49 = arith.constant 0 : index
    %c72 = arith.constant 72 : index
    %101 = vector.load %arg49[%c0_49, %c72] : memref<34x96xf32, #tpu.memory_space<vmem>>, vector<34x8xf32>
    %cst_50 = arith.constant 0.353553385 : f32
    %102 = vector.broadcast %cst_50 : f32 to vector<34x8xf32>
    %103 = arith.mulf %99, %102 : vector<34x8xf32>
    %104 = tpu.transpose %100, [1, 0] : vector<34x8xf32> -> vector<8x34xf32>
    %cst_51 = arith.constant dense<0.000000e+00> : vector<34x34xf32>
    %105 = tpu.matmul %103, %104, %cst_51 {dimension_numbers = #tpu.dot_dimension_numbers<[1], [0], [0], [1], [0, 0, 1, 1], [], []>} : vector<34x8xf32>, vector<8x34xf32>, vector<34x34xf32> -> vector<34x34xf32>
    %106 = arith.addf %105, %45 : vector<34x34xf32>
    %cst_52 = arith.constant dense<0xFF800000> : vector<34xf32>
    %107 = vector.multi_reduction <maximumf>, %106, %cst_52 [1] : vector<34x34xf32> to vector<34xf32>
    %108 = vector.shape_cast %107 : vector<34xf32> to vector<34x1xf32>
    %109 = vector.broadcast %108 : vector<34x1xf32> to vector<34x34xf32>
    %110 = arith.subf %106, %109 : vector<34x34xf32>
    %111 = math.exp %110 : vector<34x34xf32>
    %cst_53 = arith.constant dense<0.000000e+00> : vector<34xf32>
    %112 = vector.multi_reduction <add>, %111, %cst_53 [1] : vector<34x34xf32> to vector<34xf32>
    %113 = vector.shape_cast %112 : vector<34xf32> to vector<34x1xf32>
    %114 = tpu.reciprocal %113 {approx = true} : vector<34x1xf32> -> vector<34x1xf32>
    %115 = vector.broadcast %114 : vector<34x1xf32> to vector<34x34xf32>
    %116 = arith.mulf %111, %115 : vector<34x34xf32>
    %cst_54 = arith.constant dense<0.000000e+00> : vector<34x8xf32>
    %117 = tpu.matmul %116, %101, %cst_54 {dimension_numbers = #tpu.dot_dimension_numbers<[1], [0], [0], [1], [0, 0, 1, 1], [], []>} : vector<34x34xf32>, vector<34x8xf32>, vector<34x8xf32> -> vector<34x8xf32>
    %c8_55 = arith.constant 8 : index
    %c0_56 = arith.constant 0 : index
    %118 = vector.load %arg10[%c8_55, %c0_56] : memref<32x32xf32, #tpu.memory_space<vmem>>, vector<8x32xf32>
    %cst_57 = arith.constant dense<0.000000e+00> : vector<34x32xf32>
    %119 = tpu.matmul %117, %118, %cst_57 {dimension_numbers = #tpu.dot_dimension_numbers<[1], [0], [0], [1], [0, 0, 1, 1], [], []>} : vector<34x8xf32>, vector<8x32xf32>, vector<34x32xf32> -> vector<34x32xf32>
    %120 = arith.addf %98, %119 : vector<34x32xf32>
    %c0_58 = arith.constant 0 : index
    %c16 = arith.constant 16 : index
    %121 = vector.load %arg49[%c0_58, %c16] : memref<34x96xf32, #tpu.memory_space<vmem>>, vector<34x8xf32>
    %c0_59 = arith.constant 0 : index
    %c48 = arith.constant 48 : index
    %122 = vector.load %arg49[%c0_59, %c48] : memref<34x96xf32, #tpu.memory_space<vmem>>, vector<34x8xf32>
    %c0_60 = arith.constant 0 : index
    %c80 = arith.constant 80 : index
    %123 = vector.load %arg49[%c0_60, %c80] : memref<34x96xf32, #tpu.memory_space<vmem>>, vector<34x8xf32>
    %cst_61 = arith.constant 0.353553385 : f32
    %124 = vector.broadcast %cst_61 : f32 to vector<34x8xf32>
    %125 = arith.mulf %121, %124 : vector<34x8xf32>
    %126 = tpu.transpose %122, [1, 0] : vector<34x8xf32> -> vector<8x34xf32>
    %cst_62 = arith.constant dense<0.000000e+00> : vector<34x34xf32>
    %127 = tpu.matmul %125, %126, %cst_62 {dimension_numbers = #tpu.dot_dimension_numbers<[1], [0], [0], [1], [0, 0, 1, 1], [], []>} : vector<34x8xf32>, vector<8x34xf32>, vector<34x34xf32> -> vector<34x34xf32>
    %128 = arith.addf %127, %45 : vector<34x34xf32>
    %cst_63 = arith.constant dense<0xFF800000> : vector<34xf32>
    %129 = vector.multi_reduction <maximumf>, %128, %cst_63 [1] : vector<34x34xf32> to vector<34xf32>
    %130 = vector.shape_cast %129 : vector<34xf32> to vector<34x1xf32>
    %131 = vector.broadcast %130 : vector<34x1xf32> to vector<34x34xf32>
    %132 = arith.subf %128, %131 : vector<34x34xf32>
    %133 = math.exp %132 : vector<34x34xf32>
    %cst_64 = arith.constant dense<0.000000e+00> : vector<34xf32>
    %134 = vector.multi_reduction <add>, %133, %cst_64 [1] : vector<34x34xf32> to vector<34xf32>
    %135 = vector.shape_cast %134 : vector<34xf32> to vector<34x1xf32>
    %136 = tpu.reciprocal %135 {approx = true} : vector<34x1xf32> -> vector<34x1xf32>
    %137 = vector.broadcast %136 : vector<34x1xf32> to vector<34x34xf32>
    %138 = arith.mulf %133, %137 : vector<34x34xf32>
    %cst_65 = arith.constant dense<0.000000e+00> : vector<34x8xf32>
    %139 = tpu.matmul %138, %123, %cst_65 {dimension_numbers = #tpu.dot_dimension_numbers<[1], [0], [0], [1], [0, 0, 1, 1], [], []>} : vector<34x34xf32>, vector<34x8xf32>, vector<34x8xf32> -> vector<34x8xf32>
    %c16_66 = arith.constant 16 : index
    %c0_67 = arith.constant 0 : index
    %140 = vector.load %arg10[%c16_66, %c0_67] : memref<32x32xf32, #tpu.memory_space<vmem>>, vector<8x32xf32>
    %cst_68 = arith.constant dense<0.000000e+00> : vector<34x32xf32>
    %141 = tpu.matmul %139, %140, %cst_68 {dimension_numbers = #tpu.dot_dimension_numbers<[1], [0], [0], [1], [0, 0, 1, 1], [], []>} : vector<34x8xf32>, vector<8x32xf32>, vector<34x32xf32> -> vector<34x32xf32>
    %142 = arith.addf %120, %141 : vector<34x32xf32>
    %c0_69 = arith.constant 0 : index
    %c24 = arith.constant 24 : index
    %143 = vector.load %arg49[%c0_69, %c24] : memref<34x96xf32, #tpu.memory_space<vmem>>, vector<34x8xf32>
    %c0_70 = arith.constant 0 : index
    %c56 = arith.constant 56 : index
    %144 = vector.load %arg49[%c0_70, %c56] : memref<34x96xf32, #tpu.memory_space<vmem>>, vector<34x8xf32>
    %c0_71 = arith.constant 0 : index
    %c88 = arith.constant 88 : index
    %145 = vector.load %arg49[%c0_71, %c88] : memref<34x96xf32, #tpu.memory_space<vmem>>, vector<34x8xf32>
    %cst_72 = arith.constant 0.353553385 : f32
    %146 = vector.broadcast %cst_72 : f32 to vector<34x8xf32>
    %147 = arith.mulf %143, %146 : vector<34x8xf32>
    %148 = tpu.transpose %144, [1, 0] : vector<34x8xf32> -> vector<8x34xf32>
    %cst_73 = arith.constant dense<0.000000e+00> : vector<34x34xf32>
    %149 = tpu.matmul %147, %148, %cst_73 {dimension_numbers = #tpu.dot_dimension_numbers<[1], [0], [0], [1], [0, 0, 1, 1], [], []>} : vector<34x8xf32>, vector<8x34xf32>, vector<34x34xf32> -> vector<34x34xf32>
    %150 = arith.addf %149, %45 : vector<34x34xf32>
    %cst_74 = arith.constant dense<0xFF800000> : vector<34xf32>
    %151 = vector.multi_reduction <maximumf>, %150, %cst_74 [1] : vector<34x34xf32> to vector<34xf32>
    %152 = vector.shape_cast %151 : vector<34xf32> to vector<34x1xf32>
    %153 = vector.broadcast %152 : vector<34x1xf32> to vector<34x34xf32>
    %154 = arith.subf %150, %153 : vector<34x34xf32>
    %155 = math.exp %154 : vector<34x34xf32>
    %cst_75 = arith.constant dense<0.000000e+00> : vector<34xf32>
    %156 = vector.multi_reduction <add>, %155, %cst_75 [1] : vector<34x34xf32> to vector<34xf32>
    %157 = vector.shape_cast %156 : vector<34xf32> to vector<34x1xf32>
    %158 = tpu.reciprocal %157 {approx = true} : vector<34x1xf32> -> vector<34x1xf32>
    %159 = vector.broadcast %158 : vector<34x1xf32> to vector<34x34xf32>
    %160 = arith.mulf %155, %159 : vector<34x34xf32>
    %cst_76 = arith.constant dense<0.000000e+00> : vector<34x8xf32>
    %161 = tpu.matmul %160, %145, %cst_76 {dimension_numbers = #tpu.dot_dimension_numbers<[1], [0], [0], [1], [0, 0, 1, 1], [], []>} : vector<34x34xf32>, vector<34x8xf32>, vector<34x8xf32> -> vector<34x8xf32>
    %c24_77 = arith.constant 24 : index
    %c0_78 = arith.constant 0 : index
    %162 = vector.load %arg10[%c24_77, %c0_78] : memref<32x32xf32, #tpu.memory_space<vmem>>, vector<8x32xf32>
    %cst_79 = arith.constant dense<0.000000e+00> : vector<34x32xf32>
    %163 = tpu.matmul %161, %162, %cst_79 {dimension_numbers = #tpu.dot_dimension_numbers<[1], [0], [0], [1], [0, 0, 1, 1], [], []>} : vector<34x8xf32>, vector<8x32xf32>, vector<34x32xf32> -> vector<34x32xf32>
    %164 = arith.addf %142, %163 : vector<34x32xf32>
    %165 = arith.addf %17, %164 : vector<34x32xf32>
    %c0_80 = arith.constant 0 : index
    %c0_81 = arith.constant 0 : index
    %166 = vector.load %arg11[%c0_80, %c0_81] : memref<1x32xf32, #tpu.memory_space<vmem>>, vector<1x32xf32>
    %167 = vector.broadcast %166 : vector<1x32xf32> to vector<34x32xf32>
    %168 = arith.addf %165, %167 : vector<34x32xf32>
    %c0_82 = arith.constant 0 : index
    %c0_83 = arith.constant 0 : index
    %169 = vector.load %arg12[%c0_82, %c0_83] : memref<1x32xf32, #tpu.memory_space<vmem>>, vector<1x32xf32>
    %c0_84 = arith.constant 0 : index
    %c0_85 = arith.constant 0 : index
    %170 = vector.load %arg13[%c0_84, %c0_85] : memref<1x32xf32, #tpu.memory_space<vmem>>, vector<1x32xf32>
    %cst_86 = arith.constant dense<0.000000e+00> : vector<34xf32>
    %171 = vector.multi_reduction <add>, %168, %cst_86 [1] : vector<34x32xf32> to vector<34xf32>
    %172 = vector.shape_cast %171 : vector<34xf32> to vector<34x1xf32>
    %cst_87 = arith.constant 3.200000e+01 : f32
    %173 = vector.broadcast %cst_87 : f32 to vector<34x1xf32>
    %174 = arith.divf %172, %173 : vector<34x1xf32>
    %175 = vector.broadcast %174 : vector<34x1xf32> to vector<34x32xf32>
    %176 = arith.subf %168, %175 : vector<34x32xf32>
    %177 = arith.mulf %176, %176 : vector<34x32xf32>
    %cst_88 = arith.constant dense<0.000000e+00> : vector<34xf32>
    %178 = vector.multi_reduction <add>, %177, %cst_88 [1] : vector<34x32xf32> to vector<34xf32>
    %179 = vector.shape_cast %178 : vector<34xf32> to vector<34x1xf32>
    %cst_89 = arith.constant 3.200000e+01 : f32
    %180 = vector.broadcast %cst_89 : f32 to vector<34x1xf32>
    %181 = arith.divf %179, %180 : vector<34x1xf32>
    %182 = vector.broadcast %174 : vector<34x1xf32> to vector<34x32xf32>
    %183 = arith.subf %168, %182 : vector<34x32xf32>
    %cst_90 = arith.constant 9.99999997E-7 : f32
    %184 = vector.broadcast %cst_90 : f32 to vector<34x1xf32>
    %185 = arith.addf %181, %184 : vector<34x1xf32>
    %186 = math.rsqrt %185 : vector<34x1xf32>
    %187 = vector.broadcast %186 : vector<34x1xf32> to vector<34x32xf32>
    %188 = arith.mulf %183, %187 : vector<34x32xf32>
    %189 = vector.broadcast %169 : vector<1x32xf32> to vector<34x32xf32>
    %190 = arith.mulf %188, %189 : vector<34x32xf32>
    %191 = vector.broadcast %170 : vector<1x32xf32> to vector<34x32xf32>
    %192 = arith.addf %190, %191 : vector<34x32xf32>
    %c0_91 = arith.constant 0 : index
    %c0_92 = arith.constant 0 : index
    %193 = vector.load %arg14[%c0_91, %c0_92] : memref<32x128xf32, #tpu.memory_space<vmem>>, vector<32x128xf32>
    %cst_93 = arith.constant dense<0.000000e+00> : vector<34x128xf32>
    %194 = tpu.matmul %192, %193, %cst_93 {dimension_numbers = #tpu.dot_dimension_numbers<[1], [0], [0], [1], [0, 0, 1, 1], [], []>} : vector<34x32xf32>, vector<32x128xf32>, vector<34x128xf32> -> vector<34x128xf32>
    %c0_94 = arith.constant 0 : index
    %c0_95 = arith.constant 0 : index
    %195 = vector.load %arg15[%c0_94, %c0_95] : memref<1x128xf32, #tpu.memory_space<vmem>>, vector<1x128xf32>
    %196 = vector.broadcast %195 : vector<1x128xf32> to vector<34x128xf32>
    %197 = arith.addf %194, %196 : vector<34x128xf32>
    %cst_96 = arith.constant 5.000000e-01 : f32
    %198 = vector.broadcast %cst_96 : f32 to vector<34x128xf32>
    %199 = arith.mulf %198, %197 : vector<34x128xf32>
    %cst_97 = arith.constant 4.471500e-02 : f32
    %200 = vector.broadcast %cst_97 : f32 to vector<34x128xf32>
    %201 = arith.mulf %200, %197 : vector<34x128xf32>
    %202 = arith.mulf %201, %197 : vector<34x128xf32>
    %203 = arith.mulf %202, %197 : vector<34x128xf32>
    %204 = arith.addf %197, %203 : vector<34x128xf32>
    %cst_98 = arith.constant 0.797884583 : f32
    %205 = vector.broadcast %cst_98 : f32 to vector<34x128xf32>
    %206 = arith.mulf %205, %204 : vector<34x128xf32>
    %207 = math.tanh %206 : vector<34x128xf32>
    %cst_99 = arith.constant 1.000000e+00 : f32
    %208 = vector.broadcast %cst_99 : f32 to vector<34x128xf32>
    %209 = arith.addf %208, %207 : vector<34x128xf32>
    %210 = arith.mulf %199, %209 : vector<34x128xf32>
    %c0_100 = arith.constant 0 : index
    %c0_101 = arith.constant 0 : index
    %211 = vector.load %arg16[%c0_100, %c0_101] : memref<128x32xf32, #tpu.memory_space<vmem>>, vector<128x32xf32>
    %cst_102 = arith.constant dense<0.000000e+00> : vector<34x32xf32>
    %212 = tpu.matmul %210, %211, %cst_102 {dimension_numbers = #tpu.dot_dimension_numbers<[1], [0], [0], [1], [0, 0, 1, 1], [], []>} : vector<34x128xf32>, vector<128x32xf32>, vector<34x32xf32> -> vector<34x32xf32>
    %c0_103 = arith.constant 0 : index
    %c0_104 = arith.constant 0 : index
    %213 = vector.load %arg17[%c0_103, %c0_104] : memref<1x32xf32, #tpu.memory_space<vmem>>, vector<1x32xf32>
    %214 = vector.broadcast %213 : vector<1x32xf32> to vector<34x32xf32>
    %215 = arith.addf %212, %214 : vector<34x32xf32>
    %216 = arith.addf %168, %215 : vector<34x32xf32>
    %c0_105 = arith.constant 0 : index
    %c0_106 = arith.constant 0 : index
    %217 = vector.load %arg18[%c0_105, %c0_106] : memref<1x32xf32, #tpu.memory_space<vmem>>, vector<1x32xf32>
    %c0_107 = arith.constant 0 : index
    %c0_108 = arith.constant 0 : index
    %218 = vector.load %arg19[%c0_107, %c0_108] : memref<1x32xf32, #tpu.memory_space<vmem>>, vector<1x32xf32>
    %cst_109 = arith.constant dense<0.000000e+00> : vector<34xf32>
    %219 = vector.multi_reduction <add>, %216, %cst_109 [1] : vector<34x32xf32> to vector<34xf32>
    %220 = vector.shape_cast %219 : vector<34xf32> to vector<34x1xf32>
    %cst_110 = arith.constant 3.200000e+01 : f32
    %221 = vector.broadcast %cst_110 : f32 to vector<34x1xf32>
    %222 = arith.divf %220, %221 : vector<34x1xf32>
    %223 = vector.broadcast %222 : vector<34x1xf32> to vector<34x32xf32>
    %224 = arith.subf %216, %223 : vector<34x32xf32>
    %225 = arith.mulf %224, %224 : vector<34x32xf32>
    %cst_111 = arith.constant dense<0.000000e+00> : vector<34xf32>
    %226 = vector.multi_reduction <add>, %225, %cst_111 [1] : vector<34x32xf32> to vector<34xf32>
    %227 = vector.shape_cast %226 : vector<34xf32> to vector<34x1xf32>
    %cst_112 = arith.constant 3.200000e+01 : f32
    %228 = vector.broadcast %cst_112 : f32 to vector<34x1xf32>
    %229 = arith.divf %227, %228 : vector<34x1xf32>
    %230 = vector.broadcast %222 : vector<34x1xf32> to vector<34x32xf32>
    %231 = arith.subf %216, %230 : vector<34x32xf32>
    %cst_113 = arith.constant 9.99999997E-7 : f32
    %232 = vector.broadcast %cst_113 : f32 to vector<34x1xf32>
    %233 = arith.addf %229, %232 : vector<34x1xf32>
    %234 = math.rsqrt %233 : vector<34x1xf32>
    %235 = vector.broadcast %234 : vector<34x1xf32> to vector<34x32xf32>
    %236 = arith.mulf %231, %235 : vector<34x32xf32>
    %237 = vector.broadcast %217 : vector<1x32xf32> to vector<34x32xf32>
    %238 = arith.mulf %236, %237 : vector<34x32xf32>
    %239 = vector.broadcast %218 : vector<1x32xf32> to vector<34x32xf32>
    %240 = arith.addf %238, %239 : vector<34x32xf32>
    %c0_114 = arith.constant 0 : index
    %c0_115 = arith.constant 0 : index
    %241 = vector.load %arg20[%c0_114, %c0_115] : memref<32x96xf32, #tpu.memory_space<vmem>>, vector<32x96xf32>
    %cst_116 = arith.constant dense<0.000000e+00> : vector<34x96xf32>
    %242 = tpu.matmul %240, %241, %cst_116 {dimension_numbers = #tpu.dot_dimension_numbers<[1], [0], [0], [1], [0, 0, 1, 1], [], []>} : vector<34x32xf32>, vector<32x96xf32>, vector<34x96xf32> -> vector<34x96xf32>
    %c0_117 = arith.constant 0 : index
    %c0_118 = arith.constant 0 : index
    %243 = vector.load %arg21[%c0_117, %c0_118] : memref<1x96xf32, #tpu.memory_space<vmem>>, vector<1x96xf32>
    %244 = vector.broadcast %243 : vector<1x96xf32> to vector<34x96xf32>
    %245 = arith.addf %242, %244 : vector<34x96xf32>
    %c0_119 = arith.constant 0 : index
    %c0_120 = arith.constant 0 : index
    %246 = vector.load %arg49[%c0_119, %c0_120] : memref<34x96xf32, #tpu.memory_space<vmem>>, vector<34x96xf32>
    tpu.vector_store %arg49[%c0_119, %c0_120], %245 {strides = array<i32>} : memref<34x96xf32, #tpu.memory_space<vmem>>, vector<34x96xf32>,
    %cst_121 = arith.constant 0.000000e+00 : f32
    %247 = vector.broadcast %cst_121 : f32 to vector<34x32xf32>
    %c0_122 = arith.constant 0 : index
    %c0_123 = arith.constant 0 : index
    %248 = vector.load %arg49[%c0_122, %c0_123] : memref<34x96xf32, #tpu.memory_space<vmem>>, vector<34x8xf32>
    %c0_124 = arith.constant 0 : index
    %c32_125 = arith.constant 32 : index
    %249 = vector.load %arg49[%c0_124, %c32_125] : memref<34x96xf32, #tpu.memory_space<vmem>>, vector<34x8xf32>
    %c0_126 = arith.constant 0 : index
    %c64_127 = arith.constant 64 : index
    %250 = vector.load %arg49[%c0_126, %c64_127] : memref<34x96xf32, #tpu.memory_space<vmem>>, vector<34x8xf32>
    %cst_128 = arith.constant 0.353553385 : f32
    %251 = vector.broadcast %cst_128 : f32 to vector<34x8xf32>
    %252 = arith.mulf %248, %251 : vector<34x8xf32>
    %253 = tpu.transpose %249, [1, 0] : vector<34x8xf32> -> vector<8x34xf32>
    %cst_129 = arith.constant dense<0.000000e+00> : vector<34x34xf32>
    %254 = tpu.matmul %252, %253, %cst_129 {dimension_numbers = #tpu.dot_dimension_numbers<[1], [0], [0], [1], [0, 0, 1, 1], [], []>} : vector<34x8xf32>, vector<8x34xf32>, vector<34x34xf32> -> vector<34x34xf32>
    %255 = arith.addf %254, %45 : vector<34x34xf32>
    %cst_130 = arith.constant dense<0xFF800000> : vector<34xf32>
    %256 = vector.multi_reduction <maximumf>, %255, %cst_130 [1] : vector<34x34xf32> to vector<34xf32>
    %257 = vector.shape_cast %256 : vector<34xf32> to vector<34x1xf32>
    %258 = vector.broadcast %257 : vector<34x1xf32> to vector<34x34xf32>
    %259 = arith.subf %255, %258 : vector<34x34xf32>
    %260 = math.exp %259 : vector<34x34xf32>
    %cst_131 = arith.constant dense<0.000000e+00> : vector<34xf32>
    %261 = vector.multi_reduction <add>, %260, %cst_131 [1] : vector<34x34xf32> to vector<34xf32>
    %262 = vector.shape_cast %261 : vector<34xf32> to vector<34x1xf32>
    %263 = tpu.reciprocal %262 {approx = true} : vector<34x1xf32> -> vector<34x1xf32>
    %264 = vector.broadcast %263 : vector<34x1xf32> to vector<34x34xf32>
    %265 = arith.mulf %260, %264 : vector<34x34xf32>
    %cst_132 = arith.constant dense<0.000000e+00> : vector<34x8xf32>
    %266 = tpu.matmul %265, %250, %cst_132 {dimension_numbers = #tpu.dot_dimension_numbers<[1], [0], [0], [1], [0, 0, 1, 1], [], []>} : vector<34x34xf32>, vector<34x8xf32>, vector<34x8xf32> -> vector<34x8xf32>
    %c0_133 = arith.constant 0 : index
    %c0_134 = arith.constant 0 : index
    %267 = vector.load %arg22[%c0_133, %c0_134] : memref<32x32xf32, #tpu.memory_space<vmem>>, vector<8x32xf32>
    %cst_135 = arith.constant dense<0.000000e+00> : vector<34x32xf32>
    %268 = tpu.matmul %266, %267, %cst_135 {dimension_numbers = #tpu.dot_dimension_numbers<[1], [0], [0], [1], [0, 0, 1, 1], [], []>} : vector<34x8xf32>, vector<8x32xf32>, vector<34x32xf32> -> vector<34x32xf32>
    %269 = arith.addf %247, %268 : vector<34x32xf32>
    %c0_136 = arith.constant 0 : index
    %c8_137 = arith.constant 8 : index
    %270 = vector.load %arg49[%c0_136, %c8_137] : memref<34x96xf32, #tpu.memory_space<vmem>>, vector<34x8xf32>
    %c0_138 = arith.constant 0 : index
    %c40_139 = arith.constant 40 : index
    %271 = vector.load %arg49[%c0_138, %c40_139] : memref<34x96xf32, #tpu.memory_space<vmem>>, vector<34x8xf32>
    %c0_140 = arith.constant 0 : index
    %c72_141 = arith.constant 72 : index
    %272 = vector.load %arg49[%c0_140, %c72_141] : memref<34x96xf32, #tpu.memory_space<vmem>>, vector<34x8xf32>
    %cst_142 = arith.constant 0.353553385 : f32
    %273 = vector.broadcast %cst_142 : f32 to vector<34x8xf32>
    %274 = arith.mulf %270, %273 : vector<34x8xf32>
    %275 = tpu.transpose %271, [1, 0] : vector<34x8xf32> -> vector<8x34xf32>
    %cst_143 = arith.constant dense<0.000000e+00> : vector<34x34xf32>
    %276 = tpu.matmul %274, %275, %cst_143 {dimension_numbers = #tpu.dot_dimension_numbers<[1], [0], [0], [1], [0, 0, 1, 1], [], []>} : vector<34x8xf32>, vector<8x34xf32>, vector<34x34xf32> -> vector<34x34xf32>
    %277 = arith.addf %276, %45 : vector<34x34xf32>
    %cst_144 = arith.constant dense<0xFF800000> : vector<34xf32>
    %278 = vector.multi_reduction <maximumf>, %277, %cst_144 [1] : vector<34x34xf32> to vector<34xf32>
    %279 = vector.shape_cast %278 : vector<34xf32> to vector<34x1xf32>
    %280 = vector.broadcast %279 : vector<34x1xf32> to vector<34x34xf32>
    %281 = arith.subf %277, %280 : vector<34x34xf32>
    %282 = math.exp %281 : vector<34x34xf32>
    %cst_145 = arith.constant dense<0.000000e+00> : vector<34xf32>
    %283 = vector.multi_reduction <add>, %282, %cst_145 [1] : vector<34x34xf32> to vector<34xf32>
    %284 = vector.shape_cast %283 : vector<34xf32> to vector<34x1xf32>
    %285 = tpu.reciprocal %284 {approx = true} : vector<34x1xf32> -> vector<34x1xf32>
    %286 = vector.broadcast %285 : vector<34x1xf32> to vector<34x34xf32>
    %287 = arith.mulf %282, %286 : vector<34x34xf32>
    %cst_146 = arith.constant dense<0.000000e+00> : vector<34x8xf32>
    %288 = tpu.matmul %287, %272, %cst_146 {dimension_numbers = #tpu.dot_dimension_numbers<[1], [0], [0], [1], [0, 0, 1, 1], [], []>} : vector<34x34xf32>, vector<34x8xf32>, vector<34x8xf32> -> vector<34x8xf32>
    %c8_147 = arith.constant 8 : index
    %c0_148 = arith.constant 0 : index
    %289 = vector.load %arg22[%c8_147, %c0_148] : memref<32x32xf32, #tpu.memory_space<vmem>>, vector<8x32xf32>
    %cst_149 = arith.constant dense<0.000000e+00> : vector<34x32xf32>
    %290 = tpu.matmul %288, %289, %cst_149 {dimension_numbers = #tpu.dot_dimension_numbers<[1], [0], [0], [1], [0, 0, 1, 1], [], []>} : vector<34x8xf32>, vector<8x32xf32>, vector<34x32xf32> -> vector<34x32xf32>
    %291 = arith.addf %269, %290 : vector<34x32xf32>
    %c0_150 = arith.constant 0 : index
    %c16_151 = arith.constant 16 : index
    %292 = vector.load %arg49[%c0_150, %c16_151] : memref<34x96xf32, #tpu.memory_space<vmem>>, vector<34x8xf32>
    %c0_152 = arith.constant 0 : index
    %c48_153 = arith.constant 48 : index
    %293 = vector.load %arg49[%c0_152, %c48_153] : memref<34x96xf32, #tpu.memory_space<vmem>>, vector<34x8xf32>
    %c0_154 = arith.constant 0 : index
    %c80_155 = arith.constant 80 : index
    %294 = vector.load %arg49[%c0_154, %c80_155] : memref<34x96xf32, #tpu.memory_space<vmem>>, vector<34x8xf32>
    %cst_156 = arith.constant 0.353553385 : f32
    %295 = vector.broadcast %cst_156 : f32 to vector<34x8xf32>
    %296 = arith.mulf %292, %295 : vector<34x8xf32>
    %297 = tpu.transpose %293, [1, 0] : vector<34x8xf32> -> vector<8x34xf32>
    %cst_157 = arith.constant dense<0.000000e+00> : vector<34x34xf32>
    %298 = tpu.matmul %296, %297, %cst_157 {dimension_numbers = #tpu.dot_dimension_numbers<[1], [0], [0], [1], [0, 0, 1, 1], [], []>} : vector<34x8xf32>, vector<8x34xf32>, vector<34x34xf32> -> vector<34x34xf32>
    %299 = arith.addf %298, %45 : vector<34x34xf32>
    %cst_158 = arith.constant dense<0xFF800000> : vector<34xf32>
    %300 = vector.multi_reduction <maximumf>, %299, %cst_158 [1] : vector<34x34xf32> to vector<34xf32>
    %301 = vector.shape_cast %300 : vector<34xf32> to vector<34x1xf32>
    %302 = vector.broadcast %301 : vector<34x1xf32> to vector<34x34xf32>
    %303 = arith.subf %299, %302 : vector<34x34xf32>
    %304 = math.exp %303 : vector<34x34xf32>
    %cst_159 = arith.constant dense<0.000000e+00> : vector<34xf32>
    %305 = vector.multi_reduction <add>, %304, %cst_159 [1] : vector<34x34xf32> to vector<34xf32>
    %306 = vector.shape_cast %305 : vector<34xf32> to vector<34x1xf32>
    %307 = tpu.reciprocal %306 {approx = true} : vector<34x1xf32> -> vector<34x1xf32>
    %308 = vector.broadcast %307 : vector<34x1xf32> to vector<34x34xf32>
    %309 = arith.mulf %304, %308 : vector<34x34xf32>
    %cst_160 = arith.constant dense<0.000000e+00> : vector<34x8xf32>
    %310 = tpu.matmul %309, %294, %cst_160 {dimension_numbers = #tpu.dot_dimension_numbers<[1], [0], [0], [1], [0, 0, 1, 1], [], []>} : vector<34x34xf32>, vector<34x8xf32>, vector<34x8xf32> -> vector<34x8xf32>
    %c16_161 = arith.constant 16 : index
    %c0_162 = arith.constant 0 : index
    %311 = vector.load %arg22[%c16_161, %c0_162] : memref<32x32xf32, #tpu.memory_space<vmem>>, vector<8x32xf32>
    %cst_163 = arith.constant dense<0.000000e+00> : vector<34x32xf32>
    %312 = tpu.matmul %310, %311, %cst_163 {dimension_numbers = #tpu.dot_dimension_numbers<[1], [0], [0], [1], [0, 0, 1, 1], [], []>} : vector<34x8xf32>, vector<8x32xf32>, vector<34x32xf32> -> vector<34x32xf32>
    %313 = arith.addf %291, %312 : vector<34x32xf32>
    %c0_164 = arith.constant 0 : index
    %c24_165 = arith.constant 24 : index
    %314 = vector.load %arg49[%c0_164, %c24_165] : memref<34x96xf32, #tpu.memory_space<vmem>>, vector<34x8xf32>
    %c0_166 = arith.constant 0 : index
    %c56_167 = arith.constant 56 : index
    %315 = vector.load %arg49[%c0_166, %c56_167] : memref<34x96xf32, #tpu.memory_space<vmem>>, vector<34x8xf32>
    %c0_168 = arith.constant 0 : index
    %c88_169 = arith.constant 88 : index
    %316 = vector.load %arg49[%c0_168, %c88_169] : memref<34x96xf32, #tpu.memory_space<vmem>>, vector<34x8xf32>
    %cst_170 = arith.constant 0.353553385 : f32
    %317 = vector.broadcast %cst_170 : f32 to vector<34x8xf32>
    %318 = arith.mulf %314, %317 : vector<34x8xf32>
    %319 = tpu.transpose %315, [1, 0] : vector<34x8xf32> -> vector<8x34xf32>
    %cst_171 = arith.constant dense<0.000000e+00> : vector<34x34xf32>
    %320 = tpu.matmul %318, %319, %cst_171 {dimension_numbers = #tpu.dot_dimension_numbers<[1], [0], [0], [1], [0, 0, 1, 1], [], []>} : vector<34x8xf32>, vector<8x34xf32>, vector<34x34xf32> -> vector<34x34xf32>
    %321 = arith.addf %320, %45 : vector<34x34xf32>
    %cst_172 = arith.constant dense<0xFF800000> : vector<34xf32>
    %322 = vector.multi_reduction <maximumf>, %321, %cst_172 [1] : vector<34x34xf32> to vector<34xf32>
    %323 = vector.shape_cast %322 : vector<34xf32> to vector<34x1xf32>
    %324 = vector.broadcast %323 : vector<34x1xf32> to vector<34x34xf32>
    %325 = arith.subf %321, %324 : vector<34x34xf32>
    %326 = math.exp %325 : vector<34x34xf32>
    %cst_173 = arith.constant dense<0.000000e+00> : vector<34xf32>
    %327 = vector.multi_reduction <add>, %326, %cst_173 [1] : vector<34x34xf32> to vector<34xf32>
    %328 = vector.shape_cast %327 : vector<34xf32> to vector<34x1xf32>
    %329 = tpu.reciprocal %328 {approx = true} : vector<34x1xf32> -> vector<34x1xf32>
    %330 = vector.broadcast %329 : vector<34x1xf32> to vector<34x34xf32>
    %331 = arith.mulf %326, %330 : vector<34x34xf32>
    %cst_174 = arith.constant dense<0.000000e+00> : vector<34x8xf32>
    %332 = tpu.matmul %331, %316, %cst_174 {dimension_numbers = #tpu.dot_dimension_numbers<[1], [0], [0], [1], [0, 0, 1, 1], [], []>} : vector<34x34xf32>, vector<34x8xf32>, vector<34x8xf32> -> vector<34x8xf32>
    %c24_175 = arith.constant 24 : index
    %c0_176 = arith.constant 0 : index
    %333 = vector.load %arg22[%c24_175, %c0_176] : memref<32x32xf32, #tpu.memory_space<vmem>>, vector<8x32xf32>
    %cst_177 = arith.constant dense<0.000000e+00> : vector<34x32xf32>
    %334 = tpu.matmul %332, %333, %cst_177 {dimension_numbers = #tpu.dot_dimension_numbers<[1], [0], [0], [1], [0, 0, 1, 1], [], []>} : vector<34x8xf32>, vector<8x32xf32>, vector<34x32xf32> -> vector<34x32xf32>
    %335 = arith.addf %313, %334 : vector<34x32xf32>
    %336 = arith.addf %216, %335 : vector<34x32xf32>
    %c0_178 = arith.constant 0 : index
    %c0_179 = arith.constant 0 : index
    %337 = vector.load %arg23[%c0_178, %c0_179] : memref<1x32xf32, #tpu.memory_space<vmem>>, vector<1x32xf32>
    %338 = vector.broadcast %337 : vector<1x32xf32> to vector<34x32xf32>
    %339 = arith.addf %336, %338 : vector<34x32xf32>
    %c0_180 = arith.constant 0 : index
    %c0_181 = arith.constant 0 : index
    %340 = vector.load %arg24[%c0_180, %c0_181] : memref<1x32xf32, #tpu.memory_space<vmem>>, vector<1x32xf32>
    %c0_182 = arith.constant 0 : index
    %c0_183 = arith.constant 0 : index
    %341 = vector.load %arg25[%c0_182, %c0_183] : memref<1x32xf32, #tpu.memory_space<vmem>>, vector<1x32xf32>
    %cst_184 = arith.constant dense<0.000000e+00> : vector<34xf32>
    %342 = vector.multi_reduction <add>, %339, %cst_184 [1] : vector<34x32xf32> to vector<34xf32>
    %343 = vector.shape_cast %342 : vector<34xf32> to vector<34x1xf32>
    %cst_185 = arith.constant 3.200000e+01 : f32
    %344 = vector.broadcast %cst_185 : f32 to vector<34x1xf32>
    %345 = arith.divf %343, %344 : vector<34x1xf32>
    %346 = vector.broadcast %345 : vector<34x1xf32> to vector<34x32xf32>
    %347 = arith.subf %339, %346 : vector<34x32xf32>
    %348 = arith.mulf %347, %347 : vector<34x32xf32>
    %cst_186 = arith.constant dense<0.000000e+00> : vector<34xf32>
    %349 = vector.multi_reduction <add>, %348, %cst_186 [1] : vector<34x32xf32> to vector<34xf32>
    %350 = vector.shape_cast %349 : vector<34xf32> to vector<34x1xf32>
    %cst_187 = arith.constant 3.200000e+01 : f32
    %351 = vector.broadcast %cst_187 : f32 to vector<34x1xf32>
    %352 = arith.divf %350, %351 : vector<34x1xf32>
    %353 = vector.broadcast %345 : vector<34x1xf32> to vector<34x32xf32>
    %354 = arith.subf %339, %353 : vector<34x32xf32>
    %cst_188 = arith.constant 9.99999997E-7 : f32
    %355 = vector.broadcast %cst_188 : f32 to vector<34x1xf32>
    %356 = arith.addf %352, %355 : vector<34x1xf32>
    %357 = math.rsqrt %356 : vector<34x1xf32>
    %358 = vector.broadcast %357 : vector<34x1xf32> to vector<34x32xf32>
    %359 = arith.mulf %354, %358 : vector<34x32xf32>
    %360 = vector.broadcast %340 : vector<1x32xf32> to vector<34x32xf32>
    %361 = arith.mulf %359, %360 : vector<34x32xf32>
    %362 = vector.broadcast %341 : vector<1x32xf32> to vector<34x32xf32>
    %363 = arith.addf %361, %362 : vector<34x32xf32>
    %c0_189 = arith.constant 0 : index
    %c0_190 = arith.constant 0 : index
    %364 = vector.load %arg26[%c0_189, %c0_190] : memref<32x128xf32, #tpu.memory_space<vmem>>, vector<32x128xf32>
    %cst_191 = arith.constant dense<0.000000e+00> : vector<34x128xf32>
    %365 = tpu.matmul %363, %364, %cst_191 {dimension_numbers = #tpu.dot_dimension_numbers<[1], [0], [0], [1], [0, 0, 1, 1], [], []>} : vector<34x32xf32>, vector<32x128xf32>, vector<34x128xf32> -> vector<34x128xf32>
    %c0_192 = arith.constant 0 : index
    %c0_193 = arith.constant 0 : index
    %366 = vector.load %arg27[%c0_192, %c0_193] : memref<1x128xf32, #tpu.memory_space<vmem>>, vector<1x128xf32>
    %367 = vector.broadcast %366 : vector<1x128xf32> to vector<34x128xf32>
    %368 = arith.addf %365, %367 : vector<34x128xf32>
    %cst_194 = arith.constant 5.000000e-01 : f32
    %369 = vector.broadcast %cst_194 : f32 to vector<34x128xf32>
    %370 = arith.mulf %369, %368 : vector<34x128xf32>
    %cst_195 = arith.constant 4.471500e-02 : f32
    %371 = vector.broadcast %cst_195 : f32 to vector<34x128xf32>
    %372 = arith.mulf %371, %368 : vector<34x128xf32>
    %373 = arith.mulf %372, %368 : vector<34x128xf32>
    %374 = arith.mulf %373, %368 : vector<34x128xf32>
    %375 = arith.addf %368, %374 : vector<34x128xf32>
    %cst_196 = arith.constant 0.797884583 : f32
    %376 = vector.broadcast %cst_196 : f32 to vector<34x128xf32>
    %377 = arith.mulf %376, %375 : vector<34x128xf32>
    %378 = math.tanh %377 : vector<34x128xf32>
    %cst_197 = arith.constant 1.000000e+00 : f32
    %379 = vector.broadcast %cst_197 : f32 to vector<34x128xf32>
    %380 = arith.addf %379, %378 : vector<34x128xf32>
    %381 = arith.mulf %370, %380 : vector<34x128xf32>
    %c0_198 = arith.constant 0 : index
    %c0_199 = arith.constant 0 : index
    %382 = vector.load %arg28[%c0_198, %c0_199] : memref<128x32xf32, #tpu.memory_space<vmem>>, vector<128x32xf32>
    %cst_200 = arith.constant dense<0.000000e+00> : vector<34x32xf32>
    %383 = tpu.matmul %381, %382, %cst_200 {dimension_numbers = #tpu.dot_dimension_numbers<[1], [0], [0], [1], [0, 0, 1, 1], [], []>} : vector<34x128xf32>, vector<128x32xf32>, vector<34x32xf32> -> vector<34x32xf32>
    %c0_201 = arith.constant 0 : index
    %c0_202 = arith.constant 0 : index
    %384 = vector.load %arg29[%c0_201, %c0_202] : memref<1x32xf32, #tpu.memory_space<vmem>>, vector<1x32xf32>
    %385 = vector.broadcast %384 : vector<1x32xf32> to vector<34x32xf32>
    %386 = arith.addf %383, %385 : vector<34x32xf32>
    %387 = arith.addf %339, %386 : vector<34x32xf32>
    %c0_203 = arith.constant 0 : index
    %c0_204 = arith.constant 0 : index
    %388 = vector.load %arg30[%c0_203, %c0_204] : memref<1x32xf32, #tpu.memory_space<vmem>>, vector<1x32xf32>
    %c0_205 = arith.constant 0 : index
    %c0_206 = arith.constant 0 : index
    %389 = vector.load %arg31[%c0_205, %c0_206] : memref<1x32xf32, #tpu.memory_space<vmem>>, vector<1x32xf32>
    %cst_207 = arith.constant dense<0.000000e+00> : vector<34xf32>
    %390 = vector.multi_reduction <add>, %216, %cst_207 [1] : vector<34x32xf32> to vector<34xf32>
    %391 = vector.shape_cast %390 : vector<34xf32> to vector<34x1xf32>
    %cst_208 = arith.constant 3.200000e+01 : f32
    %392 = vector.broadcast %cst_208 : f32 to vector<34x1xf32>
    %393 = arith.divf %391, %392 : vector<34x1xf32>
    %394 = vector.broadcast %393 : vector<34x1xf32> to vector<34x32xf32>
    %395 = arith.subf %216, %394 : vector<34x32xf32>
    %396 = arith.mulf %395, %395 : vector<34x32xf32>
    %cst_209 = arith.constant dense<0.000000e+00> : vector<34xf32>
    %397 = vector.multi_reduction <add>, %396, %cst_209 [1] : vector<34x32xf32> to vector<34xf32>
    %398 = vector.shape_cast %397 : vector<34xf32> to vector<34x1xf32>
    %cst_210 = arith.constant 3.200000e+01 : f32
    %399 = vector.broadcast %cst_210 : f32 to vector<34x1xf32>
    %400 = arith.divf %398, %399 : vector<34x1xf32>
    %401 = vector.broadcast %393 : vector<34x1xf32> to vector<34x32xf32>
    %402 = arith.subf %216, %401 : vector<34x32xf32>
    %cst_211 = arith.constant 9.99999997E-7 : f32
    %403 = vector.broadcast %cst_211 : f32 to vector<34x1xf32>
    %404 = arith.addf %400, %403 : vector<34x1xf32>
    %405 = math.rsqrt %404 : vector<34x1xf32>
    %406 = vector.broadcast %405 : vector<34x1xf32> to vector<34x32xf32>
    %407 = arith.mulf %402, %406 : vector<34x32xf32>
    %408 = vector.broadcast %388 : vector<1x32xf32> to vector<34x32xf32>
    %409 = arith.mulf %407, %408 : vector<34x32xf32>
    %410 = vector.broadcast %389 : vector<1x32xf32> to vector<34x32xf32>
    %411 = arith.addf %409, %410 : vector<34x32xf32>
    %c0_212 = arith.constant 0 : index
    %c0_213 = arith.constant 0 : index
    %412 = vector.load %arg32[%c0_212, %c0_213] : memref<32x96xf32, #tpu.memory_space<vmem>>, vector<32x96xf32>
    %cst_214 = arith.constant dense<0.000000e+00> : vector<34x96xf32>
    %413 = tpu.matmul %411, %412, %cst_214 {dimension_numbers = #tpu.dot_dimension_numbers<[1], [0], [0], [1], [0, 0, 1, 1], [], []>} : vector<34x32xf32>, vector<32x96xf32>, vector<34x96xf32> -> vector<34x96xf32>
    %c0_215 = arith.constant 0 : index
    %c0_216 = arith.constant 0 : index
    %414 = vector.load %arg33[%c0_215, %c0_216] : memref<1x96xf32, #tpu.memory_space<vmem>>, vector<1x96xf32>
    %415 = vector.broadcast %414 : vector<1x96xf32> to vector<34x96xf32>
    %416 = arith.addf %413, %415 : vector<34x96xf32>
    %c0_217 = arith.constant 0 : index
    %c0_218 = arith.constant 0 : index
    %417 = vector.load %arg49[%c0_217, %c0_218] : memref<34x96xf32, #tpu.memory_space<vmem>>, vector<34x96xf32>
    tpu.vector_store %arg49[%c0_217, %c0_218], %416 {strides = array<i32>} : memref<34x96xf32, #tpu.memory_space<vmem>>, vector<34x96xf32>,
    %cst_219 = arith.constant 0.000000e+00 : f32
    %418 = vector.broadcast %cst_219 : f32 to vector<34x32xf32>
    %c0_220 = arith.constant 0 : index
    %c0_221 = arith.constant 0 : index
    %419 = vector.load %arg49[%c0_220, %c0_221] : memref<34x96xf32, #tpu.memory_space<vmem>>, vector<34x8xf32>
    %c0_222 = arith.constant 0 : index
    %c32_223 = arith.constant 32 : index
    %420 = vector.load %arg49[%c0_222, %c32_223] : memref<34x96xf32, #tpu.memory_space<vmem>>, vector<34x8xf32>
    %c0_224 = arith.constant 0 : index
    %c64_225 = arith.constant 64 : index
    %421 = vector.load %arg49[%c0_224, %c64_225] : memref<34x96xf32, #tpu.memory_space<vmem>>, vector<34x8xf32>
    %cst_226 = arith.constant 0.353553385 : f32
    %422 = vector.broadcast %cst_226 : f32 to vector<34x8xf32>
    %423 = arith.mulf %419, %422 : vector<34x8xf32>
    %424 = tpu.transpose %420, [1, 0] : vector<34x8xf32> -> vector<8x34xf32>
    %cst_227 = arith.constant dense<0.000000e+00> : vector<34x34xf32>
    %425 = tpu.matmul %423, %424, %cst_227 {dimension_numbers = #tpu.dot_dimension_numbers<[1], [0], [0], [1], [0, 0, 1, 1], [], []>} : vector<34x8xf32>, vector<8x34xf32>, vector<34x34xf32> -> vector<34x34xf32>
    %426 = arith.addf %425, %45 : vector<34x34xf32>
    %cst_228 = arith.constant dense<0xFF800000> : vector<34xf32>
    %427 = vector.multi_reduction <maximumf>, %426, %cst_228 [1] : vector<34x34xf32> to vector<34xf32>
    %428 = vector.shape_cast %427 : vector<34xf32> to vector<34x1xf32>
    %429 = vector.broadcast %428 : vector<34x1xf32> to vector<34x34xf32>
    %430 = arith.subf %426, %429 : vector<34x34xf32>
    %431 = math.exp %430 : vector<34x34xf32>
    %cst_229 = arith.constant dense<0.000000e+00> : vector<34xf32>
    %432 = vector.multi_reduction <add>, %431, %cst_229 [1] : vector<34x34xf32> to vector<34xf32>
    %433 = vector.shape_cast %432 : vector<34xf32> to vector<34x1xf32>
    %434 = tpu.reciprocal %433 {approx = true} : vector<34x1xf32> -> vector<34x1xf32>
    %435 = vector.broadcast %434 : vector<34x1xf32> to vector<34x34xf32>
    %436 = arith.mulf %431, %435 : vector<34x34xf32>
    %cst_230 = arith.constant dense<0.000000e+00> : vector<34x8xf32>
    %437 = tpu.matmul %436, %421, %cst_230 {dimension_numbers = #tpu.dot_dimension_numbers<[1], [0], [0], [1], [0, 0, 1, 1], [], []>} : vector<34x34xf32>, vector<34x8xf32>, vector<34x8xf32> -> vector<34x8xf32>
    %c0_231 = arith.constant 0 : index
    %c0_232 = arith.constant 0 : index
    %438 = vector.load %arg34[%c0_231, %c0_232] : memref<32x32xf32, #tpu.memory_space<vmem>>, vector<8x32xf32>
    %cst_233 = arith.constant dense<0.000000e+00> : vector<34x32xf32>
    %439 = tpu.matmul %437, %438, %cst_233 {dimension_numbers = #tpu.dot_dimension_numbers<[1], [0], [0], [1], [0, 0, 1, 1], [], []>} : vector<34x8xf32>, vector<8x32xf32>, vector<34x32xf32> -> vector<34x32xf32>
    %440 = arith.addf %418, %439 : vector<34x32xf32>
    %c0_234 = arith.constant 0 : index
    %c8_235 = arith.constant 8 : index
    %441 = vector.load %arg49[%c0_234, %c8_235] : memref<34x96xf32, #tpu.memory_space<vmem>>, vector<34x8xf32>
    %c0_236 = arith.constant 0 : index
    %c40_237 = arith.constant 40 : index
    %442 = vector.load %arg49[%c0_236, %c40_237] : memref<34x96xf32, #tpu.memory_space<vmem>>, vector<34x8xf32>
    %c0_238 = arith.constant 0 : index
    %c72_239 = arith.constant 72 : index
    %443 = vector.load %arg49[%c0_238, %c72_239] : memref<34x96xf32, #tpu.memory_space<vmem>>, vector<34x8xf32>
    %cst_240 = arith.constant 0.353553385 : f32
    %444 = vector.broadcast %cst_240 : f32 to vector<34x8xf32>
    %445 = arith.mulf %441, %444 : vector<34x8xf32>
    %446 = tpu.transpose %442, [1, 0] : vector<34x8xf32> -> vector<8x34xf32>
    %cst_241 = arith.constant dense<0.000000e+00> : vector<34x34xf32>
    %447 = tpu.matmul %445, %446, %cst_241 {dimension_numbers = #tpu.dot_dimension_numbers<[1], [0], [0], [1], [0, 0, 1, 1], [], []>} : vector<34x8xf32>, vector<8x34xf32>, vector<34x34xf32> -> vector<34x34xf32>
    %448 = arith.addf %447, %45 : vector<34x34xf32>
    %cst_242 = arith.constant dense<0xFF800000> : vector<34xf32>
    %449 = vector.multi_reduction <maximumf>, %448, %cst_242 [1] : vector<34x34xf32> to vector<34xf32>
    %450 = vector.shape_cast %449 : vector<34xf32> to vector<34x1xf32>
    %451 = vector.broadcast %450 : vector<34x1xf32> to vector<34x34xf32>
    %452 = arith.subf %448, %451 : vector<34x34xf32>
    %453 = math.exp %452 : vector<34x34xf32>
    %cst_243 = arith.constant dense<0.000000e+00> : vector<34xf32>
    %454 = vector.multi_reduction <add>, %453, %cst_243 [1] : vector<34x34xf32> to vector<34xf32>
    %455 = vector.shape_cast %454 : vector<34xf32> to vector<34x1xf32>
    %456 = tpu.reciprocal %455 {approx = true} : vector<34x1xf32> -> vector<34x1xf32>
    %457 = vector.broadcast %456 : vector<34x1xf32> to vector<34x34xf32>
    %458 = arith.mulf %453, %457 : vector<34x34xf32>
    %cst_244 = arith.constant dense<0.000000e+00> : vector<34x8xf32>
    %459 = tpu.matmul %458, %443, %cst_244 {dimension_numbers = #tpu.dot_dimension_numbers<[1], [0], [0], [1], [0, 0, 1, 1], [], []>} : vector<34x34xf32>, vector<34x8xf32>, vector<34x8xf32> -> vector<34x8xf32>
    %c8_245 = arith.constant 8 : index
    %c0_246 = arith.constant 0 : index
    %460 = vector.load %arg34[%c8_245, %c0_246] : memref<32x32xf32, #tpu.memory_space<vmem>>, vector<8x32xf32>
    %cst_247 = arith.constant dense<0.000000e+00> : vector<34x32xf32>
    %461 = tpu.matmul %459, %460, %cst_247 {dimension_numbers = #tpu.dot_dimension_numbers<[1], [0], [0], [1], [0, 0, 1, 1], [], []>} : vector<34x8xf32>, vector<8x32xf32>, vector<34x32xf32> -> vector<34x32xf32>
    %462 = arith.addf %440, %461 : vector<34x32xf32>
    %c0_248 = arith.constant 0 : index
    %c16_249 = arith.constant 16 : index
    %463 = vector.load %arg49[%c0_248, %c16_249] : memref<34x96xf32, #tpu.memory_space<vmem>>, vector<34x8xf32>
    %c0_250 = arith.constant 0 : index
    %c48_251 = arith.constant 48 : index
    %464 = vector.load %arg49[%c0_250, %c48_251] : memref<34x96xf32, #tpu.memory_space<vmem>>, vector<34x8xf32>
    %c0_252 = arith.constant 0 : index
    %c80_253 = arith.constant 80 : index
    %465 = vector.load %arg49[%c0_252, %c80_253] : memref<34x96xf32, #tpu.memory_space<vmem>>, vector<34x8xf32>
    %cst_254 = arith.constant 0.353553385 : f32
    %466 = vector.broadcast %cst_254 : f32 to vector<34x8xf32>
    %467 = arith.mulf %463, %466 : vector<34x8xf32>
    %468 = tpu.transpose %464, [1, 0] : vector<34x8xf32> -> vector<8x34xf32>
    %cst_255 = arith.constant dense<0.000000e+00> : vector<34x34xf32>
    %469 = tpu.matmul %467, %468, %cst_255 {dimension_numbers = #tpu.dot_dimension_numbers<[1], [0], [0], [1], [0, 0, 1, 1], [], []>} : vector<34x8xf32>, vector<8x34xf32>, vector<34x34xf32> -> vector<34x34xf32>
    %470 = arith.addf %469, %45 : vector<34x34xf32>
    %cst_256 = arith.constant dense<0xFF800000> : vector<34xf32>
    %471 = vector.multi_reduction <maximumf>, %470, %cst_256 [1] : vector<34x34xf32> to vector<34xf32>
    %472 = vector.shape_cast %471 : vector<34xf32> to vector<34x1xf32>
    %473 = vector.broadcast %472 : vector<34x1xf32> to vector<34x34xf32>
    %474 = arith.subf %470, %473 : vector<34x34xf32>
    %475 = math.exp %474 : vector<34x34xf32>
    %cst_257 = arith.constant dense<0.000000e+00> : vector<34xf32>
    %476 = vector.multi_reduction <add>, %475, %cst_257 [1] : vector<34x34xf32> to vector<34xf32>
    %477 = vector.shape_cast %476 : vector<34xf32> to vector<34x1xf32>
    %478 = tpu.reciprocal %477 {approx = true} : vector<34x1xf32> -> vector<34x1xf32>
    %479 = vector.broadcast %478 : vector<34x1xf32> to vector<34x34xf32>
    %480 = arith.mulf %475, %479 : vector<34x34xf32>
    %cst_258 = arith.constant dense<0.000000e+00> : vector<34x8xf32>
    %481 = tpu.matmul %480, %465, %cst_258 {dimension_numbers = #tpu.dot_dimension_numbers<[1], [0], [0], [1], [0, 0, 1, 1], [], []>} : vector<34x34xf32>, vector<34x8xf32>, vector<34x8xf32> -> vector<34x8xf32>
    %c16_259 = arith.constant 16 : index
    %c0_260 = arith.constant 0 : index
    %482 = vector.load %arg34[%c16_259, %c0_260] : memref<32x32xf32, #tpu.memory_space<vmem>>, vector<8x32xf32>
    %cst_261 = arith.constant dense<0.000000e+00> : vector<34x32xf32>
    %483 = tpu.matmul %481, %482, %cst_261 {dimension_numbers = #tpu.dot_dimension_numbers<[1], [0], [0], [1], [0, 0, 1, 1], [], []>} : vector<34x8xf32>, vector<8x32xf32>, vector<34x32xf32> -> vector<34x32xf32>
    %484 = arith.addf %462, %483 : vector<34x32xf32>
    %c0_262 = arith.constant 0 : index
    %c24_263 = arith.constant 24 : index
    %485 = vector.load %arg49[%c0_262, %c24_263] : memref<34x96xf32, #tpu.memory_space<vmem>>, vector<34x8xf32>
    %c0_264 = arith.constant 0 : index
    %c56_265 = arith.constant 56 : index
    %486 = vector.load %arg49[%c0_264, %c56_265] : memref<34x96xf32, #tpu.memory_space<vmem>>, vector<34x8xf32>
    %c0_266 = arith.constant 0 : index
    %c88_267 = arith.constant 88 : index
    %487 = vector.load %arg49[%c0_266, %c88_267] : memref<34x96xf32, #tpu.memory_space<vmem>>, vector<34x8xf32>
    %cst_268 = arith.constant 0.353553385 : f32
    %488 = vector.broadcast %cst_268 : f32 to vector<34x8xf32>
    %489 = arith.mulf %485, %488 : vector<34x8xf32>
    %490 = tpu.transpose %486, [1, 0] : vector<34x8xf32> -> vector<8x34xf32>
    %cst_269 = arith.constant dense<0.000000e+00> : vector<34x34xf32>
    %491 = tpu.matmul %489, %490, %cst_269 {dimension_numbers = #tpu.dot_dimension_numbers<[1], [0], [0], [1], [0, 0, 1, 1], [], []>} : vector<34x8xf32>, vector<8x34xf32>, vector<34x34xf32> -> vector<34x34xf32>
    %492 = arith.addf %491, %45 : vector<34x34xf32>
    %cst_270 = arith.constant dense<0xFF800000> : vector<34xf32>
    %493 = vector.multi_reduction <maximumf>, %492, %cst_270 [1] : vector<34x34xf32> to vector<34xf32>
    %494 = vector.shape_cast %493 : vector<34xf32> to vector<34x1xf32>
    %495 = vector.broadcast %494 : vector<34x1xf32> to vector<34x34xf32>
    %496 = arith.subf %492, %495 : vector<34x34xf32>
    %497 = math.exp %496 : vector<34x34xf32>
    %cst_271 = arith.constant dense<0.000000e+00> : vector<34xf32>
    %498 = vector.multi_reduction <add>, %497, %cst_271 [1] : vector<34x34xf32> to vector<34xf32>
    %499 = vector.shape_cast %498 : vector<34xf32> to vector<34x1xf32>
    %500 = tpu.reciprocal %499 {approx = true} : vector<34x1xf32> -> vector<34x1xf32>
    %501 = vector.broadcast %500 : vector<34x1xf32> to vector<34x34xf32>
    %502 = arith.mulf %497, %501 : vector<34x34xf32>
    %cst_272 = arith.constant dense<0.000000e+00> : vector<34x8xf32>
    %503 = tpu.matmul %502, %487, %cst_272 {dimension_numbers = #tpu.dot_dimension_numbers<[1], [0], [0], [1], [0, 0, 1, 1], [], []>} : vector<34x34xf32>, vector<34x8xf32>, vector<34x8xf32> -> vector<34x8xf32>
    %c24_273 = arith.constant 24 : index
    %c0_274 = arith.constant 0 : index
    %504 = vector.load %arg34[%c24_273, %c0_274] : memref<32x32xf32, #tpu.memory_space<vmem>>, vector<8x32xf32>
    %cst_275 = arith.constant dense<0.000000e+00> : vector<34x32xf32>
    %505 = tpu.matmul %503, %504, %cst_275 {dimension_numbers = #tpu.dot_dimension_numbers<[1], [0], [0], [1], [0, 0, 1, 1], [], []>} : vector<34x8xf32>, vector<8x32xf32>, vector<34x32xf32> -> vector<34x32xf32>
    %506 = arith.addf %484, %505 : vector<34x32xf32>
    %507 = arith.addf %216, %506 : vector<34x32xf32>
    %c0_276 = arith.constant 0 : index
    %c0_277 = arith.constant 0 : index
    %508 = vector.load %arg35[%c0_276, %c0_277] : memref<1x32xf32, #tpu.memory_space<vmem>>, vector<1x32xf32>
    %509 = vector.broadcast %508 : vector<1x32xf32> to vector<34x32xf32>
    %510 = arith.addf %507, %509 : vector<34x32xf32>
    %c0_278 = arith.constant 0 : index
    %c0_279 = arith.constant 0 : index
    %511 = vector.load %arg36[%c0_278, %c0_279] : memref<1x32xf32, #tpu.memory_space<vmem>>, vector<1x32xf32>
    %c0_280 = arith.constant 0 : index
    %c0_281 = arith.constant 0 : index
    %512 = vector.load %arg37[%c0_280, %c0_281] : memref<1x32xf32, #tpu.memory_space<vmem>>, vector<1x32xf32>
    %cst_282 = arith.constant dense<0.000000e+00> : vector<34xf32>
    %513 = vector.multi_reduction <add>, %510, %cst_282 [1] : vector<34x32xf32> to vector<34xf32>
    %514 = vector.shape_cast %513 : vector<34xf32> to vector<34x1xf32>
    %cst_283 = arith.constant 3.200000e+01 : f32
    %515 = vector.broadcast %cst_283 : f32 to vector<34x1xf32>
    %516 = arith.divf %514, %515 : vector<34x1xf32>
    %517 = vector.broadcast %516 : vector<34x1xf32> to vector<34x32xf32>
    %518 = arith.subf %510, %517 : vector<34x32xf32>
    %519 = arith.mulf %518, %518 : vector<34x32xf32>
    %cst_284 = arith.constant dense<0.000000e+00> : vector<34xf32>
    %520 = vector.multi_reduction <add>, %519, %cst_284 [1] : vector<34x32xf32> to vector<34xf32>
    %521 = vector.shape_cast %520 : vector<34xf32> to vector<34x1xf32>
    %cst_285 = arith.constant 3.200000e+01 : f32
    %522 = vector.broadcast %cst_285 : f32 to vector<34x1xf32>
    %523 = arith.divf %521, %522 : vector<34x1xf32>
    %524 = vector.broadcast %516 : vector<34x1xf32> to vector<34x32xf32>
    %525 = arith.subf %510, %524 : vector<34x32xf32>
    %cst_286 = arith.constant 9.99999997E-7 : f32
    %526 = vector.broadcast %cst_286 : f32 to vector<34x1xf32>
    %527 = arith.addf %523, %526 : vector<34x1xf32>
    %528 = math.rsqrt %527 : vector<34x1xf32>
    %529 = vector.broadcast %528 : vector<34x1xf32> to vector<34x32xf32>
    %530 = arith.mulf %525, %529 : vector<34x32xf32>
    %531 = vector.broadcast %511 : vector<1x32xf32> to vector<34x32xf32>
    %532 = arith.mulf %530, %531 : vector<34x32xf32>
    %533 = vector.broadcast %512 : vector<1x32xf32> to vector<34x32xf32>
    %534 = arith.addf %532, %533 : vector<34x32xf32>
    %c0_287 = arith.constant 0 : index
    %c0_288 = arith.constant 0 : index
    %535 = vector.load %arg38[%c0_287, %c0_288] : memref<32x128xf32, #tpu.memory_space<vmem>>, vector<32x128xf32>
    %cst_289 = arith.constant dense<0.000000e+00> : vector<34x128xf32>
    %536 = tpu.matmul %534, %535, %cst_289 {dimension_numbers = #tpu.dot_dimension_numbers<[1], [0], [0], [1], [0, 0, 1, 1], [], []>} : vector<34x32xf32>, vector<32x128xf32>, vector<34x128xf32> -> vector<34x128xf32>
    %c0_290 = arith.constant 0 : index
    %c0_291 = arith.constant 0 : index
    %537 = vector.load %arg39[%c0_290, %c0_291] : memref<1x128xf32, #tpu.memory_space<vmem>>, vector<1x128xf32>
    %538 = vector.broadcast %537 : vector<1x128xf32> to vector<34x128xf32>
    %539 = arith.addf %536, %538 : vector<34x128xf32>
    %cst_292 = arith.constant 5.000000e-01 : f32
    %540 = vector.broadcast %cst_292 : f32 to vector<34x128xf32>
    %541 = arith.mulf %540, %539 : vector<34x128xf32>
    %cst_293 = arith.constant 4.471500e-02 : f32
    %542 = vector.broadcast %cst_293 : f32 to vector<34x128xf32>
    %543 = arith.mulf %542, %539 : vector<34x128xf32>
    %544 = arith.mulf %543, %539 : vector<34x128xf32>
    %545 = arith.mulf %544, %539 : vector<34x128xf32>
    %546 = arith.addf %539, %545 : vector<34x128xf32>
    %cst_294 = arith.constant 0.797884583 : f32
    %547 = vector.broadcast %cst_294 : f32 to vector<34x128xf32>
    %548 = arith.mulf %547, %546 : vector<34x128xf32>
    %549 = math.tanh %548 : vector<34x128xf32>
    %cst_295 = arith.constant 1.000000e+00 : f32
    %550 = vector.broadcast %cst_295 : f32 to vector<34x128xf32>
    %551 = arith.addf %550, %549 : vector<34x128xf32>
    %552 = arith.mulf %541, %551 : vector<34x128xf32>
    %c0_296 = arith.constant 0 : index
    %c0_297 = arith.constant 0 : index
    %553 = vector.load %arg40[%c0_296, %c0_297] : memref<128x32xf32, #tpu.memory_space<vmem>>, vector<128x32xf32>
    %cst_298 = arith.constant dense<0.000000e+00> : vector<34x32xf32>
    %554 = tpu.matmul %552, %553, %cst_298 {dimension_numbers = #tpu.dot_dimension_numbers<[1], [0], [0], [1], [0, 0, 1, 1], [], []>} : vector<34x128xf32>, vector<128x32xf32>, vector<34x32xf32> -> vector<34x32xf32>
    %c0_299 = arith.constant 0 : index
    %c0_300 = arith.constant 0 : index
    %555 = vector.load %arg41[%c0_299, %c0_300] : memref<1x32xf32, #tpu.memory_space<vmem>>, vector<1x32xf32>
    %556 = vector.broadcast %555 : vector<1x32xf32> to vector<34x32xf32>
    %557 = arith.addf %554, %556 : vector<34x32xf32>
    %558 = arith.addf %510, %557 : vector<34x32xf32>
    %559 = tpu.iota {dimensions = array<i32: 1>} : vector<2x34xi32>
    %560 = tpu.iota {dimensions = array<i32: 0>} : vector<2x34xi32>
    %c17_i32_301 = arith.constant 17 : i32
    %561 = vector.broadcast %c17_i32_301 : i32 to vector<2x34xi32>
    %562 = arith.muli %560, %561 : vector<2x34xi32>
    %563 = arith.cmpi eq, %559, %562 : vector<2x34xi32>
    %564 = arith.extui %563 : vector<2x34xi1> to vector<2x34xi32>
    %565 = arith.sitofp %564 : vector<2x34xi32> to vector<2x34xf32>
    %cst_302 = arith.constant dense<0.000000e+00> : vector<2x32xf32>
    %566 = tpu.matmul %565, %387, %cst_302 {dimension_numbers = #tpu.dot_dimension_numbers<[1], [0], [0], [1], [0, 0, 1, 1], [], []>} : vector<2x34xf32>, vector<34x32xf32>, vector<2x32xf32> -> vector<2x32xf32>
    %cst_303 = arith.constant dense<0.000000e+00> : vector<2x32xf32>
    %567 = tpu.matmul %565, %558, %cst_303 {dimension_numbers = #tpu.dot_dimension_numbers<[1], [0], [0], [1], [0, 0, 1, 1], [], []>} : vector<2x34xf32>, vector<34x32xf32>, vector<2x32xf32> -> vector<2x32xf32>
    %c0_304 = arith.constant 0 : index
    %c0_305 = arith.constant 0 : index
    %568 = vector.load %arg42[%c0_304, %c0_305] : memref<1x32xf32, #tpu.memory_space<vmem>>, vector<1x32xf32>
    %c0_306 = arith.constant 0 : index
    %c0_307 = arith.constant 0 : index
    %569 = vector.load %arg43[%c0_306, %c0_307] : memref<1x32xf32, #tpu.memory_space<vmem>>, vector<1x32xf32>
    %cst_308 = arith.constant dense<0.000000e+00> : vector<2xf32>
    %570 = vector.multi_reduction <add>, %566, %cst_308 [1] : vector<2x32xf32> to vector<2xf32>
    %571 = vector.shape_cast %570 : vector<2xf32> to vector<2x1xf32>
    %cst_309 = arith.constant 3.200000e+01 : f32
    %572 = vector.broadcast %cst_309 : f32 to vector<2x1xf32>
    %573 = arith.divf %571, %572 : vector<2x1xf32>
    %574 = vector.broadcast %573 : vector<2x1xf32> to vector<2x32xf32>
    %575 = arith.subf %566, %574 : vector<2x32xf32>
    %576 = arith.mulf %575, %575 : vector<2x32xf32>
    %cst_310 = arith.constant dense<0.000000e+00> : vector<2xf32>
    %577 = vector.multi_reduction <add>, %576, %cst_310 [1] : vector<2x32xf32> to vector<2xf32>
    %578 = vector.shape_cast %577 : vector<2xf32> to vector<2x1xf32>
    %cst_311 = arith.constant 3.200000e+01 : f32
    %579 = vector.broadcast %cst_311 : f32 to vector<2x1xf32>
    %580 = arith.divf %578, %579 : vector<2x1xf32>
    %581 = vector.broadcast %573 : vector<2x1xf32> to vector<2x32xf32>
    %582 = arith.subf %566, %581 : vector<2x32xf32>
    %cst_312 = arith.constant 9.99999997E-7 : f32
    %583 = vector.broadcast %cst_312 : f32 to vector<2x1xf32>
    %584 = arith.addf %580, %583 : vector<2x1xf32>
    %585 = math.rsqrt %584 : vector<2x1xf32>
    %586 = vector.broadcast %585 : vector<2x1xf32> to vector<2x32xf32>
    %587 = arith.mulf %582, %586 : vector<2x32xf32>
    %588 = vector.broadcast %568 : vector<1x32xf32> to vector<2x32xf32>
    %589 = arith.mulf %587, %588 : vector<2x32xf32>
    %590 = vector.broadcast %569 : vector<1x32xf32> to vector<2x32xf32>
    %591 = arith.addf %589, %590 : vector<2x32xf32>
    %c0_313 = arith.constant 0 : index
    %c0_314 = arith.constant 0 : index
    %592 = vector.load %arg44[%c0_313, %c0_314] : memref<1x32xf32, #tpu.memory_space<vmem>>, vector<1x32xf32>
    %c0_315 = arith.constant 0 : index
    %c0_316 = arith.constant 0 : index
    %593 = vector.load %arg45[%c0_315, %c0_316] : memref<1x32xf32, #tpu.memory_space<vmem>>, vector<1x32xf32>
    %cst_317 = arith.constant dense<0.000000e+00> : vector<2xf32>
    %594 = vector.multi_reduction <add>, %567, %cst_317 [1] : vector<2x32xf32> to vector<2xf32>
    %595 = vector.shape_cast %594 : vector<2xf32> to vector<2x1xf32>
    %cst_318 = arith.constant 3.200000e+01 : f32
    %596 = vector.broadcast %cst_318 : f32 to vector<2x1xf32>
    %597 = arith.divf %595, %596 : vector<2x1xf32>
    %598 = vector.broadcast %597 : vector<2x1xf32> to vector<2x32xf32>
    %599 = arith.subf %567, %598 : vector<2x32xf32>
    %600 = arith.mulf %599, %599 : vector<2x32xf32>
    %cst_319 = arith.constant dense<0.000000e+00> : vector<2xf32>
    %601 = vector.multi_reduction <add>, %600, %cst_319 [1] : vector<2x32xf32> to vector<2xf32>
    %602 = vector.shape_cast %601 : vector<2xf32> to vector<2x1xf32>
    %cst_320 = arith.constant 3.200000e+01 : f32
    %603 = vector.broadcast %cst_320 : f32 to vector<2x1xf32>
    %604 = arith.divf %602, %603 : vector<2x1xf32>
    %605 = vector.broadcast %597 : vector<2x1xf32> to vector<2x32xf32>
    %606 = arith.subf %567, %605 : vector<2x32xf32>
    %cst_321 = arith.constant 9.99999997E-7 : f32
    %607 = vector.broadcast %cst_321 : f32 to vector<2x1xf32>
    %608 = arith.addf %604, %607 : vector<2x1xf32>
    %609 = math.rsqrt %608 : vector<2x1xf32>
    %610 = vector.broadcast %609 : vector<2x1xf32> to vector<2x32xf32>
    %611 = arith.mulf %606, %610 : vector<2x32xf32>
    %612 = vector.broadcast %592 : vector<1x32xf32> to vector<2x32xf32>
    %613 = arith.mulf %611, %612 : vector<2x32xf32>
    %614 = vector.broadcast %593 : vector<1x32xf32> to vector<2x32xf32>
    %615 = arith.addf %613, %614 : vector<2x32xf32>
    %c0_322 = arith.constant 0 : index
    %c0_323 = arith.constant 0 : index
    %616 = vector.load %arg47[%c0_322, %c0_323] : memref<1x10xf32, #tpu.memory_space<vmem>>, vector<1x10xf32>
    %c0_324 = arith.constant 0 : index
    %c0_325 = arith.constant 0 : index
    %617 = vector.load %arg46[%c0_324, %c0_325] : memref<64x10xf32, #tpu.memory_space<vmem>>, vector<32x10xf32>
    %cst_326 = arith.constant dense<0.000000e+00> : vector<2x10xf32>
    %618 = tpu.matmul %591, %617, %cst_326 {dimension_numbers = #tpu.dot_dimension_numbers<[1], [0], [0], [1], [0, 0, 1, 1], [], []>} : vector<2x32xf32>, vector<32x10xf32>, vector<2x10xf32> -> vector<2x10xf32>
    %619 = vector.broadcast %616 : vector<1x10xf32> to vector<2x10xf32>
    %620 = arith.addf %619, %618 : vector<2x10xf32>
    %c32_327 = arith.constant 32 : index
    %c0_328 = arith.constant 0 : index
    %621 = vector.load %arg46[%c32_327, %c0_328] : memref<64x10xf32, #tpu.memory_space<vmem>>, vector<32x10xf32>
    %cst_329 = arith.constant dense<0.000000e+00> : vector<2x10xf32>
    %622 = tpu.matmul %615, %621, %cst_329 {dimension_numbers = #tpu.dot_dimension_numbers<[1], [0], [0], [1], [0, 0, 1, 1], [], []>} : vector<2x32xf32>, vector<32x10xf32>, vector<2x10xf32> -> vector<2x10xf32>
    %623 = arith.addf %620, %622 : vector<2x10xf32>
    %c0_330 = arith.constant 0 : index
    %c0_331 = arith.constant 0 : index
    %624 = vector.load %arg48[%c0_330, %c0_331] : memref<2x10xf32, #tpu.memory_space<vmem>>, vector<2x10xf32>
    tpu.vector_store %arg48[%c0_330, %c0_331], %623 {strides = array<i32>} : memref<2x10xf32, #tpu.memory_space<vmem>>, vector<2x10xf32>,
    return
  }
  func.func @transform_0(%arg0: i32) -> (i32, i32) {
    %c0_i32 = arith.constant 0 : i32
    %c0_i32_0 = arith.constant 0 : i32
    %c0_i32_1 = arith.constant 0 : i32
    return %c0_i32, %c0_i32_0 : i32, i32
  }
  func.func @transform_1(%arg0: i32) -> (i32, i32) {
    %c0_i32 = arith.constant 0 : i32
    %c0_i32_0 = arith.constant 0 : i32
    %c0_i32_1 = arith.constant 0 : i32
    return %c0_i32, %c0_i32_0 : i32, i32
  }
  func.func @transform_2(%arg0: i32) -> (i32, i32) {
    %c0_i32 = arith.constant 0 : i32
    %c0_i32_0 = arith.constant 0 : i32
    %c0_i32_1 = arith.constant 0 : i32
    return %c0_i32, %c0_i32_0 : i32, i32
  }
  func.func @transform_3(%arg0: i32) -> (i32, i32) {
    %c0_i32 = arith.constant 0 : i32
    %c0_i32_0 = arith.constant 0 : i32
    %c0_i32_1 = arith.constant 0 : i32
    return %c0_i32, %c0_i32_0 : i32, i32
  }
  func.func @transform_4(%arg0: i32) -> (i32, i32) {
    %c0_i32 = arith.constant 0 : i32
    %c0_i32_0 = arith.constant 0 : i32
    %c0_i32_1 = arith.constant 0 : i32
    return %c0_i32, %c0_i32_0 : i32, i32
  }
  func.func @transform_5(%arg0: i32) -> (i32, i32) {
    %c0_i32 = arith.constant 0 : i32
    %c0_i32_0 = arith.constant 0 : i32
    %c0_i32_1 = arith.constant 0 : i32
    return %c0_i32, %c0_i32_0 : i32, i32
  }
  func.func @transform_6(%arg0: i32) -> (i32, i32) {
    %c0_i32 = arith.constant 0 : i32
    %c0_i32_0 = arith.constant 0 : i32
    %c0_i32_1 = arith.constant 0 : i32
    return %c0_i32, %c0_i32_0 : i32, i32
  }
  func.func @transform_7(%arg0: i32) -> (i32, i32) {
    %c0_i32 = arith.constant 0 : i32
    %c0_i32_0 = arith.constant 0 : i32
    %c0_i32_1 = arith.constant 0 : i32
    return %c0_i32, %c0_i32_0 : i32, i32
  }
  func.func @transform_8(%arg0: i32) -> (i32, i32) {
    %c0_i32 = arith.constant 0 : i32
    %c0_i32_0 = arith.constant 0 : i32
    %c0_i32_1 = arith.constant 0 : i32
    return %c0_i32, %c0_i32_0 : i32, i32
  }
  func.func @transform_9(%arg0: i32) -> (i32, i32) {
    %c0_i32 = arith.constant 0 : i32
    %c0_i32_0 = arith.constant 0 : i32
    %c0_i32_1 = arith.constant 0 : i32
    return %c0_i32, %c0_i32_0 : i32, i32
  }
  func.func @transform_10(%arg0: i32) -> (i32, i32) {
    %c0_i32 = arith.constant 0 : i32
    %c0_i32_0 = arith.constant 0 : i32
    %c0_i32_1 = arith.constant 0 : i32
    return %c0_i32, %c0_i32_0 : i32, i32
  }
  func.func @transform_11(%arg0: i32) -> (i32, i32) {
    %c0_i32 = arith.constant 0 : i32
    %c0_i32_0 = arith.constant 0 : i32
    %c0_i32_1 = arith.constant 0 : i32
    return %c0_i32, %c0_i32_0 : i32, i32
  }
  func.func @transform_12(%arg0: i32) -> (i32, i32) {
    %c0_i32 = arith.constant 0 : i32
    %c0_i32_0 = arith.constant 0 : i32
    %c0_i32_1 = arith.constant 0 : i32
    return %c0_i32, %c0_i32_0 : i32, i32
  }
  func.func @transform_13(%arg0: i32) -> (i32, i32) {
    %c0_i32 = arith.constant 0 : i32
    %c0_i32_0 = arith.constant 0 : i32
    %c0_i32_1 = arith.constant 0 : i32
    return %c0_i32, %c0_i32_0 : i32, i32
  }
  func.func @transform_14(%arg0: i32) -> (i32, i32) {
    %c0_i32 = arith.constant 0 : i32
    %c0_i32_0 = arith.constant 0 : i32
    %c0_i32_1 = arith.constant 0 : i32
    return %c0_i32, %c0_i32_0 : i32, i32
  }
  func.func @transform_15(%arg0: i32) -> (i32, i32) {
    %c0_i32 = arith.constant 0 : i32
    %c0_i32_0 = arith.constant 0 : i32
    %c0_i32_1 = arith.constant 0 : i32
    return %c0_i32, %c0_i32_0 : i32, i32
  }
  func.func @transform_16(%arg0: i32) -> (i32, i32) {
    %c0_i32 = arith.constant 0 : i32
    %c0_i32_0 = arith.constant 0 : i32
    %c0_i32_1 = arith.constant 0 : i32
    return %c0_i32, %c0_i32_0 : i32, i32
  }
  func.func @transform_17(%arg0: i32) -> (i32, i32) {
    %c0_i32 = arith.constant 0 : i32
    %c0_i32_0 = arith.constant 0 : i32
    %c0_i32_1 = arith.constant 0 : i32
    return %c0_i32, %c0_i32_0 : i32, i32
  }
  func.func @transform_18(%arg0: i32) -> (i32, i32) {
    %c0_i32 = arith.constant 0 : i32
    %c0_i32_0 = arith.constant 0 : i32
    %c0_i32_1 = arith.constant 0 : i32
    return %c0_i32, %c0_i32_0 : i32, i32
  }
  func.func @transform_19(%arg0: i32) -> (i32, i32) {
    %c0_i32 = arith.constant 0 : i32
    %c0_i32_0 = arith.constant 0 : i32
    %c0_i32_1 = arith.constant 0 : i32
    return %c0_i32, %c0_i32_0 : i32, i32
  }
  func.func @transform_20(%arg0: i32) -> (i32, i32) {
    %c0_i32 = arith.constant 0 : i32
    %c0_i32_0 = arith.constant 0 : i32
    %c0_i32_1 = arith.constant 0 : i32
    return %c0_i32, %c0_i32_0 : i32, i32
  }
  func.func @transform_21(%arg0: i32) -> (i32, i32) {
    %c0_i32 = arith.constant 0 : i32
    %c0_i32_0 = arith.constant 0 : i32
    %c0_i32_1 = arith.constant 0 : i32
    return %c0_i32, %c0_i32_0 : i32, i32
  }
  func.func @transform_22(%arg0: i32) -> (i32, i32) {
    %c0_i32 = arith.constant 0 : i32
    %c0_i32_0 = arith.constant 0 : i32
    %c0_i32_1 = arith.constant 0 : i32
    return %c0_i32, %c0_i32_0 : i32, i32
  }
  func.func @transform_23(%arg0: i32) -> (i32, i32) {
    %c0_i32 = arith.constant 0 : i32
    %c0_i32_0 = arith.constant 0 : i32
    %c0_i32_1 = arith.constant 0 : i32
    return %c0_i32, %c0_i32_0 : i32, i32
  }
  func.func @transform_24(%arg0: i32) -> (i32, i32) {
    %c0_i32 = arith.constant 0 : i32
    %c0_i32_0 = arith.constant 0 : i32
    %c0_i32_1 = arith.constant 0 : i32
    return %c0_i32, %c0_i32_0 : i32, i32
  }
  func.func @transform_25(%arg0: i32) -> (i32, i32) {
    %c0_i32 = arith.constant 0 : i32
    %c0_i32_0 = arith.constant 0 : i32
    %c0_i32_1 = arith.constant 0 : i32
    return %c0_i32, %c0_i32_0 : i32, i32
  }
  func.func @transform_26(%arg0: i32) -> (i32, i32) {
    %c0_i32 = arith.constant 0 : i32
    %c0_i32_0 = arith.constant 0 : i32
    %c0_i32_1 = arith.constant 0 : i32
    return %c0_i32, %c0_i32_0 : i32, i32
  }
  func.func @transform_27(%arg0: i32) -> (i32, i32) {
    %c0_i32 = arith.constant 0 : i32
    %c0_i32_0 = arith.constant 0 : i32
    %c0_i32_1 = arith.constant 0 : i32
    return %c0_i32, %c0_i32_0 : i32, i32
  }
  func.func @transform_28(%arg0: i32) -> (i32, i32) {
    %c0_i32 = arith.constant 0 : i32
    %c0_i32_0 = arith.constant 0 : i32
    %c0_i32_1 = arith.constant 0 : i32
    return %c0_i32, %c0_i32_0 : i32, i32
  }
  func.func @transform_29(%arg0: i32) -> (i32, i32) {
    %c0_i32 = arith.constant 0 : i32
    %c0_i32_0 = arith.constant 0 : i32
    %c0_i32_1 = arith.constant 0 : i32
    return %c0_i32, %c0_i32_0 : i32, i32
  }
  func.func @transform_30(%arg0: i32) -> (i32, i32) {
    %c0_i32 = arith.constant 0 : i32
    %c0_i32_0 = arith.constant 0 : i32
    %c0_i32_1 = arith.constant 0 : i32
    return %c0_i32, %c0_i32_0 : i32, i32
  }
  func.func @transform_31(%arg0: i32) -> (i32, i32) {
    %c0_i32 = arith.constant 0 : i32
    %c0_i32_0 = arith.constant 0 : i32
    %c0_i32_1 = arith.constant 0 : i32
    return %c0_i32, %c0_i32_0 : i32, i32
  }
  func.func @transform_32(%arg0: i32) -> (i32, i32) {
    %c0_i32 = arith.constant 0 : i32
    %c0_i32_0 = arith.constant 0 : i32
    %c0_i32_1 = arith.constant 0 : i32
    return %c0_i32, %c0_i32_0 : i32, i32
  }
  func.func @transform_33(%arg0: i32) -> (i32, i32) {
    %c0_i32 = arith.constant 0 : i32
    %c0_i32_0 = arith.constant 0 : i32
    %c0_i32_1 = arith.constant 0 : i32
    return %c0_i32, %c0_i32_0 : i32, i32
  }
  func.func @transform_34(%arg0: i32) -> (i32, i32) {
    %c0_i32 = arith.constant 0 : i32
    %c0_i32_0 = arith.constant 0 : i32
    %c0_i32_1 = arith.constant 0 : i32
    return %c0_i32, %c0_i32_0 : i32, i32
  }
  func.func @transform_35(%arg0: i32) -> (i32, i32) {
    %c0_i32 = arith.constant 0 : i32
    %c0_i32_0 = arith.constant 0 : i32
    %c0_i32_1 = arith.constant 0 : i32
    return %c0_i32, %c0_i32_0 : i32, i32
  }
  func.func @transform_36(%arg0: i32) -> (i32, i32) {
    %c0_i32 = arith.constant 0 : i32
    %c0_i32_0 = arith.constant 0 : i32
    %c0_i32_1 = arith.constant 0 : i32
    return %c0_i32, %c0_i32_0 : i32, i32
  }
  func.func @transform_37(%arg0: i32) -> (i32, i32) {
    %c0_i32 = arith.constant 0 : i32
    %c0_i32_0 = arith.constant 0 : i32
    %c0_i32_1 = arith.constant 0 : i32
    return %c0_i32, %c0_i32_0 : i32, i32
  }
  func.func @transform_38(%arg0: i32) -> (i32, i32) {
    %c0_i32 = arith.constant 0 : i32
    %c0_i32_0 = arith.constant 0 : i32
    %c0_i32_1 = arith.constant 0 : i32
    return %c0_i32, %c0_i32_0 : i32, i32
  }
  func.func @transform_39(%arg0: i32) -> (i32, i32) {
    %c0_i32 = arith.constant 0 : i32
    %c0_i32_0 = arith.constant 0 : i32
    %c0_i32_1 = arith.constant 0 : i32
    return %c0_i32, %c0_i32_0 : i32, i32
  }
  func.func @transform_40(%arg0: i32) -> (i32, i32) {
    %c0_i32 = arith.constant 0 : i32
    %c0_i32_0 = arith.constant 0 : i32
    %c0_i32_1 = arith.constant 0 : i32
    return %c0_i32, %c0_i32_0 : i32, i32
  }
  func.func @transform_41(%arg0: i32) -> (i32, i32) {
    %c0_i32 = arith.constant 0 : i32
    %c0_i32_0 = arith.constant 0 : i32
    %c0_i32_1 = arith.constant 0 : i32
    return %c0_i32, %c0_i32_0 : i32, i32
  }
  func.func @transform_42(%arg0: i32) -> (i32, i32) {
    %c0_i32 = arith.constant 0 : i32
    %c0_i32_0 = arith.constant 0 : i32
    %c0_i32_1 = arith.constant 0 : i32
    return %c0_i32, %c0_i32_0 : i32, i32
  }
  func.func @transform_43(%arg0: i32) -> (i32, i32) {
    %c0_i32 = arith.constant 0 : i32
    %c0_i32_0 = arith.constant 0 : i32
    %c0_i32_1 = arith.constant 0 : i32
    return %c0_i32, %c0_i32_0 : i32, i32
  }
  func.func @transform_44(%arg0: i32) -> (i32, i32) {
    %c0_i32 = arith.constant 0 : i32
    %c0_i32_0 = arith.constant 0 : i32
    %c0_i32_1 = arith.constant 0 : i32
    return %c0_i32, %c0_i32_0 : i32, i32
  }
  func.func @transform_45(%arg0: i32) -> (i32, i32) {
    %c0_i32 = arith.constant 0 : i32
    %c0_i32_0 = arith.constant 0 : i32
    %c0_i32_1 = arith.constant 0 : i32
    return %c0_i32, %c0_i32_0 : i32, i32
  }
  func.func @transform_46(%arg0: i32) -> (i32, i32) {
    %c0_i32 = arith.constant 0 : i32
    %c0_i32_0 = arith.constant 0 : i32
    %c0_i32_1 = arith.constant 0 : i32
    return %c0_i32, %c0_i32_0 : i32, i32
  }
  func.func @transform_47(%arg0: i32) -> (i32, i32) {
    %c0_i32 = arith.constant 0 : i32
    %c0_i32_0 = arith.constant 0 : i32
    %c0_i32_1 = arith.constant 0 : i32
    return %c0_i32, %c0_i32_0 : i32, i32
  }
}

</mosaic_0001>

<bundles_post_ra>
// kernel: deit_attach_forward.1
= control target key start
LH: loop header
LB: loop body
LE: loop exit
PB: predicated region body
PF: predicated region fallthrough
CT: control target
= control target key end

     0   :  { %s10737_s6 = smov 1   ;;  %s10738_s10 = smov 2   ;;  %s13217_s0 = inlined_call_operand.smem [shape: u32[48], index: -1, kind: input, shape index: {}] }
   0x1   :  { %s10814_s5 = sld [smem:[%s13217_s0]]   ;;  %s10739_s14 = smov 3  }
   0x2   :  { %s10819_s9 = sld [smem:[%s13217_s0 + %s10737_s6]]   ;;  %s10740_s18 = smov 4  }
   0x3   :  { %s10824_s13 = sld [smem:[%s13217_s0 + %s10738_s10]]   ;;  %s10741_s22 = smov 5  }
   0x4   :  { %s10829_s17 = sld [smem:[%s13217_s0 + %s10739_s14]]   ;;  %s10742_s26 = smov 6  }
   0x5   :  { %s10834_s21 = sld [smem:[%s13217_s0 + %s10740_s18]]   ;;  %s10743_s30 = smov 7  }
   0x6   :  { %s10839_s25 = sld [smem:[%s13217_s0 + %s10741_s22]]   ;;  %s10744_s4 = smov 8  }
   0x7   :  { %s10844_s29 = sld [smem:[%s13217_s0 + %s10742_s26]]   ;;  %s10745_s10 = smov 9  }
   0x8   :  { %s10849_s3 = sld [smem:[%s13217_s0 + %s10743_s30]]   ;;  %s10746_s15 = smov 10  }
   0x9   :  { %s10854_s8 = sld [smem:[%s13217_s0 + %s10744_s4]]   ;;  %s10747_s20 = smov 11  }
   0xa   :  { %s10859_s14 = sld [smem:[%s13217_s0 + %s10745_s10]]   ;;  %s10748_s26 = smov 12  }
   0xb   :  { %s10864_s19 = sld [smem:[%s13217_s0 + %s10746_s15]]   ;;  %s10749_s1 = smov 13  }
   0xc   :  { %s10869_s24 = sld [smem:[%s13217_s0 + %s10747_s20]]   ;;  %s10750_s7 = smov 14  }
   0xd   :  { %s10874_s30 = sld [smem:[%s13217_s0 + %s10748_s26]]   ;;  %s10751_s15 = smov 15  }
   0xe   :  { %s10879_s6 = sld [smem:[%s13217_s0 + %s10749_s1]]   ;;  %s10752_s22 = smov 16  }
   0xf   :  { %s10884_s12 = sld [smem:[%s13217_s0 + %s10750_s7]]   ;;  %s10753_s28 = smov 17  }
  0x10   :  { %s10889_s20 = sld [smem:[%s13217_s0 + %s10751_s15]]   ;;  %s10754_s7 = smov 18  }
  0x11   :  { %13230 = sst [smem:[#allocation20_spill]] %s10864_s19  ;;  %s10755_s15 = smov 19  }
  0x12   :  { %13231 = sst [smem:[#allocation21_spill]] %s10869_s24 }
  0x13   :  { %13232 = sst [smem:[#allocation22_spill]] %s10874_s30 }
  0x14   :  { %13233 = sst [smem:[#allocation23_spill]] %s10879_s6 }
  0x15   :  { %13234 = sst [smem:[#allocation24_spill]] %s10884_s12 }
  0x16   :  { %13235 = sst [smem:[#allocation25_spill]] %s10889_s20 }
  0x17   :  { %s10894_s27 = sld [smem:[%s13217_s0 + %s10752_s22]]   ;;  %s10756_s22 = smov 20  }
  0x18   :  { %s10899_s4 = sld [smem:[%s13217_s0 + %s10753_s28]]   ;;  %s10757_s28 = smov 21  }
  0x19   :  { %s10904_s12 = sld [smem:[%s13217_s0 + %s10754_s7]]   ;;  %s10758_s7 = smov 22  }
  0x1a   :  { %s10909_s30 = sld [smem:[%s13217_s0 + %s10755_s15]]   ;;  %s10759_s15 = smov 23  }
  0x1d   :  { %13236 = sst [smem:[#allocation26_spill]] %s10894_s27 }
  0x1e   :  { %13237 = sst [smem:[#allocation27_spill]] %s10899_s4 }
  0x1f   :  { %13238 = sst [smem:[#allocation28_spill]] %s10904_s12 }
  0x20   :  { %13239 = sst [smem:[#allocation29_spill]] %s10909_s30 }
  0x21   :  { %s10914_s27 = sld [smem:[%s13217_s0 + %s10756_s22]]   ;;  %s10760_s22 = smov 24  }
  0x22   :  { %s10919_s4 = sld [smem:[%s13217_s0 + %s10757_s28]]   ;;  %s10761_s28 = smov 25  }
  0x23   :  { %s10924_s12 = sld [smem:[%s13217_s0 + %s10758_s7]]   ;;  %s10762_s7 = smov 26  }
  0x24   :  { %s10929_s30 = sld [smem:[%s13217_s0 + %s10759_s15]]   ;;  %s10763_s15 = smov 27  }
  0x27   :  { %13240 = sst [smem:[#allocation30_spill]] %s10914_s27 }
  0x28   :  { %13241 = sst [smem:[#allocation31_spill]] %s10919_s4 }
  0x29   :  { %13242 = sst [smem:[#allocation32_spill]] %s10924_s12 }
  0x2a   :  { %13243 = sst [smem:[#allocation33_spill]] %s10929_s30 }
  0x2b   :  { %s10934_s27 = sld [smem:[%s13217_s0 + %s10760_s22]]   ;;  %s10764_s22 = smov 28  }
  0x2c   :  { %s10939_s4 = sld [smem:[%s13217_s0 + %s10761_s28]]   ;;  %s10765_s28 = smov 29  }
  0x2d   :  { %s10944_s12 = sld [smem:[%s13217_s0 + %s10762_s7]]   ;;  %s10766_s7 = smov 30  }
  0x2e   :  { %s10949_s30 = sld [smem:[%s13217_s0 + %s10763_s15]]   ;;  %s10767_s15 = smov 31  }
  0x31   :  { %13244 = sst [smem:[#allocation34_spill]] %s10934_s27 }
  0x32   :  { %13245 = sst [smem:[#allocation35_spill]] %s10939_s4 }
  0x33   :  { %13246 = sst [smem:[#allocation36_spill]] %s10944_s12 }
  0x34   :  { %13247 = sst [smem:[#allocation37_spill]] %s10949_s30 }
  0x35   :  { %s10954_s27 = sld [smem:[%s13217_s0 + %s10764_s22]]   ;;  %s10768_s22 = smov 32  }
  0x36   :  { %s10959_s4 = sld [smem:[%s13217_s0 + %s10765_s28]]   ;;  %s10769_s28 = smov 33  }
  0x37   :  { %s10964_s12 = sld [smem:[%s13217_s0 + %s10766_s7]]   ;;  %s10770_s7 = smov 34  }
  0x38   :  { %s10969_s30 = sld [smem:[%s13217_s0 + %s10767_s15]]   ;;  %s10771_s15 = smov 35  }
  0x3b   :  { %13248 = sst [smem:[#allocation38_spill]] %s10954_s27 }
  0x3c   :  { %13249 = sst [smem:[#allocation39_spill]] %s10959_s4 }
  0x3d   :  { %13250 = sst [smem:[#allocation40_spill]] %s10964_s12 }
  0x3e   :  { %13251 = sst [smem:[#allocation41_spill]] %s10969_s30 }
  0x3f   :  { %s10974_s27 = sld [smem:[%s13217_s0 + %s10768_s22]]   ;;  %s10772_s22 = smov 36  }
  0x40   :  { %s10979_s4 = sld [smem:[%s13217_s0 + %s10769_s28]]   ;;  %s10773_s28 = smov 37  }
  0x41   :  { %s10984_s12 = sld [smem:[%s13217_s0 + %s10770_s7]]   ;;  %s10774_s7 = smov 38  }
  0x42   :  { %s10989_s30 = sld [smem:[%s13217_s0 + %s10771_s15]]   ;;  %s10775_s15 = smov 39  }
  0x45   :  { %13252 = sst [smem:[#allocation42_spill]] %s10974_s27 }
  0x46   :  { %13253 = sst [smem:[#allocation43_spill]] %s10979_s4 }
  0x47   :  { %13254 = sst [smem:[#allocation44_spill]] %s10984_s12 }
  0x48   :  { %13255 = sst [smem:[#allocation45_spill]] %s10989_s30 }
  0x49   :  { %s10994_s27 = sld [smem:[%s13217_s0 + %s10772_s22]]   ;;  %s10776_s22 = smov 40  }
  0x4a   :  { %s10999_s4 = sld [smem:[%s13217_s0 + %s10773_s28]]   ;;  %s10777_s28 = smov 41  }
  0x4b   :  { %s11004_s12 = sld [smem:[%s13217_s0 + %s10774_s7]]   ;;  %s10778_s7 = smov 42  }
  0x4c   :  { %s11009_s30 = sld [smem:[%s13217_s0 + %s10775_s15]]   ;;  %s10779_s15 = smov 43  }
  0x4f   :  { %13256 = sst [smem:[#allocation46_spill]] %s10994_s27 }
  0x50   :  { %13257 = sst [smem:[#allocation47_spill]] %s10999_s4 }
  0x51   :  { %13258 = sst [smem:[#allocation48_spill]] %s11004_s12 }
  0x52   :  { %13259 = sst [smem:[#allocation49_spill]] %s11009_s30 }
  0x53   :  { %s11014_s27 = sld [smem:[%s13217_s0 + %s10776_s22]]   ;;  %s10780_s22 = smov 44  }
  0x54   :  { %s11019_s4 = sld [smem:[%s13217_s0 + %s10777_s28]]   ;;  %s10781_s28 = smov 45  }
  0x55   :  { %s11024_s12 = sld [smem:[%s13217_s0 + %s10778_s7]]   ;;  %s10782_s7 = smov 46  }
  0x56   :  { %s11029_s30 = sld [smem:[%s13217_s0 + %s10779_s15]]   ;;  %s10783_s15 = smov 47  }
  0x57   :  { %s11034_s24 = sld [smem:[%s13217_s0 + %s10780_s22]]  }
  0x58   :  { %s11039_s20 = sld [smem:[%s13217_s0 + %s10781_s28]]  }
  0x59   :  { %s11044_s6 = sld [smem:[%s13217_s0 + %s10782_s7]]  }
  0x5a   :  { %s11049_s19 = sld [smem:[%s13217_s0 + %s10783_s15]]  }
  0x5b   :  { %100 = vsyncpa [#allocation4], 0 }
  0x5c   :  { %101 = vsyncpa [#allocation7], 0 }
  0x5d   :  { %102 = vsyncpa [#allocation10], 0 }
  0x5e   :  { %103 = vsyncpa [#allocation13], 0 }
  0x5f   :  { %104 = vsyncpa [#allocation5], 0  ;;  %s10784_s22 = smov [#allocation6]   ;;  %s10785_s26 = smov [#allocation9]  }
  0x60   :  { %s201_s23 = sshll.u32 %s10784_s22, 4  ;;  %s221_s28 = sshll.u32 %s10785_s26, 4  ;;  %s202_s23 = int_to_ptr.vmem [resolvable:$true] %s201_s23  ;;  %s222_s28 = int_to_ptr.vmem [resolvable:$true] %s221_s28 }
  0x61   :  { %s10573_s1 = scalar_lea.hbm %s11019_s4, 16 }
  0x62   :  { %p10574_p0 = scmp.ne.s32.totalorder %s11019_s4, %s10573_s1  ;;  %p10577_p1 = scmp.lt.u32.totalorder %s10573_s1, %s11019_s4 }
  0x64   :  { %p10579_p2 = pnand %p10577_p1, %p10574_p0 }
  0x66   :  { %10582 = shalt.err (!%p10579_p2)
}
  0x67   :  { %s10583_s0 = scalar_lea.vmem %s202_s23, 16  ;;  %s10587_s2 = scalar_lea.vmem %s202_s23, 32 }
  0x68   :  { %p10584_p3 = scmp.ne.s32.totalorder %s202_s23, %s10583_s0  ;;  %p10588_p4 = scmp.lt.s32.totalorder %s202_s23, %s202_s23 }
  0x69   :  { %p10589_p5 = scmp.lt.s32.totalorder %s10587_s2, %s10583_s0 }
  0x6b   :  { %p10590_p6 = por %p10589_p5, %p10588_p4 }
  0x6d   :  { %p10591_p7 = pnand %p10590_p6, %p10584_p3 }
  0x6f   :  { %10594 = shalt.err (!%p10591_p7)
}
  0x70   :  { %204 = dma.hbm_to_vmem [thread:$0]  %s11019_s4, 16, %s202_s23, [#allocation7]  }
  0x71   :  { %s10595_s7 = scalar_lea.hbm %s11029_s30, 16 }
  0x72   :  { %p10596_p8 = scmp.ne.s32.totalorder %s11029_s30, %s10595_s7  ;;  %p10599_p9 = scmp.lt.u32.totalorder %s10595_s7, %s11029_s30 }
  0x74   :  { %p10601_p10 = pnand %p10599_p9, %p10596_p8 }
  0x76   :  { %10604 = shalt.err (!%p10601_p10)
}
  0x77   :  { %s10605_s10 = scalar_lea.vmem %s222_s28, 16  ;;  %s10609_s11 = scalar_lea.vmem %s222_s28, 32 }
  0x78   :  { %p10606_p11 = scmp.ne.s32.totalorder %s222_s28, %s10605_s10  ;;  %p10610_p12 = scmp.lt.s32.totalorder %s222_s28, %s222_s28 }
  0x79   :  { %p10611_p13 = scmp.lt.s32.totalorder %s10609_s11, %s10605_s10 }
  0x7b   :  { %p10612_p0 = por %p10611_p13, %p10610_p12 }
  0x7d   :  { %p10613_p1 = pnand %p10612_p0, %p10606_p11 }
  0x7f   :  { %10616 = shalt.err (!%p10613_p1)
}
  0x80   :  { %224 = dma.hbm_to_vmem [thread:$0]  %s11029_s30, 16, %s222_s28, [#allocation10]  }
  0x81   :  { %s10786_s15 = smov [#allocation3]   ;;  %s10787_s16 = smov [#allocation8]  }
  0x82   :  { %s191_s4 = sshll.u32 %s10786_s15, 4  ;;  %s211_s18 = sshll.u32 %s10787_s16, 4  ;;  %s192_s4 = int_to_ptr.vmem [resolvable:$true] %s191_s4  ;;  %s212_s18 = int_to_ptr.vmem [resolvable:$true] %s211_s18 }
  0x83   :  { %s10617_s22 = scalar_lea.hbm %s11014_s27, 16 }
  0x84   :  { %p10618_p2 = scmp.ne.s32.totalorder %s11014_s27, %s10617_s22  ;;  %p10621_p3 = scmp.lt.u32.totalorder %s10617_s22, %s11014_s27 }
  0x86   :  { %p10623_p4 = pnand %p10621_p3, %p10618_p2 }
  0x88   :  { %10626 = shalt.err (!%p10623_p4)
}
  0x89   :  { %s10627_s23 = scalar_lea.vmem %s192_s4, 16  ;;  %s10631_s26 = scalar_lea.vmem %s192_s4, 32 }
  0x8a   :  { %p10628_p5 = scmp.ne.s32.totalorder %s192_s4, %s10627_s23  ;;  %p10632_p6 = scmp.lt.s32.totalorder %s192_s4, %s192_s4 }
  0x8b   :  { %p10633_p7 = scmp.lt.s32.totalorder %s10631_s26, %s10627_s23 }
  0x8d   :  { %p10634_p8 = por %p10633_p7, %p10632_p6 }
  0x8f   :  { %p10635_p9 = pnand %p10634_p8, %p10628_p5 }
  0x91   :  { %10638 = shalt.err (!%p10635_p9)
}
  0x92   :  { %194 = dma.hbm_to_vmem [thread:$0]  %s11014_s27, 16, %s192_s4, [#allocation4]  }
  0x93   :  { %s10639_s30 = scalar_lea.hbm %s11024_s12, 16 }
  0x94   :  { %p10640_p10 = scmp.ne.s32.totalorder %s11024_s12, %s10639_s30  ;;  %p10643_p11 = scmp.lt.u32.totalorder %s10639_s30, %s11024_s12 }
  0x96   :  { %p10645_p12 = pnand %p10643_p11, %p10640_p10 }
  0x98   :  { %10648 = shalt.err (!%p10645_p12)
}
  0x99   :  { %s10649_s28 = scalar_lea.vmem %s212_s18, 16  ;;  %s10653_s1 = scalar_lea.vmem %s212_s18, 32 }
  0x9a   :  { %p10650_p13 = scmp.ne.s32.totalorder %s212_s18, %s10649_s28  ;;  %p10654_p0 = scmp.lt.s32.totalorder %s212_s18, %s212_s18 }
  0x9b   :  { %p10655_p1 = scmp.lt.s32.totalorder %s10653_s1, %s10649_s28 }
  0x9d   :  { %p10656_p2 = por %p10655_p1, %p10654_p0 }
  0x9f   :  { %p10657_p3 = pnand %p10656_p2, %p10650_p13 }
  0xa1   :  { %10660 = shalt.err (!%p10657_p3)
}
  0xa2   :  { %214 = dma.hbm_to_vmem [thread:$0]  %s11024_s12, 16, %s212_s18, [#allocation7]  }
  0xa3   :  { %s10788_s0 = smov [#allocation11]   ;;  %s10789_s2 = smov [#allocation12]  }
  0xa4   :  { %s231_s27 = sshll.u32 %s10788_s0, 4  ;;  %s243_s7 = sshll.u32 %s10789_s2, 4  ;;  %s232_s27 = int_to_ptr.vmem [resolvable:$true] %s231_s27  ;;  %s244_s7 = int_to_ptr.vmem [resolvable:$true] %s243_s7 }
  0xa5   :  { %s10661_s10 = scalar_lea.hbm %s11034_s24, 16 }
  0xa6   :  { %p10662_p4 = scmp.ne.s32.totalorder %s11034_s24, %s10661_s10  ;;  %p10665_p5 = scmp.lt.u32.totalorder %s10661_s10, %s11034_s24 }
  0xa8   :  { %p10667_p6 = pnand %p10665_p5, %p10662_p4 }
  0xaa   :  { %10670 = shalt.err (!%p10667_p6)
}
  0xab   :  { %s10671_s11 = scalar_lea.vmem %s232_s27, 16  ;;  %s10675_s15 = scalar_lea.vmem %s232_s27, 32 }
  0xac   :  { %p10672_p7 = scmp.ne.s32.totalorder %s232_s27, %s10671_s11  ;;  %p10676_p8 = scmp.lt.s32.totalorder %s232_s27, %s232_s27 }
  0xad   :  { %p10677_p9 = scmp.lt.s32.totalorder %s10675_s15, %s10671_s11 }
  0xaf   :  { %p10678_p10 = por %p10677_p9, %p10676_p8 }
  0xb1   :  { %p10679_p11 = pnand %p10678_p10, %p10672_p7 }
  0xb3   :  { %10682 = shalt.err (!%p10679_p11)
}
  0xb4   :  { %234 = dma.hbm_to_vmem [thread:$0]  %s11034_s24, 16, %s232_s27, [#allocation10]  }
  0xb5   :  { %s10683_s12 = scalar_lea.hbm %s11044_s6, 16 }
  0xb6   :  { %p10684_p12 = scmp.ne.s32.totalorder %s11044_s6, %s10683_s12  ;;  %p10687_p13 = scmp.lt.u32.totalorder %s10683_s12, %s11044_s6 }
  0xb8   :  { %p10689_p0 = pnand %p10687_p13, %p10684_p12 }
  0xba   :  { %10692 = shalt.err (!%p10689_p0)
}
  0xbb   :  { %s10693_s4 = scalar_lea.vmem %s244_s7, 16  ;;  %s10697_s16 = scalar_lea.vmem %s244_s7, 32 }
  0xbc   :  { %p10694_p1 = scmp.ne.s32.totalorder %s244_s7, %s10693_s4  ;;  %p10698_p2 = scmp.lt.s32.totalorder %s244_s7, %s244_s7 }
  0xbd   :  { %p10699_p3 = scmp.lt.s32.totalorder %s10697_s16, %s10693_s4 }
  0xbf   :  { %p10700_p4 = por %p10699_p3, %p10698_p2 }
  0xc1   :  { %p10701_p5 = pnand %p10700_p4, %p10694_p1 }
  0xc3   :  { %10704 = shalt.err (!%p10701_p5)
}
  0xc4   :  { %246 = dma.hbm_to_vmem [thread:$0]  %s11044_s6, 16, %s244_s7, [#allocation13]  }
  0xc5   :  { %10727 = dma.done.wait [#allocation4], 16  }
  0xc6   :  { %10728 = vsyncadd [#allocation4], 4294967280 }
  0xc7   :  { %10729 = dma.done.wait [#allocation7], 32  }
  0xc8   :  { %10730 = vsyncadd [#allocation7], 4294967264 }
  0xc9   :  { %10731 = dma.done.wait [#allocation10], 32  }
  0xca   :  { %10732 = vsyncadd [#allocation10], 4294967264 }
  0xcb   :  { %10733 = dma.done.wait [#allocation13], 16  }
  0xcc   :  { %10734 = vsyncadd [#allocation13], 4294967280  ;;  %v10790_v0 = vmov 0.0|0.0   ;;  %vm10791_vm0 = vmmov 0   ;;  %v10792_v1 = vmov 0.0   ;;  %v270_v2 = vld [vmem:[%s10819_s9] sm:$0xff]  ;;  %v389_v16 = vlaneseq }
  0xcd   :  { %9617 = vmatprep.subr.bf16.mxu0 %v10790_v0  ;;  %8471 = vmatprep.mubr.msk.f32.mxu0 %vm10791_vm0, %v10792_v1  ;;  %v271_v3 = vld [vmem:[%s10819_s9 + $0x8] sm:$0xff]  ;;  %v272_v4 = vld [vmem:[%s10819_s9 + $0x10] sm:$0xff]  ;;  %v273_v6 = vld [vmem:[%s10819_s9 + $0x18] sm:$0xff]  ;;  %vm283_vm1 = vcmask 392192   ;;  %vm500_vm3 = vcmask 261120   ;;  %vm513_vm5 = vcmask 254976  }
  0xce   :  { %9626 = vmatprep.subr.bf16.mxu1 %v10790_v0  ;;  %8494 = vmatprep.mubr.msk.f32.mxu1 %vm10791_vm0, %v10792_v1  ;;  %v9618_v5 = vpack.c.bf16 %v271_v3, %v270_v2  ;;  %v9621_v7 = vpack.c.bf16 %v273_v6, %v272_v4  ;;  %v274_v8 = vld [vmem:[%s10819_s9 + $0x20] sm:$0xff]  ;;  %v275_v9 = vld [vmem:[%s10819_s9 + $0x28] sm:$0xff]  ;;  %v267_v13 = vld [vmem:[%s10814_s5 + $0x10] sm:$0xff]  ;;  %v11106_v17 = vshrl.u32 %v389_v16, 7  ;;  %vm706_vm6 = vcmask 785408   ;;  %s10794_s9 = smov 88  }
  0xcf   :  { %v9624_v10 = vpack.c.bf16 %v275_v9, %v274_v8  ;;  %v265_v11 = vld [vmem:[%s10814_s5] sm:$0xff]  ;;  %v266_v12 = vld [vmem:[%s10814_s5 + $0x8] sm:$0xff]  ;;  %v268_v14 = vld [vmem:[%s10814_s5 + $0x18] sm:$0xff]  ;;  %vm13229_vm7 = vcmask 779264   ;;  %vm738_vm8 = vcmask 64512   ;;  %s10803_s24 = smov 72  }
  0xd0   :  { %9619 = vmatpush3.bf16.msra.mxu0 %v9618_v5  ;;  %v269_v15 = vld [vmem:[%s10814_s5 + $0x20] sm:$0x3]  ;;  %vm395_vm2 = vcmp.eq.s32.totalorder %v11106_v17, 0  ;;  %v423_v26 = vld [vmem:[%s10834_s21 + $0x8] sm:$0xff]  ;;  %v11116_v28 = vadd.s32 16, %v11106_v17  ;;  %v424_v37 = vld [vmem:[%s10834_s21 + $0x10] sm:$0xff] }
  0xd1   :  { %9620 = vmatprep.subr.bf16.mxu0 %v10790_v0  ;;  %v7672_v18 = vld [vmem:[%s10824_s13] ss:$0 sm:$0xff]  ;;  %v425_v40 = vld [vmem:[%s10834_s21 + $0x18] sm:$0xff]  ;;  %s10793_s5 = smov 96   ;;  %s10795_s13 = smov 120   ;;  %vm11220_vm9 = vmpackc.low %vm738_vm8, %vm738_vm8 }
  0xd2   :  { %v7678_v20 = vld [vmem:[%s10829_s17] ss:$0 sm:$0xff]  ;;  %vm402_vm4 = vcmp.eq.s32.totalorder %v11116_v28, 17  ;;  %vm463_vm10 = vcmp.ge.s32.totalorder %v11116_v28, 17  ;;  %vm441_vm13 = vcmp.lt.s32.totalorder %v11116_v28, 17  ;;  %s10797_s17 = smov 64  }
  0xd3   :  { %v422_v23 = vld [vmem:[%s10834_s21] sm:$0xff]  ;;  %s10804_s6 = smov 40   ;;  %s13262_s18 = sld [smem:[#allocation20_spill]] }
  0xd4   :  { %9622 = vmatpush3.bf16.msra.mxu0 %v9621_v7  ;;  %v426_v47 = vld [vmem:[%s10834_s21 + $0x20] sm:$0x3]  ;;  %s10798_s21 = smov 56   ;;  %s13264_s22 = sld [smem:[#allocation25_spill]] }
  0xd5   :  { %9623 = vmatprep.subr.bf16.mxu0 %v10790_v0  ;;  %s13265_s23 = sld [smem:[#allocation21_spill]]  ;;  %s13266_s26 = sld [smem:[#allocation22_spill]] }
  0xd6   :  { %s13267_s30 = sld [smem:[#allocation24_spill]]  ;;  %s13268_s28 = sld [smem:[#allocation26_spill]] }
  0xd7   :  { %s13269_s1 = sld [smem:[#allocation29_spill]]  ;;  %s13270_s0 = sld [smem:[#allocation27_spill]] }
  0xd8   :  { %9625 = vmatpush3.bf16.msra.mxu0 %v9624_v10  ;;  %s13271_s27 = sld [smem:[#allocation28_spill]]  ;;  %s13272_s2 = sld [smem:[#allocation30_spill]] }
  0xd9   :  { %9640 = vmatprep.subr.bf16.mxu0 %v10790_v0  ;;  %s13274_s7 = sld [smem:[#allocation31_spill]]  ;;  %s13275_s10 = sld [smem:[#allocation32_spill]] }
  0xda   :  { %s13276_s11 = sld [smem:[#allocation35_spill]]  ;;  %s13277_s15 = sld [smem:[#allocation37_spill]] }
  0xdb   :  { %8472 = vmatmul.mubr.msk.f32.vlgmr.msra.gmra.mrb[0].mxu0 %vm283_vm1, %v265_v11  ;;  %s13278_s12 = sld [smem:[#allocation33_spill]]  ;;  %s13280_s16 = sld [smem:[#allocation34_spill]] }
  0xdc   :  { %8474 = vmatprep.mubr.msk.f32.mxu0 %vm10791_vm0, %v10792_v1  ;;  %s13279_s4 = sld [smem:[#allocation41_spill]] }
  0xdf   :  { %8475 = vmatmul.mubr.msk.f32.gmra.mrb[2].mxu0 %vm283_vm1, %v266_v12 }
  0xe0   :  { %8477 = vmatprep.mubr.msk.f32.mxu0 %vm10791_vm0, %v10792_v1 }
  0xe3   :  { %8478 = vmatmul.mubr.msk.f32.gmra.mrb[4].mxu0 %vm283_vm1, %v267_v13 }
  0xe4   :  { %8480 = vmatprep.mubr.msk.f32.mxu0 %vm10791_vm0, %v10792_v1 }
  0xe7   :  { %8481 = vmatmul.mubr.msk.f32.gmra.mrb[6].mxu0 %vm283_vm1, %v268_v14 }
  0xe8   :  { %8483 = vmatprep.mubr.msk.f32.mxu0 %vm10791_vm0, %v10792_v1 }
  0xeb   :  { %8484 = vmatmul.mubr.msk.f32.gmra.mrb[8].mxu0 %vm283_vm1, %v269_v15 }
  0xec   :  { %8544 = vmatprep.mubr.msk.f32.mxu0 %vm10791_vm0, %v10792_v1 }
 0x1ae   :  { %v365_v19 = vpop.f32.mrb[0].mxu0 }
 0x1af   :  { %v366_v21 = vadd.f32 %v7672_v18, %v365_v19  ;;  %v8473_v22 = vpop.f32.mrb[1].mxu0  ;;  %v591_v19 = vld [vmem:[%s10849_s3 + $0x8] sm:$0xff] }
 0x1b0   :  { %v593_v22 = vld [vmem:[%s10849_s3 + $0x18] sm:$0xff] }
 0x1b1   :  { %v417_v24 = vsel %vm395_vm2, %v7678_v20, %v366_v21  ;;  %v592_v21 = vld [vmem:[%s10849_s3 + $0x10] sm:$0xff] }
 0x1b2   :  { %v370_v25 = vpop.f32.mrb[2].mxu0  ;;  %v11113_v27 = vadd.f32 %v422_v23, %v417_v24  ;;  %v9630_v23 = vpack.c.bf16 %v593_v22, %v592_v21 }
 0x1b3   :  { %v371_v29 = vadd.f32 %v7672_v18, %v370_v25  ;;  %v8476_v30 = vpop.f32.mrb[3].mxu0 }
 0x1b4   :  { %v501_v31 = vsel %vm500_vm3, %v11113_v27, 0.0 }
 0x1b5   :  { %v11120_v32 = vadd.f32 %v423_v26, %v371_v29  ;;  %502 = vadd.xlane.f32.xlu0 %v501_v31 }
 0x1b6   :  { %v375_v33 = vpop.f32.mrb[4].mxu0 }
 0x1b7   :  { %v376_v34 = vadd.f32 %v7672_v18, %v375_v33  ;;  %v8479_v35 = vpop.f32.mrb[5].mxu0  ;;  %v504_v36 = vsel %vm500_vm3, %v11120_v32, 0.0 }
 0x1b9   :  { %v419_v38 = vsel %vm402_vm4, %v7678_v20, %v376_v34  ;;  %505 = vadd.xlane.f32.xlu0 %v504_v36  ;;  %vm854_vm4 = vcmask 277504  }
 0x1ba   :  { %v380_v39 = vpop.f32.mrb[6].mxu0  ;;  %v11127_v41 = vadd.f32 %v424_v37, %v419_v38 }
 0x1bb   :  { %v381_v42 = vadd.f32 %v7672_v18, %v380_v39  ;;  %v8482_v43 = vpop.f32.mrb[7].mxu0 }
 0x1bc   :  { %v507_v44 = vsel %vm500_vm3, %v11127_v41, 0.0 }
 0x1bd   :  { %v11131_v45 = vadd.f32 %v425_v40, %v381_v42  ;;  %508 = vadd.xlane.f32.xlu1 %v507_v44  ;;  %v7679_v42 = vld [vmem:[%s10839_s25] ss:$0 sm:$0xff]  ;;  %s10799_s25 = smov 80  }
 0x1be   :  { %v385_v46 = vpop.f32.mrb[8].mxu0 }
 0x1bf   :  { %v386_v48 = vadd.f32 %v7672_v18, %v385_v46  ;;  %v510_v49 = vsel %vm500_vm3, %v11131_v45, 0.0  ;;  %v8485_v50 = vpop.f32.mrb[9].mxu0  ;;  %v590_v18 = vld [vmem:[%s10849_s3] sm:$0xff]  ;;  %s10801_s3 = smov 48  }
 0x1c0   :  { %v9627_v20 = vpack.c.bf16 %v591_v19, %v590_v18  ;;  %v7680_v46 = vld [vmem:[%s10844_s29] ss:$0 sm:$0xff]  ;;  %s10800_s29 = smov 112  }
 0x1c1   :  { %v11136_v51 = vadd.f32 %v426_v47, %v386_v48  ;;  %511 = vadd.xlane.f32.xlu1 %v510_v49 }
 0x1c2   :  { %9628 = vmatpush3.bf16.msra.mxu1 %v9627_v20 }
 0x1c3   :  { %v514_v52 = vsel %vm513_vm5, %v11136_v51, 0.0  ;;  %9629 = vmatprep.subr.bf16.mxu1 %v10790_v0 }
 0x1c4   :  { %515 = vadd.xlane.f32.xlu0 %v514_v52 }
 0x1c6   :  { %9631 = vmatpush3.bf16.msra.mxu1 %v9630_v23 }
 0x1c7   :  { %9632 = vmatprep.subr.bf16.mxu1 %v10790_v0 }
 0x242   :  { %v503_v53 = vpop.xlane.xlu0 %502 }
 0x243   :  { %v518_v54 = vmul.f32 0.03125, %v503_v53 }
 0x245   :  { %v523_v55 = vsub.f32 %v11113_v27, %v518_v54 }
 0x246   :  { %v506_v56 = vpop.xlane.xlu0 %505 }
 0x247   :  { %v519_v57 = vmul.f32 0.03125, %v506_v56  ;;  %v528_v58 = vmul.f32 %v523_v55, %v523_v55 }
 0x249   :  { %v524_v59 = vsub.f32 %v11120_v32, %v519_v57  ;;  %v533_v60 = vsel %vm500_vm3, %v528_v58, 0.0 }
 0x24a   :  { %v509_v61 = vpop.xlane.xlu1 %508  ;;  %534 = vadd.xlane.f32.xlu1 %v533_v60 }
 0x24b   :  { %v520_v62 = vmul.f32 0.03125, %v509_v61  ;;  %v529_v63 = vmul.f32 %v524_v59, %v524_v59 }
 0x24d   :  { %v525_v2 = vsub.f32 %v11127_v41, %v520_v62  ;;  %v536_v3 = vsel %vm500_vm3, %v529_v63, 0.0 }
 0x24e   :  { %v512_v4 = vpop.xlane.xlu1 %511  ;;  %537 = vadd.xlane.f32.xlu0 %v536_v3 }
 0x24f   :  { %v521_v5 = vmul.f32 0.03125, %v512_v4  ;;  %v530_v6 = vmul.f32 %v525_v2, %v525_v2 }
 0x251   :  { %v526_v7 = vsub.f32 %v11131_v45, %v521_v5  ;;  %v516_v8 = vpop.xlane.xlu0 %515  ;;  %v539_v9 = vsel %vm500_vm3, %v530_v6, 0.0  ;;  %v7681_v5 = vld [vmem:[%s10854_s8] ss:$0 sm:$0xff]  ;;  %s10802_s8 = smov 104  }
 0x252   :  { %v522_v10 = vmul.f32 0.03125, %v516_v8  ;;  %540 = vadd.xlane.f32.xlu1 %v539_v9 }
 0x253   :  { %v531_v11 = vmul.f32 %v526_v7, %v526_v7 }
 0x254   :  { %v527_v12 = vsub.f32 %v11136_v51, %v522_v10 }
 0x255   :  { %v542_v13 = vsel %vm500_vm3, %v531_v11, 0.0 }
 0x256   :  { %543 = vadd.xlane.f32.xlu0 %v542_v13  ;;  %v532_v14 = vmul.f32 %v527_v12, %v527_v12 }
 0x258   :  { %v545_v15 = vsel %vm513_vm5, %v532_v14, 0.0 }
 0x259   :  { %546 = vadd.xlane.f32.xlu1 %v545_v15 }
 0x2d7   :  { %v535_v24 = vpop.xlane.xlu1 %534 }
 0x2d8   :  { %v548_v25 = vmul.f32 0.03125, %v535_v24 }
 0x2da   :  { %v553_v26 = vadd.f32 1e-06, %v548_v25 }
 0x2db   :  { %v538_v29 = vpop.xlane.xlu0 %537 }
 0x2dc   :  { %10237 = vrsqrt.f32 %v553_v26  ;;  %v549_v30 = vmul.f32 0.03125, %v538_v29 }
 0x2de   :  { %v554_v31 = vadd.f32 1e-06, %v549_v30 }
 0x2df   :  { %v541_v33 = vpop.xlane.xlu1 %540 }
 0x2e0   :  { %10239 = vrsqrt.f32 %v554_v31  ;;  %v550_v34 = vmul.f32 0.03125, %v541_v33 }
 0x2e2   :  { %v555_v35 = vadd.f32 1e-06, %v550_v34 }
 0x2e3   :  { %v544_v36 = vpop.xlane.xlu0 %543 }
 0x2e4   :  { %10241 = vrsqrt.f32 %v555_v35  ;;  %v551_v37 = vmul.f32 0.03125, %v544_v36 }
 0x2e6   :  { %v10238_v38 = vpop.eup %10237  ;;  %v556_v39 = vadd.f32 1e-06, %v551_v37  ;;  %v547_v40 = vpop.xlane.xlu1 %546 }
 0x2e7   :  { %v552_v43 = vmul.f32 0.03125, %v547_v40  ;;  %v563_v44 = vmul.f32 %v10238_v38, %v523_v55 }
 0x2e8   :  { %10243 = vrsqrt.f32 %v556_v39 }
 0x2e9   :  { %v557_v47 = vadd.f32 1e-06, %v552_v43  ;;  %v574_v48 = vmul.f32 %v7679_v42, %v563_v44 }
 0x2ea   :  { %v10240_v49 = vpop.eup %10239 }
 0x2eb   :  { %10245 = vrsqrt.f32 %v557_v47  ;;  %v585_v50 = vadd.f32 %v7680_v46, %v574_v48  ;;  %v564_v52 = vmul.f32 %v10240_v49, %v524_v59 }
 0x2ed   :  { %8495 = vmatmul.mubr.msk.f32.vlgmr.msra.gmra.mrb[0].mxu1 %vm500_vm3, %v585_v50  ;;  %v575_v53 = vmul.f32 %v7679_v42, %v564_v52 }
 0x2ee   :  { %v10242_v54 = vpop.eup %10241  ;;  %8497 = vmatprep.mubr.msk.f32.mxu1 %vm10791_vm0, %v10792_v1 }
 0x2ef   :  { %v586_v56 = vadd.f32 %v7680_v46, %v575_v53  ;;  %v565_v57 = vmul.f32 %v10242_v54, %v525_v2 }
 0x2f1   :  { %8498 = vmatmul.mubr.msk.f32.gmra.mrb[2].mxu1 %vm500_vm3, %v586_v56  ;;  %v576_v55 = vmul.f32 %v7679_v42, %v565_v57 }
 0x2f2   :  { %v10244_v58 = vpop.eup %10243  ;;  %8500 = vmatprep.mubr.msk.f32.mxu1 %vm10791_vm0, %v10792_v1 }
 0x2f3   :  { %v587_v60 = vadd.f32 %v7680_v46, %v576_v55  ;;  %v566_v61 = vmul.f32 %v10244_v58, %v526_v7 }
 0x2f5   :  { %v10246_v59 = vpop.eup %10245  ;;  %8501 = vmatmul.mubr.msk.f32.gmra.mrb[4].mxu1 %vm500_vm3, %v587_v60  ;;  %v577_v62 = vmul.f32 %v7679_v42, %v566_v61 }
 0x2f6   :  { %8503 = vmatprep.mubr.msk.f32.mxu1 %vm10791_vm0, %v10792_v1  ;;  %v567_v63 = vmul.f32 %v10246_v59, %v527_v12 }
 0x2f7   :  { %v588_v3 = vadd.f32 %v7680_v46, %v577_v62 }
 0x2f8   :  { %v578_v2 = vmul.f32 %v7679_v42, %v567_v63 }
 0x2f9   :  { %8504 = vmatmul.mubr.msk.f32.gmra.mrb[6].mxu1 %vm500_vm3, %v588_v3 }
 0x2fa   :  { %8506 = vmatprep.mubr.msk.f32.mxu1 %vm10791_vm0, %v10792_v1  ;;  %v589_v4 = vadd.f32 %v7680_v46, %v578_v2  ;;  %v11276_v2 = vand.u32 127, %v389_v16 }
 0x2fc   :  { %vm476_vm11 = vcmp.ge.s32.totalorder %v11276_v2, 17  ;;  %vm455_vm12 = vcmp.lt.s32.totalorder %v11276_v2, 17  ;;  %vm482_vm15 = vcmp.lt.s32.totalorder %v11276_v2, 34 }
 0x2fd   :  { %8507 = vmatmul.mubr.msk.f32.gmra.mrb[8].mxu1 %vm500_vm3, %v589_v4  ;;  %vm479_vm14 = vmand %vm463_vm10, %vm476_vm11  ;;  %v10796_v4 = vmov -1e+30  }
 0x2fe   :  { %8519 = vmatprep.mubr.msk.f32.mxu1 %vm10791_vm0, %v10792_v1  ;;  %vm458_vm1 = vmand %vm441_vm13, %vm455_vm12 }
 0x2ff   :  { %vm485_vm2 = vmand %vm479_vm14, %vm482_vm15  ;;  %vm940_vm14 = vcmask 1041408  }
 0x3c0   :  { %v682_v6 = vpop.f32.mrb[0].mxu1 }
 0x3c1   :  { %v683_v7 = vadd.f32 %v7681_v5, %v682_v6  ;;  %v8496_v8 = vpop.f32.mrb[1].mxu1  ;;  %v394_v6 = vadd.s32 32, %v11106_v17 }
 0x3c3   :  { %707 = vst.msk [vmem:[#allocation2] sm:$0xff] %vm706_vm6, %v683_v7  ;;  %vm470_vm10 = vcmp.lt.s32.totalorder %v394_v6, 34 }
 0x3c4   :  { %v687_v9 = vpop.f32.mrb[2].mxu1  ;;  %vm481_vm13 = vmand %vm470_vm10, %vm476_vm11 }
 0x3c5   :  { %v688_v10 = vadd.f32 %v7681_v5, %v687_v9  ;;  %v8499_v11 = vpop.f32.mrb[3].mxu1 }
 0x3c7   :  { %708 = vst.msk [vmem:[#allocation2 + $0x8] sm:$0xff] %vm706_vm6, %v688_v10 }
 0x3c8   :  { %v692_v12 = vpop.f32.mrb[4].mxu1 }
 0x3c9   :  { %v693_v13 = vadd.f32 %v7681_v5, %v692_v12  ;;  %v8502_v14 = vpop.f32.mrb[5].mxu1 }
 0x3ca   :  { %v713_v20 = vld [vmem:[#allocation2] sm:$0xff] }
 0x3cb   :  { %709 = vst.msk [vmem:[#allocation2 + $0x10] sm:$0xff] %vm706_vm6, %v693_v13  ;;  %v11189_v31 = vmul.f32 0.35355338, %v713_v20 }
 0x3cc   :  { %v697_v15 = vpop.f32.mrb[6].mxu1 }
 0x3cd   :  { %v698_v18 = vadd.f32 %v7681_v5, %v697_v15  ;;  %v8505_v19 = vpop.f32.mrb[7].mxu1 }
 0x3ce   :  { %v714_v21 = vld [vmem:[#allocation2 + $0x8] sm:$0xff] }
 0x3cf   :  { %710 = vst.msk [vmem:[#allocation2 + $0x18] sm:$0xff] %vm706_vm6, %v698_v18  ;;  %v11178_v22 = vpack.i.bf16 %v714_v21, %v713_v20  ;;  %v11210_v36 = vmul.f32 0.35355338, %v714_v21 }
 0x3d0   :  { %v702_v23 = vpop.f32.mrb[8].mxu1 }
 0x3d1   :  { %v703_v24 = vadd.f32 %v7681_v5, %v702_v23  ;;  %9998 = vrot.lane.b32.xlu0 %v11178_v22, %s10793_s5  ;;  %v8508_v25 = vpop.f32.mrb[9].mxu1  ;;  %v11285_v5 = vsel %vm455_vm12, 0.0, %v10796_v4  ;;  %vm486_vm12 = vmand %vm476_vm11, %vm482_vm15  ;;  %vm867_vm11 = vcmask 271360  }
 0x3d2   :  { %v715_v26 = vld [vmem:[#allocation2 + $0x10] sm:$0xff]  ;;  %v11306_v19 = vsel %vm486_vm12, 0.0, %v10796_v4 }
 0x3d3   :  { %712 = vst.msk [vmem:[#allocation2 + $0x20] sm:$0x3] %vm13229_vm7, %v703_v24  ;;  %v11197_v34 = vmul.f32 0.35355338, %v715_v26  ;;  %vm490_vm7 = vmor %vm458_vm1, %vm485_vm2 }
 0x3d4   :  { %v11296_v12 = vsel %vm490_vm7, 0.0, %v10796_v4  ;;  %vm487_vm7 = vmand %vm481_vm13, %vm482_vm15  ;;  %vm13273_vm15 = vcmask 779264  }
 0x3d5   :  { %v11312_v25 = vsel %vm487_vm7, 0.0, %v10796_v4  ;;  %vm13285_vm1 = vmmov %vm13273_vm15 }
 0x3d6   :  { %v716_v29 = vld [vmem:[#allocation2 + $0x18] sm:$0xff] }
 0x3d7   :  { %v11183_v30 = vpack.i.bf16 %v716_v29, %v715_v26  ;;  %v11214_v37 = vmul.f32 0.35355338, %v716_v29 }
 0x3d9   :  { %10013 = vrot.lane.b32.xlu0 %v11183_v30, %s10794_s9  ;;  %10003 = vrot.lane.b32.xlu1 %v11183_v30, %s10793_s5 }
 0x3da   :  { %v11191_v33 = vld [vmem:[#allocation2 + $0x20] sm:$0x3] }
 0x3db   :  { %v11204_v35 = vmul.f32 0.35355338, %v11191_v33 }
 0x3dd   :  { %1034 = vrot.lane.b32.xlu0 %v11189_v31, %s10795_s13  ;;  %736 = vrot.lane.b32.xlu1 %v11191_v33, %s10793_s5 }
 0x3e1   :  { %1038 = vrot.lane.b32.xlu0 %v11197_v34, %s10795_s13  ;;  %10008 = vrot.lane.b32.xlu1 %v11178_v22, %s10794_s9 }
 0x3e5   :  { %1052 = vrot.lane.b32.xlu1 %v11191_v33, %s10794_s9  ;;  %1042 = vrot.lane.b32.xlu0 %v11204_v35, %s10795_s13 }
 0x3e9   :  { %1036 = vrot.lane.b32.xlu1 %v11210_v36, %s10795_s13 }
 0x3ed   :  { %1040 = vrot.lane.b32.xlu1 %v11214_v37, %s10795_s13 }
 0x443   :  { %v9999_v38 = vpop.permute.xlu0 %9998 }
 0x444   :  { %v10001_v39 = vunpack.i.h.bf16 %v9999_v38  ;;  %v10000_v40 = vunpack.i.l.bf16 %v9999_v38 }
 0x446   :  { %v9633_v43 = vpack.c.bf16 %v10001_v39, %v10000_v40 }
 0x448   :  { %9635 = vmatpush3.bf16.xpose.msk.msra.mxu1 %vm11220_vm9, %v9633_v43 }
 0x449   :  { %9636 = vmatprep.subr.bf16.mxu1 %v10790_v0 }
 0x44b   :  { %v10004_v44 = vpop.permute.xlu1 %10003  ;;  %v10014_v56 = vpop.permute.xlu0 %10013 }
 0x44c   :  { %v10006_v46 = vunpack.i.h.bf16 %v10004_v44  ;;  %v10005_v47 = vunpack.i.l.bf16 %v10004_v44  ;;  %v10016_v57 = vunpack.i.h.bf16 %v10014_v56  ;;  %v10015_v55 = vunpack.i.l.bf16 %v10014_v56 }
 0x44e   :  { %v9637_v48 = vpack.c.bf16 %v10006_v46, %v10005_v47  ;;  %v9651_v58 = vpack.c.bf16 %v10016_v57, %v10015_v55 }
 0x44f   :  { %v737_v49 = vpop.permute.xlu1 %736  ;;  %v1035_v61 = vpop.permute.xlu0 %1034 }
 0x450   :  { %9639 = vmatpush3.bf16.xpose.msk.msra.mxu1 %vm11220_vm9, %v9637_v48 }
 0x451   :  { %8517 = vmatprep.subr.mxu1 %v10792_v1 }
 0x453   :  { %v10009_v50 = vpop.permute.xlu1 %10008  ;;  %v1039_v62 = vpop.permute.xlu0 %1038 }
 0x454   :  { %v10011_v52 = vunpack.i.h.bf16 %v10009_v50  ;;  %v10010_v53 = vunpack.i.l.bf16 %v10009_v50 }
 0x456   :  { %v9647_v54 = vpack.c.bf16 %v10011_v52, %v10010_v53 }
 0x457   :  { %v1053_v60 = vpop.permute.xlu1 %1052  ;;  %v1043_v3 = vpop.permute.xlu0 %1042 }
 0x458   :  { %8518 = vmatpush3.xpose.msk.msra.mxu1 %vm738_vm8, %v737_v49 }
 0x459   :  { %9646 = vmatprep.subr.bf16.mxu1 %v10790_v0 }
 0x45b   :  { %8520 = vmatmul.mubr.msk.f32.vlgmr.msra.gmra.mrb[10].mxu1 %vm738_vm8, %v11189_v31  ;;  %v1037_v59 = vpop.permute.xlu1 %1036 }
 0x45c   :  { %9649 = vmatpush3.bf16.xpose.msk.msra.mxu1 %vm11220_vm9, %v9647_v54  ;;  %8522 = vmatprep.mubr.msk.f32.mxu1 %vm10791_vm0, %v10792_v1 }
 0x45d   :  { %9650 = vmatprep.subr.bf16.mxu1 %v10790_v0 }
 0x45f   :  { %8523 = vmatmul.mubr.msk.f32.gmra.mrb[12].mxu1 %vm738_vm8, %v11210_v36  ;;  %v1041_v63 = vpop.permute.xlu1 %1040 }
 0x460   :  { %8525 = vmatprep.mubr.msk.f32.mxu1 %vm10791_vm0, %v10792_v1 }
 0x463   :  { %8526 = vmatmul.mubr.msk.f32.gmra.mrb[14].mxu1 %vm738_vm8, %v11197_v34 }
 0x464   :  { %9653 = vmatpush3.bf16.xpose.msk.msra.mxu1 %vm11220_vm9, %v9651_v58  ;;  %8528 = vmatprep.mubr.msk.f32.mxu1 %vm10791_vm0, %v10792_v1 }
 0x465   :  { %8567 = vmatprep.subr.mxu1 %v10792_v1 }
 0x467   :  { %8529 = vmatmul.mubr.msk.f32.gmra.mrb[16].mxu1 %vm738_vm8, %v11214_v37 }
 0x468   :  { %8531 = vmatprep.mubr.msk.f32.mxu1 %vm10791_vm0, %v10792_v1 }
 0x46b   :  { %8532 = vmatmul.mubr.msk.f32.gmra.mrb[18].mxu1 %vm738_vm8, %v11204_v35 }
 0x46c   :  { %8568 = vmatpush3.xpose.msk.msra.mxu1 %vm738_vm8, %v1053_v60  ;;  %8569 = vmatprep.mubr.msk.f32.mxu1 %vm10791_vm0, %v10792_v1 }
 0x46d   :  { %8609 = vmatprep.subr.mxu1 %v10792_v1 }
 0x46f   :  { %8570 = vmatmul.mubr.msk.f32.vlgmr.msra.gmra.mrb[20].mxu1 %vm738_vm8, %v1035_v61 }
 0x470   :  { %8572 = vmatprep.mubr.msk.f32.mxu1 %vm10791_vm0, %v10792_v1 }
 0x473   :  { %8573 = vmatmul.mubr.msk.f32.gmra.mrb[22].mxu1 %vm738_vm8, %v1037_v59 }
 0x474   :  { %8575 = vmatprep.mubr.msk.f32.mxu1 %vm10791_vm0, %v10792_v1 }
 0x477   :  { %8576 = vmatmul.mubr.msk.f32.gmra.mrb[24].mxu1 %vm738_vm8, %v1039_v62 }
 0x478   :  { %8578 = vmatprep.mubr.msk.f32.mxu1 %vm10791_vm0, %v10792_v1 }
 0x47b   :  { %8579 = vmatmul.mubr.msk.f32.gmra.mrb[26].mxu1 %vm738_vm8, %v1041_v63 }
 0x47c   :  { %8581 = vmatprep.mubr.msk.f32.mxu1 %vm10791_vm0, %v10792_v1 }
 0x47f   :  { %8582 = vmatmul.mubr.msk.f32.gmra.mrb[28].mxu1 %vm738_vm8, %v1043_v3 }
 0x480   :  { %8611 = vmatprep.mubr.msk.f32.mxu1 %vm10791_vm0, %v10792_v1 }
 0x52e   :  { %v830_v16 = vpop.f32.mrb[10].mxu1 }
 0x52f   :  { %v11291_v7 = vadd.f32 %v830_v16, %v11285_v5  ;;  %v8521_v28 = vpop.f32.mrb[11].mxu1 }
 0x531   :  { %v855_v8 = vsel %vm854_vm4, %v11291_v7, -inf }
 0x532   :  { %856 = vmax.xlane.f32.xlu1 %v855_v8  ;;  %v835_v9 = vpop.f32.mrb[12].mxu1 }
 0x533   :  { %v836_v10 = vadd.f32 %v835_v9, %v11285_v5  ;;  %v8524_v11 = vpop.f32.mrb[13].mxu1 }
 0x535   :  { %v858_v13 = vsel %vm854_vm4, %v836_v10, -inf }
 0x536   :  { %859 = vmax.xlane.f32.xlu0 %v858_v13  ;;  %v840_v14 = vpop.f32.mrb[14].mxu1 }
 0x537   :  { %v841_v15 = vadd.f32 %v840_v14, %v11296_v12  ;;  %v8527_v18 = vpop.f32.mrb[15].mxu1 }
 0x539   :  { %v861_v20 = vsel %vm854_vm4, %v841_v15, -inf }
 0x53a   :  { %862 = vmax.xlane.f32.xlu0 %v861_v20  ;;  %v845_v21 = vpop.f32.mrb[16].mxu1 }
 0x53b   :  { %v846_v23 = vadd.f32 %v845_v21, %v11306_v19  ;;  %v8530_v24 = vpop.f32.mrb[17].mxu1 }
 0x53d   :  { %v864_v26 = vsel %vm854_vm4, %v846_v23, -inf }
 0x53e   :  { %865 = vmax.xlane.f32.xlu0 %v864_v26  ;;  %v850_v29 = vpop.f32.mrb[18].mxu1 }
 0x53f   :  { %v851_v38 = vadd.f32 %v850_v29, %v11312_v25  ;;  %v8533_v39 = vpop.f32.mrb[19].mxu1 }
 0x541   :  { %v868_v40 = vsel %vm867_vm11, %v851_v38, -inf }
 0x542   :  { %869 = vmax.xlane.f32.xlu1 %v868_v40  ;;  %v1140_v43 = vpop.f32.mrb[20].mxu1 }
 0x543   :  { %v1141_v44 = vadd.f32 %v1140_v43, %v11285_v5  ;;  %v8571_v46 = vpop.f32.mrb[21].mxu1 }
 0x545   :  { %v1164_v47 = vsel %vm854_vm4, %v1141_v44, -inf }
 0x546   :  { %1165 = vmax.xlane.f32.xlu0 %v1164_v47  ;;  %v1145_v48 = vpop.f32.mrb[22].mxu1 }
 0x547   :  { %v1146_v49 = vadd.f32 %v1145_v48, %v11285_v5  ;;  %v8574_v50 = vpop.f32.mrb[23].mxu1 }
 0x549   :  { %v1167_v52 = vsel %vm854_vm4, %v1146_v49, -inf }
 0x54a   :  { %1168 = vmax.xlane.f32.xlu1 %v1167_v52  ;;  %v1150_v53 = vpop.f32.mrb[24].mxu1 }
 0x54b   :  { %v1151_v54 = vadd.f32 %v1150_v53, %v11296_v12  ;;  %v8577_v56 = vpop.f32.mrb[25].mxu1 }
 0x54d   :  { %v1170_v57 = vsel %vm854_vm4, %v1151_v54, -inf }
 0x54e   :  { %1171 = vmax.xlane.f32.xlu0 %v1170_v57  ;;  %v1155_v55 = vpop.f32.mrb[26].mxu1 }
 0x54f   :  { %v11324_v58 = vadd.f32 %v1155_v55, %v11306_v19  ;;  %v8580_v60 = vpop.f32.mrb[27].mxu1 }
 0x551   :  { %v1173_v61 = vsel %vm854_vm4, %v11324_v58, -inf }
 0x552   :  { %1174 = vmax.xlane.f32.xlu1 %v1173_v61  ;;  %v1160_v59 = vpop.f32.mrb[28].mxu1 }
 0x553   :  { %v8583_v62 = vpop.f32.mrb[29].mxu1  ;;  %v11333_v63 = vadd.f32 %v1160_v59, %v11312_v25 }
 0x555   :  { %v1176_v3 = vsel %vm867_vm11, %v11333_v63, -inf }
 0x563   :  { %10023 = vrot.lane.b32.xlu1 %v11183_v30, %s10797_s17 }
 0x564   :  { %10018 = vrot.lane.b32.xlu0 %v11178_v22, %s10797_s17 }
 0x583   :  { %1177 = vmax.xlane.f32.xlu0 %v1176_v3 }
 0x599   :  { %919 = vrot.lane.b32.xlu0 %v11191_v33, %s10797_s17 }
 0x5bf   :  { %v857_v4 = vpop.xlane.xlu1 %856 }
 0x5c0   :  { %v871_v16 = vsub.f32 %v11291_v7, %v857_v4 }
 0x5c2   :  { %v876_v6 = vmul.f32 1.442695, %v871_v16 }
 0x5c3   :  { %v860_v28 = vpop.xlane.xlu0 %859 }
 0x5c4   :  { %10247 = vpow2.f32 %v876_v6  ;;  %v872_v8 = vsub.f32 %v836_v10, %v860_v28 }
 0x5c6   :  { %v878_v9 = vmul.f32 1.442695, %v872_v8 }
 0x5c7   :  { %v863_v11 = vpop.xlane.xlu0 %862 }
 0x5c8   :  { %10249 = vpow2.f32 %v878_v9  ;;  %v873_v13 = vsub.f32 %v841_v15, %v863_v11 }
 0x5ca   :  { %v880_v14 = vmul.f32 1.442695, %v873_v13 }
 0x5cb   :  { %v866_v18 = vpop.xlane.xlu0 %865 }
 0x5cc   :  { %10251 = vpow2.f32 %v880_v14  ;;  %v874_v20 = vsub.f32 %v846_v23, %v866_v18 }
 0x5ce   :  { %v11340_v21 = vpop.eup %10247  ;;  %v882_v24 = vmul.f32 1.442695, %v874_v20 }
 0x5cf   :  { %v870_v26 = vpop.xlane.xlu1 %869  ;;  %v886_v29 = vsel %vm854_vm4, %v11340_v21, 0.0 }
 0x5d0   :  { %10253 = vpow2.f32 %v882_v24  ;;  %v875_v7 = vsub.f32 %v851_v38, %v870_v26  ;;  %887 = vadd.xlane.f32.xlu1 %v886_v29 }
 0x5d2   :  { %v11344_v39 = vpop.eup %10249  ;;  %v884_v10 = vmul.f32 1.442695, %v875_v7 }
 0x5d3   :  { %v1166_v40 = vpop.xlane.xlu0 %1165  ;;  %v889_v15 = vsel %vm854_vm4, %v11344_v39, 0.0 }
 0x5d4   :  { %10255 = vpow2.f32 %v884_v10  ;;  %v1179_v43 = vsub.f32 %v1141_v44, %v1166_v40  ;;  %890 = vadd.xlane.f32.xlu0 %v889_v15 }
 0x5d6   :  { %v11348_v23 = vpop.eup %10251  ;;  %v1184_v46 = vmul.f32 1.442695, %v1179_v43 }
 0x5d7   :  { %v1169_v47 = vpop.xlane.xlu1 %1168  ;;  %v892_v48 = vsel %vm854_vm4, %v11348_v23, 0.0 }
 0x5d8   :  { %10257 = vpow2.f32 %v1184_v46  ;;  %v1180_v38 = vsub.f32 %v1146_v49, %v1169_v47  ;;  %893 = vadd.xlane.f32.xlu1 %v892_v48 }
 0x5da   :  { %v11352_v50 = vpop.eup %10253  ;;  %v1186_v52 = vmul.f32 1.442695, %v1180_v38 }
 0x5db   :  { %v1172_v53 = vpop.xlane.xlu0 %1171  ;;  %v895_v56 = vsel %vm854_vm4, %v11352_v50, 0.0 }
 0x5dc   :  { %10259 = vpow2.f32 %v1186_v52  ;;  %v1181_v44 = vsub.f32 %v1151_v54, %v1172_v53  ;;  %896 = vadd.xlane.f32.xlu0 %v895_v56 }
 0x5de   :  { %v11356_v57 = vpop.eup %10255  ;;  %v1188_v55 = vmul.f32 1.442695, %v1181_v44 }
 0x5df   :  { %v10019_v60 = vpop.permute.xlu0 %10018  ;;  %v1175_v61 = vpop.xlane.xlu1 %1174  ;;  %v898_v59 = vsel %vm867_vm11, %v11356_v57, 0.0 }
 0x5e0   :  { %10261 = vpow2.f32 %v1188_v55  ;;  %v10021_v49 = vunpack.i.h.bf16 %v10019_v60  ;;  %v10020_v62 = vunpack.i.l.bf16 %v10019_v60  ;;  %v1182_v3 = vsub.f32 %v11324_v58, %v1175_v61  ;;  %899 = vadd.xlane.f32.xlu1 %v898_v59 }
 0x5e2   :  { %v11361_v4 = vpop.eup %10257  ;;  %v9641_v16 = vpack.c.bf16 %v10021_v49, %v10020_v62  ;;  %v1190_v6 = vmul.f32 1.442695, %v1182_v3 }
 0x5e3   :  { %v10024_v54 = vpop.permute.xlu1 %10023  ;;  %v1194_v28 = vsel %vm854_vm4, %v11361_v4, 0.0 }
 0x5e4   :  { %10263 = vpow2.f32 %v1190_v6  ;;  %v10026_v8 = vunpack.i.h.bf16 %v10024_v54  ;;  %v10025_v9 = vunpack.i.l.bf16 %v10024_v54  ;;  %9642 = vmatpush3.bf16.msra.mxu0 %v9641_v16  ;;  %1195 = vadd.xlane.f32.xlu1 %v1194_v28 }
 0x5e5   :  { %9643 = vmatprep.subr.bf16.mxu0 %v10790_v0 }
 0x5e6   :  { %v11366_v11 = vpop.eup %10259  ;;  %v9644_v13 = vpack.c.bf16 %v10026_v8, %v10025_v9 }
 0x5e7   :  { %v1197_v58 = vsel %vm854_vm4, %v11366_v11, 0.0 }
 0x5e8   :  { %9645 = vmatpush3.bf16.msra.mxu0 %v9644_v13  ;;  %1198 = vadd.xlane.f32.xlu0 %v1197_v58 }
 0x5e9   :  { %8542 = vmatprep.subr.mxu0 %v10792_v1 }
 0x5ea   :  { %v11371_v14 = vpop.eup %10261 }
 0x5eb   :  { %v1200_v18 = vsel %vm854_vm4, %v11371_v14, 0.0 }
 0x5ec   :  { %1201 = vadd.xlane.f32.xlu1 %v1200_v18 }
 0x5ee   :  { %v11375_v20 = vpop.eup %10263 }
 0x5ef   :  { %v1203_v24 = vsel %vm854_vm4, %v11375_v20, 0.0 }
 0x5f0   :  { %1204 = vadd.xlane.f32.xlu1 %v1203_v24  ;;  %v1033_v24 = vld [vmem:[%s10859_s14] sm:$0xff] }
 0x5fe   :  { %10033 = vrot.lane.b32.xlu0 %v11183_v30, %s10798_s21 }
 0x602   :  { %1227 = vrot.lane.b32.xlu0 %v11191_v33, %s10798_s21 }
 0x606   :  { %10043 = vrot.lane.b32.xlu0 %v11183_v30, %s10799_s25 }
 0x60a   :  { %1551 = vrot.lane.b32.xlu0 %v11189_v31, %s10800_s29 }
 0x60e   :  { %1555 = vrot.lane.b32.xlu0 %v11197_v34, %s10800_s29 }
 0x610   :  { %v1178_v26 = vpop.xlane.xlu0 %1177 }
 0x611   :  { %v1183_v29 = vsub.f32 %v11333_v63, %v1178_v26 }
 0x612   :  { %1559 = vrot.lane.b32.xlu0 %v11204_v35, %s10800_s29 }
 0x613   :  { %v1192_v7 = vmul.f32 1.442695, %v1183_v29 }
 0x614   :  { %v920_v10 = vpop.permute.xlu0 %919 }
 0x615   :  { %10265 = vpow2.f32 %v1192_v7  ;;  %8543 = vmatpush3.msk.msra.mxu0 %vm940_vm14, %v920_v10 }
 0x616   :  { %9654 = vmatprep.subr.bf16.mxu0 %v10790_v0 }
 0x61f   :  { %v11394_v40 = vpop.eup %10265 }
 0x620   :  { %v1206_v15 = vsel %vm867_vm11, %v11394_v40, 0.0 }
 0x621   :  { %1207 = vadd.xlane.f32.xlu1 %v1206_v15 }
 0x632   :  { %10028 = vrot.lane.b32.xlu1 %v11178_v22, %s10798_s21 }
 0x636   :  { %10038 = vrot.lane.b32.xlu1 %v11178_v22, %s10799_s25 }
 0x63a   :  { %1569 = vrot.lane.b32.xlu1 %v11191_v33, %s10799_s25 }
 0x63e   :  { %1553 = vrot.lane.b32.xlu1 %v11210_v36, %s10800_s29 }
 0x642   :  { %1557 = vrot.lane.b32.xlu1 %v11214_v37, %s10800_s29 }
 0x65d   :  { %v888_v63 = vpop.xlane.xlu1 %887 }
 0x65e   :  { %10267 = vrcp.f32 %v888_v63 }
 0x661   :  { %v891_v43 = vpop.xlane.xlu0 %890 }
 0x662   :  { %10269 = vrcp.f32 %v891_v43  ;;  %v1340_v43 = vld [vmem:[%s10859_s14 + $0x8] sm:$0xff] }
 0x663   :  { %8610 = vmatpush3.msra.mxu1 %v1340_v43 }
 0x664   :  { %9660 = vmatprep.subr.bf16.mxu1 %v10790_v0 }
 0x665   :  { %v894_v46 = vpop.xlane.xlu1 %893 }
 0x666   :  { %10271 = vrcp.f32 %v894_v46 }
 0x668   :  { %v10268_v47 = vpop.eup %10267 }
 0x669   :  { %v906_v48 = vmul.f32 %v10268_v47, %v11340_v21  ;;  %v897_v38 = vpop.xlane.xlu0 %896 }
 0x66a   :  { %10273 = vrcp.f32 %v897_v38 }
 0x66b   :  { %8545 = vmatmul.mubr.msk.f32.vlgmr.msra.gmra.mrb[10].mxu0 %vm854_vm4, %v906_v48 }
 0x66c   :  { %v10270_v52 = vpop.eup %10269  ;;  %8547 = vmatprep.mubr.msk.f32.mxu0 %vm10791_vm0, %v10792_v1 }
 0x66d   :  { %v900_v53 = vpop.xlane.xlu1 %899  ;;  %v907_v56 = vmul.f32 %v10270_v52, %v11344_v39 }
 0x66e   :  { %10275 = vrcp.f32 %v900_v53 }
 0x66f   :  { %8548 = vmatmul.mubr.msk.f32.gmra.mrb[12].mxu0 %vm854_vm4, %v907_v56 }
 0x670   :  { %v10272_v44 = vpop.eup %10271  ;;  %8550 = vmatprep.mubr.msk.f32.mxu0 %vm10791_vm0, %v10792_v1 }
 0x671   :  { %v908_v21 = vmul.f32 %v10272_v44, %v11348_v23  ;;  %v1196_v23 = vpop.xlane.xlu1 %1195 }
 0x672   :  { %10277 = vrcp.f32 %v1196_v23 }
 0x673   :  { %8551 = vmatmul.mubr.msk.f32.gmra.mrb[14].mxu0 %vm854_vm4, %v908_v21 }
 0x674   :  { %v10274_v55 = vpop.eup %10273  ;;  %8553 = vmatprep.mubr.msk.f32.mxu0 %vm10791_vm0, %v10792_v1 }
 0x675   :  { %v909_v60 = vmul.f32 %v10274_v55, %v11352_v50  ;;  %v1199_v62 = vpop.xlane.xlu0 %1198 }
 0x676   :  { %10279 = vrcp.f32 %v1199_v62 }
 0x677   :  { %8554 = vmatmul.mubr.msk.f32.gmra.mrb[16].mxu0 %vm854_vm4, %v909_v60 }
 0x678   :  { %v10276_v39 = vpop.eup %10275  ;;  %8556 = vmatprep.mubr.msk.f32.mxu0 %vm10791_vm0, %v10792_v1 }
 0x679   :  { %v910_v61 = vmul.f32 %v10276_v39, %v11356_v57  ;;  %v1202_v59 = vpop.xlane.xlu1 %1201  ;;  %v10034_v50 = vpop.permute.xlu0 %10033 }
 0x67a   :  { %v10036_v28 = vunpack.i.h.bf16 %v10034_v50  ;;  %v10035_v8 = vunpack.i.l.bf16 %v10034_v50  ;;  %10281 = vrcp.f32 %v1202_v59 }
 0x67b   :  { %8557 = vmatmul.mubr.msk.f32.gmra.mrb[18].mxu0 %vm854_vm4, %v910_v61 }
 0x67c   :  { %8594 = vmatprep.mubr.msk.f32.mxu0 %vm10791_vm0, %v10792_v1  ;;  %v9658_v9 = vpack.c.bf16 %v10036_v28, %v10035_v8  ;;  %v10278_v13 = vpop.eup %10277 }
 0x67d   :  { %v1205_v49 = vpop.xlane.xlu1 %1204  ;;  %v1214_v58 = vmul.f32 %v10278_v13, %v11361_v4  ;;  %v1228_v18 = vpop.permute.xlu0 %1227 }
 0x67e   :  { %10283 = vrcp.f32 %v1205_v49 }
 0x680   :  { %v10280_v26 = vpop.eup %10279 }
 0x681   :  { %v1215_v29 = vmul.f32 %v10280_v26, %v11366_v11  ;;  %v10044_v61 = vpop.permute.xlu0 %10043 }
 0x682   :  { %v10046_v59 = vunpack.i.h.bf16 %v10044_v61  ;;  %v10045_v49 = vunpack.i.l.bf16 %v10044_v61 }
 0x684   :  { %v10282_v4 = vpop.eup %10281  ;;  %v9665_v50 = vpack.c.bf16 %v10046_v59, %v10045_v49 }
 0x685   :  { %v1216_v7 = vmul.f32 %v10282_v4, %v11371_v14  ;;  %v1552_v13 = vpop.permute.xlu0 %1551 }
 0x688   :  { %v10284_v10 = vpop.eup %10283 }
 0x689   :  { %v1217_v15 = vmul.f32 %v10284_v10, %v11375_v20 }
 0x6ae   :  { %v1208_v3 = vpop.xlane.xlu1 %1207 }
 0x6af   :  { %10285 = vrcp.f32 %v1208_v3 }
 0x6b2   :  { %v10029_v16 = vpop.permute.xlu1 %10028 }
 0x6b3   :  { %v10031_v6 = vunpack.i.h.bf16 %v10029_v16  ;;  %v10030_v54 = vunpack.i.l.bf16 %v10029_v16 }
 0x6b5   :  { %v9655_v57 = vpack.c.bf16 %v10031_v6, %v10030_v54 }
 0x6b6   :  { %v10039_v44 = vpop.permute.xlu1 %10038 }
 0x6b7   :  { %9656 = vmatpush3.bf16.msra.mxu0 %v9655_v57  ;;  %v10041_v21 = vunpack.i.h.bf16 %v10039_v44  ;;  %v10040_v55 = vunpack.i.l.bf16 %v10039_v44 }
 0x6b8   :  { %9657 = vmatprep.subr.bf16.mxu0 %v10790_v0 }
 0x6b9   :  { %v10286_v63 = vpop.eup %10285  ;;  %v9661_v60 = vpack.c.bf16 %v10041_v21, %v10040_v55 }
 0x6ba   :  { %v1218_v11 = vmul.f32 %v10286_v63, %v11394_v40  ;;  %v1570_v57 = vpop.permute.xlu1 %1569 }
 0x6bb   :  { %9659 = vmatpush3.bf16.msra.mxu0 %v9658_v9 }
 0x6bc   :  { %8592 = vmatprep.subr.mxu0 %v10792_v1 }
 0x6bf   :  { %8593 = vmatpush3.msk.msra.mxu0 %vm940_vm14, %v1228_v18  ;;  %v1556_v18 = vpop.permute.xlu0 %1555 }
 0x6c0   :  { %8595 = vmatmul.mubr.msk.f32.vlgmr.msra.gmra.mrb[20].mxu0 %vm854_vm4, %v1214_v58  ;;  %8626 = vmatprep.subr.mxu0 %v10792_v1  ;;  %v1554_v58 = vpop.permute.xlu1 %1553 }
 0x6c1   :  { %8597 = vmatprep.mubr.msk.f32.mxu0 %vm10791_vm0, %v10792_v1  ;;  %8627 = vmatpush3.msra.mxu0 %v1033_v24 }
 0x6c2   :  { %9668 = vmatprep.subr.bf16.mxu0 %v10790_v0 }
 0x6c3   :  { %v1560_v26 = vpop.permute.xlu0 %1559 }
 0x6c4   :  { %8598 = vmatmul.mubr.msk.f32.gmra.mrb[22].mxu0 %vm854_vm4, %v1215_v29  ;;  %v1558_v24 = vpop.permute.xlu1 %1557 }
 0x6c5   :  { %8600 = vmatprep.mubr.msk.f32.mxu0 %vm10791_vm0, %v10792_v1 }
 0x6c8   :  { %8601 = vmatmul.mubr.msk.f32.gmra.mrb[24].mxu0 %vm854_vm4, %v1216_v7 }
 0x6c9   :  { %8603 = vmatprep.mubr.msk.f32.mxu0 %vm10791_vm0, %v10792_v1 }
 0x6cc   :  { %8604 = vmatmul.mubr.msk.f32.gmra.mrb[26].mxu0 %vm854_vm4, %v1217_v15 }
 0x6cd   :  { %8606 = vmatprep.mubr.msk.f32.mxu0 %vm10791_vm0, %v10792_v1 }
 0x6d0   :  { %8607 = vmatmul.mubr.msk.f32.gmra.mrb[28].mxu0 %vm854_vm4, %v1218_v11 }
 0x6d1   :  { %8628 = vmatprep.mubr.msk.f32.mxu0 %vm10791_vm0, %v10792_v1 }
 0x73e   :  { %v1009_v14 = vpop.f32.mrb[10].mxu0 }
 0x73f   :  { %v8546_v46 = vpop.f32.mrb[11].mxu0  ;;  %8629 = vmatmul.mubr.msk.f32.vlgmr.msra.gmra.mrb[30].mxu0 %vm738_vm8, %v1009_v14 }
 0x740   :  { %8631 = vmatprep.mubr.msk.f32.mxu0 %vm10791_vm0, %v10792_v1 }
 0x742   :  { %v1014_v20 = vpop.f32.mrb[12].mxu0 }
 0x743   :  { %v8549_v47 = vpop.f32.mrb[13].mxu0  ;;  %8632 = vmatmul.mubr.msk.f32.gmra.mrb[32].mxu0 %vm738_vm8, %v1014_v20 }
 0x744   :  { %8634 = vmatprep.mubr.msk.f32.mxu0 %vm10791_vm0, %v10792_v1 }
 0x746   :  { %v1019_v40 = vpop.f32.mrb[14].mxu0 }
 0x747   :  { %v8552_v48 = vpop.f32.mrb[15].mxu0  ;;  %8635 = vmatmul.mubr.msk.f32.gmra.mrb[34].mxu0 %vm738_vm8, %v1019_v40 }
 0x748   :  { %8637 = vmatprep.mubr.msk.f32.mxu0 %vm10791_vm0, %v10792_v1 }
 0x74a   :  { %v1024_v38 = vpop.f32.mrb[16].mxu0 }
 0x74b   :  { %v8555_v52 = vpop.f32.mrb[17].mxu0  ;;  %8638 = vmatmul.mubr.msk.f32.gmra.mrb[36].mxu0 %vm738_vm8, %v1024_v38 }
 0x74c   :  { %8640 = vmatprep.mubr.msk.f32.mxu0 %vm10791_vm0, %v10792_v1 }
 0x74e   :  { %v1029_v53 = vpop.f32.mrb[18].mxu0 }
 0x74f   :  { %v8558_v56 = vpop.f32.mrb[19].mxu0  ;;  %8641 = vmatmul.mubr.msk.f32.gmra.mrb[38].mxu0 %vm738_vm8, %v1029_v53 }
 0x750   :  { %8678 = vmatprep.mubr.msk.f32.mxu0 %vm10791_vm0, %v10792_v1 }
 0x793   :  { %v1316_v39 = vpop.f32.mrb[20].mxu0 }
 0x794   :  { %v8596_v23 = vpop.f32.mrb[21].mxu0  ;;  %8612 = vmatmul.mubr.msk.f32.vlgmr.msra.gmra.mrb[30].mxu1 %vm738_vm8, %v1316_v39 }
 0x795   :  { %9663 = vmatpush3.bf16.xpose.msk.msra.mxu1 %vm11220_vm9, %v9661_v60  ;;  %8614 = vmatprep.mubr.msk.f32.mxu1 %vm10791_vm0, %v10792_v1 }
 0x796   :  { %9664 = vmatprep.subr.bf16.mxu1 %v10790_v0 }
 0x797   :  { %v1321_v62 = vpop.f32.mrb[22].mxu0 }
 0x798   :  { %v8599_v3 = vpop.f32.mrb[23].mxu0  ;;  %8615 = vmatmul.mubr.msk.f32.gmra.mrb[32].mxu1 %vm738_vm8, %v1321_v62 }
 0x799   :  { %8617 = vmatprep.mubr.msk.f32.mxu1 %vm10791_vm0, %v10792_v1 }
 0x79b   :  { %v1326_v16 = vpop.f32.mrb[24].mxu0 }
 0x79c   :  { %v8602_v6 = vpop.f32.mrb[25].mxu0  ;;  %8618 = vmatmul.mubr.msk.f32.gmra.mrb[34].mxu1 %vm738_vm8, %v1326_v16 }
 0x79d   :  { %9667 = vmatpush3.bf16.xpose.msk.msra.mxu1 %vm11220_vm9, %v9665_v50  ;;  %8620 = vmatprep.mubr.msk.f32.mxu1 %vm10791_vm0, %v10792_v1 }
 0x79e   :  { %8651 = vmatprep.subr.mxu1 %v10792_v1 }
 0x79f   :  { %v1331_v54 = vpop.f32.mrb[26].mxu0 }
 0x7a0   :  { %v8605_v28 = vpop.f32.mrb[27].mxu0  ;;  %8621 = vmatmul.mubr.msk.f32.gmra.mrb[36].mxu1 %vm738_vm8, %v1331_v54 }
 0x7a1   :  { %8623 = vmatprep.mubr.msk.f32.mxu1 %vm10791_vm0, %v10792_v1 }
 0x7a3   :  { %v1336_v8 = vpop.f32.mrb[28].mxu0 }
 0x7a4   :  { %v8608_v9 = vpop.f32.mrb[29].mxu0  ;;  %8624 = vmatmul.mubr.msk.f32.gmra.mrb[38].mxu1 %vm738_vm8, %v1336_v8 }
 0x7a5   :  { %8652 = vmatpush3.xpose.msk.msra.mxu1 %vm738_vm8, %v1570_v57  ;;  %8653 = vmatprep.mubr.msk.f32.mxu1 %vm10791_vm0, %v10792_v1 }
 0x7a6   :  { %8693 = vmatprep.subr.mxu1 %v10792_v1 }
 0x7a8   :  { %8654 = vmatmul.mubr.msk.f32.vlgmr.msra.gmra.mrb[40].mxu1 %vm738_vm8, %v1552_v13 }
 0x7a9   :  { %8656 = vmatprep.mubr.msk.f32.mxu1 %vm10791_vm0, %v10792_v1 }
 0x7ac   :  { %8657 = vmatmul.mubr.msk.f32.gmra.mrb[42].mxu1 %vm738_vm8, %v1554_v58 }
 0x7ad   :  { %8659 = vmatprep.mubr.msk.f32.mxu1 %vm10791_vm0, %v10792_v1 }
 0x7b0   :  { %8660 = vmatmul.mubr.msk.f32.gmra.mrb[44].mxu1 %vm738_vm8, %v1556_v18 }
 0x7b1   :  { %8662 = vmatprep.mubr.msk.f32.mxu1 %vm10791_vm0, %v10792_v1 }
 0x7b4   :  { %8663 = vmatmul.mubr.msk.f32.gmra.mrb[46].mxu1 %vm738_vm8, %v1558_v24 }
 0x7b5   :  { %8665 = vmatprep.mubr.msk.f32.mxu1 %vm10791_vm0, %v10792_v1 }
 0x7b8   :  { %8666 = vmatmul.mubr.msk.f32.gmra.mrb[48].mxu1 %vm738_vm8, %v1560_v26 }
 0x7b9   :  { %8695 = vmatprep.mubr.msk.f32.mxu1 %vm10791_vm0, %v10792_v1 }
 0x812   :  { %v1527_v29 = vpop.f32.mrb[30].mxu0 }
 0x813   :  { %v8630_v4 = vpop.f32.mrb[31].mxu0 }
 0x816   :  { %v1532_v7 = vpop.f32.mrb[32].mxu0 }
 0x817   :  { %v8633_v10 = vpop.f32.mrb[33].mxu0 }
 0x81a   :  { %v1537_v15 = vpop.f32.mrb[34].mxu0 }
 0x81b   :  { %v8636_v63 = vpop.f32.mrb[35].mxu0 }
 0x81e   :  { %v1542_v11 = vpop.f32.mrb[36].mxu0 }
 0x81f   :  { %v8639_v43 = vpop.f32.mrb[37].mxu0 }
 0x822   :  { %v1547_v14 = vpop.f32.mrb[38].mxu0 }
 0x823   :  { %v8642_v46 = vpop.f32.mrb[39].mxu0 }
 0x867   :  { %v1422_v20 = vpop.f32.mrb[30].mxu1 }
 0x868   :  { %v11509_v47 = vadd.f32 %v1527_v29, %v1422_v20  ;;  %v8613_v40 = vpop.f32.mrb[31].mxu1 }
 0x86b   :  { %v1427_v48 = vpop.f32.mrb[32].mxu1 }
 0x86c   :  { %v11511_v38 = vadd.f32 %v1532_v7, %v1427_v48  ;;  %v8616_v52 = vpop.f32.mrb[33].mxu1 }
 0x86f   :  { %v1432_v53 = vpop.f32.mrb[34].mxu1 }
 0x870   :  { %v11513_v56 = vadd.f32 %v1537_v15, %v1432_v53  ;;  %v8619_v44 = vpop.f32.mrb[35].mxu1 }
 0x873   :  { %v1437_v21 = vpop.f32.mrb[36].mxu1 }
 0x874   :  { %v11515_v55 = vadd.f32 %v1542_v11, %v1437_v21  ;;  %v8622_v60 = vpop.f32.mrb[37].mxu1 }
 0x877   :  { %v1442_v39 = vpop.f32.mrb[38].mxu1 }
 0x878   :  { %v11517_v61 = vadd.f32 %v1547_v14, %v1442_v39  ;;  %v8625_v23 = vpop.f32.mrb[39].mxu1 }
 0x87b   :  { %v1657_v59 = vpop.f32.mrb[40].mxu1 }
 0x87c   :  { %v1658_v49 = vadd.f32 %v1657_v59, %v11285_v5  ;;  %v8655_v62 = vpop.f32.mrb[41].mxu1 }
 0x87e   :  { %v1681_v3 = vsel %vm854_vm4, %v1658_v49, -inf }
 0x87f   :  { %1682 = vmax.xlane.f32.xlu1 %v1681_v3  ;;  %v1662_v50 = vpop.f32.mrb[42].mxu1 }
 0x880   :  { %v1663_v16 = vadd.f32 %v1662_v50, %v11285_v5  ;;  %v8658_v6 = vpop.f32.mrb[43].mxu1 }
 0x882   :  { %v1684_v54 = vsel %vm854_vm4, %v1663_v16, -inf }
 0x883   :  { %1685 = vmax.xlane.f32.xlu0 %v1684_v54  ;;  %v1667_v28 = vpop.f32.mrb[44].mxu1  ;;  %v10561_v54 = vld [vmem:[#allocation2] sm:$0xff] }
 0x884   :  { %v1668_v8 = vadd.f32 %v1667_v28, %v11296_v12  ;;  %v8661_v57 = vpop.f32.mrb[45].mxu1  ;;  %v10562_v28 = vld [vmem:[#allocation2 + $0x8] sm:$0xff] }
 0x886   :  { %v1687_v9 = vsel %vm854_vm4, %v1668_v8, -inf }
 0x887   :  { %1688 = vmax.xlane.f32.xlu0 %v1687_v9  ;;  %v1672_v13 = vpop.f32.mrb[46].mxu1 }
 0x888   :  { %v1673_v58 = vadd.f32 %v1672_v13, %v11306_v19  ;;  %v8664_v18 = vpop.f32.mrb[47].mxu1 }
 0x88a   :  { %v1690_v24 = vsel %vm854_vm4, %v1673_v58, -inf }
 0x88b   :  { %1691 = vmax.xlane.f32.xlu0 %v1690_v24  ;;  %v1677_v26 = vpop.f32.mrb[48].mxu1 }
 0x88c   :  { %v1678_v29 = vadd.f32 %v1677_v26, %v11312_v25  ;;  %v8667_v4 = vpop.f32.mrb[49].mxu1 }
 0x88e   :  { %v1693_v7 = vsel %vm867_vm11, %v1678_v29, -inf }
 0x88f   :  { %1694 = vmax.xlane.f32.xlu1 %v1693_v7 }
 0x90c   :  { %v1683_v10 = vpop.xlane.xlu1 %1682 }
 0x90d   :  { %v1696_v15 = vsub.f32 %v1658_v49, %v1683_v10 }
 0x90f   :  { %v1701_v63 = vmul.f32 1.442695, %v1696_v15 }
 0x910   :  { %v1686_v11 = vpop.xlane.xlu0 %1685 }
 0x911   :  { %10287 = vpow2.f32 %v1701_v63  ;;  %v1697_v43 = vsub.f32 %v1663_v16, %v1686_v11 }
 0x913   :  { %v1703_v14 = vmul.f32 1.442695, %v1697_v43 }
 0x914   :  { %v1689_v52 = vpop.xlane.xlu0 %1688 }
 0x915   :  { %10289 = vpow2.f32 %v1703_v14  ;;  %v1698_v53 = vsub.f32 %v1668_v8, %v1689_v52  ;;  %v11554_v8 = vpack.i.bf16 %v10562_v28, %v10561_v54 }
 0x917   :  { %v1705_v39 = vmul.f32 1.442695, %v1698_v53 }
 0x918   :  { %v1692_v44 = vpop.xlane.xlu0 %1691 }
 0x919   :  { %v1699_v60 = vsub.f32 %v1673_v58, %v1692_v44  ;;  %10291 = vpow2.f32 %v1705_v39 }
 0x91b   :  { %v11529_v46 = vpop.eup %10287  ;;  %v1707_v59 = vmul.f32 1.442695, %v1699_v60 }
 0x91c   :  { %v1711_v20 = vsel %vm854_vm4, %v11529_v46, 0.0  ;;  %v1695_v21 = vpop.xlane.xlu1 %1694 }
 0x91d   :  { %1712 = vadd.xlane.f32.xlu0 %v1711_v20  ;;  %v1700_v23 = vsub.f32 %v1678_v29, %v1695_v21  ;;  %10293 = vpow2.f32 %v1707_v59 }
 0x91f   :  { %v11533_v40 = vpop.eup %10289  ;;  %v1709_v49 = vmul.f32 1.442695, %v1700_v23 }
 0x920   :  { %v1714_v48 = vsel %vm854_vm4, %v11533_v40, 0.0 }
 0x921   :  { %1715 = vadd.xlane.f32.xlu1 %v1714_v48  ;;  %10295 = vpow2.f32 %v1709_v49 }
 0x923   :  { %v10292_v62 = vpop.eup %10291 }
 0x927   :  { %v11541_v3 = vpop.eup %10293 }
 0x928   :  { %v1720_v16 = vsel %vm854_vm4, %v11541_v3, 0.0 }
 0x92b   :  { %v11544_v50 = vpop.eup %10295 }
 0x92c   :  { %v1723_v6 = vsel %vm867_vm11, %v11544_v50, 0.0 }
 0x932   :  { %10048 = vrot.lane.b32.xlu1 %v11178_v22, %s10801_s3  ;;  %v1717_v22 = vsel %vm854_vm4, %v10292_v62, 0.0 }
 0x933   :  { %10053 = vrot.lane.b32.xlu0 %v11183_v30, %s10801_s3 }
 0x952   :  { %1718 = vadd.xlane.f32.xlu0 %v1717_v22  ;;  %v1857_v22 = vld [vmem:[%s10859_s14 + $0x10] sm:$0xff] }
 0x953   :  { %8694 = vmatpush3.msra.mxu1 %v1857_v22 }
 0x954   :  { %9682 = vmatprep.subr.bf16.mxu1 %v10790_v0 }
 0x956   :  { %1721 = vadd.xlane.f32.xlu0 %v1720_v16  ;;  %1724 = vadd.xlane.f32.xlu1 %v1723_v6 }
 0x967   :  { %1972 = vrot.lane.b32.xlu1 %v11197_v34, %s10802_s8 }
 0x96c   :  { %1744 = vrot.lane.b32.xlu0 %v11191_v33, %s10801_s3 }
 0x970   :  { %10058 = vrot.lane.b32.xlu0 %v11554_v8, %s10803_s24 }
 0x974   :  { %10063 = vrot.lane.b32.xlu0 %v11183_v30, %s10803_s24 }
 0x978   :  { %1986 = vrot.lane.b32.xlu0 %v11191_v33, %s10803_s24 }
 0x97c   :  { %1968 = vrot.lane.b32.xlu0 %v11189_v31, %s10802_s8 }
 0x980   :  { %1970 = vrot.lane.b32.xlu0 %v11210_v36, %s10802_s8 }
 0x984   :  { %1974 = vrot.lane.b32.xlu0 %v11214_v37, %s10802_s8 }
 0x988   :  { %1976 = vrot.lane.b32.xlu0 %v11204_v35, %s10802_s8 }
 0x9aa   :  { %v1713_v34 = vpop.xlane.xlu0 %1712 }
 0x9ab   :  { %10297 = vrcp.f32 %v1713_v34 }
 0x9ae   :  { %v1716_v57 = vpop.xlane.xlu1 %1715  ;;  %v10054_v9 = vpop.permute.xlu0 %10053 }
 0x9af   :  { %v10056_v18 = vunpack.i.h.bf16 %v10054_v9  ;;  %v10055_v33 = vunpack.i.l.bf16 %v10054_v9  ;;  %10299 = vrcp.f32 %v1716_v57 }
 0x9b1   :  { %v9672_v31 = vpack.c.bf16 %v10056_v18, %v10055_v33 }
 0x9b2   :  { %v10049_v13 = vpop.permute.xlu1 %10048 }
 0x9b3   :  { %v10051_v30 = vunpack.i.h.bf16 %v10049_v13  ;;  %v10050_v58 = vunpack.i.l.bf16 %v10049_v13 }
 0x9b5   :  { %v9669_v24 = vpack.c.bf16 %v10051_v30, %v10050_v58  ;;  %v10298_v37 = vpop.eup %10297 }
 0x9b6   :  { %v1731_v26 = vmul.f32 %v10298_v37, %v11529_v46 }
 0x9b7   :  { %9670 = vmatpush3.bf16.msra.mxu0 %v9669_v24 }
 0x9b8   :  { %9671 = vmatprep.subr.bf16.mxu0 %v10790_v0 }
 0x9b9   :  { %v10300_v7 = vpop.eup %10299 }
 0x9ba   :  { %v1732_v15 = vmul.f32 %v10300_v7, %v11533_v40 }
 0x9bb   :  { %9673 = vmatpush3.bf16.msra.mxu0 %v9672_v31 }
 0x9bc   :  { %8676 = vmatprep.subr.mxu0 %v10792_v1 }
 0x9df   :  { %v1719_v36 = vpop.xlane.xlu0 %1718 }
 0x9e0   :  { %10301 = vrcp.f32 %v1719_v36 }
 0x9e3   :  { %v1722_v35 = vpop.xlane.xlu0 %1721  ;;  %v1725_v29 = vpop.xlane.xlu1 %1724 }
 0x9e4   :  { %10303 = vrcp.f32 %v1722_v35 }
 0x9e5   :  { %10305 = vrcp.f32 %v1725_v29 }
 0x9e7   :  { %v1745_v4 = vpop.permute.xlu0 %1744  ;;  %v1973_v49 = vpop.permute.xlu1 %1972 }
 0x9e8   :  { %8677 = vmatpush3.msk.msra.mxu0 %vm940_vm14, %v1745_v4 }
 0x9e9   :  { %8679 = vmatmul.mubr.msk.f32.vlgmr.msra.gmra.mrb[40].mxu0 %vm854_vm4, %v1731_v26  ;;  %9674 = vmatprep.subr.bf16.mxu0 %v10790_v0 }
 0x9ea   :  { %8681 = vmatprep.mubr.msk.f32.mxu0 %vm10791_vm0, %v10792_v1  ;;  %v10302_v63 = vpop.eup %10301 }
 0x9eb   :  { %v10059_v10 = vpop.permute.xlu0 %10058  ;;  %v1733_v20 = vmul.f32 %v10302_v63, %v10292_v62 }
 0x9ec   :  { %v10061_v11 = vunpack.i.h.bf16 %v10059_v10  ;;  %v10060_v43 = vunpack.i.l.bf16 %v10059_v10 }
 0x9ed   :  { %8682 = vmatmul.mubr.msk.f32.gmra.mrb[42].mxu0 %vm854_vm4, %v1732_v15 }
 0x9ee   :  { %v9675_v14 = vpack.c.bf16 %v10061_v11, %v10060_v43  ;;  %8684 = vmatprep.mubr.msk.f32.mxu0 %vm10791_vm0, %v10792_v1  ;;  %v10304_v48 = vpop.eup %10303 }
 0x9ef   :  { %v10064_v46 = vpop.permute.xlu0 %10063  ;;  %v1734_v53 = vmul.f32 %v10304_v48, %v11541_v3  ;;  %v10306_v44 = vpop.eup %10305 }
 0x9f0   :  { %9677 = vmatpush3.bf16.xpose.msk.msra.mxu0 %vm11220_vm9, %v9675_v14  ;;  %v10066_v40 = vunpack.i.h.bf16 %v10064_v46  ;;  %v10065_v52 = vunpack.i.l.bf16 %v10064_v46  ;;  %v1735_v60 = vmul.f32 %v10306_v44, %v11544_v50 }
 0x9f1   :  { %8685 = vmatmul.mubr.msk.f32.gmra.mrb[44].mxu0 %vm854_vm4, %v1733_v20  ;;  %9678 = vmatprep.subr.bf16.mxu0 %v10790_v0 }
 0x9f2   :  { %8687 = vmatprep.mubr.msk.f32.mxu0 %vm10791_vm0, %v10792_v1  ;;  %v9679_v21 = vpack.c.bf16 %v10066_v40, %v10065_v52 }
 0x9f3   :  { %v1987_v39 = vpop.permute.xlu0 %1986 }
 0x9f5   :  { %8688 = vmatmul.mubr.msk.f32.gmra.mrb[46].mxu0 %vm854_vm4, %v1734_v53 }
 0x9f6   :  { %8690 = vmatprep.mubr.msk.f32.mxu0 %vm10791_vm0, %v10792_v1 }
 0x9f7   :  { %v1969_v23 = vpop.permute.xlu0 %1968 }
 0x9f8   :  { %9681 = vmatpush3.bf16.xpose.msk.msra.mxu0 %vm11220_vm9, %v9679_v21 }
 0x9f9   :  { %8691 = vmatmul.mubr.msk.f32.gmra.mrb[48].mxu0 %vm854_vm4, %v1735_v60  ;;  %8718 = vmatprep.subr.mxu0 %v10792_v1 }
 0x9fa   :  { %8720 = vmatprep.mubr.msk.f32.mxu0 %vm10791_vm0, %v10792_v1 }
 0x9fb   :  { %v1971_v59 = vpop.permute.xlu0 %1970 }
 0x9ff   :  { %v1975_v62 = vpop.permute.xlu0 %1974 }
 0xa00   :  { %8719 = vmatpush3.xpose.msk.msra.mxu0 %vm738_vm8, %v1987_v39 }
 0xa01   :  { %8760 = vmatprep.subr.mxu0 %v10792_v1 }
 0xa03   :  { %8721 = vmatmul.mubr.msk.f32.vlgmr.msra.gmra.mrb[50].mxu0 %vm738_vm8, %v1969_v23  ;;  %v1977_v3 = vpop.permute.xlu0 %1976 }
 0xa04   :  { %8723 = vmatprep.mubr.msk.f32.mxu0 %vm10791_vm0, %v10792_v1 }
 0xa07   :  { %8724 = vmatmul.mubr.msk.f32.gmra.mrb[52].mxu0 %vm738_vm8, %v1971_v59 }
 0xa08   :  { %8726 = vmatprep.mubr.msk.f32.mxu0 %vm10791_vm0, %v10792_v1 }
 0xa0b   :  { %8727 = vmatmul.mubr.msk.f32.gmra.mrb[54].mxu0 %vm738_vm8, %v1973_v49 }
 0xa0c   :  { %8729 = vmatprep.mubr.msk.f32.mxu0 %vm10791_vm0, %v10792_v1 }
 0xa0f   :  { %8730 = vmatmul.mubr.msk.f32.gmra.mrb[56].mxu0 %vm738_vm8, %v1975_v62 }
 0xa10   :  { %8732 = vmatprep.mubr.msk.f32.mxu0 %vm10791_vm0, %v10792_v1 }
 0xa13   :  { %8733 = vmatmul.mubr.msk.f32.gmra.mrb[58].mxu0 %vm738_vm8, %v1977_v3 }
 0xa14   :  { %8762 = vmatprep.mubr.msk.f32.mxu0 %vm10791_vm0, %v10792_v1 }
 0xabc   :  { %v1833_v50 = vpop.f32.mrb[40].mxu0 }
 0xabd   :  { %v8680_v16 = vpop.f32.mrb[41].mxu0  ;;  %8696 = vmatmul.mubr.msk.f32.vlgmr.msra.gmra.mrb[50].mxu1 %vm738_vm8, %v1833_v50 }
 0xabe   :  { %8698 = vmatprep.mubr.msk.f32.mxu1 %vm10791_vm0, %v10792_v1 }
 0xac0   :  { %v1838_v6 = vpop.f32.mrb[42].mxu0 }
 0xac1   :  { %v8683_v54 = vpop.f32.mrb[43].mxu0  ;;  %8699 = vmatmul.mubr.msk.f32.gmra.mrb[52].mxu1 %vm738_vm8, %v1838_v6 }
 0xac2   :  { %8701 = vmatprep.mubr.msk.f32.mxu1 %vm10791_vm0, %v10792_v1 }
 0xac4   :  { %v1843_v28 = vpop.f32.mrb[44].mxu0 }
 0xac5   :  { %v8686_v34 = vpop.f32.mrb[45].mxu0  ;;  %8702 = vmatmul.mubr.msk.f32.gmra.mrb[54].mxu1 %vm738_vm8, %v1843_v28 }
 0xac6   :  { %8704 = vmatprep.mubr.msk.f32.mxu1 %vm10791_vm0, %v10792_v1 }
 0xac8   :  { %v1848_v57 = vpop.f32.mrb[46].mxu0 }
 0xac9   :  { %v8689_v9 = vpop.f32.mrb[47].mxu0  ;;  %8705 = vmatmul.mubr.msk.f32.gmra.mrb[56].mxu1 %vm738_vm8, %v1848_v57 }
 0xaca   :  { %8707 = vmatprep.mubr.msk.f32.mxu1 %vm10791_vm0, %v10792_v1 }
 0xacc   :  { %v1853_v13 = vpop.f32.mrb[48].mxu0 }
 0xacd   :  { %v8692_v30 = vpop.f32.mrb[49].mxu0  ;;  %8708 = vmatmul.mubr.msk.f32.gmra.mrb[58].mxu1 %vm738_vm8, %v1853_v13 }
 0xace   :  { %8745 = vmatprep.mubr.msk.f32.mxu1 %vm10791_vm0, %v10792_v1 }
 0xad6   :  { %v2074_v58 = vpop.f32.mrb[50].mxu0 }
 0xad7   :  { %v2075_v18 = vadd.f32 %v2074_v58, %v11285_v5  ;;  %v8722_v33 = vpop.f32.mrb[51].mxu0 }
 0xad9   :  { %v2098_v24 = vsel %vm854_vm4, %v2075_v18, -inf }
 0xada   :  { %2099 = vmax.xlane.f32.xlu0 %v2098_v24  ;;  %v2079_v31 = vpop.f32.mrb[52].mxu0  ;;  %v10563_v24 = vld [vmem:[#allocation2 + $0x10] sm:$0xff] }
 0xadb   :  { %v2080_v36 = vadd.f32 %v2079_v31, %v11285_v5  ;;  %v8725_v35 = vpop.f32.mrb[53].mxu0  ;;  %v10564_v31 = vld [vmem:[#allocation2 + $0x18] sm:$0xff] }
 0xadd   :  { %v2101_v37 = vsel %vm854_vm4, %v2080_v36, -inf }
 0xade   :  { %2102 = vmax.xlane.f32.xlu1 %v2101_v37  ;;  %v2084_v26 = vpop.f32.mrb[54].mxu0 }
 0xadf   :  { %v2085_v29 = vadd.f32 %v2084_v26, %v11296_v12  ;;  %v8728_v4 = vpop.f32.mrb[55].mxu0 }
 0xae1   :  { %v2104_v7 = vsel %vm854_vm4, %v2085_v29, -inf }
 0xae2   :  { %2105 = vmax.xlane.f32.xlu0 %v2104_v7  ;;  %v2089_v10 = vpop.f32.mrb[56].mxu0 }
 0xae3   :  { %v2090_v15 = vadd.f32 %v2089_v10, %v11306_v19  ;;  %v8731_v63 = vpop.f32.mrb[57].mxu0 }
 0xae5   :  { %v2107_v11 = vsel %vm854_vm4, %v2090_v15, -inf }
 0xae6   :  { %2108 = vmax.xlane.f32.xlu0 %v2107_v11  ;;  %v2094_v43 = vpop.f32.mrb[58].mxu0 }
 0xae7   :  { %v11642_v14 = vadd.f32 %v2094_v43, %v11312_v25  ;;  %v8734_v46 = vpop.f32.mrb[59].mxu0 }
 0xae9   :  { %v2110_v20 = vsel %vm867_vm11, %v11642_v14, -inf }
 0xaea   :  { %2111 = vmax.xlane.f32.xlu0 %v2110_v20 }
 0xb00   :  { %10068 = vrot.lane.b32.xlu0 %v11554_v8, %s10804_s6 }
 0xb67   :  { %v2100_v48 = vpop.xlane.xlu0 %2099 }
 0xb68   :  { %v2113_v40 = vsub.f32 %v2075_v18, %v2100_v48 }
 0xb6a   :  { %v2118_v52 = vmul.f32 1.442695, %v2113_v40 }
 0xb6b   :  { %v2103_v53 = vpop.xlane.xlu1 %2102 }
 0xb6c   :  { %10307 = vpow2.f32 %v2118_v52  ;;  %v2114_v44 = vsub.f32 %v2080_v36, %v2103_v53  ;;  %v10072_v36 = vpack.i.bf16 %v10564_v31, %v10563_v24 }
 0xb6e   :  { %v2120_v21 = vmul.f32 1.442695, %v2114_v44 }
 0xb6f   :  { %v2106_v60 = vpop.xlane.xlu0 %2105 }
 0xb70   :  { %10309 = vpow2.f32 %v2120_v21  ;;  %v2115_v39 = vsub.f32 %v2085_v29, %v2106_v60  ;;  %v10565_v29 = vld [vmem:[#allocation2 + $0x20] sm:$0x3] }
 0xb72   :  { %v2122_v23 = vmul.f32 1.442695, %v2115_v39 }
 0xb73   :  { %v2109_v59 = vpop.xlane.xlu0 %2108 }
 0xb74   :  { %10311 = vpow2.f32 %v2122_v23  ;;  %v2116_v49 = vsub.f32 %v2090_v15, %v2109_v59 }
 0xb76   :  { %v11648_v62 = vpop.eup %10307  ;;  %v2124_v3 = vmul.f32 1.442695, %v2116_v49 }
 0xb77   :  { %v2112_v22 = vpop.xlane.xlu0 %2111  ;;  %v2128_v8 = vsel %vm854_vm4, %v11648_v62, 0.0 }
 0xb78   :  { %10313 = vpow2.f32 %v2124_v3  ;;  %2129 = vadd.xlane.f32.xlu0 %v2128_v8  ;;  %v2117_v46 = vsub.f32 %v11642_v14, %v2112_v22 }
 0xb7a   :  { %v11652_v50 = vpop.eup %10309  ;;  %v2126_v20 = vmul.f32 1.442695, %v2117_v46 }
 0xb7b   :  { %v10069_v16 = vpop.permute.xlu0 %10068  ;;  %v2131_v6 = vsel %vm854_vm4, %v11652_v50, 0.0 }
 0xb7c   :  { %v10071_v54 = vunpack.i.h.bf16 %v10069_v16  ;;  %v10070_v28 = vunpack.i.l.bf16 %v10069_v16  ;;  %2132 = vadd.xlane.f32.xlu1 %v2131_v6  ;;  %10315 = vpow2.f32 %v2126_v20 }
 0xb7e   :  { %v10312_v34 = vpop.eup %10311  ;;  %v9683_v57 = vpack.c.bf16 %v10071_v54, %v10070_v28  ;;  %v2274_v54 = vld [vmem:[%s10859_s14 + $0x18] sm:$0xff]  ;;  %s13263_s14 = sld [smem:[#allocation23_spill]] }
 0xb7f   :  { %v2134_v9 = vsel %vm854_vm4, %v10312_v34, 0.0  ;;  %8761 = vmatpush3.msra.mxu0 %v2274_v54 }
 0xb80   :  { %2135 = vadd.xlane.f32.xlu0 %v2134_v9  ;;  %9684 = vmatpush3.bf16.msra.mxu1 %v9683_v57 }
 0xb81   :  { %9685 = vmatprep.subr.bf16.mxu1 %v10790_v0  ;;  %9694 = vmatprep.subr.bf16.mxu0 %v10790_v0 }
 0xb82   :  { %v10314_v13 = vpop.eup %10313 }
 0xb83   :  { %v2137_v30 = vsel %vm854_vm4, %v10314_v13, 0.0 }
 0xb84   :  { %2138 = vadd.xlane.f32.xlu1 %v2137_v30 }
 0xb86   :  { %v10316_v48 = vpop.eup %10315 }
 0xb87   :  { %v2140_v40 = vsel %vm867_vm11, %v10316_v48, 0.0 }
 0xb90   :  { %v1939_v58 = vpop.f32.mrb[50].mxu1 }
 0xb91   :  { %v11660_v18 = vadd.f32 %v1939_v58, %v11509_v47  ;;  %v8697_v33 = vpop.f32.mrb[51].mxu1 }
 0xb94   :  { %v1944_v35 = vpop.f32.mrb[52].mxu1 }
 0xb95   :  { %v11663_v37 = vadd.f32 %v1944_v35, %v11511_v38  ;;  %v8700_v26 = vpop.f32.mrb[53].mxu1  ;;  %10073 = vrot.lane.b32.xlu1 %v10072_v36, %s10804_s6 }
 0xb96   :  { %2161 = vrot.lane.b32.xlu0 %v10565_v29, %s10804_s6  ;;  %v7771_v29 = vld [vmem:[%s13262_s18] ss:$0 sm:$0xff]  ;;  %s13281_s18 = sld [smem:[#allocation39_spill]] }
 0xb98   :  { %v1949_v4 = vpop.f32.mrb[54].mxu1 }
 0xb99   :  { %v11668_v7 = vadd.f32 %v1949_v4, %v11513_v56  ;;  %v8703_v47 = vpop.f32.mrb[55].mxu1 }
 0xb9c   :  { %v1954_v10 = vpop.f32.mrb[56].mxu1 }
 0xb9d   :  { %v11671_v15 = vadd.f32 %v1954_v10, %v11515_v55  ;;  %v8706_v63 = vpop.f32.mrb[57].mxu1 }
 0xba0   :  { %v1959_v11 = vpop.f32.mrb[58].mxu1 }
 0xba1   :  { %v11674_v38 = vadd.f32 %v1959_v11, %v11517_v61  ;;  %v8709_v43 = vpop.f32.mrb[59].mxu1 }
 0xbb9   :  { %2141 = vadd.xlane.f32.xlu1 %v2140_v40 }
 0xc05   :  { %v2130_v56 = vpop.xlane.xlu0 %2129 }
 0xc06   :  { %10317 = vrcp.f32 %v2130_v56 }
 0xc09   :  { %v2133_v52 = vpop.xlane.xlu1 %2132 }
 0xc0a   :  { %10319 = vrcp.f32 %v2133_v52 }
 0xc0d   :  { %v2136_v55 = vpop.xlane.xlu0 %2135 }
 0xc0e   :  { %10321 = vrcp.f32 %v2136_v55 }
 0xc10   :  { %v10318_v39 = vpop.eup %10317 }
 0xc11   :  { %v2139_v53 = vpop.xlane.xlu1 %2138  ;;  %v2148_v14 = vmul.f32 %v10318_v39, %v11648_v62  ;;  %v2162_v23 = vpop.permute.xlu0 %2161 }
 0xc12   :  { %10323 = vrcp.f32 %v2139_v53 }
 0xc14   :  { %v10320_v59 = vpop.eup %10319 }
 0xc15   :  { %v10074_v44 = vpop.permute.xlu1 %10073  ;;  %v2149_v49 = vmul.f32 %v10320_v59, %v11652_v50 }
 0xc16   :  { %v10076_v21 = vunpack.i.h.bf16 %v10074_v44  ;;  %v10075_v60 = vunpack.i.l.bf16 %v10074_v44 }
 0xc18   :  { %v9686_v61 = vpack.c.bf16 %v10076_v21, %v10075_v60  ;;  %v10322_v3 = vpop.eup %10321 }
 0xc19   :  { %v2150_v62 = vmul.f32 %v10322_v3, %v10312_v34 }
 0xc1a   :  { %9687 = vmatpush3.bf16.msra.mxu1 %v9686_v61 }
 0xc1b   :  { %8743 = vmatprep.subr.mxu1 %v10792_v1 }
 0xc1c   :  { %v10324_v22 = vpop.eup %10323 }
 0xc1d   :  { %v2151_v8 = vmul.f32 %v10324_v22, %v10314_v13 }
 0xc1e   :  { %8744 = vmatpush3.msk.msra.mxu1 %vm940_vm14, %v2162_v23 }
 0xc1f   :  { %8746 = vmatmul.mubr.msk.f32.vlgmr.msra.gmra.mrb[60].mxu1 %vm854_vm4, %v2148_v14  ;;  %9688 = vmatprep.subr.bf16.mxu1 %v10790_v0 }
 0xc20   :  { %8748 = vmatprep.mubr.msk.f32.mxu1 %vm10791_vm0, %v10792_v1 }
 0xc23   :  { %8749 = vmatmul.mubr.msk.f32.gmra.mrb[62].mxu1 %vm854_vm4, %v2149_v49 }
 0xc24   :  { %8751 = vmatprep.mubr.msk.f32.mxu1 %vm10791_vm0, %v10792_v1 }
 0xc27   :  { %8752 = vmatmul.mubr.msk.f32.gmra.mrb[64].mxu1 %vm854_vm4, %v2150_v62 }
 0xc28   :  { %8754 = vmatprep.mubr.msk.f32.mxu1 %vm10791_vm0, %v10792_v1 }
 0xc2b   :  { %8755 = vmatmul.mubr.msk.f32.gmra.mrb[66].mxu1 %vm854_vm4, %v2151_v8 }
 0xc2c   :  { %8757 = vmatprep.mubr.msk.f32.mxu1 %vm10791_vm0, %v10792_v1 }
 0xc46   :  { %v2142_v50 = vpop.xlane.xlu1 %2141 }
 0xc47   :  { %10325 = vrcp.f32 %v2142_v50 }
 0xc51   :  { %v10326_v16 = vpop.eup %10325 }
 0xc52   :  { %v2152_v6 = vmul.f32 %v10326_v16, %v10316_v48 }
 0xc54   :  { %8758 = vmatmul.mubr.msk.f32.gmra.mrb[68].mxu1 %vm854_vm4, %v2152_v6 }
 0xc55   :  { %8785 = vmatprep.mubr.msk.f32.mxu1 %vm10791_vm0, %v10792_v1 }
 0xcf2   :  { %v2250_v28 = vpop.f32.mrb[60].mxu1 }
 0xcf3   :  { %v8747_v34 = vpop.f32.mrb[61].mxu1  ;;  %8763 = vmatmul.mubr.msk.f32.vlgmr.msra.gmra.mrb[60].mxu0 %vm738_vm8, %v2250_v28 }
 0xcf4   :  { %8765 = vmatprep.mubr.msk.f32.mxu0 %vm10791_vm0, %v10792_v1 }
 0xcf6   :  { %v2255_v57 = vpop.f32.mrb[62].mxu1 }
 0xcf7   :  { %v8750_v9 = vpop.f32.mrb[63].mxu1  ;;  %8766 = vmatmul.mubr.msk.f32.gmra.mrb[62].mxu0 %vm738_vm8, %v2255_v57 }
 0xcf8   :  { %8768 = vmatprep.mubr.msk.f32.mxu0 %vm10791_vm0, %v10792_v1 }
 0xcfa   :  { %v2260_v13 = vpop.f32.mrb[64].mxu1 }
 0xcfb   :  { %v8753_v30 = vpop.f32.mrb[65].mxu1  ;;  %8769 = vmatmul.mubr.msk.f32.gmra.mrb[64].mxu0 %vm738_vm8, %v2260_v13 }
 0xcfc   :  { %8771 = vmatprep.mubr.msk.f32.mxu0 %vm10791_vm0, %v10792_v1 }
 0xcfe   :  { %v2265_v58 = vpop.f32.mrb[66].mxu1 }
 0xcff   :  { %v8756_v33 = vpop.f32.mrb[67].mxu1  ;;  %8772 = vmatmul.mubr.msk.f32.gmra.mrb[66].mxu0 %vm738_vm8, %v2265_v58  ;;  %v2491_v58 = vld [vmem:[%s13263_s14] sm:$0xff] }
 0xd00   :  { %8774 = vmatprep.mubr.msk.f32.mxu0 %vm10791_vm0, %v10792_v1  ;;  %v2492_v33 = vld [vmem:[%s13263_s14 + $0x8] sm:$0xff] }
 0xd27   :  { %v2270_v24 = vpop.f32.mrb[68].mxu1 }
 0xd28   :  { %v8759_v31 = vpop.f32.mrb[69].mxu1  ;;  %8775 = vmatmul.mubr.msk.f32.gmra.mrb[68].mxu0 %vm738_vm8, %v2270_v24  ;;  %v9689_v24 = vpack.c.bf16 %v2492_v33, %v2491_v58  ;;  %v2654_v33 = vld [vmem:[%s13264_s22 + $0x10] sm:$0xff] }
 0xd29   :  { %8832 = vmatprep.mubr.msk.f32.mxu0 %vm10791_vm0, %v10792_v1  ;;  %v2493_v31 = vld [vmem:[%s13263_s14 + $0x10] sm:$0xff] }
 0xd2a   :  { %9690 = vmatpush3.bf16.msra.mxu1 %v9689_v24  ;;  %v2655_v24 = vld [vmem:[%s13264_s22 + $0x18] sm:$0xff] }
 0xd2b   :  { %9691 = vmatprep.subr.bf16.mxu1 %v10790_v0 }
 0xdc6   :  { %v2356_v36 = vpop.f32.mrb[60].mxu0 }
 0xdc7   :  { %v2380_v35 = vadd.f32 %v2356_v36, %v11660_v18  ;;  %v8764_v26 = vpop.f32.mrb[61].mxu0  ;;  %v2494_v36 = vld [vmem:[%s13263_s14 + $0x18] sm:$0xff]  ;;  %s13282_s14 = sld [smem:[#allocation40_spill]] }
 0xdc9   :  { %v2385_v4 = vadd.f32 %v2380_v35, %v11113_v27  ;;  %v9692_v35 = vpack.c.bf16 %v2494_v36, %v2493_v31  ;;  %v9698_v31 = vpack.c.bf16 %v2655_v24, %v2654_v33  ;;  %v2656_v36 = vld [vmem:[%s13264_s22 + $0x20] sm:$0xff] }
 0xdca   :  { %v2361_v47 = vpop.f32.mrb[62].mxu0 }
 0xdcb   :  { %v11718_v10 = vadd.f32 %v7771_v29, %v2385_v4  ;;  %v2381_v63 = vadd.f32 %v2361_v47, %v11663_v37  ;;  %v8767_v11 = vpop.f32.mrb[63].mxu0  ;;  %9693 = vmatpush3.bf16.msra.mxu1 %v9692_v35  ;;  %v2657_v35 = vld [vmem:[%s13264_s22 + $0x28] sm:$0xff] }
 0xdcc   :  { %9718 = vmatprep.subr.bf16.mxu1 %v10790_v0  ;;  %v2652_v11 = vld [vmem:[%s13264_s22] sm:$0xff] }
 0xdcd   :  { %v2386_v43 = vadd.f32 %v2381_v63, %v11120_v32  ;;  %v2404_v46 = vsel %vm500_vm3, %v11718_v10, 0.0 }
 0xdce   :  { %2405 = vadd.xlane.f32.xlu0 %v2404_v46  ;;  %v2366_v20 = vpop.f32.mrb[64].mxu0 }
 0xdcf   :  { %v11724_v48 = vadd.f32 %v7771_v29, %v2386_v43  ;;  %v2382_v18 = vadd.f32 %v2366_v20, %v11668_v7  ;;  %v8770_v40 = vpop.f32.mrb[65].mxu0  ;;  %v2653_v43 = vld [vmem:[%s13264_s22 + $0x8] sm:$0xff] }
 0xdd0   :  { %v9695_v46 = vpack.c.bf16 %v2653_v43, %v2652_v11  ;;  %v2661_v11 = vld [vmem:[%s13264_s22 + $0x48] sm:$0xff] }
 0xdd1   :  { %v2387_v27 = vadd.f32 %v2382_v18, %v11127_v41  ;;  %v2407_v56 = vsel %vm500_vm3, %v11724_v48, 0.0 }
 0xdd2   :  { %2408 = vadd.xlane.f32.xlu1 %v2407_v56  ;;  %v2371_v37 = vpop.f32.mrb[66].mxu0  ;;  %9696 = vmatpush3.bf16.msra.mxu0 %v9695_v46  ;;  %v2662_v46 = vld [vmem:[%s13264_s22 + $0x50] sm:$0xff] }
 0xdd3   :  { %v11730_v52 = vadd.f32 %v7771_v29, %v2387_v27  ;;  %v2383_v32 = vadd.f32 %v2371_v37, %v11671_v15  ;;  %v8773_v53 = vpop.f32.mrb[67].mxu0  ;;  %9697 = vmatprep.subr.bf16.mxu0 %v10790_v0 }
 0xdd5   :  { %v2388_v55 = vadd.f32 %v2383_v32, %v11131_v45  ;;  %v2410_v44 = vsel %vm500_vm3, %v11730_v52, 0.0 }
 0xdd6   :  { %2411 = vadd.xlane.f32.xlu0 %v2410_v44  ;;  %9699 = vmatpush3.bf16.msra.mxu0 %v9698_v31 }
 0xdd7   :  { %v11736_v7 = vadd.f32 %v7771_v29, %v2388_v55  ;;  %9700 = vmatprep.subr.bf16.mxu0 %v10790_v0 }
 0xdd9   :  { %v2413_v41 = vsel %vm500_vm3, %v11736_v7, 0.0 }
 0xdda   :  { %2414 = vadd.xlane.f32.xlu1 %v2413_v41 }
 0xdfb   :  { %v2376_v21 = vpop.f32.mrb[68].mxu0 }
 0xdfc   :  { %v2384_v60 = vadd.f32 %v2376_v21, %v11674_v38  ;;  %v8776_v61 = vpop.f32.mrb[69].mxu0 }
 0xdfe   :  { %v2389_v39 = vadd.f32 %v2384_v60, %v11136_v51  ;;  %v7772_v60 = vld [vmem:[%s13265_s23] ss:$0 sm:$0xff]  ;;  %s13284_s23 = sld [smem:[#allocation42_spill]] }
 0xe00   :  { %v11742_v15 = vadd.f32 %v7771_v29, %v2389_v39 }
 0xe02   :  { %v2416_v45 = vsel %vm513_vm5, %v11742_v15, 0.0 }
 0xe03   :  { %2417 = vadd.xlane.f32.xlu0 %v2416_v45  ;;  %v7773_v45 = vld [vmem:[%s13266_s26] ss:$0 sm:$0xff] }
 0xe5b   :  { %v2406_v14 = vpop.xlane.xlu0 %2405 }
 0xe5c   :  { %v2419_v23 = vmul.f32 0.03125, %v2406_v14 }
 0xe5e   :  { %v2424_v59 = vsub.f32 %v11718_v10, %v2419_v23 }
 0xe5f   :  { %v2409_v49 = vpop.xlane.xlu1 %2408 }
 0xe60   :  { %v2420_v3 = vmul.f32 0.03125, %v2409_v49  ;;  %v2429_v62 = vmul.f32 %v2424_v59, %v2424_v59 }
 0xe62   :  { %v2425_v22 = vsub.f32 %v11724_v48, %v2420_v3  ;;  %v2434_v38 = vsel %vm500_vm3, %v2429_v62, 0.0 }
 0xe63   :  { %v2412_v8 = vpop.xlane.xlu0 %2411  ;;  %2435 = vadd.xlane.f32.xlu1 %v2434_v38 }
 0xe64   :  { %v2421_v51 = vmul.f32 0.03125, %v2412_v8  ;;  %v2430_v50 = vmul.f32 %v2425_v22, %v2425_v22 }
 0xe66   :  { %v2426_v16 = vsub.f32 %v11730_v52, %v2421_v51  ;;  %v2437_v6 = vsel %vm500_vm3, %v2430_v50, 0.0 }
 0xe67   :  { %v2415_v54 = vpop.xlane.xlu1 %2414  ;;  %2438 = vadd.xlane.f32.xlu0 %v2437_v6 }
 0xe68   :  { %v2422_v28 = vmul.f32 0.03125, %v2415_v54  ;;  %v2431_v34 = vmul.f32 %v2426_v16, %v2426_v16 }
 0xe6a   :  { %v2427_v57 = vsub.f32 %v11736_v7, %v2422_v28  ;;  %v2440_v9 = vsel %vm500_vm3, %v2431_v34, 0.0 }
 0xe6b   :  { %2441 = vadd.xlane.f32.xlu1 %v2440_v9 }
 0xe6c   :  { %v2432_v13 = vmul.f32 %v2427_v57, %v2427_v57 }
 0xe6e   :  { %v2443_v30 = vsel %vm500_vm3, %v2432_v13, 0.0 }
 0xe6f   :  { %2444 = vadd.xlane.f32.xlu0 %v2443_v30 }
 0xe90   :  { %v2418_v26 = vpop.xlane.xlu0 %2417 }
 0xe91   :  { %v2423_v29 = vmul.f32 0.03125, %v2418_v26  ;;  %v9701_v26 = vpack.c.bf16 %v2657_v35, %v2656_v36 }
 0xe93   :  { %v2428_v4 = vsub.f32 %v11742_v15, %v2423_v29  ;;  %9702 = vmatpush3.bf16.msra.mxu0 %v9701_v26  ;;  %v2658_v29 = vld [vmem:[%s13264_s22 + $0x30] sm:$0xff] }
 0xe94   :  { %9703 = vmatprep.subr.bf16.mxu0 %v10790_v0 }
 0xe95   :  { %v2433_v47 = vmul.f32 %v2428_v4, %v2428_v4 }
 0xe97   :  { %v2446_v63 = vsel %vm513_vm5, %v2433_v47, 0.0 }
 0xe98   :  { %2447 = vadd.xlane.f32.xlu1 %v2446_v63  ;;  %v2660_v63 = vld [vmem:[%s13264_s22 + $0x40] sm:$0xff] }
 0xe99   :  { %v9707_v43 = vpack.c.bf16 %v2661_v11, %v2660_v63 }
 0xef0   :  { %v2436_v20 = vpop.xlane.xlu1 %2435 }
 0xef1   :  { %v2449_v18 = vmul.f32 0.03125, %v2436_v20  ;;  %v2663_v20 = vld [vmem:[%s13264_s22 + $0x58] sm:$0xff] }
 0xef3   :  { %v2454_v40 = vadd.f32 1e-06, %v2449_v18  ;;  %v9710_v18 = vpack.c.bf16 %v2663_v20, %v2662_v46 }
 0xef4   :  { %v2439_v27 = vpop.xlane.xlu0 %2438 }
 0xef5   :  { %10327 = vrsqrt.f32 %v2454_v40  ;;  %v2450_v56 = vmul.f32 0.03125, %v2439_v27  ;;  %v2664_v40 = vld [vmem:[%s13264_s22 + $0x60] sm:$0xff]  ;;  %v2665_v27 = vld [vmem:[%s13264_s22 + $0x68] sm:$0xff] }
 0xef7   :  { %v2455_v37 = vadd.f32 1e-06, %v2450_v56  ;;  %v9713_v56 = vpack.c.bf16 %v2665_v27, %v2664_v40 }
 0xef8   :  { %v2442_v32 = vpop.xlane.xlu1 %2441 }
 0xef9   :  { %10329 = vrsqrt.f32 %v2455_v37  ;;  %v2451_v53 = vmul.f32 0.03125, %v2442_v32  ;;  %v2666_v37 = vld [vmem:[%s13264_s22 + $0x70] sm:$0xff]  ;;  %v2667_v32 = vld [vmem:[%s13264_s22 + $0x78] sm:$0xff] }
 0xefb   :  { %v2456_v55 = vadd.f32 1e-06, %v2451_v53  ;;  %v9716_v53 = vpack.c.bf16 %v2667_v32, %v2666_v37 }
 0xefc   :  { %v2445_v44 = vpop.xlane.xlu0 %2444 }
 0xefd   :  { %10331 = vrsqrt.f32 %v2456_v55  ;;  %v2452_v41 = vmul.f32 0.03125, %v2445_v44  ;;  %v7774_v55 = vld [vmem:[%s13267_s30] ss:$0 sm:$0xff] }
 0xeff   :  { %v10328_v21 = vpop.eup %10327  ;;  %v2457_v61 = vadd.f32 1e-06, %v2452_v41 }
 0xf00   :  { %v2464_v39 = vmul.f32 %v10328_v21, %v2424_v59 }
 0xf01   :  { %10333 = vrsqrt.f32 %v2457_v61 }
 0xf02   :  { %v2475_v14 = vmul.f32 %v7772_v60, %v2464_v39 }
 0xf03   :  { %v10330_v23 = vpop.eup %10329 }
 0xf04   :  { %v2486_v49 = vadd.f32 %v7773_v45, %v2475_v14  ;;  %v2465_v3 = vmul.f32 %v10330_v23, %v2425_v22 }
 0xf06   :  { %8786 = vmatmul.mubr.msk.f32.vlgmr.msra.gmra.mrb[70].mxu1 %vm500_vm3, %v2486_v49  ;;  %v2476_v62 = vmul.f32 %v7772_v60, %v2465_v3 }
 0xf07   :  { %v10332_v38 = vpop.eup %10331  ;;  %8788 = vmatprep.mubr.msk.f32.mxu1 %vm10791_vm0, %v10792_v1 }
 0xf08   :  { %v2487_v8 = vadd.f32 %v7773_v45, %v2476_v62  ;;  %v2466_v51 = vmul.f32 %v10332_v38, %v2426_v16 }
 0xf0a   :  { %8789 = vmatmul.mubr.msk.f32.gmra.mrb[72].mxu1 %vm500_vm3, %v2487_v8  ;;  %v2477_v50 = vmul.f32 %v7772_v60, %v2466_v51 }
 0xf0b   :  { %v10334_v6 = vpop.eup %10333  ;;  %8791 = vmatprep.mubr.msk.f32.mxu1 %vm10791_vm0, %v10792_v1 }
 0xf0c   :  { %v2488_v59 = vadd.f32 %v7773_v45, %v2477_v50  ;;  %v2467_v54 = vmul.f32 %v10334_v6, %v2427_v57 }
 0xf0e   :  { %8792 = vmatmul.mubr.msk.f32.gmra.mrb[74].mxu1 %vm500_vm3, %v2488_v59  ;;  %v2478_v22 = vmul.f32 %v7772_v60, %v2467_v54 }
 0xf0f   :  { %8794 = vmatprep.mubr.msk.f32.mxu1 %vm10791_vm0, %v10792_v1 }
 0xf10   :  { %v2489_v28 = vadd.f32 %v7773_v45, %v2478_v22 }
 0xf12   :  { %8795 = vmatmul.mubr.msk.f32.gmra.mrb[76].mxu1 %vm500_vm3, %v2489_v28 }
 0xf13   :  { %8797 = vmatprep.mubr.msk.f32.mxu1 %vm10791_vm0, %v10792_v1 }
 0xf25   :  { %v2448_v16 = vpop.xlane.xlu1 %2447 }
 0xf26   :  { %v2453_v34 = vmul.f32 0.03125, %v2448_v16 }
 0xf28   :  { %v2458_v9 = vadd.f32 1e-06, %v2453_v34 }
 0xf2a   :  { %10335 = vrsqrt.f32 %v2458_v9 }
 0xf34   :  { %v10336_v57 = vpop.eup %10335 }
 0xf35   :  { %v2468_v13 = vmul.f32 %v10336_v57, %v2428_v4  ;;  %v2659_v4 = vld [vmem:[%s13264_s22 + $0x38] sm:$0xff]  ;;  %s13283_s22 = sld [smem:[#allocation36_spill]] }
 0xf36   :  { %v9704_v47 = vpack.c.bf16 %v2659_v4, %v2658_v29 }
 0xf37   :  { %v2479_v30 = vmul.f32 %v7772_v60, %v2468_v13 }
 0xf38   :  { %9705 = vmatpush3.bf16.msra.mxu0 %v9704_v47 }
 0xf39   :  { %v2490_v58 = vadd.f32 %v7773_v45, %v2479_v30  ;;  %9706 = vmatprep.subr.bf16.mxu0 %v10790_v0 }
 0xf3b   :  { %8798 = vmatmul.mubr.msk.f32.gmra.mrb[78].mxu1 %vm500_vm3, %v2490_v58 }
 0xf3c   :  { %8855 = vmatprep.mubr.msk.f32.mxu1 %vm10791_vm0, %v10792_v1  ;;  %9708 = vmatpush3.bf16.msra.mxu0 %v9707_v43 }
 0xf3d   :  { %9709 = vmatprep.subr.bf16.mxu0 %v10790_v0 }
 0xf40   :  { %9711 = vmatpush3.bf16.msra.mxu0 %v9710_v18 }
 0xf41   :  { %9712 = vmatprep.subr.bf16.mxu0 %v10790_v0 }
 0xf44   :  { %9714 = vmatpush3.bf16.msra.mxu0 %v9713_v56 }
 0xf45   :  { %9715 = vmatprep.subr.bf16.mxu0 %v10790_v0 }
 0xf48   :  { %9717 = vmatpush3.bf16.msra.mxu0 %v9716_v53 }
 0xf49   :  { %9724 = vmatprep.subr.bf16.mxu0 %v10790_v0 }
 0xfd9   :  { %v2583_v44 = vpop.f32.mrb[70].mxu1 }
 0xfda   :  { %v2584_v41 = vadd.f32 %v7774_v55, %v2583_v44  ;;  %v8787_v21 = vpop.f32.mrb[71].mxu1 }
 0xfdc   :  { %v2612_v60 = vmul.f32 0.044715, %v2584_v41  ;;  %v2607_v26 = vmul.f32 0.5, %v2584_v41 }
 0xfdd   :  { %v2588_v61 = vpop.f32.mrb[72].mxu1 }
 0xfde   :  { %v2617_v39 = vmul.f32 %v2612_v60, %v2584_v41  ;;  %v2589_v45 = vadd.f32 %v7774_v55, %v2588_v61  ;;  %v8790_v14 = vpop.f32.mrb[73].mxu1 }
 0xfe0   :  { %v2622_v23 = vmul.f32 %v2617_v39, %v2584_v41  ;;  %v2613_v49 = vmul.f32 0.044715, %v2589_v45  ;;  %v2608_v63 = vmul.f32 0.5, %v2589_v45 }
 0xfe1   :  { %v2593_v3 = vpop.f32.mrb[74].mxu1 }
 0xfe2   :  { %v2627_v62 = vadd.f32 %v2622_v23, %v2584_v41  ;;  %v2618_v38 = vmul.f32 %v2613_v49, %v2589_v45  ;;  %v2594_v8 = vadd.f32 %v7774_v55, %v2593_v3  ;;  %v8793_v51 = vpop.f32.mrb[75].mxu1 }
 0xfe4   :  { %v2632_v50 = vmul.f32 0.7978846, %v2627_v62  ;;  %v2614_v6 = vmul.f32 0.044715, %v2594_v8  ;;  %v2623_v59 = vmul.f32 %v2618_v38, %v2589_v45  ;;  %v2609_v20 = vmul.f32 0.5, %v2594_v8 }
 0xfe5   :  { %v2598_v54 = vpop.f32.mrb[76].mxu1  ;;  %v7780_v62 = vld [vmem:[%s13268_s28] ss:$0 sm:$0xff] }
 0xfe6   :  { %10337 = vtanh.f32 %v2632_v50  ;;  %v2619_v22 = vmul.f32 %v2614_v6, %v2594_v8  ;;  %v2599_v28 = vadd.f32 %v7774_v55, %v2598_v54  ;;  %v8796_v16 = vpop.f32.mrb[77].mxu1  ;;  %v2628_v34 = vadd.f32 %v2623_v59, %v2589_v45 }
 0xfe8   :  { %v2615_v9 = vmul.f32 0.044715, %v2599_v28  ;;  %v2633_v57 = vmul.f32 0.7978846, %v2628_v34  ;;  %v2624_v13 = vmul.f32 %v2619_v22, %v2594_v8  ;;  %v2610_v56 = vmul.f32 0.5, %v2599_v28 }
 0xfea   :  { %v2620_v30 = vmul.f32 %v2615_v9, %v2599_v28  ;;  %10339 = vtanh.f32 %v2633_v57  ;;  %v2629_v58 = vadd.f32 %v2624_v13, %v2594_v8 }
 0xfec   :  { %v2634_v33 = vmul.f32 0.7978846, %v2629_v58  ;;  %v2625_v24 = vmul.f32 %v2620_v30, %v2599_v28 }
 0xfee   :  { %10341 = vtanh.f32 %v2634_v33  ;;  %v2630_v31 = vadd.f32 %v2625_v24, %v2599_v28 }
 0xff0   :  { %v10338_v36 = vpop.eup %10337  ;;  %v2635_v35 = vmul.f32 0.7978846, %v2630_v31 }
 0xff1   :  { %v2642_v29 = vadd.f32 1.0, %v10338_v36 }
 0xff2   :  { %10343 = vtanh.f32 %v2635_v35 }
 0xff3   :  { %v2647_v4 = vmul.f32 %v2642_v29, %v2607_v26 }
 0xff4   :  { %v10340_v47 = vpop.eup %10339 }
 0xff5   :  { %8833 = vmatmul.mubr.f32.vlgmr.msra.gmra.mrb[70].mxu0 %v2647_v4  ;;  %v2643_v11 = vadd.f32 1.0, %v10340_v47 }
 0xff6   :  { %8835 = vmatprep.mubr.msk.f32.mxu0 %vm10791_vm0, %v10792_v1 }
 0xff7   :  { %v2648_v43 = vmul.f32 %v2643_v11, %v2608_v63 }
 0xff8   :  { %v10342_v46 = vpop.eup %10341 }
 0xff9   :  { %8836 = vmatmul.mubr.f32.gmra.mrb[72].mxu0 %v2648_v43  ;;  %v2644_v18 = vadd.f32 1.0, %v10342_v46 }
 0xffa   :  { %8838 = vmatprep.mubr.msk.f32.mxu0 %vm10791_vm0, %v10792_v1 }
 0xffb   :  { %v2649_v40 = vmul.f32 %v2644_v18, %v2609_v20 }
 0xffc   :  { %v10344_v27 = vpop.eup %10343 }
 0xffd   :  { %8839 = vmatmul.mubr.f32.gmra.mrb[74].mxu0 %v2649_v40  ;;  %v2645_v37 = vadd.f32 1.0, %v10344_v27 }
 0xffe   :  { %8841 = vmatprep.mubr.msk.f32.mxu0 %vm10791_vm0, %v10792_v1 }
 0xfff   :  { %v2650_v32 = vmul.f32 %v2645_v37, %v2610_v56 }
0x1001   :  { %8842 = vmatmul.mubr.f32.gmra.mrb[76].mxu0 %v2650_v32 }
0x1002   :  { %8844 = vmatprep.mubr.msk.f32.mxu0 %vm10791_vm0, %v10792_v1 }
0x100e   :  { %v2603_v53 = vpop.f32.mrb[78].mxu1 }
0x100f   :  { %v2604_v44 = vadd.f32 %v7774_v55, %v2603_v53  ;;  %v8799_v41 = vpop.f32.mrb[79].mxu1 }
0x1011   :  { %v2616_v21 = vmul.f32 0.044715, %v2604_v44  ;;  %v2611_v23 = vmul.f32 0.5, %v2604_v44 }
0x1013   :  { %v2621_v60 = vmul.f32 %v2616_v21, %v2604_v44  ;;  %v2859_v21 = vld [vmem:[%s13269_s1] sm:$0xff] }
0x1015   :  { %v2626_v61 = vmul.f32 %v2621_v60, %v2604_v44  ;;  %v2860_v60 = vld [vmem:[%s13269_s1 + $0x8] sm:$0xff] }
0x1017   :  { %v2631_v39 = vadd.f32 %v2626_v61, %v2604_v44  ;;  %v9719_v61 = vpack.c.bf16 %v2860_v60, %v2859_v21 }
0x1019   :  { %v2636_v45 = vmul.f32 0.7978846, %v2631_v39  ;;  %9720 = vmatpush3.bf16.msra.mxu1 %v9719_v61  ;;  %v2861_v39 = vld [vmem:[%s13269_s1 + $0x10] sm:$0xff] }
0x101a   :  { %9721 = vmatprep.subr.bf16.mxu1 %v10790_v0 }
0x101b   :  { %10345 = vtanh.f32 %v2636_v45  ;;  %v2862_v45 = vld [vmem:[%s13269_s1 + $0x18] sm:$0xff] }
0x1025   :  { %v10346_v14 = vpop.eup %10345 }
0x1026   :  { %v2646_v49 = vadd.f32 1.0, %v10346_v14  ;;  %v9722_v14 = vpack.c.bf16 %v2862_v45, %v2861_v39 }
0x1028   :  { %v2651_v3 = vmul.f32 %v2646_v49, %v2611_v23  ;;  %9723 = vmatpush3.bf16.msra.mxu1 %v9722_v14 }
0x1029   :  { %9732 = vmatprep.subr.bf16.mxu1 %v10790_v0 }
0x102a   :  { %8845 = vmatmul.mubr.f32.gmra.mrb[78].mxu0 %v2651_v3 }
0x102b   :  { %8880 = vmatprep.mubr.msk.f32.mxu0 %vm10791_vm0, %v10792_v1 }
0x10c8   :  { %v2741_v38 = vpop.f32.mrb[70].mxu0 }
0x10c9   :  { %v2742_v8 = vadd.f32 %v7780_v62, %v2741_v38  ;;  %v8834_v51 = vpop.f32.mrb[71].mxu0 }
0x10cb   :  { %v11816_v55 = vadd.f32 %v2742_v8, %v11718_v10 }
0x10cc   :  { %v2746_v50 = vpop.f32.mrb[72].mxu0 }
0x10cd   :  { %v2747_v6 = vadd.f32 %v7780_v62, %v2746_v50  ;;  %v8837_v59 = vpop.f32.mrb[73].mxu0  ;;  %v2772_v54 = vsel %vm500_vm3, %v11816_v55, 0.0 }
0x10ce   :  { %2773 = vadd.xlane.f32.xlu0 %v2772_v54 }
0x10cf   :  { %v11821_v22 = vadd.f32 %v2747_v6, %v11724_v48 }
0x10d0   :  { %v2751_v28 = vpop.f32.mrb[74].mxu0 }
0x10d1   :  { %v2752_v16 = vadd.f32 %v7780_v62, %v2751_v28  ;;  %v8840_v34 = vpop.f32.mrb[75].mxu0  ;;  %v2775_v9 = vsel %vm500_vm3, %v11821_v22, 0.0 }
0x10d2   :  { %2776 = vadd.xlane.f32.xlu1 %v2775_v9 }
0x10d3   :  { %v11826_v10 = vadd.f32 %v2752_v16, %v11730_v52 }
0x10d4   :  { %v2756_v57 = vpop.f32.mrb[76].mxu0 }
0x10d5   :  { %v2757_v13 = vadd.f32 %v7780_v62, %v2756_v57  ;;  %v8843_v30 = vpop.f32.mrb[77].mxu0  ;;  %v2778_v58 = vsel %vm500_vm3, %v11826_v10, 0.0 }
0x10d6   :  { %2779 = vadd.xlane.f32.xlu0 %v2778_v58  ;;  %v7781_v30 = vld [vmem:[%s13270_s0] ss:$0 sm:$0xff] }
0x10d7   :  { %v11831_v48 = vadd.f32 %v2757_v13, %v11736_v7 }
0x10d9   :  { %v2781_v33 = vsel %vm500_vm3, %v11831_v48, 0.0 }
0x10da   :  { %2782 = vadd.xlane.f32.xlu1 %v2781_v33 }
0x10fd   :  { %v2761_v24 = vpop.f32.mrb[78].mxu0 }
0x10fe   :  { %v2762_v31 = vadd.f32 %v7780_v62, %v2761_v24  ;;  %v8846_v36 = vpop.f32.mrb[79].mxu0  ;;  %v7782_v24 = vld [vmem:[%s13271_s27] ss:$0 sm:$0xff] }
0x1100   :  { %v11836_v52 = vadd.f32 %v2762_v31, %v11742_v15 }
0x1102   :  { %v2784_v35 = vsel %vm513_vm5, %v11836_v52, 0.0 }
0x1103   :  { %2785 = vadd.xlane.f32.xlu0 %v2784_v35 }
0x115b   :  { %v2774_v26 = vpop.xlane.xlu0 %2773 }
0x115c   :  { %v2787_v29 = vmul.f32 0.03125, %v2774_v26 }
0x115e   :  { %v2792_v4 = vsub.f32 %v11816_v55, %v2787_v29 }
0x115f   :  { %v2777_v7 = vpop.xlane.xlu1 %2776 }
0x1160   :  { %v2788_v47 = vmul.f32 0.03125, %v2777_v7  ;;  %v2797_v63 = vmul.f32 %v2792_v4, %v2792_v4 }
0x1162   :  { %v2793_v11 = vsub.f32 %v11821_v22, %v2788_v47  ;;  %v2802_v43 = vsel %vm500_vm3, %v2797_v63, 0.0 }
0x1163   :  { %v2780_v46 = vpop.xlane.xlu0 %2779  ;;  %2803 = vadd.xlane.f32.xlu1 %v2802_v43 }
0x1164   :  { %v2789_v15 = vmul.f32 0.03125, %v2780_v46  ;;  %v2798_v20 = vmul.f32 %v2793_v11, %v2793_v11 }
0x1166   :  { %v2794_v18 = vsub.f32 %v11826_v10, %v2789_v15  ;;  %v2805_v40 = vsel %vm500_vm3, %v2798_v20, 0.0 }
0x1167   :  { %v2783_v27 = vpop.xlane.xlu1 %2782  ;;  %2806 = vadd.xlane.f32.xlu0 %v2805_v40 }
0x1168   :  { %v2790_v56 = vmul.f32 0.03125, %v2783_v27  ;;  %v2799_v37 = vmul.f32 %v2794_v18, %v2794_v18 }
0x116a   :  { %v2795_v32 = vsub.f32 %v11831_v48, %v2790_v56  ;;  %v2808_v53 = vsel %vm500_vm3, %v2799_v37, 0.0 }
0x116b   :  { %2809 = vadd.xlane.f32.xlu1 %v2808_v53 }
0x116c   :  { %v2800_v44 = vmul.f32 %v2795_v32, %v2795_v32 }
0x116e   :  { %v2811_v41 = vsel %vm500_vm3, %v2800_v44, 0.0  ;;  %v7783_v44 = vld [vmem:[%s13272_s2] ss:$0 sm:$0xff] }
0x116f   :  { %2812 = vadd.xlane.f32.xlu0 %v2811_v41 }
0x1190   :  { %v2786_v23 = vpop.xlane.xlu0 %2785 }
0x1191   :  { %v2791_v49 = vmul.f32 0.03125, %v2786_v23 }
0x1193   :  { %v2796_v3 = vsub.f32 %v11836_v52, %v2791_v49 }
0x1195   :  { %v2801_v62 = vmul.f32 %v2796_v3, %v2796_v3 }
0x1197   :  { %v2814_v38 = vsel %vm513_vm5, %v2801_v62, 0.0 }
0x1198   :  { %2815 = vadd.xlane.f32.xlu1 %v2814_v38 }
0x11f0   :  { %v2804_v8 = vpop.xlane.xlu1 %2803 }
0x11f1   :  { %v2817_v51 = vmul.f32 0.03125, %v2804_v8 }
0x11f3   :  { %v2822_v50 = vadd.f32 1e-06, %v2817_v51 }
0x11f4   :  { %v2807_v6 = vpop.xlane.xlu0 %2806 }
0x11f5   :  { %10347 = vrsqrt.f32 %v2822_v50  ;;  %v2818_v59 = vmul.f32 0.03125, %v2807_v6 }
0x11f7   :  { %v2823_v54 = vadd.f32 1e-06, %v2818_v59 }
0x11f8   :  { %v2810_v28 = vpop.xlane.xlu1 %2809 }
0x11f9   :  { %10349 = vrsqrt.f32 %v2823_v54  ;;  %v2819_v16 = vmul.f32 0.03125, %v2810_v28 }
0x11fb   :  { %v2824_v34 = vadd.f32 1e-06, %v2819_v16 }
0x11fc   :  { %v2813_v9 = vpop.xlane.xlu0 %2812 }
0x11fd   :  { %10351 = vrsqrt.f32 %v2824_v34  ;;  %v2820_v57 = vmul.f32 0.03125, %v2813_v9 }
0x11ff   :  { %v10348_v13 = vpop.eup %10347  ;;  %v2825_v58 = vadd.f32 1e-06, %v2820_v57 }
0x1200   :  { %v11857_v33 = vmul.f32 %v10348_v13, %v2792_v4 }
0x1201   :  { %10353 = vrsqrt.f32 %v2825_v58 }
0x1202   :  { %v2843_v31 = vmul.f32 %v7781_v30, %v11857_v33 }
0x1203   :  { %v10350_v36 = vpop.eup %10349 }
0x1204   :  { %v2854_v35 = vadd.f32 %v7782_v24, %v2843_v31  ;;  %v11861_v26 = vmul.f32 %v10350_v36, %v2793_v11 }
0x1206   :  { %8856 = vmatmul.mubr.msk.f32.vlgmr.msra.gmra.mrb[80].mxu1 %vm500_vm3, %v2854_v35  ;;  %v2844_v29 = vmul.f32 %v7781_v30, %v11861_v26 }
0x1207   :  { %v10352_v7 = vpop.eup %10351  ;;  %8858 = vmatprep.mubr.msk.f32.mxu1 %vm10791_vm0, %v10792_v1 }
0x1208   :  { %v2855_v47 = vadd.f32 %v7782_v24, %v2844_v29  ;;  %v11867_v63 = vmul.f32 %v10352_v7, %v2794_v18 }
0x120a   :  { %8859 = vmatmul.mubr.msk.f32.gmra.mrb[82].mxu1 %vm500_vm3, %v2855_v47  ;;  %v2845_v4 = vmul.f32 %v7781_v30, %v11867_v63 }
0x120b   :  { %v10354_v43 = vpop.eup %10353  ;;  %8861 = vmatprep.mubr.msk.f32.mxu1 %vm10791_vm0, %v10792_v1 }
0x120c   :  { %v2856_v11 = vadd.f32 %v7782_v24, %v2845_v4  ;;  %v11873_v46 = vmul.f32 %v10354_v43, %v2795_v32 }
0x120e   :  { %8862 = vmatmul.mubr.msk.f32.gmra.mrb[84].mxu1 %vm500_vm3, %v2856_v11  ;;  %v2846_v15 = vmul.f32 %v7781_v30, %v11873_v46 }
0x120f   :  { %8864 = vmatprep.mubr.msk.f32.mxu1 %vm10791_vm0, %v10792_v1 }
0x1210   :  { %v2857_v20 = vadd.f32 %v7782_v24, %v2846_v15 }
0x1212   :  { %8865 = vmatmul.mubr.msk.f32.gmra.mrb[86].mxu1 %vm500_vm3, %v2857_v20 }
0x1213   :  { %8867 = vmatprep.mubr.msk.f32.mxu1 %vm10791_vm0, %v10792_v1 }
0x1225   :  { %v2816_v18 = vpop.xlane.xlu1 %2815 }
0x1226   :  { %v2821_v40 = vmul.f32 0.03125, %v2816_v18 }
0x1228   :  { %v2826_v27 = vadd.f32 1e-06, %v2821_v40 }
0x122a   :  { %10355 = vrsqrt.f32 %v2826_v27 }
0x1234   :  { %v10356_v56 = vpop.eup %10355 }
0x1235   :  { %v11882_v37 = vmul.f32 %v10356_v56, %v2796_v3 }
0x1237   :  { %v2847_v32 = vmul.f32 %v7781_v30, %v11882_v37 }
0x1239   :  { %v2858_v53 = vadd.f32 %v7782_v24, %v2847_v32 }
0x123b   :  { %8868 = vmatmul.mubr.msk.f32.gmra.mrb[88].mxu1 %vm500_vm3, %v2858_v53 }
0x123c   :  { %8905 = vmatprep.mubr.msk.f32.mxu1 %vm10791_vm0, %v10792_v1 }
0x12d9   :  { %v2951_v41 = vpop.f32.mrb[80].mxu1 }
0x12da   :  { %v2952_v21 = vadd.f32 %v7783_v44, %v2951_v41  ;;  %v8857_v60 = vpop.f32.mrb[81].mxu1 }
0x12dc   :  { %2975 = vst.msk [vmem:[#allocation2] sm:$0xff] %vm706_vm6, %v2952_v21 }
0x12dd   :  { %v2956_v61 = vpop.f32.mrb[82].mxu1 }
0x12de   :  { %v2957_v39 = vadd.f32 %v7783_v44, %v2956_v61  ;;  %v8860_v45 = vpop.f32.mrb[83].mxu1 }
0x12e0   :  { %2976 = vst.msk [vmem:[#allocation2 + $0x8] sm:$0xff] %vm706_vm6, %v2957_v39 }
0x12e1   :  { %v2961_v14 = vpop.f32.mrb[84].mxu1 }
0x12e2   :  { %v2962_v23 = vadd.f32 %v7783_v44, %v2961_v14  ;;  %v8863_v49 = vpop.f32.mrb[85].mxu1 }
0x12e3   :  { %v2980_v8 = vld [vmem:[#allocation2] sm:$0xff] }
0x12e4   :  { %2977 = vst.msk [vmem:[#allocation2 + $0x10] sm:$0xff] %vm706_vm6, %v2962_v23  ;;  %v11918_v30 = vmul.f32 0.35355338, %v2980_v8 }
0x12e5   :  { %v2966_v3 = vpop.f32.mrb[86].mxu1 }
0x12e6   :  { %v2967_v62 = vadd.f32 %v7783_v44, %v2966_v3  ;;  %v8866_v38 = vpop.f32.mrb[87].mxu1 }
0x12e7   :  { %v2981_v51 = vld [vmem:[#allocation2 + $0x8] sm:$0xff] }
0x12e8   :  { %2978 = vst.msk [vmem:[#allocation2 + $0x18] sm:$0xff] %vm706_vm6, %v2967_v62  ;;  %v11893_v50 = vpack.i.bf16 %v2981_v51, %v2980_v8  ;;  %v11910_v57 = vmul.f32 0.35355338, %v2981_v51 }
0x12ea   :  { %10078 = vrot.lane.b32.xlu0 %v11893_v50, %s10793_s5 }
0x12eb   :  { %v2982_v6 = vld [vmem:[#allocation2 + $0x10] sm:$0xff] }
0x12ec   :  { %v11924_v58 = vmul.f32 0.35355338, %v2982_v6 }
0x12ee   :  { %10088 = vrot.lane.b32.xlu0 %v11893_v50, %s10794_s9 }
0x12ef   :  { %v2983_v59 = vld [vmem:[#allocation2 + $0x18] sm:$0xff] }
0x12f0   :  { %v11899_v54 = vpack.i.bf16 %v2983_v59, %v2982_v6  ;;  %v11916_v13 = vmul.f32 0.35355338, %v2983_v59 }
0x12f2   :  { %10083 = vrot.lane.b32.xlu1 %v11899_v54, %s10793_s5 }
0x130e   :  { %v2971_v28 = vpop.f32.mrb[88].mxu1 }
0x130f   :  { %v2972_v16 = vadd.f32 %v7783_v44, %v2971_v28  ;;  %v8869_v34 = vpop.f32.mrb[89].mxu1 }
0x1311   :  { %2979 = vst.msk [vmem:[#allocation2 + $0x20] sm:$0x3] %vm13273_vm15, %v2972_v16 }
0x1318   :  { %v11904_v9 = vld [vmem:[#allocation2 + $0x20] sm:$0x3] }
0x1319   :  { %3315 = vrot.lane.b32.xlu0 %v11904_v9, %s10794_s9  ;;  %3003 = vrot.lane.b32.xlu1 %v11904_v9, %s10793_s5  ;;  %v11929_v24 = vmul.f32 0.35355338, %v11904_v9 }
0x131d   :  { %3299 = vrot.lane.b32.xlu0 %v11910_v57, %s10795_s13  ;;  %10093 = vrot.lane.b32.xlu1 %v11899_v54, %s10794_s9 }
0x1321   :  { %3303 = vrot.lane.b32.xlu0 %v11916_v13, %s10795_s13  ;;  %3297 = vrot.lane.b32.xlu1 %v11918_v30, %s10795_s13 }
0x1325   :  { %3301 = vrot.lane.b32.xlu1 %v11924_v58, %s10795_s13 }
0x1329   :  { %3305 = vrot.lane.b32.xlu1 %v11929_v24, %s10795_s13 }
0x135c   :  { %v10079_v31 = vpop.permute.xlu0 %10078 }
0x135d   :  { %v10081_v36 = vunpack.i.h.bf16 %v10079_v31  ;;  %v10080_v35 = vunpack.i.l.bf16 %v10079_v31 }
0x135f   :  { %v9725_v29 = vpack.c.bf16 %v10081_v36, %v10080_v35 }
0x1360   :  { %v10089_v11 = vpop.permute.xlu0 %10088 }
0x1361   :  { %9727 = vmatpush3.bf16.xpose.msk.msra.mxu0 %vm11220_vm9, %v9725_v29  ;;  %v10091_v15 = vunpack.i.h.bf16 %v10089_v11  ;;  %v10090_v20 = vunpack.i.l.bf16 %v10089_v11 }
0x1362   :  { %9728 = vmatprep.subr.bf16.mxu0 %v10790_v0 }
0x1363   :  { %v9739_v40 = vpack.c.bf16 %v10091_v15, %v10090_v20 }
0x1364   :  { %v10084_v7 = vpop.permute.xlu1 %10083 }
0x1365   :  { %v10086_v47 = vunpack.i.h.bf16 %v10084_v7  ;;  %v10085_v4 = vunpack.i.l.bf16 %v10084_v7 }
0x1367   :  { %v9729_v43 = vpack.c.bf16 %v10086_v47, %v10085_v4 }
0x1369   :  { %9731 = vmatpush3.bf16.xpose.msk.msra.mxu0 %vm11220_vm9, %v9729_v43 }
0x136a   :  { %8878 = vmatprep.subr.mxu0 %v10792_v1 }
0x138b   :  { %v3004_v18 = vpop.permute.xlu1 %3003  ;;  %v3316_v44 = vpop.permute.xlu0 %3315 }
0x138c   :  { %8879 = vmatpush3.xpose.msk.msra.mxu0 %vm738_vm8, %v3004_v18 }
0x138d   :  { %9738 = vmatprep.subr.bf16.mxu0 %v10790_v0 }
0x138f   :  { %v10094_v27 = vpop.permute.xlu1 %10093  ;;  %8881 = vmatmul.mubr.msk.f32.vlgmr.msra.gmra.mrb[80].mxu0 %vm738_vm8, %v11918_v30  ;;  %v3300_v21 = vpop.permute.xlu0 %3299 }
0x1390   :  { %9741 = vmatpush3.bf16.xpose.msk.msra.mxu0 %vm11220_vm9, %v9739_v40  ;;  %8883 = vmatprep.mubr.msk.f32.mxu0 %vm10791_vm0, %v10792_v1  ;;  %v10096_v56 = vunpack.i.h.bf16 %v10094_v27  ;;  %v10095_v32 = vunpack.i.l.bf16 %v10094_v27 }
0x1391   :  { %9742 = vmatprep.subr.bf16.mxu0 %v10790_v0 }
0x1392   :  { %v9743_v53 = vpack.c.bf16 %v10096_v56, %v10095_v32 }
0x1393   :  { %8884 = vmatmul.mubr.msk.f32.gmra.mrb[82].mxu0 %vm738_vm8, %v11910_v57  ;;  %v3298_v41 = vpop.permute.xlu1 %3297  ;;  %v3304_v61 = vpop.permute.xlu0 %3303 }
0x1394   :  { %8886 = vmatprep.mubr.msk.f32.mxu0 %vm10791_vm0, %v10792_v1 }
0x1397   :  { %8887 = vmatmul.mubr.msk.f32.gmra.mrb[84].mxu0 %vm738_vm8, %v11924_v58  ;;  %v3302_v60 = vpop.permute.xlu1 %3301 }
0x1398   :  { %9745 = vmatpush3.bf16.xpose.msk.msra.mxu0 %vm11220_vm9, %v9743_v53  ;;  %8889 = vmatprep.mubr.msk.f32.mxu0 %vm10791_vm0, %v10792_v1 }
0x1399   :  { %8928 = vmatprep.subr.mxu0 %v10792_v1 }
0x139b   :  { %8890 = vmatmul.mubr.msk.f32.gmra.mrb[86].mxu0 %vm738_vm8, %v11916_v13  ;;  %v3306_v39 = vpop.permute.xlu1 %3305 }
0x139c   :  { %8892 = vmatprep.mubr.msk.f32.mxu0 %vm10791_vm0, %v10792_v1 }
0x139f   :  { %8893 = vmatmul.mubr.msk.f32.gmra.mrb[88].mxu0 %vm738_vm8, %v11929_v24 }
0x13a0   :  { %8929 = vmatpush3.xpose.msk.msra.mxu0 %vm738_vm8, %v3316_v44  ;;  %8930 = vmatprep.mubr.msk.f32.mxu0 %vm10791_vm0, %v10792_v1 }
0x13a1   :  { %8970 = vmatprep.subr.mxu0 %v10792_v1 }
0x13a3   :  { %8931 = vmatmul.mubr.msk.f32.vlgmr.msra.gmra.mrb[90].mxu0 %vm738_vm8, %v3298_v41 }
0x13a4   :  { %8933 = vmatprep.mubr.msk.f32.mxu0 %vm10791_vm0, %v10792_v1 }
0x13a7   :  { %8934 = vmatmul.mubr.msk.f32.gmra.mrb[92].mxu0 %vm738_vm8, %v3300_v21 }
0x13a8   :  { %8936 = vmatprep.mubr.msk.f32.mxu0 %vm10791_vm0, %v10792_v1 }
0x13ab   :  { %8937 = vmatmul.mubr.msk.f32.gmra.mrb[94].mxu0 %vm738_vm8, %v3302_v60 }
0x13ac   :  { %8939 = vmatprep.mubr.msk.f32.mxu0 %vm10791_vm0, %v10792_v1 }
0x13af   :  { %8940 = vmatmul.mubr.msk.f32.gmra.mrb[96].mxu0 %vm738_vm8, %v3304_v61 }
0x13b0   :  { %8942 = vmatprep.mubr.msk.f32.mxu0 %vm10791_vm0, %v10792_v1 }
0x13b3   :  { %8943 = vmatmul.mubr.msk.f32.gmra.mrb[98].mxu0 %vm738_vm8, %v3306_v39 }
0x13b4   :  { %8972 = vmatprep.mubr.msk.f32.mxu0 %vm10791_vm0, %v10792_v1 }
0x1462   :  { %v3096_v45 = vpop.f32.mrb[80].mxu0 }
0x1463   :  { %v3097_v14 = vadd.f32 %v3096_v45, %v11285_v5  ;;  %v8882_v23 = vpop.f32.mrb[81].mxu0 }
0x1465   :  { %v3120_v49 = vsel %vm854_vm4, %v3097_v14, -inf }
0x1466   :  { %3121 = vmax.xlane.f32.xlu0 %v3120_v49  ;;  %v3101_v3 = vpop.f32.mrb[82].mxu0 }
0x1467   :  { %v3102_v62 = vadd.f32 %v3101_v3, %v11285_v5  ;;  %v8885_v38 = vpop.f32.mrb[83].mxu0 }
0x1469   :  { %v3123_v8 = vsel %vm854_vm4, %v3102_v62, -inf }
0x146a   :  { %3124 = vmax.xlane.f32.xlu1 %v3123_v8  ;;  %v3106_v51 = vpop.f32.mrb[84].mxu0 }
0x146b   :  { %v3107_v6 = vadd.f32 %v3106_v51, %v11296_v12  ;;  %v8888_v59 = vpop.f32.mrb[85].mxu0 }
0x146d   :  { %v3126_v28 = vsel %vm854_vm4, %v3107_v6, -inf }
0x146e   :  { %3127 = vmax.xlane.f32.xlu0 %v3126_v28  ;;  %v3111_v16 = vpop.f32.mrb[86].mxu0 }
0x146f   :  { %v3112_v34 = vadd.f32 %v3111_v16, %v11306_v19  ;;  %v8891_v31 = vpop.f32.mrb[87].mxu0 }
0x1471   :  { %v3129_v36 = vsel %vm854_vm4, %v3112_v34, -inf }
0x1472   :  { %3130 = vmax.xlane.f32.xlu0 %v3129_v36  ;;  %v3116_v35 = vpop.f32.mrb[88].mxu0 }
0x1473   :  { %v3117_v29 = vadd.f32 %v3116_v35, %v11312_v25  ;;  %v8894_v7 = vpop.f32.mrb[89].mxu0 }
0x1475   :  { %v3132_v47 = vsel %vm867_vm11, %v3117_v29, -inf }
0x1476   :  { %3133 = vmax.xlane.f32.xlu1 %v3132_v47  ;;  %v3403_v4 = vpop.f32.mrb[90].mxu0 }
0x1477   :  { %v3404_v43 = vadd.f32 %v3403_v4, %v11285_v5  ;;  %v8932_v11 = vpop.f32.mrb[91].mxu0 }
0x1479   :  { %v3427_v15 = vsel %vm854_vm4, %v3404_v43, -inf }
0x147a   :  { %3428 = vmax.xlane.f32.xlu0 %v3427_v15  ;;  %v3408_v20 = vpop.f32.mrb[92].mxu0 }
0x147b   :  { %v3409_v18 = vadd.f32 %v3408_v20, %v11285_v5  ;;  %v8935_v40 = vpop.f32.mrb[93].mxu0 }
0x147d   :  { %v3430_v27 = vsel %vm854_vm4, %v3409_v18, -inf }
0x147e   :  { %3431 = vmax.xlane.f32.xlu1 %v3430_v27  ;;  %v3413_v56 = vpop.f32.mrb[94].mxu0 }
0x147f   :  { %v3414_v32 = vadd.f32 %v3413_v56, %v11296_v12  ;;  %v8938_v53 = vpop.f32.mrb[95].mxu0 }
0x1481   :  { %v3433_v44 = vsel %vm854_vm4, %v3414_v32, -inf }
0x1482   :  { %3434 = vmax.xlane.f32.xlu0 %v3433_v44  ;;  %v3418_v41 = vpop.f32.mrb[96].mxu0 }
0x1483   :  { %v12001_v21 = vadd.f32 %v3418_v41, %v11306_v19  ;;  %v8941_v60 = vpop.f32.mrb[97].mxu0 }
0x1485   :  { %v3436_v61 = vsel %vm854_vm4, %v12001_v21, -inf }
0x1486   :  { %3437 = vmax.xlane.f32.xlu1 %v3436_v61  ;;  %v3423_v39 = vpop.f32.mrb[98].mxu0 }
0x1487   :  { %v8944_v45 = vpop.f32.mrb[99].mxu0  ;;  %v12010_v23 = vadd.f32 %v3423_v39, %v11312_v25 }
0x1489   :  { %v3439_v49 = vsel %vm867_vm11, %v12010_v23, -inf }
0x1497   :  { %10103 = vrot.lane.b32.xlu1 %v11899_v54, %s10797_s17 }
0x1498   :  { %10098 = vrot.lane.b32.xlu0 %v11893_v50, %s10797_s17 }
0x14b7   :  { %3440 = vmax.xlane.f32.xlu0 %v3439_v49 }
0x14cd   :  { %3183 = vrot.lane.b32.xlu0 %v11904_v9, %s10797_s17 }
0x14f3   :  { %v3122_v3 = vpop.xlane.xlu0 %3121 }
0x14f4   :  { %v3135_v38 = vsub.f32 %v3097_v14, %v3122_v3 }
0x14f6   :  { %v3140_v8 = vmul.f32 1.442695, %v3135_v38 }
0x14f7   :  { %v3125_v51 = vpop.xlane.xlu1 %3124 }
0x14f8   :  { %10357 = vpow2.f32 %v3140_v8  ;;  %v3136_v59 = vsub.f32 %v3102_v62, %v3125_v51 }
0x14fa   :  { %v3142_v28 = vmul.f32 1.442695, %v3136_v59 }
0x14fb   :  { %v3128_v16 = vpop.xlane.xlu0 %3127 }
0x14fc   :  { %10359 = vpow2.f32 %v3142_v28  ;;  %v3137_v31 = vsub.f32 %v3107_v6, %v3128_v16 }
0x14fe   :  { %v3144_v36 = vmul.f32 1.442695, %v3137_v31 }
0x14ff   :  { %v3131_v35 = vpop.xlane.xlu0 %3130 }
0x1500   :  { %10361 = vpow2.f32 %v3144_v36  ;;  %v3138_v7 = vsub.f32 %v3112_v34, %v3131_v35 }
0x1502   :  { %v12016_v47 = vpop.eup %10357  ;;  %v3146_v4 = vmul.f32 1.442695, %v3138_v7 }
0x1503   :  { %v3134_v11 = vpop.xlane.xlu1 %3133  ;;  %v3150_v15 = vsel %vm854_vm4, %v12016_v47, 0.0 }
0x1504   :  { %10363 = vpow2.f32 %v3146_v4  ;;  %v3139_v14 = vsub.f32 %v3117_v29, %v3134_v11  ;;  %3151 = vadd.xlane.f32.xlu1 %v3150_v15 }
0x1506   :  { %v12020_v20 = vpop.eup %10359  ;;  %v3148_v62 = vmul.f32 1.442695, %v3139_v14 }
0x1507   :  { %v3429_v40 = vpop.xlane.xlu0 %3428  ;;  %v3153_v6 = vsel %vm854_vm4, %v12020_v20, 0.0 }
0x1508   :  { %10365 = vpow2.f32 %v3148_v62  ;;  %v3442_v27 = vsub.f32 %v3404_v43, %v3429_v40  ;;  %3154 = vadd.xlane.f32.xlu0 %v3153_v6 }
0x150a   :  { %v12024_v34 = vpop.eup %10361  ;;  %v3447_v56 = vmul.f32 1.442695, %v3442_v27 }
0x150b   :  { %v3432_v53 = vpop.xlane.xlu1 %3431  ;;  %v3156_v44 = vsel %vm854_vm4, %v12024_v34, 0.0 }
0x150c   :  { %10367 = vpow2.f32 %v3447_v56  ;;  %v3443_v29 = vsub.f32 %v3409_v18, %v3432_v53  ;;  %3157 = vadd.xlane.f32.xlu1 %v3156_v44 }
0x150e   :  { %v12028_v41 = vpop.eup %10363  ;;  %v3449_v60 = vmul.f32 1.442695, %v3443_v29 }
0x150f   :  { %v3435_v61 = vpop.xlane.xlu0 %3434  ;;  %v3159_v39 = vsel %vm854_vm4, %v12028_v41, 0.0 }
0x1510   :  { %10369 = vpow2.f32 %v3449_v60  ;;  %v3444_v43 = vsub.f32 %v3414_v32, %v3435_v61  ;;  %3160 = vadd.xlane.f32.xlu0 %v3159_v39 }
0x1512   :  { %v12032_v45 = vpop.eup %10365  ;;  %v3451_v49 = vmul.f32 1.442695, %v3444_v43 }
0x1513   :  { %v10099_v3 = vpop.permute.xlu0 %10098  ;;  %v3438_v38 = vpop.xlane.xlu1 %3437  ;;  %v3162_v8 = vsel %vm867_vm11, %v12032_v45, 0.0 }
0x1514   :  { %10371 = vpow2.f32 %v3451_v49  ;;  %v10101_v18 = vunpack.i.h.bf16 %v10099_v3  ;;  %v10100_v51 = vunpack.i.l.bf16 %v10099_v3  ;;  %v3445_v59 = vsub.f32 %v12001_v21, %v3438_v38  ;;  %3163 = vadd.xlane.f32.xlu1 %v3162_v8 }
0x1516   :  { %v12037_v28 = vpop.eup %10367  ;;  %v9733_v16 = vpack.c.bf16 %v10101_v18, %v10100_v51  ;;  %v3453_v31 = vmul.f32 1.442695, %v3445_v59 }
0x1517   :  { %v10104_v32 = vpop.permute.xlu1 %10103  ;;  %v3457_v36 = vsel %vm854_vm4, %v12037_v28, 0.0 }
0x1518   :  { %10373 = vpow2.f32 %v3453_v31  ;;  %v10106_v35 = vunpack.i.h.bf16 %v10104_v32  ;;  %v10105_v7 = vunpack.i.l.bf16 %v10104_v32  ;;  %9734 = vmatpush3.bf16.msra.mxu1 %v9733_v16  ;;  %3458 = vadd.xlane.f32.xlu1 %v3457_v36 }
0x1519   :  { %9735 = vmatprep.subr.bf16.mxu1 %v10790_v0 }
0x151a   :  { %v12042_v4 = vpop.eup %10369  ;;  %v9736_v11 = vpack.c.bf16 %v10106_v35, %v10105_v7 }
0x151b   :  { %v3460_v21 = vsel %vm854_vm4, %v12042_v4, 0.0 }
0x151c   :  { %9737 = vmatpush3.bf16.msra.mxu1 %v9736_v11  ;;  %3461 = vadd.xlane.f32.xlu0 %v3460_v21 }
0x151d   :  { %8903 = vmatprep.subr.mxu1 %v10792_v1 }
0x151e   :  { %v12047_v15 = vpop.eup %10371 }
0x151f   :  { %v3463_v14 = vsel %vm854_vm4, %v12047_v15, 0.0 }
0x1520   :  { %3464 = vadd.xlane.f32.xlu1 %v3463_v14 }
0x1522   :  { %v12051_v62 = vpop.eup %10373 }
0x1523   :  { %v3466_v40 = vsel %vm854_vm4, %v12051_v62, 0.0 }
0x1524   :  { %3467 = vadd.xlane.f32.xlu1 %v3466_v40 }
0x1532   :  { %10113 = vrot.lane.b32.xlu0 %v11899_v54, %s10798_s21 }
0x1536   :  { %3490 = vrot.lane.b32.xlu0 %v11904_v9, %s10798_s21 }
0x153a   :  { %10118 = vrot.lane.b32.xlu0 %v11893_v50, %s10799_s25 }
0x153e   :  { %3832 = vrot.lane.b32.xlu0 %v11904_v9, %s10799_s25 }
0x1542   :  { %3816 = vrot.lane.b32.xlu0 %v11910_v57, %s10800_s29 }
0x1544   :  { %v3441_v6 = vpop.xlane.xlu0 %3440 }
0x1545   :  { %v3446_v27 = vsub.f32 %v12010_v23, %v3441_v6 }
0x1546   :  { %3820 = vrot.lane.b32.xlu0 %v11916_v13, %s10800_s29 }
0x1547   :  { %v3455_v56 = vmul.f32 1.442695, %v3446_v27 }
0x1548   :  { %v3184_v53 = vpop.permute.xlu0 %3183 }
0x1549   :  { %10375 = vpow2.f32 %v3455_v56  ;;  %8904 = vmatpush3.msk.msra.mxu1 %vm940_vm14, %v3184_v53 }
0x154a   :  { %9746 = vmatprep.subr.bf16.mxu1 %v10790_v0 }
0x1553   :  { %v12070_v44 = vpop.eup %10375 }
0x1554   :  { %v3469_v29 = vsel %vm867_vm11, %v12070_v44, 0.0 }
0x1555   :  { %3470 = vadd.xlane.f32.xlu1 %v3469_v29  ;;  %v3296_v29 = vld [vmem:[%s13274_s7] sm:$0xff] }
0x1566   :  { %10108 = vrot.lane.b32.xlu1 %v11893_v50, %s10798_s21 }
0x156a   :  { %10123 = vrot.lane.b32.xlu1 %v11899_v54, %s10799_s25 }
0x156e   :  { %3814 = vrot.lane.b32.xlu1 %v11918_v30, %s10800_s29 }
0x1572   :  { %3818 = vrot.lane.b32.xlu1 %v11924_v58, %s10800_s29 }
0x1576   :  { %3822 = vrot.lane.b32.xlu1 %v11929_v24, %s10800_s29 }
0x1591   :  { %v3152_v23 = vpop.xlane.xlu1 %3151 }
0x1592   :  { %10377 = vrcp.f32 %v3152_v23 }
0x1595   :  { %v3155_v60 = vpop.xlane.xlu0 %3154 }
0x1596   :  { %10379 = vrcp.f32 %v3155_v60 }
0x1599   :  { %v3158_v61 = vpop.xlane.xlu1 %3157 }
0x159a   :  { %10381 = vrcp.f32 %v3158_v61 }
0x159c   :  { %v10378_v39 = vpop.eup %10377 }
0x159d   :  { %v3170_v43 = vmul.f32 %v10378_v39, %v12016_v47  ;;  %v3161_v49 = vpop.xlane.xlu0 %3160 }
0x159e   :  { %10383 = vrcp.f32 %v3161_v49 }
0x159f   :  { %8906 = vmatmul.mubr.msk.f32.vlgmr.msra.gmra.mrb[90].mxu1 %vm854_vm4, %v3170_v43 }
0x15a0   :  { %v10380_v3 = vpop.eup %10379  ;;  %8908 = vmatprep.mubr.msk.f32.mxu1 %vm10791_vm0, %v10792_v1 }
0x15a1   :  { %v3164_v38 = vpop.xlane.xlu1 %3163  ;;  %v3171_v8 = vmul.f32 %v10380_v3, %v12020_v20  ;;  %v3603_v3 = vld [vmem:[%s13274_s7 + $0x8] sm:$0xff] }
0x15a2   :  { %10385 = vrcp.f32 %v3164_v38  ;;  %8971 = vmatpush3.msra.mxu0 %v3603_v3 }
0x15a3   :  { %8909 = vmatmul.mubr.msk.f32.gmra.mrb[92].mxu1 %vm854_vm4, %v3171_v8  ;;  %9752 = vmatprep.subr.bf16.mxu0 %v10790_v0 }
0x15a4   :  { %v10382_v18 = vpop.eup %10381  ;;  %8911 = vmatprep.mubr.msk.f32.mxu1 %vm10791_vm0, %v10792_v1 }
0x15a5   :  { %v3172_v47 = vmul.f32 %v10382_v18, %v12024_v34  ;;  %v3459_v34 = vpop.xlane.xlu1 %3458 }
0x15a6   :  { %10387 = vrcp.f32 %v3459_v34 }
0x15a7   :  { %8912 = vmatmul.mubr.msk.f32.gmra.mrb[94].mxu1 %vm854_vm4, %v3172_v47 }
0x15a8   :  { %v10384_v51 = vpop.eup %10383  ;;  %8914 = vmatprep.mubr.msk.f32.mxu1 %vm10791_vm0, %v10792_v1 }
0x15a9   :  { %v3173_v59 = vmul.f32 %v10384_v51, %v12028_v41  ;;  %v3462_v36 = vpop.xlane.xlu0 %3461 }
0x15aa   :  { %10389 = vrcp.f32 %v3462_v36 }
0x15ab   :  { %8915 = vmatmul.mubr.msk.f32.gmra.mrb[96].mxu1 %vm854_vm4, %v3173_v59 }
0x15ac   :  { %v10386_v20 = vpop.eup %10385  ;;  %8917 = vmatprep.mubr.msk.f32.mxu1 %vm10791_vm0, %v10792_v1 }
0x15ad   :  { %v3174_v16 = vmul.f32 %v10386_v20, %v12032_v45  ;;  %v3465_v31 = vpop.xlane.xlu1 %3464  ;;  %v10114_v41 = vpop.permute.xlu0 %10113 }
0x15ae   :  { %v10116_v14 = vunpack.i.h.bf16 %v10114_v41  ;;  %v10115_v40 = vunpack.i.l.bf16 %v10114_v41  ;;  %10391 = vrcp.f32 %v3465_v31 }
0x15af   :  { %8918 = vmatmul.mubr.msk.f32.gmra.mrb[98].mxu1 %vm854_vm4, %v3174_v16 }
0x15b0   :  { %8955 = vmatprep.mubr.msk.f32.mxu1 %vm10791_vm0, %v10792_v1  ;;  %v9750_v6 = vpack.c.bf16 %v10116_v14, %v10115_v40  ;;  %v10388_v27 = vpop.eup %10387 }
0x15b1   :  { %v3468_v32 = vpop.xlane.xlu1 %3467  ;;  %v3477_v56 = vmul.f32 %v10388_v27, %v12037_v28  ;;  %v3491_v53 = vpop.permute.xlu0 %3490 }
0x15b2   :  { %10393 = vrcp.f32 %v3468_v32 }
0x15b4   :  { %v10390_v23 = vpop.eup %10389 }
0x15b5   :  { %v3478_v60 = vmul.f32 %v10390_v23, %v12042_v4  ;;  %v10119_v16 = vpop.permute.xlu0 %10118 }
0x15b6   :  { %v10121_v34 = vunpack.i.h.bf16 %v10119_v16  ;;  %v10120_v31 = vunpack.i.l.bf16 %v10119_v16 }
0x15b8   :  { %v10392_v28 = vpop.eup %10391  ;;  %v9753_v32 = vpack.c.bf16 %v10121_v34, %v10120_v31 }
0x15b9   :  { %v3479_v61 = vmul.f32 %v10392_v28, %v12047_v15 }
0x15bc   :  { %v10394_v39 = vpop.eup %10393 }
0x15bd   :  { %v3480_v43 = vmul.f32 %v10394_v39, %v12051_v62 }
0x15e2   :  { %v3471_v35 = vpop.xlane.xlu1 %3470 }
0x15e3   :  { %10395 = vrcp.f32 %v3471_v35 }
0x15e6   :  { %v10109_v7 = vpop.permute.xlu1 %10108 }
0x15e7   :  { %v10111_v11 = vunpack.i.h.bf16 %v10109_v7  ;;  %v10110_v21 = vunpack.i.l.bf16 %v10109_v7 }
0x15e9   :  { %v9747_v45 = vpack.c.bf16 %v10111_v11, %v10110_v21 }
0x15ea   :  { %v10124_v35 = vpop.permute.xlu1 %10123 }
0x15eb   :  { %9748 = vmatpush3.bf16.msra.mxu1 %v9747_v45  ;;  %v10126_v7 = vunpack.i.h.bf16 %v10124_v35  ;;  %v10125_v11 = vunpack.i.l.bf16 %v10124_v35 }
0x15ec   :  { %9749 = vmatprep.subr.bf16.mxu1 %v10790_v0 }
0x15ed   :  { %v10396_v49 = vpop.eup %10395  ;;  %v9757_v40 = vpack.c.bf16 %v10126_v7, %v10125_v11 }
0x15ee   :  { %v3481_v4 = vmul.f32 %v10396_v49, %v12070_v44 }
0x15ef   :  { %9751 = vmatpush3.bf16.msra.mxu1 %v9750_v6 }
0x15f0   :  { %8953 = vmatprep.subr.mxu1 %v10792_v1 }
0x15f3   :  { %8954 = vmatpush3.msk.msra.mxu1 %vm940_vm14, %v3491_v53 }
0x15f4   :  { %8956 = vmatmul.mubr.msk.f32.vlgmr.msra.gmra.mrb[100].mxu1 %vm854_vm4, %v3477_v56  ;;  %8987 = vmatprep.subr.mxu1 %v10792_v1 }
0x15f5   :  { %8958 = vmatprep.mubr.msk.f32.mxu1 %vm10791_vm0, %v10792_v1  ;;  %8988 = vmatpush3.msra.mxu1 %v3296_v29  ;;  %v3833_v29 = vpop.permute.xlu0 %3832 }
0x15f6   :  { %9760 = vmatprep.subr.bf16.mxu1 %v10790_v0 }
0x15f8   :  { %8959 = vmatmul.mubr.msk.f32.gmra.mrb[102].mxu1 %vm854_vm4, %v3478_v60  ;;  %v3815_v60 = vpop.permute.xlu1 %3814 }
0x15f9   :  { %8961 = vmatprep.mubr.msk.f32.mxu1 %vm10791_vm0, %v10792_v1  ;;  %v3817_v28 = vpop.permute.xlu0 %3816 }
0x15fc   :  { %8962 = vmatmul.mubr.msk.f32.gmra.mrb[104].mxu1 %vm854_vm4, %v3479_v61  ;;  %v3819_v61 = vpop.permute.xlu1 %3818 }
0x15fd   :  { %8964 = vmatprep.mubr.msk.f32.mxu1 %vm10791_vm0, %v10792_v1  ;;  %v3821_v39 = vpop.permute.xlu0 %3820 }
0x1600   :  { %8965 = vmatmul.mubr.msk.f32.gmra.mrb[106].mxu1 %vm854_vm4, %v3480_v43  ;;  %v3823_v43 = vpop.permute.xlu1 %3822 }
0x1601   :  { %8967 = vmatprep.mubr.msk.f32.mxu1 %vm10791_vm0, %v10792_v1 }
0x1604   :  { %8968 = vmatmul.mubr.msk.f32.gmra.mrb[108].mxu1 %vm854_vm4, %v3481_v4 }
0x1605   :  { %8989 = vmatprep.mubr.msk.f32.mxu1 %vm10791_vm0, %v10792_v1 }
0x1672   :  { %v3272_v15 = vpop.f32.mrb[90].mxu1 }
0x1673   :  { %v8907_v38 = vpop.f32.mrb[91].mxu1  ;;  %8990 = vmatmul.mubr.msk.f32.vlgmr.msra.gmra.mrb[110].mxu1 %vm738_vm8, %v3272_v15 }
0x1674   :  { %8992 = vmatprep.mubr.msk.f32.mxu1 %vm10791_vm0, %v10792_v1 }
0x1676   :  { %v3277_v62 = vpop.f32.mrb[92].mxu1 }
0x1677   :  { %v8910_v8 = vpop.f32.mrb[93].mxu1  ;;  %8993 = vmatmul.mubr.msk.f32.gmra.mrb[112].mxu1 %vm738_vm8, %v3277_v62 }
0x1678   :  { %8995 = vmatprep.mubr.msk.f32.mxu1 %vm10791_vm0, %v10792_v1 }
0x167a   :  { %v3282_v44 = vpop.f32.mrb[94].mxu1 }
0x167b   :  { %v8913_v18 = vpop.f32.mrb[95].mxu1  ;;  %8996 = vmatmul.mubr.msk.f32.gmra.mrb[114].mxu1 %vm738_vm8, %v3282_v44 }
0x167c   :  { %8998 = vmatprep.mubr.msk.f32.mxu1 %vm10791_vm0, %v10792_v1 }
0x167e   :  { %v3287_v47 = vpop.f32.mrb[96].mxu1 }
0x167f   :  { %v8916_v51 = vpop.f32.mrb[97].mxu1  ;;  %8999 = vmatmul.mubr.msk.f32.gmra.mrb[116].mxu1 %vm738_vm8, %v3287_v47 }
0x1680   :  { %9001 = vmatprep.mubr.msk.f32.mxu1 %vm10791_vm0, %v10792_v1 }
0x1682   :  { %v3292_v59 = vpop.f32.mrb[98].mxu1 }
0x1683   :  { %v8919_v20 = vpop.f32.mrb[99].mxu1  ;;  %9002 = vmatmul.mubr.msk.f32.gmra.mrb[118].mxu1 %vm738_vm8, %v3292_v59 }
0x1684   :  { %9039 = vmatprep.mubr.msk.f32.mxu1 %vm10791_vm0, %v10792_v1 }
0x16c7   :  { %v3579_v36 = vpop.f32.mrb[100].mxu1 }
0x16c8   :  { %v8957_v41 = vpop.f32.mrb[101].mxu1  ;;  %8973 = vmatmul.mubr.msk.f32.vlgmr.msra.gmra.mrb[100].mxu0 %vm738_vm8, %v3579_v36 }
0x16c9   :  { %9755 = vmatpush3.bf16.xpose.msk.msra.mxu0 %vm11220_vm9, %v9753_v32  ;;  %8975 = vmatprep.mubr.msk.f32.mxu0 %vm10791_vm0, %v10792_v1 }
0x16ca   :  { %9756 = vmatprep.subr.bf16.mxu0 %v10790_v0 }
0x16cb   :  { %v3584_v21 = vpop.f32.mrb[102].mxu1 }
0x16cc   :  { %v8960_v14 = vpop.f32.mrb[103].mxu1  ;;  %8976 = vmatmul.mubr.msk.f32.gmra.mrb[102].mxu0 %vm738_vm8, %v3584_v21 }
0x16cd   :  { %8978 = vmatprep.mubr.msk.f32.mxu0 %vm10791_vm0, %v10792_v1 }
0x16cf   :  { %v3589_v45 = vpop.f32.mrb[104].mxu1 }
0x16d0   :  { %v8963_v6 = vpop.f32.mrb[105].mxu1  ;;  %8979 = vmatmul.mubr.msk.f32.gmra.mrb[104].mxu0 %vm738_vm8, %v3589_v45 }
0x16d1   :  { %9759 = vmatpush3.bf16.xpose.msk.msra.mxu0 %vm11220_vm9, %v9757_v40  ;;  %8981 = vmatprep.mubr.msk.f32.mxu0 %vm10791_vm0, %v10792_v1 }
0x16d2   :  { %9012 = vmatprep.subr.mxu0 %v10792_v1 }
0x16d3   :  { %v3594_v27 = vpop.f32.mrb[106].mxu1 }
0x16d4   :  { %v8966_v56 = vpop.f32.mrb[107].mxu1  ;;  %8982 = vmatmul.mubr.msk.f32.gmra.mrb[106].mxu0 %vm738_vm8, %v3594_v27 }
0x16d5   :  { %8984 = vmatprep.mubr.msk.f32.mxu0 %vm10791_vm0, %v10792_v1 }
0x16d7   :  { %v3599_v53 = vpop.f32.mrb[108].mxu1 }
0x16d8   :  { %v8969_v23 = vpop.f32.mrb[109].mxu1  ;;  %8985 = vmatmul.mubr.msk.f32.gmra.mrb[108].mxu0 %vm738_vm8, %v3599_v53 }
0x16d9   :  { %9013 = vmatpush3.xpose.msk.msra.mxu0 %vm738_vm8, %v3833_v29  ;;  %9014 = vmatprep.mubr.msk.f32.mxu0 %vm10791_vm0, %v10792_v1 }
0x16da   :  { %9054 = vmatprep.subr.mxu0 %v10792_v1 }
0x16dc   :  { %9015 = vmatmul.mubr.msk.f32.vlgmr.msra.gmra.mrb[110].mxu0 %vm738_vm8, %v3815_v60 }
0x16dd   :  { %9017 = vmatprep.mubr.msk.f32.mxu0 %vm10791_vm0, %v10792_v1 }
0x16e0   :  { %9018 = vmatmul.mubr.msk.f32.gmra.mrb[112].mxu0 %vm738_vm8, %v3817_v28 }
0x16e1   :  { %9020 = vmatprep.mubr.msk.f32.mxu0 %vm10791_vm0, %v10792_v1 }
0x16e4   :  { %9021 = vmatmul.mubr.msk.f32.gmra.mrb[114].mxu0 %vm738_vm8, %v3819_v61 }
0x16e5   :  { %9023 = vmatprep.mubr.msk.f32.mxu0 %vm10791_vm0, %v10792_v1 }
0x16e8   :  { %9024 = vmatmul.mubr.msk.f32.gmra.mrb[116].mxu0 %vm738_vm8, %v3821_v39 }
0x16e9   :  { %9026 = vmatprep.mubr.msk.f32.mxu0 %vm10791_vm0, %v10792_v1 }
0x16ec   :  { %9027 = vmatmul.mubr.msk.f32.gmra.mrb[118].mxu0 %vm738_vm8, %v3823_v43 }
0x16ed   :  { %9056 = vmatprep.mubr.msk.f32.mxu0 %vm10791_vm0, %v10792_v1 }
0x1746   :  { %v3790_v49 = vpop.f32.mrb[110].mxu1 }
0x1747   :  { %v8991_v4 = vpop.f32.mrb[111].mxu1 }
0x174a   :  { %v3795_v3 = vpop.f32.mrb[112].mxu1 }
0x174b   :  { %v8994_v15 = vpop.f32.mrb[113].mxu1 }
0x174e   :  { %v3800_v38 = vpop.f32.mrb[114].mxu1 }
0x174f   :  { %v8997_v62 = vpop.f32.mrb[115].mxu1 }
0x1752   :  { %v3805_v8 = vpop.f32.mrb[116].mxu1 }
0x1753   :  { %v9000_v44 = vpop.f32.mrb[117].mxu1 }
0x1756   :  { %v3810_v18 = vpop.f32.mrb[118].mxu1 }
0x1757   :  { %v9003_v47 = vpop.f32.mrb[119].mxu1 }
0x179b   :  { %v3685_v51 = vpop.f32.mrb[100].mxu0 }
0x179c   :  { %v12185_v59 = vadd.f32 %v3790_v49, %v3685_v51  ;;  %v8974_v20 = vpop.f32.mrb[101].mxu0 }
0x179f   :  { %v3690_v16 = vpop.f32.mrb[102].mxu0 }
0x17a0   :  { %v12187_v34 = vadd.f32 %v3795_v3, %v3690_v16  ;;  %v8977_v31 = vpop.f32.mrb[103].mxu0 }
0x17a3   :  { %v3695_v32 = vpop.f32.mrb[104].mxu0 }
0x17a4   :  { %v12189_v36 = vadd.f32 %v3800_v38, %v3695_v32  ;;  %v8980_v35 = vpop.f32.mrb[105].mxu0 }
0x17a7   :  { %v3700_v41 = vpop.f32.mrb[106].mxu0 }
0x17a8   :  { %v12191_v7 = vadd.f32 %v3805_v8, %v3700_v41  ;;  %v8983_v11 = vpop.f32.mrb[107].mxu0 }
0x17ab   :  { %v3705_v21 = vpop.f32.mrb[108].mxu0 }
0x17ac   :  { %v12193_v14 = vadd.f32 %v3810_v18, %v3705_v21  ;;  %v8986_v40 = vpop.f32.mrb[109].mxu0 }
0x17af   :  { %v3920_v45 = vpop.f32.mrb[110].mxu0 }
0x17b0   :  { %v3921_v6 = vadd.f32 %v3920_v45, %v11285_v5  ;;  %v9016_v27 = vpop.f32.mrb[111].mxu0 }
0x17b2   :  { %v3944_v56 = vsel %vm854_vm4, %v3921_v6, -inf }
0x17b3   :  { %3945 = vmax.xlane.f32.xlu0 %v3944_v56  ;;  %v3925_v53 = vpop.f32.mrb[112].mxu0 }
0x17b4   :  { %v3926_v29 = vadd.f32 %v3925_v53, %v11285_v5  ;;  %v9019_v23 = vpop.f32.mrb[113].mxu0 }
0x17b6   :  { %v3947_v60 = vsel %vm854_vm4, %v3926_v29, -inf }
0x17b7   :  { %3948 = vmax.xlane.f32.xlu1 %v3947_v60  ;;  %v3930_v28 = vpop.f32.mrb[114].mxu0 }
0x17b8   :  { %v3931_v61 = vadd.f32 %v3930_v28, %v11296_v12  ;;  %v9022_v39 = vpop.f32.mrb[115].mxu0 }
0x17ba   :  { %v3950_v43 = vsel %vm854_vm4, %v3931_v61, -inf }
0x17bb   :  { %3951 = vmax.xlane.f32.xlu0 %v3950_v43  ;;  %v3935_v49 = vpop.f32.mrb[116].mxu0 }
0x17bc   :  { %v3936_v4 = vadd.f32 %v3935_v49, %v11306_v19  ;;  %v9025_v3 = vpop.f32.mrb[117].mxu0 }
0x17be   :  { %v3953_v15 = vsel %vm854_vm4, %v3936_v4, -inf }
0x17bf   :  { %3954 = vmax.xlane.f32.xlu0 %v3953_v15  ;;  %v3940_v38 = vpop.f32.mrb[118].mxu0 }
0x17c0   :  { %v3941_v62 = vadd.f32 %v3940_v38, %v11312_v25  ;;  %v9028_v8 = vpop.f32.mrb[119].mxu0 }
0x17c2   :  { %v3956_v44 = vsel %vm867_vm11, %v3941_v62, -inf }
0x17c3   :  { %3957 = vmax.xlane.f32.xlu1 %v3956_v44 }
0x1840   :  { %v3946_v18 = vpop.xlane.xlu0 %3945 }
0x1841   :  { %v3959_v47 = vsub.f32 %v3921_v6, %v3946_v18 }
0x1843   :  { %v3964_v51 = vmul.f32 1.442695, %v3959_v47 }
0x1844   :  { %v3949_v20 = vpop.xlane.xlu1 %3948 }
0x1845   :  { %10397 = vpow2.f32 %v3964_v51  ;;  %v3960_v16 = vsub.f32 %v3926_v29, %v3949_v20 }
0x1847   :  { %v3966_v31 = vmul.f32 1.442695, %v3960_v16 }
0x1848   :  { %v3952_v21 = vpop.xlane.xlu0 %3951 }
0x1849   :  { %10399 = vpow2.f32 %v3966_v31  ;;  %v3961_v40 = vsub.f32 %v3931_v61, %v3952_v21 }
0x184b   :  { %v3968_v56 = vmul.f32 1.442695, %v3961_v40 }
0x184c   :  { %v3955_v45 = vpop.xlane.xlu0 %3954 }
0x184d   :  { %v3962_v27 = vsub.f32 %v3936_v4, %v3955_v45  ;;  %10401 = vpow2.f32 %v3968_v56 }
0x184f   :  { %v10398_v32 = vpop.eup %10397  ;;  %v3970_v29 = vmul.f32 1.442695, %v3962_v27 }
0x1850   :  { %v3974_v35 = vsel %vm854_vm4, %v10398_v32, 0.0  ;;  %v3958_v6 = vpop.xlane.xlu1 %3957 }
0x1851   :  { %3975 = vadd.xlane.f32.xlu0 %v3974_v35  ;;  %v3963_v53 = vsub.f32 %v3941_v62, %v3958_v6  ;;  %10403 = vpow2.f32 %v3970_v29 }
0x1853   :  { %v12206_v41 = vpop.eup %10399  ;;  %v3972_v23 = vmul.f32 1.442695, %v3963_v53 }
0x1854   :  { %v3977_v11 = vsel %vm854_vm4, %v12206_v41, 0.0 }
0x1855   :  { %3978 = vadd.xlane.f32.xlu1 %v3977_v11  ;;  %10405 = vpow2.f32 %v3972_v23 }
0x1857   :  { %v10402_v60 = vpop.eup %10401 }
0x1858   :  { %v3980_v39 = vsel %vm854_vm4, %v10402_v60, 0.0 }
0x185b   :  { %v12214_v28 = vpop.eup %10403 }
0x185c   :  { %v3983_v61 = vsel %vm854_vm4, %v12214_v28, 0.0 }
0x185f   :  { %v12217_v43 = vpop.eup %10405 }
0x1860   :  { %v3986_v49 = vsel %vm867_vm11, %v12217_v43, 0.0 }
0x1866   :  { %10128 = vrot.lane.b32.xlu1 %v11893_v50, %s10801_s3 }
0x1867   :  { %10133 = vrot.lane.b32.xlu0 %v11899_v54, %s10801_s3 }
0x1886   :  { %3981 = vadd.xlane.f32.xlu0 %v3980_v39 }
0x188a   :  { %3984 = vadd.xlane.f32.xlu0 %v3983_v61  ;;  %3987 = vadd.xlane.f32.xlu1 %v3986_v49  ;;  %v4120_v61 = vld [vmem:[%s13274_s7 + $0x10] sm:$0xff] }
0x188b   :  { %9055 = vmatpush3.msra.mxu0 %v4120_v61 }
0x188c   :  { %9774 = vmatprep.subr.bf16.mxu0 %v10790_v0 }
0x189b   :  { %4237 = vrot.lane.b32.xlu1 %v11916_v13, %s10802_s8 }
0x18a0   :  { %4007 = vrot.lane.b32.xlu0 %v11904_v9, %s10801_s3 }
0x18a4   :  { %10138 = vrot.lane.b32.xlu0 %v11893_v50, %s10803_s24 }
0x18a8   :  { %10143 = vrot.lane.b32.xlu0 %v11899_v54, %s10803_s24 }
0x18ac   :  { %4249 = vrot.lane.b32.xlu0 %v11904_v9, %s10803_s24 }
0x18b0   :  { %4231 = vrot.lane.b32.xlu0 %v11918_v30, %s10802_s8 }
0x18b4   :  { %4233 = vrot.lane.b32.xlu0 %v11910_v57, %s10802_s8 }
0x18b8   :  { %4235 = vrot.lane.b32.xlu0 %v11924_v58, %s10802_s8 }
0x18bc   :  { %4239 = vrot.lane.b32.xlu0 %v11929_v24, %s10802_s8 }
0x18de   :  { %v3976_v13 = vpop.xlane.xlu0 %3975 }
0x18df   :  { %10407 = vrcp.f32 %v3976_v13 }
0x18e2   :  { %v3979_v50 = vpop.xlane.xlu1 %3978  ;;  %v10134_v4 = vpop.permute.xlu0 %10133 }
0x18e3   :  { %v10136_v38 = vunpack.i.h.bf16 %v10134_v4  ;;  %v10135_v9 = vunpack.i.l.bf16 %v10134_v4  ;;  %10409 = vrcp.f32 %v3979_v50 }
0x18e5   :  { %v9764_v30 = vpack.c.bf16 %v10136_v38, %v10135_v9 }
0x18e6   :  { %v10129_v3 = vpop.permute.xlu1 %10128 }
0x18e7   :  { %v10131_v54 = vunpack.i.h.bf16 %v10129_v3  ;;  %v10130_v15 = vunpack.i.l.bf16 %v10129_v3 }
0x18e9   :  { %v9761_v62 = vpack.c.bf16 %v10131_v54, %v10130_v15  ;;  %v10408_v24 = vpop.eup %10407 }
0x18ea   :  { %v3994_v8 = vmul.f32 %v10408_v24, %v10398_v32 }
0x18eb   :  { %9762 = vmatpush3.bf16.msra.mxu1 %v9761_v62 }
0x18ec   :  { %9763 = vmatprep.subr.bf16.mxu1 %v10790_v0 }
0x18ed   :  { %v10410_v47 = vpop.eup %10409 }
0x18ee   :  { %v3995_v20 = vmul.f32 %v10410_v47, %v12206_v41 }
0x18ef   :  { %9765 = vmatpush3.bf16.msra.mxu1 %v9764_v30 }
0x18f0   :  { %9037 = vmatprep.subr.mxu1 %v10792_v1 }
0x1913   :  { %v3982_v57 = vpop.xlane.xlu0 %3981 }
0x1914   :  { %10411 = vrcp.f32 %v3982_v57 }
0x1917   :  { %v3985_v58 = vpop.xlane.xlu0 %3984  ;;  %v3988_v44 = vpop.xlane.xlu1 %3987 }
0x1918   :  { %10413 = vrcp.f32 %v3985_v58 }
0x1919   :  { %10415 = vrcp.f32 %v3988_v44 }
0x191b   :  { %v4008_v18 = vpop.permute.xlu0 %4007  ;;  %v4238_v39 = vpop.permute.xlu1 %4237 }
0x191c   :  { %9038 = vmatpush3.msk.msra.mxu1 %vm940_vm14, %v4008_v18 }
0x191d   :  { %9040 = vmatmul.mubr.msk.f32.vlgmr.msra.gmra.mrb[120].mxu1 %vm854_vm4, %v3994_v8  ;;  %9766 = vmatprep.subr.bf16.mxu1 %v10790_v0 }
0x191e   :  { %9042 = vmatprep.mubr.msk.f32.mxu1 %vm10791_vm0, %v10792_v1  ;;  %v10412_v16 = vpop.eup %10411 }
0x191f   :  { %v10139_v51 = vpop.permute.xlu0 %10138  ;;  %v3996_v21 = vmul.f32 %v10412_v16, %v10402_v60 }
0x1920   :  { %v10141_v31 = vunpack.i.h.bf16 %v10139_v51  ;;  %v10140_v35 = vunpack.i.l.bf16 %v10139_v51 }
0x1921   :  { %9043 = vmatmul.mubr.msk.f32.gmra.mrb[122].mxu1 %vm854_vm4, %v3995_v20 }
0x1922   :  { %v9767_v32 = vpack.c.bf16 %v10141_v31, %v10140_v35  ;;  %9045 = vmatprep.mubr.msk.f32.mxu1 %vm10791_vm0, %v10792_v1  ;;  %v10414_v40 = vpop.eup %10413 }
0x1923   :  { %v10144_v11 = vpop.permute.xlu0 %10143  ;;  %v3997_v6 = vmul.f32 %v10414_v40, %v12214_v28  ;;  %v10416_v27 = vpop.eup %10415 }
0x1924   :  { %9769 = vmatpush3.bf16.xpose.msk.msra.mxu1 %vm11220_vm9, %v9767_v32  ;;  %v10146_v41 = vunpack.i.h.bf16 %v10144_v11  ;;  %v10145_v45 = vunpack.i.l.bf16 %v10144_v11  ;;  %v3998_v53 = vmul.f32 %v10416_v27, %v12217_v43  ;;  %v10566_v27 = vld [vmem:[#allocation2] sm:$0xff] }
0x1925   :  { %9046 = vmatmul.mubr.msk.f32.gmra.mrb[124].mxu1 %vm854_vm4, %v3996_v21  ;;  %9770 = vmatprep.subr.bf16.mxu1 %v10790_v0 }
0x1926   :  { %9048 = vmatprep.mubr.msk.f32.mxu1 %vm10791_vm0, %v10792_v1  ;;  %v9771_v56 = vpack.c.bf16 %v10146_v41, %v10145_v45 }
0x1927   :  { %v4250_v29 = vpop.permute.xlu0 %4249 }
0x1929   :  { %9049 = vmatmul.mubr.msk.f32.gmra.mrb[126].mxu1 %vm854_vm4, %v3997_v6 }
0x192a   :  { %9051 = vmatprep.mubr.msk.f32.mxu1 %vm10791_vm0, %v10792_v1 }
0x192b   :  { %v4232_v23 = vpop.permute.xlu0 %4231 }
0x192c   :  { %9773 = vmatpush3.bf16.xpose.msk.msra.mxu1 %vm11220_vm9, %v9771_v56  ;;  %v10567_v56 = vld [vmem:[#allocation2 + $0x8] sm:$0xff] }
0x192d   :  { %9052 = vmatmul.mubr.msk.f32.gmra.mrb[128].mxu1 %vm854_vm4, %v3998_v53  ;;  %9079 = vmatprep.subr.mxu1 %v10792_v1  ;;  %v10147_v53 = vpack.i.bf16 %v10567_v56, %v10566_v27 }
0x192e   :  { %9081 = vmatprep.mubr.msk.f32.mxu1 %vm10791_vm0, %v10792_v1 }
0x192f   :  { %v4234_v60 = vpop.permute.xlu0 %4233 }
0x1933   :  { %v4236_v28 = vpop.permute.xlu0 %4235 }
0x1934   :  { %9080 = vmatpush3.xpose.msk.msra.mxu1 %vm738_vm8, %v4250_v29 }
0x1935   :  { %9121 = vmatprep.subr.mxu1 %v10792_v1 }
0x1937   :  { %9082 = vmatmul.mubr.msk.f32.vlgmr.msra.gmra.mrb[130].mxu1 %vm738_vm8, %v4232_v23  ;;  %v4240_v43 = vpop.permute.xlu0 %4239 }
0x1938   :  { %9084 = vmatprep.mubr.msk.f32.mxu1 %vm10791_vm0, %v10792_v1 }
0x193b   :  { %9085 = vmatmul.mubr.msk.f32.gmra.mrb[132].mxu1 %vm738_vm8, %v4234_v60 }
0x193c   :  { %9087 = vmatprep.mubr.msk.f32.mxu1 %vm10791_vm0, %v10792_v1 }
0x193f   :  { %9088 = vmatmul.mubr.msk.f32.gmra.mrb[134].mxu1 %vm738_vm8, %v4236_v28 }
0x1940   :  { %9090 = vmatprep.mubr.msk.f32.mxu1 %vm10791_vm0, %v10792_v1 }
0x1943   :  { %9091 = vmatmul.mubr.msk.f32.gmra.mrb[136].mxu1 %vm738_vm8, %v4238_v39 }
0x1944   :  { %9093 = vmatprep.mubr.msk.f32.mxu1 %vm10791_vm0, %v10792_v1 }
0x1947   :  { %9094 = vmatmul.mubr.msk.f32.gmra.mrb[138].mxu1 %vm738_vm8, %v4240_v43 }
0x1948   :  { %9123 = vmatprep.mubr.msk.f32.mxu1 %vm10791_vm0, %v10792_v1 }
0x19f0   :  { %v4096_v49 = vpop.f32.mrb[120].mxu1 }
0x19f1   :  { %v9041_v13 = vpop.f32.mrb[121].mxu1  ;;  %9057 = vmatmul.mubr.msk.f32.vlgmr.msra.gmra.mrb[120].mxu0 %vm738_vm8, %v4096_v49 }
0x19f2   :  { %9059 = vmatprep.mubr.msk.f32.mxu0 %vm10791_vm0, %v10792_v1 }
0x19f4   :  { %v4101_v50 = vpop.f32.mrb[122].mxu1 }
0x19f5   :  { %v9044_v4 = vpop.f32.mrb[123].mxu1  ;;  %9060 = vmatmul.mubr.msk.f32.gmra.mrb[122].mxu0 %vm738_vm8, %v4101_v50 }
0x19f6   :  { %9062 = vmatprep.mubr.msk.f32.mxu0 %vm10791_vm0, %v10792_v1 }
0x19f8   :  { %v4106_v3 = vpop.f32.mrb[124].mxu1 }
0x19f9   :  { %v9047_v54 = vpop.f32.mrb[125].mxu1  ;;  %9063 = vmatmul.mubr.msk.f32.gmra.mrb[124].mxu0 %vm738_vm8, %v4106_v3 }
0x19fa   :  { %9065 = vmatprep.mubr.msk.f32.mxu0 %vm10791_vm0, %v10792_v1 }
0x19fc   :  { %v4111_v15 = vpop.f32.mrb[126].mxu1 }
0x19fd   :  { %v9050_v38 = vpop.f32.mrb[127].mxu1  ;;  %9066 = vmatmul.mubr.msk.f32.gmra.mrb[126].mxu0 %vm738_vm8, %v4111_v15 }
0x19fe   :  { %9068 = vmatprep.mubr.msk.f32.mxu0 %vm10791_vm0, %v10792_v1 }
0x1a00   :  { %v4116_v9 = vpop.f32.mrb[128].mxu1 }
0x1a01   :  { %v9053_v62 = vpop.f32.mrb[129].mxu1  ;;  %9069 = vmatmul.mubr.msk.f32.gmra.mrb[128].mxu0 %vm738_vm8, %v4116_v9 }
0x1a02   :  { %9106 = vmatprep.mubr.msk.f32.mxu0 %vm10791_vm0, %v10792_v1 }
0x1a0a   :  { %v4337_v30 = vpop.f32.mrb[130].mxu1 }
0x1a0b   :  { %v4338_v57 = vadd.f32 %v4337_v30, %v11285_v5  ;;  %v9083_v58 = vpop.f32.mrb[131].mxu1 }
0x1a0d   :  { %v4361_v24 = vsel %vm854_vm4, %v4338_v57, -inf }
0x1a0e   :  { %4362 = vmax.xlane.f32.xlu0 %v4361_v24  ;;  %v4342_v8 = vpop.f32.mrb[132].mxu1 }
0x1a0f   :  { %v4343_v44 = vadd.f32 %v4342_v8, %v11285_v5  ;;  %v9086_v18 = vpop.f32.mrb[133].mxu1 }
0x1a11   :  { %v4364_v47 = vsel %vm854_vm4, %v4343_v44, -inf }
0x1a12   :  { %4365 = vmax.xlane.f32.xlu1 %v4364_v47  ;;  %v4347_v51 = vpop.f32.mrb[134].mxu1 }
0x1a13   :  { %v4348_v20 = vadd.f32 %v4347_v51, %v11296_v12  ;;  %v9089_v16 = vpop.f32.mrb[135].mxu1 }
0x1a15   :  { %v4367_v31 = vsel %vm854_vm4, %v4348_v20, -inf }
0x1a16   :  { %4368 = vmax.xlane.f32.xlu0 %v4367_v31  ;;  %v4352_v35 = vpop.f32.mrb[136].mxu1 }
0x1a17   :  { %v4353_v32 = vadd.f32 %v4352_v35, %v11306_v19  ;;  %v9092_v11 = vpop.f32.mrb[137].mxu1 }
0x1a19   :  { %v4370_v21 = vsel %vm854_vm4, %v4353_v32, -inf }
0x1a1a   :  { %4371 = vmax.xlane.f32.xlu0 %v4370_v21  ;;  %v4357_v40 = vpop.f32.mrb[138].mxu1 }
0x1a1b   :  { %v4358_v41 = vadd.f32 %v4357_v40, %v11312_v25  ;;  %v9095_v45 = vpop.f32.mrb[139].mxu1 }
0x1a1d   :  { %v4373_v6 = vsel %vm867_vm11, %v4358_v41, -inf }
0x1a1e   :  { %4374 = vmax.xlane.f32.xlu0 %v4373_v6 }
0x1a23   :  { %10148 = vrot.lane.b32.xlu1 %v10147_v53, %s10804_s6 }
0x1a9b   :  { %v4363_v29 = vpop.xlane.xlu0 %4362 }
0x1a9c   :  { %v4376_v23 = vsub.f32 %v4338_v57, %v4363_v29  ;;  %v10569_v29 = vld [vmem:[#allocation2 + $0x10] sm:$0xff] }
0x1a9e   :  { %v4381_v60 = vmul.f32 1.442695, %v4376_v23  ;;  %v10570_v23 = vld [vmem:[#allocation2 + $0x18] sm:$0xff] }
0x1a9f   :  { %v4366_v28 = vpop.xlane.xlu1 %4365 }
0x1aa0   :  { %10417 = vpow2.f32 %v4381_v60  ;;  %v4377_v39 = vsub.f32 %v4343_v44, %v4366_v28 }
0x1aa2   :  { %v4383_v43 = vmul.f32 1.442695, %v4377_v39 }
0x1aa3   :  { %v10149_v61 = vpop.permute.xlu1 %10148  ;;  %v4369_v49 = vpop.xlane.xlu0 %4368 }
0x1aa4   :  { %10419 = vpow2.f32 %v4383_v43  ;;  %v10151_v13 = vunpack.i.h.bf16 %v10149_v61  ;;  %v10150_v50 = vunpack.i.l.bf16 %v10149_v61  ;;  %v4378_v4 = vsub.f32 %v4348_v20, %v4369_v49  ;;  %v4537_v61 = vld [vmem:[%s13274_s7 + $0x18] sm:$0xff] }
0x1aa5   :  { %9122 = vmatpush3.msra.mxu1 %v4537_v61 }
0x1aa6   :  { %v9775_v3 = vpack.c.bf16 %v10151_v13, %v10150_v50  ;;  %v4385_v54 = vmul.f32 1.442695, %v4378_v4  ;;  %9786 = vmatprep.subr.bf16.mxu1 %v10790_v0 }
0x1aa7   :  { %v4372_v15 = vpop.xlane.xlu0 %4371 }
0x1aa8   :  { %10421 = vpow2.f32 %v4385_v54  ;;  %v4379_v38 = vsub.f32 %v4353_v32, %v4372_v15  ;;  %9776 = vmatpush3.bf16.msra.mxu0 %v9775_v3 }
0x1aa9   :  { %9777 = vmatprep.subr.bf16.mxu0 %v10790_v0 }
0x1aaa   :  { %v10418_v9 = vpop.eup %10417  ;;  %v4387_v62 = vmul.f32 1.442695, %v4379_v38 }
0x1aab   :  { %v4375_v30 = vpop.xlane.xlu0 %4374  ;;  %v4391_v57 = vsel %vm854_vm4, %v10418_v9, 0.0 }
0x1aac   :  { %10423 = vpow2.f32 %v4387_v62  ;;  %v4380_v58 = vsub.f32 %v4358_v41, %v4375_v30  ;;  %4392 = vadd.xlane.f32.xlu0 %v4391_v57  ;;  %v10568_v41 = vld [vmem:[#allocation2 + $0x20] sm:$0x3] }
0x1aae   :  { %v10420_v24 = vpop.eup %10419  ;;  %v4389_v8 = vmul.f32 1.442695, %v4380_v58 }
0x1aaf   :  { %v4394_v44 = vsel %vm854_vm4, %v10420_v24, 0.0 }
0x1ab0   :  { %10425 = vpow2.f32 %v4389_v8  ;;  %4395 = vadd.xlane.f32.xlu1 %v4394_v44 }
0x1ab2   :  { %v10422_v18 = vpop.eup %10421 }
0x1ab3   :  { %v4397_v47 = vsel %vm854_vm4, %v10422_v18, 0.0 }
0x1ab4   :  { %4398 = vadd.xlane.f32.xlu0 %v4397_v47 }
0x1ab6   :  { %v10424_v51 = vpop.eup %10423 }
0x1ab7   :  { %v4400_v20 = vsel %vm854_vm4, %v10424_v51, 0.0 }
0x1ab8   :  { %4401 = vadd.xlane.f32.xlu1 %v4400_v20 }
0x1aba   :  { %v12319_v16 = vpop.eup %10425 }
0x1abb   :  { %v4403_v31 = vsel %vm867_vm11, %v12319_v16, 0.0 }
0x1abc   :  { %4404 = vadd.xlane.f32.xlu0 %v4403_v31 }
0x1ac4   :  { %v4202_v35 = vpop.f32.mrb[120].mxu0 }
0x1ac5   :  { %v12324_v32 = vadd.f32 %v4202_v35, %v12185_v59  ;;  %v9058_v11 = vpop.f32.mrb[121].mxu0  ;;  %v10152_v59 = vpack.i.bf16 %v10570_v23, %v10569_v29  ;;  %v7873_v29 = vld [vmem:[%s13275_s10] ss:$0 sm:$0xff] }
0x1ac8   :  { %v4207_v21 = vpop.f32.mrb[122].mxu0 }
0x1ac9   :  { %v12327_v40 = vadd.f32 %v4207_v21, %v12187_v34  ;;  %4424 = vrot.lane.b32.xlu1 %v10568_v41, %s10804_s6  ;;  %v9061_v45 = vpop.f32.mrb[123].mxu0 }
0x1acc   :  { %v4212_v6 = vpop.f32.mrb[124].mxu0 }
0x1acd   :  { %v12331_v27 = vadd.f32 %v4212_v6, %v12189_v36  ;;  %v9064_v56 = vpop.f32.mrb[125].mxu0 }
0x1ad0   :  { %v4217_v53 = vpop.f32.mrb[126].mxu0 }
0x1ad1   :  { %v12334_v60 = vadd.f32 %v4217_v53, %v12191_v7  ;;  %v9067_v28 = vpop.f32.mrb[127].mxu0 }
0x1ad2   :  { %10153 = vrot.lane.b32.xlu0 %v10152_v59, %s10804_s6 }
0x1ad4   :  { %v4222_v34 = vpop.f32.mrb[128].mxu0 }
0x1ad5   :  { %v12338_v39 = vadd.f32 %v4222_v34, %v12193_v14  ;;  %v9070_v43 = vpop.f32.mrb[129].mxu0 }
0x1b39   :  { %v4393_v36 = vpop.xlane.xlu0 %4392 }
0x1b3a   :  { %10427 = vrcp.f32 %v4393_v36 }
0x1b3d   :  { %v4396_v13 = vpop.xlane.xlu1 %4395 }
0x1b3e   :  { %10429 = vrcp.f32 %v4396_v13 }
0x1b41   :  { %v4399_v49 = vpop.xlane.xlu0 %4398 }
0x1b42   :  { %10431 = vrcp.f32 %v4399_v49 }
0x1b44   :  { %v10428_v38 = vpop.eup %10427 }
0x1b45   :  { %v4402_v54 = vpop.xlane.xlu1 %4401  ;;  %v4411_v14 = vmul.f32 %v10428_v38, %v10418_v9 }
0x1b46   :  { %10433 = vrcp.f32 %v4402_v54 }
0x1b48   :  { %v10430_v30 = vpop.eup %10429 }
0x1b49   :  { %v4405_v50 = vpop.xlane.xlu0 %4404  ;;  %v4425_v62 = vpop.permute.xlu1 %4424  ;;  %v4412_v57 = vmul.f32 %v10430_v30, %v10420_v24 }
0x1b4a   :  { %10435 = vrcp.f32 %v4405_v50 }
0x1b4c   :  { %v10432_v58 = vpop.eup %10431 }
0x1b4d   :  { %v10154_v7 = vpop.permute.xlu0 %10153  ;;  %v4413_v9 = vmul.f32 %v10432_v58, %v10422_v18 }
0x1b4e   :  { %v10156_v4 = vunpack.i.h.bf16 %v10154_v7  ;;  %v10155_v3 = vunpack.i.l.bf16 %v10154_v7 }
0x1b50   :  { %v9778_v15 = vpack.c.bf16 %v10156_v4, %v10155_v3  ;;  %v10434_v8 = vpop.eup %10433 }
0x1b51   :  { %v4414_v44 = vmul.f32 %v10434_v8, %v10424_v51 }
0x1b52   :  { %9779 = vmatpush3.bf16.msra.mxu0 %v9778_v15 }
0x1b53   :  { %9104 = vmatprep.subr.mxu0 %v10792_v1 }
0x1b54   :  { %v10436_v47 = vpop.eup %10435 }
0x1b55   :  { %v4415_v24 = vmul.f32 %v10436_v47, %v12319_v16 }
0x1b56   :  { %9105 = vmatpush3.msk.msra.mxu0 %vm940_vm14, %v4425_v62 }
0x1b57   :  { %9107 = vmatmul.mubr.msk.f32.vlgmr.msra.gmra.mrb[130].mxu0 %vm854_vm4, %v4411_v14  ;;  %9780 = vmatprep.subr.bf16.mxu0 %v10790_v0 }
0x1b58   :  { %9109 = vmatprep.mubr.msk.f32.mxu0 %vm10791_vm0, %v10792_v1 }
0x1b5b   :  { %9110 = vmatmul.mubr.msk.f32.gmra.mrb[132].mxu0 %vm854_vm4, %v4412_v57 }
0x1b5c   :  { %9112 = vmatprep.mubr.msk.f32.mxu0 %vm10791_vm0, %v10792_v1 }
0x1b5f   :  { %9113 = vmatmul.mubr.msk.f32.gmra.mrb[134].mxu0 %vm854_vm4, %v4413_v9 }
0x1b60   :  { %9115 = vmatprep.mubr.msk.f32.mxu0 %vm10791_vm0, %v10792_v1 }
0x1b63   :  { %9116 = vmatmul.mubr.msk.f32.gmra.mrb[136].mxu0 %vm854_vm4, %v4414_v44 }
0x1b64   :  { %9118 = vmatprep.mubr.msk.f32.mxu0 %vm10791_vm0, %v10792_v1 }
0x1b67   :  { %9119 = vmatmul.mubr.msk.f32.gmra.mrb[138].mxu0 %vm854_vm4, %v4415_v24 }
0x1b68   :  { %9146 = vmatprep.mubr.msk.f32.mxu0 %vm10791_vm0, %v10792_v1 }
0x1c2a   :  { %v4513_v18 = vpop.f32.mrb[130].mxu0 }
0x1c2b   :  { %v9108_v20 = vpop.f32.mrb[131].mxu0  ;;  %9124 = vmatmul.mubr.msk.f32.vlgmr.msra.gmra.mrb[140].mxu1 %vm738_vm8, %v4513_v18 }
0x1c2c   :  { %9126 = vmatprep.mubr.msk.f32.mxu1 %vm10791_vm0, %v10792_v1 }
0x1c2e   :  { %v4518_v51 = vpop.f32.mrb[132].mxu0 }
0x1c2f   :  { %v9111_v31 = vpop.f32.mrb[133].mxu0  ;;  %9127 = vmatmul.mubr.msk.f32.gmra.mrb[142].mxu1 %vm738_vm8, %v4518_v51 }
0x1c30   :  { %9129 = vmatprep.mubr.msk.f32.mxu1 %vm10791_vm0, %v10792_v1 }
0x1c32   :  { %v4523_v16 = vpop.f32.mrb[134].mxu0 }
0x1c33   :  { %v9114_v35 = vpop.f32.mrb[135].mxu0  ;;  %9130 = vmatmul.mubr.msk.f32.gmra.mrb[144].mxu1 %vm738_vm8, %v4523_v16 }
0x1c34   :  { %9132 = vmatprep.mubr.msk.f32.mxu1 %vm10791_vm0, %v10792_v1 }
0x1c36   :  { %v4528_v11 = vpop.f32.mrb[136].mxu0 }
0x1c37   :  { %v9117_v21 = vpop.f32.mrb[137].mxu0  ;;  %9133 = vmatmul.mubr.msk.f32.gmra.mrb[146].mxu1 %vm738_vm8, %v4528_v11 }
0x1c38   :  { %9135 = vmatprep.mubr.msk.f32.mxu1 %vm10791_vm0, %v10792_v1 }
0x1c3a   :  { %v4533_v41 = vpop.f32.mrb[138].mxu0 }
0x1c3b   :  { %v9120_v45 = vpop.f32.mrb[139].mxu0  ;;  %9136 = vmatmul.mubr.msk.f32.gmra.mrb[148].mxu1 %vm738_vm8, %v4533_v41 }
0x1c3c   :  { %9193 = vmatprep.mubr.msk.f32.mxu1 %vm10791_vm0, %v10792_v1 }
0x1cfe   :  { %v4619_v6 = vpop.f32.mrb[140].mxu1 }
0x1cff   :  { %v4643_v56 = vadd.f32 %v4619_v6, %v12324_v32  ;;  %v9125_v53 = vpop.f32.mrb[141].mxu1 }
0x1d01   :  { %v4648_v23 = vadd.f32 %v4643_v56, %v11816_v55 }
0x1d02   :  { %v4624_v59 = vpop.f32.mrb[142].mxu1 }
0x1d03   :  { %v12379_v28 = vadd.f32 %v7873_v29, %v4648_v23  ;;  %v4644_v34 = vadd.f32 %v4624_v59, %v12327_v40  ;;  %v9128_v43 = vpop.f32.mrb[143].mxu1 }
0x1d05   :  { %v4649_v61 = vadd.f32 %v4644_v34, %v11821_v22  ;;  %v4667_v36 = vsel %vm500_vm3, %v12379_v28, 0.0 }
0x1d06   :  { %4668 = vadd.xlane.f32.xlu1 %v4667_v36  ;;  %v4629_v49 = vpop.f32.mrb[144].mxu1 }
0x1d07   :  { %v12385_v13 = vadd.f32 %v7873_v29, %v4649_v61  ;;  %v4645_v32 = vadd.f32 %v4629_v49, %v12331_v27  ;;  %v9131_v50 = vpop.f32.mrb[145].mxu1 }
0x1d08   :  { %v4755_v50 = vld [vmem:[%s13276_s11 + $0x8] sm:$0xff] }
0x1d09   :  { %v4650_v7 = vadd.f32 %v4645_v32, %v11826_v10  ;;  %v4670_v4 = vsel %vm500_vm3, %v12385_v13, 0.0  ;;  %v4754_v32 = vld [vmem:[%s13276_s11] sm:$0xff] }
0x1d0a   :  { %4671 = vadd.xlane.f32.xlu0 %v4670_v4  ;;  %v4634_v40 = vpop.f32.mrb[146].mxu1  ;;  %v4756_v4 = vld [vmem:[%s13276_s11 + $0x10] sm:$0xff] }
0x1d0b   :  { %v12391_v3 = vadd.f32 %v7873_v29, %v4650_v7  ;;  %v4646_v54 = vadd.f32 %v4634_v40, %v12334_v60  ;;  %v9134_v15 = vpop.f32.mrb[147].mxu1  ;;  %v9781_v7 = vpack.c.bf16 %v4755_v50, %v4754_v32  ;;  %v4757_v40 = vld [vmem:[%s13276_s11 + $0x18] sm:$0xff]  ;;  %v5059_v32 = vld [vmem:[%s13279_s4 + $0x10] sm:$0xff] }
0x1d0c   :  { %v4915_v15 = vld [vmem:[%s13277_s15] sm:$0xff]  ;;  %v5060_v50 = vld [vmem:[%s13279_s4 + $0x18] sm:$0xff] }
0x1d0d   :  { %v4651_v38 = vadd.f32 %v4646_v54, %v11831_v48  ;;  %v4673_v14 = vsel %vm500_vm3, %v12391_v3, 0.0  ;;  %9782 = vmatpush3.bf16.msra.mxu0 %v9781_v7  ;;  %v9784_v54 = vpack.c.bf16 %v4757_v40, %v4756_v4  ;;  %v9814_v4 = vpack.c.bf16 %v5060_v50, %v5059_v32  ;;  %v4928_v32 = vld [vmem:[%s13277_s15 + $0x68] sm:$0xff] }
0x1d0e   :  { %4674 = vadd.xlane.f32.xlu0 %v4673_v14  ;;  %v4639_v27 = vpop.f32.mrb[148].mxu1  ;;  %9783 = vmatprep.subr.bf16.mxu0 %v10790_v0 }
0x1d0f   :  { %v12397_v62 = vadd.f32 %v7873_v29, %v4651_v38  ;;  %v4647_v30 = vadd.f32 %v4639_v27, %v12338_v39  ;;  %v9137_v57 = vpop.f32.mrb[149].mxu1  ;;  %v4916_v38 = vld [vmem:[%s13277_s15 + $0x8] sm:$0xff] }
0x1d10   :  { %v9787_v14 = vpack.c.bf16 %v4916_v38, %v4915_v15 }
0x1d11   :  { %v4652_v58 = vadd.f32 %v4647_v30, %v11836_v52  ;;  %v4676_v9 = vsel %vm500_vm3, %v12397_v62, 0.0  ;;  %9785 = vmatpush3.bf16.msra.mxu0 %v9784_v54 }
0x1d12   :  { %4677 = vadd.xlane.f32.xlu1 %v4676_v9  ;;  %9810 = vmatprep.subr.bf16.mxu0 %v10790_v0 }
0x1d13   :  { %v12403_v60 = vadd.f32 %v7873_v29, %v4652_v58  ;;  %9788 = vmatpush3.bf16.msra.mxu1 %v9787_v14 }
0x1d14   :  { %9789 = vmatprep.subr.bf16.mxu1 %v10790_v0 }
0x1d15   :  { %v4679_v8 = vsel %vm513_vm5, %v12403_v60, 0.0 }
0x1d16   :  { %4680 = vadd.xlane.f32.xlu0 %v4679_v8 }
0x1d93   :  { %v4669_v44 = vpop.xlane.xlu1 %4668 }
0x1d94   :  { %v4682_v47 = vmul.f32 0.03125, %v4669_v44 }
0x1d96   :  { %v4687_v24 = vsub.f32 %v12379_v28, %v4682_v47 }
0x1d97   :  { %v4672_v18 = vpop.xlane.xlu0 %4671 }
0x1d98   :  { %v4683_v20 = vmul.f32 0.03125, %v4672_v18  ;;  %v4692_v39 = vmul.f32 %v4687_v24, %v4687_v24 }
0x1d9a   :  { %v12409_v51 = vsub.f32 %v12385_v13, %v4683_v20  ;;  %v4697_v31 = vsel %vm500_vm3, %v4692_v39, 0.0 }
0x1d9b   :  { %v4675_v16 = vpop.xlane.xlu0 %4674  ;;  %4698 = vadd.xlane.f32.xlu1 %v4697_v31 }
0x1d9c   :  { %v4684_v35 = vmul.f32 0.03125, %v4675_v16  ;;  %v4693_v11 = vmul.f32 %v12409_v51, %v12409_v51  ;;  %v7874_v16 = vld [vmem:[%s13278_s12] ss:$0 sm:$0xff] }
0x1d9e   :  { %v12415_v21 = vsub.f32 %v12391_v3, %v4684_v35  ;;  %v4700_v41 = vsel %vm500_vm3, %v4693_v11, 0.0 }
0x1d9f   :  { %v4678_v45 = vpop.xlane.xlu1 %4677  ;;  %4701 = vadd.xlane.f32.xlu0 %v4700_v41 }
0x1da0   :  { %v4685_v6 = vmul.f32 0.03125, %v4678_v45  ;;  %v4694_v56 = vmul.f32 %v12415_v21, %v12415_v21  ;;  %v5057_v45 = vld [vmem:[%s13279_s4] sm:$0xff] }
0x1da2   :  { %v12421_v53 = vsub.f32 %v12397_v62, %v4685_v6  ;;  %v4703_v29 = vsel %vm500_vm3, %v4694_v56, 0.0  ;;  %v5058_v6 = vld [vmem:[%s13279_s4 + $0x8] sm:$0xff]  ;;  %v7875_v56 = vld [vmem:[%s13280_s16] ss:$0 sm:$0xff] }
0x1da3   :  { %4704 = vadd.xlane.f32.xlu1 %v4703_v29  ;;  %v4681_v23 = vpop.xlane.xlu0 %4680 }
0x1da4   :  { %v4686_v59 = vmul.f32 0.03125, %v4681_v23  ;;  %v4695_v34 = vmul.f32 %v12421_v53, %v12421_v53 }
0x1da6   :  { %v12427_v43 = vsub.f32 %v12403_v60, %v4686_v59  ;;  %v4706_v61 = vsel %vm500_vm3, %v4695_v34, 0.0 }
0x1da7   :  { %4707 = vadd.xlane.f32.xlu0 %v4706_v61  ;;  %v9811_v61 = vpack.c.bf16 %v5058_v6, %v5057_v45  ;;  %v4921_v45 = vld [vmem:[%s13277_s15 + $0x30] sm:$0xff]  ;;  %v4922_v6 = vld [vmem:[%s13277_s15 + $0x38] sm:$0xff] }
0x1da8   :  { %v4696_v36 = vmul.f32 %v12427_v43, %v12427_v43 }
0x1daa   :  { %v4709_v49 = vsel %vm513_vm5, %v4696_v36, 0.0 }
0x1dab   :  { %4710 = vadd.xlane.f32.xlu1 %v4709_v49 }
0x1e28   :  { %v4699_v27 = vpop.xlane.xlu1 %4698 }
0x1e29   :  { %v4712_v30 = vmul.f32 0.03125, %v4699_v27 }
0x1e2b   :  { %v4717_v57 = vadd.f32 1e-06, %v4712_v30 }
0x1e2c   :  { %v4702_v58 = vpop.xlane.xlu0 %4701 }
0x1e2d   :  { %10437 = vrsqrt.f32 %v4717_v57  ;;  %v4713_v9 = vmul.f32 0.03125, %v4702_v58  ;;  %v7883_v58 = vld [vmem:[%s13281_s18] ss:$0 sm:$0xff] }
0x1e2f   :  { %v4718_v8 = vadd.f32 1e-06, %v4713_v9 }
0x1e30   :  { %v4705_v44 = vpop.xlane.xlu1 %4704 }
0x1e31   :  { %10439 = vrsqrt.f32 %v4718_v8  ;;  %v4714_v47 = vmul.f32 0.03125, %v4705_v44  ;;  %v7884_v44 = vld [vmem:[%s13282_s14] ss:$0 sm:$0xff] }
0x1e33   :  { %v4719_v18 = vadd.f32 1e-06, %v4714_v47 }
0x1e34   :  { %v4708_v20 = vpop.xlane.xlu0 %4707 }
0x1e35   :  { %10441 = vrsqrt.f32 %v4719_v18  ;;  %v4715_v39 = vmul.f32 0.03125, %v4708_v20  ;;  %v5042_v18 = vmul.f32 %v7883_v58, %v11861_v26 }
0x1e37   :  { %v10438_v31 = vpop.eup %10437  ;;  %v4720_v35 = vadd.f32 1e-06, %v4715_v39  ;;  %v5044_v39 = vmul.f32 %v7883_v58, %v11873_v46  ;;  %v4917_v46 = vld [vmem:[%s13277_s15 + $0x10] sm:$0xff] }
0x1e38   :  { %v4727_v11 = vmul.f32 %v10438_v31, %v4687_v24  ;;  %v4711_v41 = vpop.xlane.xlu1 %4710  ;;  %v5045_v31 = vmul.f32 %v7883_v58, %v11882_v37  ;;  %v4919_v37 = vld [vmem:[%s13277_s15 + $0x20] sm:$0xff] }
0x1e39   :  { %10443 = vrsqrt.f32 %v4720_v35  ;;  %v4716_v29 = vmul.f32 0.03125, %v4711_v41  ;;  %v5055_v26 = vadd.f32 %v7884_v44, %v5044_v39 }
0x1e3a   :  { %v4738_v23 = vmul.f32 %v7874_v16, %v4727_v11  ;;  %v4920_v11 = vld [vmem:[%s13277_s15 + $0x28] sm:$0xff] }
0x1e3b   :  { %v10440_v59 = vpop.eup %10439  ;;  %v4721_v34 = vadd.f32 1e-06, %v4716_v29  ;;  %v9793_v41 = vpack.c.bf16 %v4920_v11, %v4919_v37  ;;  %v4923_v29 = vld [vmem:[%s13277_s15 + $0x40] sm:$0xff] }
0x1e3c   :  { %v4749_v36 = vadd.f32 %v7875_v56, %v4738_v23  ;;  %v4728_v49 = vmul.f32 %v10440_v59, %v12409_v51  ;;  %v4924_v23 = vld [vmem:[%s13277_s15 + $0x48] sm:$0xff] }
0x1e3d   :  { %10445 = vrsqrt.f32 %v4721_v34  ;;  %v9799_v59 = vpack.c.bf16 %v4924_v23, %v4923_v29  ;;  %v4925_v34 = vld [vmem:[%s13277_s15 + $0x50] sm:$0xff] }
0x1e3e   :  { %9147 = vmatmul.mubr.msk.f32.vlgmr.msra.gmra.mrb[140].mxu0 %vm500_vm3, %v4749_v36  ;;  %v4739_v7 = vmul.f32 %v7874_v16, %v4728_v49  ;;  %v4927_v49 = vld [vmem:[%s13277_s15 + $0x60] sm:$0xff] }
0x1e3f   :  { %v10442_v24 = vpop.eup %10441  ;;  %9149 = vmatprep.mubr.msk.f32.mxu0 %vm10791_vm0, %v10792_v1  ;;  %9812 = vmatpush3.bf16.msra.mxu0 %v9811_v61  ;;  %v4926_v61 = vld [vmem:[%s13277_s15 + $0x58] sm:$0xff]  ;;  %v9805_v50 = vpack.c.bf16 %v4928_v32, %v4927_v49 }
0x1e40   :  { %v4750_v40 = vadd.f32 %v7875_v56, %v4739_v7  ;;  %v4729_v54 = vmul.f32 %v10442_v24, %v12415_v21  ;;  %9813 = vmatprep.subr.bf16.mxu0 %v10790_v0  ;;  %v9802_v36 = vpack.c.bf16 %v4926_v61, %v4925_v34  ;;  %v4929_v7 = vld [vmem:[%s13277_s15 + $0x70] sm:$0xff]  ;;  %v4930_v24 = vld [vmem:[%s13277_s15 + $0x78] sm:$0xff] }
0x1e42   :  { %9150 = vmatmul.mubr.msk.f32.gmra.mrb[142].mxu0 %vm500_vm3, %v4750_v40  ;;  %v4740_v51 = vmul.f32 %v7874_v16, %v4729_v54  ;;  %v7876_v40 = vld [vmem:[%s13283_s22] ss:$0 sm:$0xff] }
0x1e43   :  { %v10444_v15 = vpop.eup %10443  ;;  %9152 = vmatprep.mubr.msk.f32.mxu0 %vm10791_vm0, %v10792_v1  ;;  %9815 = vmatpush3.bf16.msra.mxu0 %v9814_v4  ;;  %v9808_v4 = vpack.c.bf16 %v4930_v24, %v4929_v7 }
0x1e44   :  { %v4751_v38 = vadd.f32 %v7875_v56, %v4740_v51  ;;  %v4730_v14 = vmul.f32 %v10444_v15, %v12421_v53  ;;  %9824 = vmatprep.subr.bf16.mxu0 %v10790_v0  ;;  %v5041_v53 = vmul.f32 %v7883_v58, %v11857_v33  ;;  %v5043_v33 = vmul.f32 %v7883_v58, %v11867_v63 }
0x1e45   :  { %v5056_v63 = vadd.f32 %v7884_v44, %v5045_v31 }
0x1e46   :  { %9153 = vmatmul.mubr.msk.f32.gmra.mrb[144].mxu0 %vm500_vm3, %v4751_v38  ;;  %v4741_v21 = vmul.f32 %v7874_v16, %v4730_v14  ;;  %v5052_v47 = vadd.f32 %v7884_v44, %v5041_v53  ;;  %v5054_v20 = vadd.f32 %v7884_v44, %v5043_v33 }
0x1e47   :  { %v10446_v27 = vpop.eup %10445  ;;  %9155 = vmatprep.mubr.msk.f32.mxu0 %vm10791_vm0, %v10792_v1 }
0x1e48   :  { %v4752_v30 = vadd.f32 %v7875_v56, %v4741_v21  ;;  %v4731_v57 = vmul.f32 %v10446_v27, %v12427_v43  ;;  %v5053_v43 = vadd.f32 %v7884_v44, %v5042_v18 }
0x1e4a   :  { %9156 = vmatmul.mubr.msk.f32.gmra.mrb[146].mxu0 %vm500_vm3, %v4752_v30  ;;  %v4742_v9 = vmul.f32 %v7874_v16, %v4731_v57  ;;  %v4918_v16 = vld [vmem:[%s13277_s15 + $0x18] sm:$0xff] }
0x1e4b   :  { %9158 = vmatprep.mubr.msk.f32.mxu0 %vm10791_vm0, %v10792_v1  ;;  %v9790_v35 = vpack.c.bf16 %v4918_v16, %v4917_v46 }
0x1e4c   :  { %v4753_v8 = vadd.f32 %v7875_v56, %v4742_v9  ;;  %v9796_v56 = vpack.c.bf16 %v4922_v6, %v4921_v45 }
0x1e4d   :  { %9791 = vmatpush3.bf16.msra.mxu1 %v9790_v35 }
0x1e4e   :  { %9159 = vmatmul.mubr.msk.f32.gmra.mrb[148].mxu0 %vm500_vm3, %v4753_v8  ;;  %9792 = vmatprep.subr.bf16.mxu1 %v10790_v0 }
0x1e4f   :  { %9216 = vmatprep.mubr.msk.f32.mxu0 %vm10791_vm0, %v10792_v1 }
0x1e51   :  { %9794 = vmatpush3.bf16.msra.mxu1 %v9793_v41 }
0x1e52   :  { %9217 = vmatmul.mubr.msk.f32.vlgmr.msra.gmra.mrb[150].mxu0 %vm500_vm3, %v5052_v47  ;;  %9795 = vmatprep.subr.bf16.mxu1 %v10790_v0 }
0x1e53   :  { %9219 = vmatprep.mubr.msk.f32.mxu0 %vm10791_vm0, %v10792_v1 }
0x1e55   :  { %9797 = vmatpush3.bf16.msra.mxu1 %v9796_v56  ;;  %v7885_v56 = vld [vmem:[%s13284_s23] ss:$0 sm:$0xff] }
0x1e56   :  { %9220 = vmatmul.mubr.msk.f32.gmra.mrb[152].mxu0 %vm500_vm3, %v5053_v43  ;;  %9798 = vmatprep.subr.bf16.mxu1 %v10790_v0 }
0x1e57   :  { %9222 = vmatprep.mubr.msk.f32.mxu0 %vm10791_vm0, %v10792_v1 }
0x1e59   :  { %9800 = vmatpush3.bf16.msra.mxu1 %v9799_v59 }
0x1e5a   :  { %9223 = vmatmul.mubr.msk.f32.gmra.mrb[154].mxu0 %vm500_vm3, %v5054_v20  ;;  %9801 = vmatprep.subr.bf16.mxu1 %v10790_v0 }
0x1e5b   :  { %9225 = vmatprep.mubr.msk.f32.mxu0 %vm10791_vm0, %v10792_v1 }
0x1e5d   :  { %9803 = vmatpush3.bf16.msra.mxu1 %v9802_v36 }
0x1e5e   :  { %9226 = vmatmul.mubr.msk.f32.gmra.mrb[156].mxu0 %vm500_vm3, %v5055_v26  ;;  %9804 = vmatprep.subr.bf16.mxu1 %v10790_v0 }
0x1e5f   :  { %9228 = vmatprep.mubr.msk.f32.mxu0 %vm10791_vm0, %v10792_v1 }
0x1e61   :  { %9806 = vmatpush3.bf16.msra.mxu1 %v9805_v50 }
0x1e62   :  { %9229 = vmatmul.mubr.msk.f32.gmra.mrb[158].mxu0 %vm500_vm3, %v5056_v63  ;;  %9807 = vmatprep.subr.bf16.mxu1 %v10790_v0 }
0x1e63   :  { %9266 = vmatprep.mubr.msk.f32.mxu0 %vm10791_vm0, %v10792_v1 }
0x1e65   :  { %9809 = vmatpush3.bf16.msra.mxu1 %v9808_v4 }
0x1e66   :  { %9816 = vmatprep.subr.bf16.mxu1 %v10790_v0 }
0x1f11   :  { %v4846_v54 = vpop.f32.mrb[140].mxu0 }
0x1f12   :  { %v4847_v51 = vadd.f32 %v7876_v40, %v4846_v54  ;;  %v9148_v15 = vpop.f32.mrb[141].mxu0 }
0x1f14   :  { %v4875_v38 = vmul.f32 0.044715, %v4847_v51  ;;  %v4870_v4 = vmul.f32 0.5, %v4847_v51 }
0x1f15   :  { %v4851_v14 = vpop.f32.mrb[142].mxu0 }
0x1f16   :  { %v4880_v21 = vmul.f32 %v4875_v38, %v4847_v51  ;;  %v4852_v27 = vadd.f32 %v7876_v40, %v4851_v14  ;;  %v9151_v30 = vpop.f32.mrb[143].mxu0 }
0x1f18   :  { %v4885_v57 = vmul.f32 %v4880_v21, %v4847_v51  ;;  %v4876_v58 = vmul.f32 0.044715, %v4852_v27 }
0x1f19   :  { %v4856_v9 = vpop.f32.mrb[144].mxu0 }
0x1f1a   :  { %v4890_v53 = vadd.f32 %v4885_v57, %v4847_v51  ;;  %v4881_v8 = vmul.f32 %v4876_v58, %v4852_v27  ;;  %v4857_v44 = vadd.f32 %v7876_v40, %v4856_v9  ;;  %v9154_v47 = vpop.f32.mrb[145].mxu0  ;;  %v4871_v9 = vmul.f32 0.5, %v4852_v27 }
0x1f1c   :  { %v4895_v18 = vmul.f32 0.7978846, %v4890_v53  ;;  %v4877_v43 = vmul.f32 0.044715, %v4857_v44  ;;  %v4886_v33 = vmul.f32 %v4881_v8, %v4852_v27 }
0x1f1d   :  { %v4861_v20 = vpop.f32.mrb[146].mxu0 }
0x1f1e   :  { %10447 = vtanh.f32 %v4895_v18  ;;  %v4882_v39 = vmul.f32 %v4877_v43, %v4857_v44  ;;  %v4862_v26 = vadd.f32 %v7876_v40, %v4861_v20  ;;  %v9157_v31 = vpop.f32.mrb[147].mxu0  ;;  %v4891_v63 = vadd.f32 %v4886_v33, %v4852_v27 }
0x1f1f   :  { %v4872_v33 = vmul.f32 0.5, %v4857_v44 }
0x1f20   :  { %v4878_v46 = vmul.f32 0.044715, %v4862_v26  ;;  %v4896_v16 = vmul.f32 0.7978846, %v4891_v63  ;;  %v4887_v35 = vmul.f32 %v4882_v39, %v4857_v44 }
0x1f21   :  { %v4866_v37 = vpop.f32.mrb[148].mxu0 }
0x1f22   :  { %v4883_v11 = vmul.f32 %v4878_v46, %v4862_v26  ;;  %v12513_v41 = vadd.f32 %v7876_v40, %v4866_v37  ;;  %v9160_v45 = vpop.f32.mrb[149].mxu0  ;;  %10449 = vtanh.f32 %v4896_v16  ;;  %v4892_v6 = vadd.f32 %v4887_v35, %v4857_v44 }
0x1f23   :  { %v4873_v37 = vmul.f32 0.5, %v4862_v26 }
0x1f24   :  { %v4879_v29 = vmul.f32 0.044715, %v12513_v41  ;;  %v4897_v23 = vmul.f32 0.7978846, %v4892_v6  ;;  %v4888_v59 = vmul.f32 %v4883_v11, %v4862_v26 }
0x1f25   :  { %v5149_v34 = vpop.f32.mrb[150].mxu0 }
0x1f26   :  { %v4884_v61 = vmul.f32 %v4879_v29, %v12513_v41  ;;  %v5150_v36 = vadd.f32 %v7885_v56, %v5149_v34  ;;  %v9218_v49 = vpop.f32.mrb[151].mxu0  ;;  %10451 = vtanh.f32 %v4897_v23  ;;  %v4893_v32 = vadd.f32 %v4888_v59, %v4862_v26 }
0x1f27   :  { %v4874_v59 = vmul.f32 0.5, %v12513_v41 }
0x1f28   :  { %v10448_v50 = vpop.eup %10447  ;;  %5173 = vst.msk [vmem:[#allocation2] sm:$0xff] %vm706_vm6, %v5150_v36  ;;  %v4898_v7 = vmul.f32 0.7978846, %v4893_v32  ;;  %v4889_v24 = vmul.f32 %v4884_v61, %v12513_v41 }
0x1f29   :  { %v5154_v40 = vpop.f32.mrb[152].mxu0  ;;  %v4905_v54 = vadd.f32 1.0, %v10448_v50 }
0x1f2a   :  { %v5155_v15 = vadd.f32 %v7885_v56, %v5154_v40  ;;  %v9221_v38 = vpop.f32.mrb[153].mxu0  ;;  %10453 = vtanh.f32 %v4898_v7  ;;  %v4894_v14 = vadd.f32 %v4889_v24, %v12513_v41 }
0x1f2b   :  { %v4910_v21 = vmul.f32 %v4905_v54, %v4870_v4 }
0x1f2c   :  { %v10450_v30 = vpop.eup %10449  ;;  %5174 = vst.msk [vmem:[#allocation2 + $0x8] sm:$0xff] %vm706_vm6, %v5155_v15  ;;  %v4899_v57 = vmul.f32 0.7978846, %v4894_v14 }
0x1f2d   :  { %9194 = vmatmul.mubr.f32.vlgmr.msra.gmra.mrb[150].mxu1 %v4910_v21  ;;  %v5159_v58 = vpop.f32.mrb[154].mxu0  ;;  %v4906_v53 = vadd.f32 1.0, %v10450_v30 }
0x1f2e   :  { %v5160_v8 = vadd.f32 %v7885_v56, %v5159_v58  ;;  %v9224_v47 = vpop.f32.mrb[155].mxu0  ;;  %9196 = vmatprep.mubr.msk.f32.mxu1 %vm10791_vm0, %v10792_v1  ;;  %10455 = vtanh.f32 %v4899_v57 }
0x1f2f   :  { %v4911_v51 = vmul.f32 %v4906_v53, %v4871_v9  ;;  %v5178_v63 = vld [vmem:[#allocation2] sm:$0xff] }
0x1f30   :  { %v10452_v18 = vpop.eup %10451  ;;  %5175 = vst.msk [vmem:[#allocation2 + $0x10] sm:$0xff] %vm706_vm6, %v5160_v8  ;;  %v12562_v50 = vmul.f32 0.35355338, %v5178_v63 }
0x1f31   :  { %9197 = vmatmul.mubr.f32.gmra.mrb[152].mxu1 %v4911_v51  ;;  %v5164_v43 = vpop.f32.mrb[156].mxu0  ;;  %v4907_v20 = vadd.f32 1.0, %v10452_v18 }
0x1f32   :  { %v5165_v39 = vadd.f32 %v7885_v56, %v5164_v43  ;;  %v9227_v31 = vpop.f32.mrb[157].mxu0  ;;  %9199 = vmatprep.mubr.msk.f32.mxu1 %vm10791_vm0, %v10792_v1 }
0x1f33   :  { %v4912_v27 = vmul.f32 %v4907_v20, %v4872_v33  ;;  %v5179_v46 = vld [vmem:[#allocation2 + $0x8] sm:$0xff] }
0x1f34   :  { %v10454_v16 = vpop.eup %10453  ;;  %5176 = vst.msk [vmem:[#allocation2 + $0x18] sm:$0xff] %vm706_vm6, %v5165_v39  ;;  %v12528_v35 = vpack.i.bf16 %v5179_v46, %v5178_v63  ;;  %v12552_v49 = vmul.f32 0.35355338, %v5179_v46 }
0x1f35   :  { %9200 = vmatmul.mubr.f32.gmra.mrb[154].mxu1 %v4912_v27  ;;  %v5169_v11 = vpop.f32.mrb[158].mxu0  ;;  %v4908_v45 = vadd.f32 1.0, %v10454_v16 }
0x1f36   :  { %v5170_v6 = vadd.f32 %v7885_v56, %v5169_v11  ;;  %10158 = vrot.lane.b32.xlu0 %v12528_v35, %s10793_s5  ;;  %v9230_v44 = vpop.f32.mrb[159].mxu0  ;;  %9202 = vmatprep.mubr.msk.f32.mxu1 %vm10791_vm0, %v10792_v1 }
0x1f37   :  { %v4913_v29 = vmul.f32 %v4908_v45, %v4873_v37  ;;  %v5180_v56 = vld [vmem:[#allocation2 + $0x10] sm:$0xff] }
0x1f38   :  { %v10456_v23 = vpop.eup %10455  ;;  %5177 = vst.msk [vmem:[#allocation2 + $0x20] sm:$0x3] %vm13285_vm1, %v5170_v6  ;;  %v12566_v7 = vmul.f32 0.35355338, %v5180_v56 }
0x1f39   :  { %9203 = vmatmul.mubr.f32.gmra.mrb[156].mxu1 %v4913_v29  ;;  %v4909_v34 = vadd.f32 1.0, %v10456_v23 }
0x1f3a   :  { %10168 = vrot.lane.b32.xlu0 %v12528_v35, %s10794_s9  ;;  %9205 = vmatprep.mubr.msk.f32.mxu1 %vm10791_vm0, %v10792_v1 }
0x1f3b   :  { %v4914_v26 = vmul.f32 %v4909_v34, %v4874_v59  ;;  %v5181_v61 = vld [vmem:[#allocation2 + $0x18] sm:$0xff] }
0x1f3c   :  { %v12540_v36 = vpack.i.bf16 %v5181_v61, %v5180_v56  ;;  %v12558_v32 = vmul.f32 0.35355338, %v5181_v61 }
0x1f3d   :  { %9206 = vmatmul.mubr.f32.gmra.mrb[158].mxu1 %v4914_v26 }
0x1f3e   :  { %10163 = vrot.lane.b32.xlu1 %v12540_v36, %s10793_s5  ;;  %9241 = vmatprep.mubr.msk.f32.mxu1 %vm10791_vm0, %v10792_v1 }
0x1f3f   :  { %v12546_v41 = vld [vmem:[#allocation2 + $0x20] sm:$0x3] }
0x1f40   :  { %5513 = vrot.lane.b32.xlu0 %v12546_v41, %s10794_s9  ;;  %v12571_v24 = vmul.f32 0.35355338, %v12546_v41 }
0x1f42   :  { %5201 = vrot.lane.b32.xlu1 %v12546_v41, %s10793_s5  ;;  %s13286_s5 = sld [smem:[#allocation38_spill]] }
0x1f44   :  { %5497 = vrot.lane.b32.xlu0 %v12552_v49, %s10795_s13 }
0x1f46   :  { %10173 = vrot.lane.b32.xlu1 %v12540_v36, %s10794_s9  ;;  %s13287_s9 = sld [smem:[#allocation43_spill]] }
0x1f48   :  { %5501 = vrot.lane.b32.xlu0 %v12558_v32, %s10795_s13  ;;  %v7882_v46 = vld [vmem:[%s13286_s5] ss:$0 sm:$0xff] }
0x1f4a   :  { %5495 = vrot.lane.b32.xlu1 %v12562_v50, %s10795_s13 }
0x1f4e   :  { %5499 = vrot.lane.b32.xlu1 %v12566_v7, %s10795_s13 }
0x1f52   :  { %5503 = vrot.lane.b32.xlu1 %v12571_v24, %s10795_s13  ;;  %s13288_s13 = sld [smem:[#allocation44_spill]] }
0x1fa8   :  { %v10159_v4 = vpop.permute.xlu0 %10158 }
0x1fa9   :  { %v10161_v40 = vunpack.i.h.bf16 %v10159_v4  ;;  %v10160_v54 = vunpack.i.l.bf16 %v10159_v4 }
0x1fab   :  { %v9817_v15 = vpack.c.bf16 %v10161_v40, %v10160_v54 }
0x1fac   :  { %v10169_v57 = vpop.permute.xlu0 %10168 }
0x1fad   :  { %9819 = vmatpush3.bf16.xpose.msk.msra.mxu1 %vm11220_vm9, %v9817_v15  ;;  %v10171_v9 = vunpack.i.h.bf16 %v10169_v57  ;;  %v10170_v53 = vunpack.i.l.bf16 %v10169_v57 }
0x1fae   :  { %9820 = vmatprep.subr.bf16.mxu1 %v10790_v0 }
0x1faf   :  { %v9831_v8 = vpack.c.bf16 %v10171_v9, %v10170_v53 }
0x1fb0   :  { %v10164_v38 = vpop.permute.xlu1 %10163 }
0x1fb1   :  { %v10166_v14 = vunpack.i.h.bf16 %v10164_v38  ;;  %v10165_v21 = vunpack.i.l.bf16 %v10164_v38 }
0x1fb2   :  { %v5514_v33 = vpop.permute.xlu0 %5513 }
0x1fb3   :  { %v9821_v30 = vpack.c.bf16 %v10166_v14, %v10165_v21 }
0x1fb4   :  { %v5202_v58 = vpop.permute.xlu1 %5201 }
0x1fb5   :  { %9823 = vmatpush3.bf16.xpose.msk.msra.mxu1 %vm11220_vm9, %v9821_v30 }
0x1fb6   :  { %9239 = vmatprep.subr.mxu1 %v10792_v1  ;;  %v5498_v39 = vpop.permute.xlu0 %5497 }
0x1fb8   :  { %v10174_v47 = vpop.permute.xlu1 %10173 }
0x1fb9   :  { %v10176_v51 = vunpack.i.h.bf16 %v10174_v47  ;;  %v10175_v18 = vunpack.i.l.bf16 %v10174_v47 }
0x1fba   :  { %v5502_v27 = vpop.permute.xlu0 %5501 }
0x1fbb   :  { %v9835_v43 = vpack.c.bf16 %v10176_v51, %v10175_v18 }
0x1fbc   :  { %v5496_v20 = vpop.permute.xlu1 %5495 }
0x1fbd   :  { %9240 = vmatpush3.xpose.msk.msra.mxu1 %vm738_vm8, %v5202_v58 }
0x1fbe   :  { %9830 = vmatprep.subr.bf16.mxu1 %v10790_v0 }
0x1fc0   :  { %9242 = vmatmul.mubr.msk.f32.vlgmr.msra.gmra.mrb[160].mxu1 %vm738_vm8, %v12562_v50  ;;  %v5500_v31 = vpop.permute.xlu1 %5499 }
0x1fc1   :  { %9833 = vmatpush3.bf16.xpose.msk.msra.mxu1 %vm11220_vm9, %v9831_v8  ;;  %9244 = vmatprep.mubr.msk.f32.mxu1 %vm10791_vm0, %v10792_v1 }
0x1fc2   :  { %9834 = vmatprep.subr.bf16.mxu1 %v10790_v0 }
0x1fc4   :  { %9245 = vmatmul.mubr.msk.f32.gmra.mrb[162].mxu1 %vm738_vm8, %v12552_v49  ;;  %v5504_v63 = vpop.permute.xlu1 %5503 }
0x1fc5   :  { %9247 = vmatprep.mubr.msk.f32.mxu1 %vm10791_vm0, %v10792_v1 }
0x1fc8   :  { %9248 = vmatmul.mubr.msk.f32.gmra.mrb[164].mxu1 %vm738_vm8, %v12566_v7 }
0x1fc9   :  { %9837 = vmatpush3.bf16.xpose.msk.msra.mxu1 %vm11220_vm9, %v9835_v43  ;;  %9250 = vmatprep.mubr.msk.f32.mxu1 %vm10791_vm0, %v10792_v1 }
0x1fca   :  { %9289 = vmatprep.subr.mxu1 %v10792_v1 }
0x1fcc   :  { %9251 = vmatmul.mubr.msk.f32.gmra.mrb[166].mxu1 %vm738_vm8, %v12558_v32 }
0x1fcd   :  { %9253 = vmatprep.mubr.msk.f32.mxu1 %vm10791_vm0, %v10792_v1 }
0x1fd0   :  { %9254 = vmatmul.mubr.msk.f32.gmra.mrb[168].mxu1 %vm738_vm8, %v12571_v24 }
0x1fd1   :  { %9290 = vmatpush3.xpose.msk.msra.mxu1 %vm738_vm8, %v5514_v33  ;;  %9291 = vmatprep.mubr.msk.f32.mxu1 %vm10791_vm0, %v10792_v1 }
0x1fd2   :  { %9331 = vmatprep.subr.mxu1 %v10792_v1 }
0x1fd4   :  { %9292 = vmatmul.mubr.msk.f32.vlgmr.msra.gmra.mrb[170].mxu1 %vm738_vm8, %v5496_v20 }
0x1fd5   :  { %9294 = vmatprep.mubr.msk.f32.mxu1 %vm10791_vm0, %v10792_v1 }
0x1fd8   :  { %9295 = vmatmul.mubr.msk.f32.gmra.mrb[172].mxu1 %vm738_vm8, %v5498_v39 }
0x1fd9   :  { %9297 = vmatprep.mubr.msk.f32.mxu1 %vm10791_vm0, %v10792_v1 }
0x1fdc   :  { %9298 = vmatmul.mubr.msk.f32.gmra.mrb[174].mxu1 %vm738_vm8, %v5500_v31 }
0x1fdd   :  { %9300 = vmatprep.mubr.msk.f32.mxu1 %vm10791_vm0, %v10792_v1 }
0x1fe0   :  { %9301 = vmatmul.mubr.msk.f32.gmra.mrb[176].mxu1 %vm738_vm8, %v5502_v27 }
0x1fe1   :  { %9303 = vmatprep.mubr.msk.f32.mxu1 %vm10791_vm0, %v10792_v1 }
0x1fe4   :  { %9304 = vmatmul.mubr.msk.f32.gmra.mrb[178].mxu1 %vm738_vm8, %v5504_v63 }
0x1fe5   :  { %9333 = vmatprep.mubr.msk.f32.mxu1 %vm10791_vm0, %v10792_v1 }
0x2000   :  { %v5004_v16 = vpop.f32.mrb[150].mxu1 }
0x2001   :  { %v9195_v37 = vpop.f32.mrb[151].mxu1  ;;  %v5005_v11 = vadd.f32 %v7882_v46, %v5004_v16 }
0x2003   :  { %v12628_v29 = vadd.f32 %v5005_v11, %v12379_v28 }
0x2004   :  { %v5009_v45 = vpop.f32.mrb[152].mxu1 }
0x2005   :  { %v5010_v6 = vadd.f32 %v7882_v46, %v5009_v45  ;;  %v9198_v44 = vpop.f32.mrb[153].mxu1 }
0x2007   :  { %v12631_v23 = vadd.f32 %v5010_v6, %v12385_v13 }
0x2008   :  { %v5014_v59 = vpop.f32.mrb[154].mxu1 }
0x2009   :  { %v9903_v34 = vpack.c.bf16 %v12631_v23, %v12628_v29  ;;  %v9201_v26 = vpop.f32.mrb[155].mxu1  ;;  %v5015_v56 = vadd.f32 %v7882_v46, %v5014_v59 }
0x200b   :  { %v12636_v54 = vadd.f32 %v5015_v56, %v12391_v3 }
0x200c   :  { %v5019_v61 = vpop.f32.mrb[156].mxu1 }
0x200d   :  { %v5020_v4 = vadd.f32 %v7882_v46, %v5019_v61  ;;  %v9204_v40 = vpop.f32.mrb[157].mxu1 }
0x200f   :  { %v12639_v15 = vadd.f32 %v5020_v4, %v12397_v62 }
0x2010   :  { %v12641_v28 = vpop.f32.mrb[158].mxu1 }
0x2011   :  { %v9906_v13 = vpack.c.bf16 %v12639_v15, %v12636_v54  ;;  %v9207_v38 = vpop.f32.mrb[159].mxu1 }
0x2093   :  { %v5294_v14 = vpop.f32.mrb[160].mxu1 }
0x2094   :  { %v5295_v21 = vadd.f32 %v5294_v14, %v11285_v5  ;;  %v9243_v30 = vpop.f32.mrb[161].mxu1 }
0x2096   :  { %v5318_v57 = vsel %vm854_vm4, %v5295_v21, -inf }
0x2097   :  { %5319 = vmax.xlane.f32.xlu0 %v5318_v57  ;;  %v5299_v58 = vpop.f32.mrb[162].mxu1 }
0x2098   :  { %v5300_v3 = vadd.f32 %v5299_v58, %v11285_v5  ;;  %v9246_v9 = vpop.f32.mrb[163].mxu1 }
0x209a   :  { %v5321_v62 = vsel %vm854_vm4, %v5300_v3, -inf }
0x209b   :  { %v5304_v53 = vpop.f32.mrb[164].mxu1  ;;  %5322 = vmax.xlane.f32.xlu1 %v5321_v62 }
0x209c   :  { %v5305_v8 = vadd.f32 %v5304_v53, %v11296_v12  ;;  %v9249_v47 = vpop.f32.mrb[165].mxu1 }
0x209e   :  { %v5324_v51 = vsel %vm854_vm4, %v5305_v8, -inf }
0x209f   :  { %5325 = vmax.xlane.f32.xlu0 %v5324_v51  ;;  %v5309_v18 = vpop.f32.mrb[166].mxu1 }
0x20a0   :  { %v5310_v43 = vadd.f32 %v5309_v18, %v11306_v19  ;;  %v9252_v33 = vpop.f32.mrb[167].mxu1 }
0x20a2   :  { %v5327_v20 = vsel %vm854_vm4, %v5310_v43, -inf }
0x20a3   :  { %5328 = vmax.xlane.f32.xlu0 %v5327_v20  ;;  %v5314_v39 = vpop.f32.mrb[168].mxu1 }
0x20a4   :  { %v5315_v31 = vadd.f32 %v5314_v39, %v11312_v25  ;;  %v9255_v27 = vpop.f32.mrb[169].mxu1 }
0x20a6   :  { %v5330_v63 = vsel %vm867_vm11, %v5315_v31, -inf }
0x20a7   :  { %5331 = vmax.xlane.f32.xlu1 %v5330_v63  ;;  %v5601_v46 = vpop.f32.mrb[170].mxu1 }
0x20a8   :  { %v5602_v16 = vadd.f32 %v5601_v46, %v11285_v5  ;;  %v9293_v37 = vpop.f32.mrb[171].mxu1 }
0x20aa   :  { %v5625_v11 = vsel %vm854_vm4, %v5602_v16, -inf }
0x20ab   :  { %5626 = vmax.xlane.f32.xlu0 %v5625_v11  ;;  %v5606_v45 = vpop.f32.mrb[172].mxu1 }
0x20ac   :  { %v5607_v6 = vadd.f32 %v5606_v45, %v11285_v5  ;;  %v9296_v44 = vpop.f32.mrb[173].mxu1 }
0x20ae   :  { %v5628_v59 = vsel %vm854_vm4, %v5607_v6, -inf }
0x20af   :  { %5629 = vmax.xlane.f32.xlu1 %v5628_v59  ;;  %v5611_v26 = vpop.f32.mrb[174].mxu1 }
0x20b0   :  { %v5612_v56 = vadd.f32 %v5611_v26, %v11296_v12  ;;  %v9299_v61 = vpop.f32.mrb[175].mxu1 }
0x20b2   :  { %v5631_v4 = vsel %vm854_vm4, %v5612_v56, -inf }
0x20b3   :  { %5632 = vmax.xlane.f32.xlu0 %v5631_v4  ;;  %v5616_v40 = vpop.f32.mrb[176].mxu1 }
0x20b4   :  { %v12662_v38 = vadd.f32 %v5616_v40, %v11306_v19  ;;  %v9302_v14 = vpop.f32.mrb[177].mxu1 }
0x20b6   :  { %v5634_v30 = vsel %vm854_vm4, %v12662_v38, -inf }
0x20b7   :  { %5635 = vmax.xlane.f32.xlu1 %v5634_v30  ;;  %v5621_v57 = vpop.f32.mrb[178].mxu1 }
0x20b8   :  { %v9305_v58 = vpop.f32.mrb[179].mxu1  ;;  %v12671_v9 = vadd.f32 %v5621_v57, %v11312_v25 }
0x20ba   :  { %v5637_v62 = vsel %vm867_vm11, %v12671_v9, -inf }
0x20c8   :  { %10183 = vrot.lane.b32.xlu1 %v12540_v36, %s10797_s17 }
0x20c9   :  { %10178 = vrot.lane.b32.xlu0 %v12528_v35, %s10797_s17 }
0x20e8   :  { %5638 = vmax.xlane.f32.xlu0 %v5637_v62 }
0x20fe   :  { %5381 = vrot.lane.b32.xlu0 %v12546_v41, %s10797_s17  ;;  %s13289_s17 = sld [smem:[#allocation47_spill]] }
0x2124   :  { %v5320_v53 = vpop.xlane.xlu0 %5319 }
0x2125   :  { %v5333_v47 = vsub.f32 %v5295_v21, %v5320_v53 }
0x2127   :  { %v5338_v51 = vmul.f32 1.442695, %v5333_v47 }
0x2128   :  { %v5323_v18 = vpop.xlane.xlu1 %5322 }
0x2129   :  { %10457 = vpow2.f32 %v5338_v51  ;;  %v5334_v33 = vsub.f32 %v5300_v3, %v5323_v18 }
0x212b   :  { %v5340_v20 = vmul.f32 1.442695, %v5334_v33 }
0x212c   :  { %v5326_v39 = vpop.xlane.xlu0 %5325 }
0x212d   :  { %10459 = vpow2.f32 %v5340_v20  ;;  %v5335_v27 = vsub.f32 %v5305_v8, %v5326_v39 }
0x212f   :  { %v5342_v63 = vmul.f32 1.442695, %v5335_v27 }
0x2130   :  { %v5329_v46 = vpop.xlane.xlu0 %5328 }
0x2131   :  { %10461 = vpow2.f32 %v5342_v63  ;;  %v5336_v37 = vsub.f32 %v5310_v43, %v5329_v46 }
0x2133   :  { %v12677_v11 = vpop.eup %10457  ;;  %v5344_v45 = vmul.f32 1.442695, %v5336_v37 }
0x2134   :  { %v5332_v44 = vpop.xlane.xlu1 %5331  ;;  %v5348_v59 = vsel %vm854_vm4, %v12677_v11, 0.0 }
0x2135   :  { %10463 = vpow2.f32 %v5344_v45  ;;  %v5337_v21 = vsub.f32 %v5315_v31, %v5332_v44  ;;  %5349 = vadd.xlane.f32.xlu1 %v5348_v59 }
0x2137   :  { %v12681_v26 = vpop.eup %10459  ;;  %v5346_v3 = vmul.f32 1.442695, %v5337_v21 }
0x2138   :  { %v5627_v61 = vpop.xlane.xlu0 %5626  ;;  %v5351_v8 = vsel %vm854_vm4, %v12681_v26, 0.0 }
0x2139   :  { %10465 = vpow2.f32 %v5346_v3  ;;  %v5640_v4 = vsub.f32 %v5602_v16, %v5627_v61  ;;  %5352 = vadd.xlane.f32.xlu0 %v5351_v8 }
0x213b   :  { %v12685_v43 = vpop.eup %10461  ;;  %v5645_v40 = vmul.f32 1.442695, %v5640_v4 }
0x213c   :  { %v5630_v14 = vpop.xlane.xlu1 %5629  ;;  %v5354_v30 = vsel %vm854_vm4, %v12685_v43, 0.0 }
0x213d   :  { %10467 = vpow2.f32 %v5645_v40  ;;  %v5641_v31 = vsub.f32 %v5607_v6, %v5630_v14  ;;  %5355 = vadd.xlane.f32.xlu1 %v5354_v30 }
0x213f   :  { %v12689_v57 = vpop.eup %10463  ;;  %v5647_v58 = vmul.f32 1.442695, %v5641_v31 }
0x2140   :  { %v5633_v62 = vpop.xlane.xlu0 %5632  ;;  %v5357_v53 = vsel %vm854_vm4, %v12689_v57, 0.0 }
0x2141   :  { %10469 = vpow2.f32 %v5647_v58  ;;  %v5642_v16 = vsub.f32 %v5612_v56, %v5633_v62  ;;  %5358 = vadd.xlane.f32.xlu0 %v5357_v53 }
0x2143   :  { %v12693_v47 = vpop.eup %10465  ;;  %v5649_v51 = vmul.f32 1.442695, %v5642_v16 }
0x2144   :  { %v10179_v18 = vpop.permute.xlu0 %10178  ;;  %v5636_v33 = vpop.xlane.xlu1 %5635  ;;  %v5360_v20 = vsel %vm867_vm11, %v12693_v47, 0.0 }
0x2145   :  { %10471 = vpow2.f32 %v5649_v51  ;;  %v10181_v6 = vunpack.i.h.bf16 %v10179_v18  ;;  %v10180_v39 = vunpack.i.l.bf16 %v10179_v18  ;;  %v5643_v27 = vsub.f32 %v12662_v38, %v5636_v33  ;;  %5361 = vadd.xlane.f32.xlu1 %v5360_v20 }
0x2147   :  { %v12698_v63 = vpop.eup %10467  ;;  %v9825_v46 = vpack.c.bf16 %v10181_v6, %v10180_v39  ;;  %v5651_v37 = vmul.f32 1.442695, %v5643_v27 }
0x2148   :  { %v10184_v56 = vpop.permute.xlu1 %10183  ;;  %v5655_v45 = vsel %vm854_vm4, %v12698_v63, 0.0 }
0x2149   :  { %10473 = vpow2.f32 %v5651_v37  ;;  %v10186_v44 = vunpack.i.h.bf16 %v10184_v56  ;;  %v10185_v59 = vunpack.i.l.bf16 %v10184_v56  ;;  %9826 = vmatpush3.bf16.msra.mxu0 %v9825_v46  ;;  %5656 = vadd.xlane.f32.xlu1 %v5655_v45 }
0x214a   :  { %9827 = vmatprep.subr.bf16.mxu0 %v10790_v0 }
0x214b   :  { %v12703_v21 = vpop.eup %10469  ;;  %v9828_v3 = vpack.c.bf16 %v10186_v44, %v10185_v59 }
0x214c   :  { %v5658_v38 = vsel %vm854_vm4, %v12703_v21, 0.0 }
0x214d   :  { %9829 = vmatpush3.bf16.msra.mxu0 %v9828_v3  ;;  %5659 = vadd.xlane.f32.xlu0 %v5658_v38 }
0x214e   :  { %9264 = vmatprep.subr.mxu0 %v10792_v1 }
0x214f   :  { %v12708_v61 = vpop.eup %10471 }
0x2150   :  { %v5661_v8 = vsel %vm854_vm4, %v12708_v61, 0.0 }
0x2151   :  { %5662 = vadd.xlane.f32.xlu1 %v5661_v8 }
0x2153   :  { %v12712_v4 = vpop.eup %10473 }
0x2154   :  { %v5664_v40 = vsel %vm854_vm4, %v12712_v4, 0.0 }
0x2155   :  { %5665 = vadd.xlane.f32.xlu1 %v5664_v40 }
0x2163   :  { %10193 = vrot.lane.b32.xlu0 %v12540_v36, %s10798_s21 }
0x2167   :  { %5688 = vrot.lane.b32.xlu0 %v12546_v41, %s10798_s21 }
0x216b   :  { %10198 = vrot.lane.b32.xlu0 %v12528_v35, %s10799_s25 }
0x216f   :  { %6030 = vrot.lane.b32.xlu0 %v12546_v41, %s10799_s25 }
0x2173   :  { %6014 = vrot.lane.b32.xlu0 %v12552_v49, %s10800_s29 }
0x2175   :  { %v5639_v14 = vpop.xlane.xlu0 %5638 }
0x2176   :  { %v5644_v30 = vsub.f32 %v12671_v9, %v5639_v14 }
0x2177   :  { %6018 = vrot.lane.b32.xlu0 %v12558_v32, %s10800_s29 }
0x2178   :  { %v5653_v31 = vmul.f32 1.442695, %v5644_v30 }
0x2179   :  { %v5382_v58 = vpop.permute.xlu0 %5381 }
0x217a   :  { %10475 = vpow2.f32 %v5653_v31  ;;  %9265 = vmatpush3.msk.msra.mxu0 %vm940_vm14, %v5382_v58 }
0x217b   :  { %9838 = vmatprep.subr.bf16.mxu0 %v10790_v0 }
0x2184   :  { %v12731_v62 = vpop.eup %10475 }
0x2185   :  { %v5667_v53 = vsel %vm867_vm11, %v12731_v62, 0.0 }
0x2186   :  { %5668 = vadd.xlane.f32.xlu1 %v5667_v53 }
0x2197   :  { %10188 = vrot.lane.b32.xlu1 %v12528_v35, %s10798_s21  ;;  %s13290_s21 = sld [smem:[#allocation49_spill]] }
0x219b   :  { %10203 = vrot.lane.b32.xlu1 %v12540_v36, %s10799_s25  ;;  %s13291_s25 = sld [smem:[#allocation45_spill]] }
0x219f   :  { %6012 = vrot.lane.b32.xlu1 %v12562_v50, %s10800_s29 }
0x21a3   :  { %6016 = vrot.lane.b32.xlu1 %v12566_v7, %s10800_s29 }
0x21a7   :  { %6020 = vrot.lane.b32.xlu1 %v12571_v24, %s10800_s29  ;;  %s13292_s29 = sld [smem:[#allocation46_spill]] }
0x21c2   :  { %v5350_v9 = vpop.xlane.xlu1 %5349 }
0x21c3   :  { %10477 = vrcp.f32 %v5350_v9 }
0x21c6   :  { %v5353_v16 = vpop.xlane.xlu0 %5352 }
0x21c7   :  { %10479 = vrcp.f32 %v5353_v16 }
0x21ca   :  { %v5356_v51 = vpop.xlane.xlu1 %5355 }
0x21cb   :  { %10481 = vrcp.f32 %v5356_v51  ;;  %v5494_v51 = vld [vmem:[%s13287_s9] sm:$0xff] }
0x21cd   :  { %v10478_v18 = vpop.eup %10477 }
0x21ce   :  { %v5368_v33 = vmul.f32 %v10478_v18, %v12677_v11  ;;  %v5359_v20 = vpop.xlane.xlu0 %5358 }
0x21cf   :  { %10483 = vrcp.f32 %v5359_v20 }
0x21d0   :  { %9267 = vmatmul.mubr.msk.f32.vlgmr.msra.gmra.mrb[160].mxu0 %vm854_vm4, %v5368_v33 }
0x21d1   :  { %v10480_v6 = vpop.eup %10479  ;;  %9269 = vmatprep.mubr.msk.f32.mxu0 %vm10791_vm0, %v10792_v1 }
0x21d2   :  { %v5362_v39 = vpop.xlane.xlu1 %5361  ;;  %v5369_v27 = vmul.f32 %v10480_v6, %v12681_v26 }
0x21d3   :  { %10485 = vrcp.f32 %v5362_v39 }
0x21d4   :  { %9270 = vmatmul.mubr.msk.f32.gmra.mrb[162].mxu0 %vm854_vm4, %v5369_v27 }
0x21d5   :  { %v10482_v46 = vpop.eup %10481  ;;  %9272 = vmatprep.mubr.msk.f32.mxu0 %vm10791_vm0, %v10792_v1 }
0x21d6   :  { %v5370_v11 = vmul.f32 %v10482_v46, %v12685_v43  ;;  %v5657_v43 = vpop.xlane.xlu1 %5656  ;;  %v5801_v46 = vld [vmem:[%s13287_s9 + $0x8] sm:$0xff] }
0x21d7   :  { %10487 = vrcp.f32 %v5657_v43  ;;  %9332 = vmatpush3.msra.mxu1 %v5801_v46 }
0x21d8   :  { %9273 = vmatmul.mubr.msk.f32.gmra.mrb[164].mxu0 %vm854_vm4, %v5370_v11  ;;  %9844 = vmatprep.subr.bf16.mxu1 %v10790_v0 }
0x21d9   :  { %v10484_v37 = vpop.eup %10483  ;;  %9275 = vmatprep.mubr.msk.f32.mxu0 %vm10791_vm0, %v10792_v1 }
0x21da   :  { %v5371_v56 = vmul.f32 %v10484_v37, %v12689_v57  ;;  %v5660_v3 = vpop.xlane.xlu0 %5659 }
0x21db   :  { %10489 = vrcp.f32 %v5660_v3 }
0x21dc   :  { %9276 = vmatmul.mubr.msk.f32.gmra.mrb[166].mxu0 %vm854_vm4, %v5371_v56 }
0x21dd   :  { %v10486_v26 = vpop.eup %10485  ;;  %9278 = vmatprep.mubr.msk.f32.mxu0 %vm10791_vm0, %v10792_v1 }
0x21de   :  { %v5372_v45 = vmul.f32 %v10486_v26, %v12693_v47  ;;  %v5663_v44 = vpop.xlane.xlu1 %5662  ;;  %v10194_v57 = vpop.permute.xlu0 %10193 }
0x21df   :  { %v10196_v30 = vunpack.i.h.bf16 %v10194_v57  ;;  %v10195_v31 = vunpack.i.l.bf16 %v10194_v57  ;;  %10491 = vrcp.f32 %v5663_v44 }
0x21e0   :  { %9279 = vmatmul.mubr.msk.f32.gmra.mrb[168].mxu0 %vm854_vm4, %v5372_v45 }
0x21e1   :  { %9316 = vmatprep.mubr.msk.f32.mxu0 %vm10791_vm0, %v10792_v1  ;;  %v9842_v58 = vpack.c.bf16 %v10196_v30, %v10195_v31  ;;  %v10488_v53 = vpop.eup %10487 }
0x21e2   :  { %v5666_v59 = vpop.xlane.xlu1 %5665  ;;  %v5675_v9 = vmul.f32 %v10488_v53, %v12698_v63  ;;  %v5689_v16 = vpop.permute.xlu0 %5688 }
0x21e3   :  { %10493 = vrcp.f32 %v5666_v59 }
0x21e5   :  { %v10490_v18 = vpop.eup %10489 }
0x21e6   :  { %v5676_v33 = vmul.f32 %v10490_v18, %v12703_v21  ;;  %v10199_v59 = vpop.permute.xlu0 %10198 }
0x21e7   :  { %v10201_v3 = vunpack.i.h.bf16 %v10199_v59 }
0x21e9   :  { %v10492_v63 = vpop.eup %10491 }
0x21ea   :  { %v5677_v20 = vmul.f32 %v10492_v63, %v12708_v61  ;;  %v6031_v63 = vpop.permute.xlu0 %6030 }
0x21ed   :  { %v10494_v6 = vpop.eup %10493 }
0x21ee   :  { %v5678_v39 = vmul.f32 %v10494_v6, %v12712_v4 }
0x2213   :  { %v5669_v38 = vpop.xlane.xlu1 %5668 }
0x2214   :  { %10495 = vrcp.f32 %v5669_v38  ;;  %v10200_v38 = vunpack.i.l.bf16 %v10199_v59 }
0x2216   :  { %v9845_v57 = vpack.c.bf16 %v10201_v3, %v10200_v38 }
0x2217   :  { %v10189_v8 = vpop.permute.xlu1 %10188 }
0x2218   :  { %v10191_v40 = vunpack.i.h.bf16 %v10189_v8  ;;  %v10190_v14 = vunpack.i.l.bf16 %v10189_v8 }
0x221a   :  { %v9839_v47 = vpack.c.bf16 %v10191_v40, %v10190_v14 }
0x221b   :  { %v10204_v40 = vpop.permute.xlu1 %10203 }
0x221c   :  { %9840 = vmatpush3.bf16.msra.mxu0 %v9839_v47  ;;  %v10206_v30 = vunpack.i.h.bf16 %v10204_v40  ;;  %v10205_v31 = vunpack.i.l.bf16 %v10204_v40 }
0x221d   :  { %9841 = vmatprep.subr.bf16.mxu0 %v10790_v0 }
0x221e   :  { %v10496_v27 = vpop.eup %10495  ;;  %v9849_v53 = vpack.c.bf16 %v10206_v30, %v10205_v31 }
0x221f   :  { %v5679_v21 = vmul.f32 %v10496_v27, %v12731_v62  ;;  %v6013_v6 = vpop.permute.xlu1 %6012 }
0x2220   :  { %9843 = vmatpush3.bf16.msra.mxu0 %v9842_v58 }
0x2221   :  { %9314 = vmatprep.subr.mxu0 %v10792_v1 }
0x2223   :  { %v6017_v27 = vpop.permute.xlu1 %6016 }
0x2224   :  { %9315 = vmatpush3.msk.msra.mxu0 %vm940_vm14, %v5689_v16 }
0x2225   :  { %9317 = vmatmul.mubr.msk.f32.vlgmr.msra.gmra.mrb[170].mxu0 %vm854_vm4, %v5675_v9  ;;  %9348 = vmatprep.subr.mxu0 %v10792_v1 }
0x2226   :  { %9319 = vmatprep.mubr.msk.f32.mxu0 %vm10791_vm0, %v10792_v1  ;;  %9349 = vmatpush3.msra.mxu0 %v5494_v51 }
0x2227   :  { %9852 = vmatprep.subr.bf16.mxu0 %v10790_v0  ;;  %v6021_v46 = vpop.permute.xlu1 %6020 }
0x2229   :  { %9320 = vmatmul.mubr.msk.f32.gmra.mrb[172].mxu0 %vm854_vm4, %v5676_v33 }
0x222a   :  { %9322 = vmatprep.mubr.msk.f32.mxu0 %vm10791_vm0, %v10792_v1 }
0x222d   :  { %9323 = vmatmul.mubr.msk.f32.gmra.mrb[174].mxu0 %vm854_vm4, %v5677_v20 }
0x222e   :  { %9325 = vmatprep.mubr.msk.f32.mxu0 %vm10791_vm0, %v10792_v1 }
0x2231   :  { %9326 = vmatmul.mubr.msk.f32.gmra.mrb[176].mxu0 %vm854_vm4, %v5678_v39  ;;  %v6015_v39 = vpop.permute.xlu0 %6014 }
0x2232   :  { %9328 = vmatprep.mubr.msk.f32.mxu0 %vm10791_vm0, %v10792_v1 }
0x2235   :  { %9329 = vmatmul.mubr.msk.f32.gmra.mrb[178].mxu0 %vm854_vm4, %v5679_v21  ;;  %v6019_v21 = vpop.permute.xlu0 %6018 }
0x2236   :  { %9350 = vmatprep.mubr.msk.f32.mxu0 %vm10791_vm0, %v10792_v1 }
0x22a3   :  { %v5470_v61 = vpop.f32.mrb[160].mxu0 }
0x22a4   :  { %v9268_v11 = vpop.f32.mrb[161].mxu0  ;;  %9351 = vmatmul.mubr.msk.f32.vlgmr.msra.gmra.mrb[180].mxu0 %vm738_vm8, %v5470_v61 }
0x22a5   :  { %9353 = vmatprep.mubr.msk.f32.mxu0 %vm10791_vm0, %v10792_v1 }
0x22a7   :  { %v5475_v4 = vpop.f32.mrb[162].mxu0 }
0x22a8   :  { %v9271_v37 = vpop.f32.mrb[163].mxu0  ;;  %9354 = vmatmul.mubr.msk.f32.gmra.mrb[182].mxu0 %vm738_vm8, %v5475_v4 }
0x22a9   :  { %9356 = vmatprep.mubr.msk.f32.mxu0 %vm10791_vm0, %v10792_v1 }
0x22ab   :  { %v5480_v62 = vpop.f32.mrb[164].mxu0 }
0x22ac   :  { %v9274_v56 = vpop.f32.mrb[165].mxu0  ;;  %9357 = vmatmul.mubr.msk.f32.gmra.mrb[184].mxu0 %vm738_vm8, %v5480_v62 }
0x22ad   :  { %9359 = vmatprep.mubr.msk.f32.mxu0 %vm10791_vm0, %v10792_v1 }
0x22af   :  { %v5485_v26 = vpop.f32.mrb[166].mxu0 }
0x22b0   :  { %v9277_v45 = vpop.f32.mrb[167].mxu0  ;;  %9360 = vmatmul.mubr.msk.f32.gmra.mrb[186].mxu0 %vm738_vm8, %v5485_v26 }
0x22b1   :  { %9362 = vmatprep.mubr.msk.f32.mxu0 %vm10791_vm0, %v10792_v1 }
0x22b3   :  { %v5490_v43 = vpop.f32.mrb[168].mxu0 }
0x22b4   :  { %v9280_v44 = vpop.f32.mrb[169].mxu0  ;;  %9363 = vmatmul.mubr.msk.f32.gmra.mrb[188].mxu0 %vm738_vm8, %v5490_v43 }
0x22b5   :  { %9400 = vmatprep.mubr.msk.f32.mxu0 %vm10791_vm0, %v10792_v1 }
0x22f8   :  { %v5777_v8 = vpop.f32.mrb[170].mxu0 }
0x22f9   :  { %v9318_v14 = vpop.f32.mrb[171].mxu0  ;;  %9334 = vmatmul.mubr.msk.f32.vlgmr.msra.gmra.mrb[180].mxu1 %vm738_vm8, %v5777_v8 }
0x22fa   :  { %9847 = vmatpush3.bf16.xpose.msk.msra.mxu1 %vm11220_vm9, %v9845_v57  ;;  %9336 = vmatprep.mubr.msk.f32.mxu1 %vm10791_vm0, %v10792_v1 }
0x22fb   :  { %9848 = vmatprep.subr.bf16.mxu1 %v10790_v0 }
0x22fc   :  { %v5782_v47 = vpop.f32.mrb[172].mxu0 }
0x22fd   :  { %v9321_v58 = vpop.f32.mrb[173].mxu0  ;;  %9337 = vmatmul.mubr.msk.f32.gmra.mrb[182].mxu1 %vm738_vm8, %v5782_v47 }
0x22fe   :  { %9339 = vmatprep.mubr.msk.f32.mxu1 %vm10791_vm0, %v10792_v1 }
0x2300   :  { %v5787_v9 = vpop.f32.mrb[174].mxu0 }
0x2301   :  { %v9324_v16 = vpop.f32.mrb[175].mxu0  ;;  %9340 = vmatmul.mubr.msk.f32.gmra.mrb[184].mxu1 %vm738_vm8, %v5787_v9 }
0x2302   :  { %9851 = vmatpush3.bf16.xpose.msk.msra.mxu1 %vm11220_vm9, %v9849_v53  ;;  %9342 = vmatprep.mubr.msk.f32.mxu1 %vm10791_vm0, %v10792_v1 }
0x2303   :  { %9373 = vmatprep.subr.mxu1 %v10792_v1 }
0x2304   :  { %v5792_v51 = vpop.f32.mrb[176].mxu0 }
0x2305   :  { %v9327_v18 = vpop.f32.mrb[177].mxu0  ;;  %9343 = vmatmul.mubr.msk.f32.gmra.mrb[186].mxu1 %vm738_vm8, %v5792_v51 }
0x2306   :  { %9345 = vmatprep.mubr.msk.f32.mxu1 %vm10791_vm0, %v10792_v1 }
0x2308   :  { %v5797_v33 = vpop.f32.mrb[178].mxu0 }
0x2309   :  { %v9330_v20 = vpop.f32.mrb[179].mxu0  ;;  %9346 = vmatmul.mubr.msk.f32.gmra.mrb[188].mxu1 %vm738_vm8, %v5797_v33 }
0x230a   :  { %9374 = vmatpush3.xpose.msk.msra.mxu1 %vm738_vm8, %v6031_v63  ;;  %9375 = vmatprep.mubr.msk.f32.mxu1 %vm10791_vm0, %v10792_v1 }
0x230b   :  { %9415 = vmatprep.subr.mxu1 %v10792_v1 }
0x230d   :  { %9376 = vmatmul.mubr.msk.f32.vlgmr.msra.gmra.mrb[190].mxu1 %vm738_vm8, %v6013_v6 }
0x230e   :  { %9378 = vmatprep.mubr.msk.f32.mxu1 %vm10791_vm0, %v10792_v1 }
0x2311   :  { %9379 = vmatmul.mubr.msk.f32.gmra.mrb[192].mxu1 %vm738_vm8, %v6015_v39 }
0x2312   :  { %9381 = vmatprep.mubr.msk.f32.mxu1 %vm10791_vm0, %v10792_v1 }
0x2315   :  { %9382 = vmatmul.mubr.msk.f32.gmra.mrb[194].mxu1 %vm738_vm8, %v6017_v27 }
0x2316   :  { %9384 = vmatprep.mubr.msk.f32.mxu1 %vm10791_vm0, %v10792_v1 }
0x2319   :  { %9385 = vmatmul.mubr.msk.f32.gmra.mrb[196].mxu1 %vm738_vm8, %v6019_v21 }
0x231a   :  { %9387 = vmatprep.mubr.msk.f32.mxu1 %vm10791_vm0, %v10792_v1 }
0x231d   :  { %9388 = vmatmul.mubr.msk.f32.gmra.mrb[198].mxu1 %vm738_vm8, %v6021_v46 }
0x231e   :  { %9417 = vmatprep.mubr.msk.f32.mxu1 %vm10791_vm0, %v10792_v1 }
0x2377   :  { %v5988_v61 = vpop.f32.mrb[180].mxu0 }
0x2378   :  { %v9352_v11 = vpop.f32.mrb[181].mxu0 }
0x237b   :  { %v5993_v4 = vpop.f32.mrb[182].mxu0 }
0x237c   :  { %v9355_v37 = vpop.f32.mrb[183].mxu0 }
0x237f   :  { %v5998_v62 = vpop.f32.mrb[184].mxu0 }
0x2380   :  { %v9358_v56 = vpop.f32.mrb[185].mxu0 }
0x2383   :  { %v6003_v26 = vpop.f32.mrb[186].mxu0 }
0x2384   :  { %v9361_v45 = vpop.f32.mrb[187].mxu0 }
0x2387   :  { %v6008_v43 = vpop.f32.mrb[188].mxu0 }
0x2388   :  { %v9364_v44 = vpop.f32.mrb[189].mxu0 }
0x23cc   :  { %v5883_v59 = vpop.f32.mrb[180].mxu1 }
0x23cd   :  { %v12846_v3 = vadd.f32 %v5988_v61, %v5883_v59  ;;  %v9335_v38 = vpop.f32.mrb[181].mxu1 }
0x23d0   :  { %v5888_v57 = vpop.f32.mrb[182].mxu1 }
0x23d1   :  { %v12848_v8 = vadd.f32 %v5993_v4, %v5888_v57  ;;  %v9338_v40 = vpop.f32.mrb[183].mxu1 }
0x23d4   :  { %v5893_v14 = vpop.f32.mrb[184].mxu1 }
0x23d5   :  { %v12850_v30 = vadd.f32 %v5998_v62, %v5893_v14  ;;  %v9341_v31 = vpop.f32.mrb[185].mxu1 }
0x23d8   :  { %v5898_v47 = vpop.f32.mrb[186].mxu1 }
0x23d9   :  { %v12852_v58 = vadd.f32 %v6003_v26, %v5898_v47  ;;  %v9344_v53 = vpop.f32.mrb[187].mxu1 }
0x23dc   :  { %v5903_v9 = vpop.f32.mrb[188].mxu1 }
0x23dd   :  { %v12854_v16 = vadd.f32 %v6008_v43, %v5903_v9  ;;  %v9347_v51 = vpop.f32.mrb[189].mxu1 }
0x23e0   :  { %v6118_v18 = vpop.f32.mrb[190].mxu1 }
0x23e1   :  { %v6119_v33 = vadd.f32 %v6118_v18, %v11285_v5  ;;  %v9377_v63 = vpop.f32.mrb[191].mxu1 }
0x23e3   :  { %v6142_v20 = vsel %vm854_vm4, %v6119_v33, -inf }
0x23e4   :  { %6143 = vmax.xlane.f32.xlu0 %v6142_v20  ;;  %v6123_v6 = vpop.f32.mrb[192].mxu1 }
0x23e5   :  { %v6124_v39 = vadd.f32 %v6123_v6, %v11285_v5  ;;  %v9380_v27 = vpop.f32.mrb[193].mxu1 }
0x23e7   :  { %v6145_v21 = vsel %vm854_vm4, %v6124_v39, -inf }
0x23e8   :  { %6146 = vmax.xlane.f32.xlu1 %v6145_v21  ;;  %v6128_v46 = vpop.f32.mrb[194].mxu1 }
0x23e9   :  { %v6129_v61 = vadd.f32 %v6128_v46, %v11296_v12  ;;  %v9383_v11 = vpop.f32.mrb[195].mxu1 }
0x23eb   :  { %v6148_v4 = vsel %vm854_vm4, %v6129_v61, -inf }
0x23ec   :  { %6149 = vmax.xlane.f32.xlu0 %v6148_v4  ;;  %v6133_v37 = vpop.f32.mrb[196].mxu1 }
0x23ed   :  { %v6134_v62 = vadd.f32 %v6133_v37, %v11306_v19  ;;  %v9386_v56 = vpop.f32.mrb[197].mxu1 }
0x23ef   :  { %v6151_v26 = vsel %vm854_vm4, %v6134_v62, -inf }
0x23f0   :  { %6152 = vmax.xlane.f32.xlu0 %v6151_v26  ;;  %v6138_v45 = vpop.f32.mrb[198].mxu1 }
0x23f1   :  { %v6139_v43 = vadd.f32 %v6138_v45, %v11312_v25  ;;  %v9389_v44 = vpop.f32.mrb[199].mxu1 }
0x23f3   :  { %v6154_v59 = vsel %vm867_vm11, %v6139_v43, -inf }
0x23f4   :  { %6155 = vmax.xlane.f32.xlu1 %v6154_v59 }
0x2471   :  { %v6144_v38 = vpop.xlane.xlu0 %6143 }
0x2472   :  { %v6157_v57 = vsub.f32 %v6119_v33, %v6144_v38 }
0x2474   :  { %v6162_v40 = vmul.f32 1.442695, %v6157_v57 }
0x2475   :  { %v6147_v14 = vpop.xlane.xlu1 %6146 }
0x2476   :  { %10497 = vpow2.f32 %v6162_v40  ;;  %v6158_v31 = vsub.f32 %v6124_v39, %v6147_v14 }
0x2478   :  { %v6164_v47 = vmul.f32 1.442695, %v6158_v31 }
0x2479   :  { %v6150_v33 = vpop.xlane.xlu0 %6149 }
0x247a   :  { %10499 = vpow2.f32 %v6164_v47  ;;  %v6159_v63 = vsub.f32 %v6129_v61, %v6150_v33 }
0x247c   :  { %v6166_v27 = vmul.f32 1.442695, %v6159_v63 }
0x247d   :  { %v6153_v20 = vpop.xlane.xlu0 %6152 }
0x247e   :  { %v6160_v39 = vsub.f32 %v6134_v62, %v6153_v20  ;;  %10501 = vpow2.f32 %v6166_v27 }
0x2480   :  { %v10498_v53 = vpop.eup %10497  ;;  %v6168_v46 = vmul.f32 1.442695, %v6160_v39 }
0x2481   :  { %v6172_v9 = vsel %vm854_vm4, %v10498_v53, 0.0  ;;  %v6156_v6 = vpop.xlane.xlu1 %6155 }
0x2482   :  { %6173 = vadd.xlane.f32.xlu0 %v6172_v9  ;;  %v6161_v21 = vsub.f32 %v6139_v43, %v6156_v6  ;;  %10503 = vpow2.f32 %v6168_v46 }
0x2484   :  { %v12867_v51 = vpop.eup %10499  ;;  %v6170_v11 = vmul.f32 1.442695, %v6161_v21 }
0x2485   :  { %v6175_v18 = vsel %vm854_vm4, %v12867_v51, 0.0 }
0x2486   :  { %6176 = vadd.xlane.f32.xlu1 %v6175_v18  ;;  %10505 = vpow2.f32 %v6170_v11 }
0x2488   :  { %v10502_v4 = vpop.eup %10501 }
0x2489   :  { %v6178_v56 = vsel %vm854_vm4, %v10502_v4, 0.0 }
0x248c   :  { %v12875_v37 = vpop.eup %10503 }
0x248d   :  { %v6181_v61 = vsel %vm854_vm4, %v12875_v37, 0.0 }
0x2490   :  { %v12878_v26 = vpop.eup %10505 }
0x2491   :  { %v6184_v62 = vsel %vm867_vm11, %v12878_v26, 0.0 }
0x2497   :  { %10208 = vrot.lane.b32.xlu1 %v12528_v35, %s10801_s3 }
0x2498   :  { %10213 = vrot.lane.b32.xlu0 %v12540_v36, %s10801_s3 }
0x24b7   :  { %6179 = vadd.xlane.f32.xlu0 %v6178_v56 }
0x24bb   :  { %6182 = vadd.xlane.f32.xlu0 %v6181_v61  ;;  %6185 = vadd.xlane.f32.xlu1 %v6184_v62 }
0x24cc   :  { %6435 = vrot.lane.b32.xlu1 %v12558_v32, %s10802_s8 }
0x24d1   :  { %6205 = vrot.lane.b32.xlu0 %v12546_v41, %s10801_s3  ;;  %s13293_s3 = sld [smem:[#allocation48_spill]] }
0x24d5   :  { %10218 = vrot.lane.b32.xlu0 %v12528_v35, %s10803_s24 }
0x24d9   :  { %10223 = vrot.lane.b32.xlu0 %v12540_v36, %s10803_s24 }
0x24dd   :  { %6447 = vrot.lane.b32.xlu0 %v12546_v41, %s10803_s24 }
0x24e1   :  { %6429 = vrot.lane.b32.xlu0 %v12562_v50, %s10802_s8 }
0x24e5   :  { %6431 = vrot.lane.b32.xlu0 %v12552_v49, %s10802_s8 }
0x24e9   :  { %6433 = vrot.lane.b32.xlu0 %v12566_v7, %s10802_s8 }
0x24ed   :  { %6437 = vrot.lane.b32.xlu0 %v12571_v24, %s10802_s8  ;;  %s10805_s8 = smov [#allocation14]  }
0x24ee   :  { %s7613_s24 = sshll.u32 %s10805_s8, 4  ;;  %s7614_s24 = int_to_ptr.vmem [resolvable:$true] %s7613_s24 }
0x24ef   :  { %p10710_p7 = scmp.lt.s32.totalorder %s7614_s24, %s7614_s24 }
0x250f   :  { %v6174_v32 = vpop.xlane.xlu0 %6173 }
0x2510   :  { %10507 = vrcp.f32 %v6174_v32 }
0x2513   :  { %v6177_v45 = vpop.xlane.xlu1 %6176  ;;  %v10214_v43 = vpop.permute.xlu0 %10213 }
0x2514   :  { %v10216_v57 = vunpack.i.h.bf16 %v10214_v43  ;;  %v10215_v41 = vunpack.i.l.bf16 %v10214_v43  ;;  %10509 = vrcp.f32 %v6177_v45  ;;  %v6318_v43 = vld [vmem:[%s13287_s9 + $0x10] sm:$0xff] }
0x2515   :  { %9416 = vmatpush3.msra.mxu1 %v6318_v43 }
0x2516   :  { %v9856_v50 = vpack.c.bf16 %v10216_v57, %v10215_v41  ;;  %9866 = vmatprep.subr.bf16.mxu1 %v10790_v0 }
0x2517   :  { %v10209_v44 = vpop.permute.xlu1 %10208 }
0x2518   :  { %v10211_v59 = vunpack.i.h.bf16 %v10209_v44  ;;  %v10210_v38 = vunpack.i.l.bf16 %v10209_v44 }
0x251a   :  { %v9853_v40 = vpack.c.bf16 %v10211_v59, %v10210_v38  ;;  %v10508_v24 = vpop.eup %10507 }
0x251b   :  { %v6192_v14 = vmul.f32 %v10508_v24, %v10498_v53 }
0x251c   :  { %9854 = vmatpush3.bf16.msra.mxu0 %v9853_v40 }
0x251d   :  { %9855 = vmatprep.subr.bf16.mxu0 %v10790_v0 }
0x251e   :  { %v10510_v9 = vpop.eup %10509 }
0x251f   :  { %v6193_v33 = vmul.f32 %v10510_v9, %v12867_v51 }
0x2520   :  { %9857 = vmatpush3.bf16.msra.mxu0 %v9856_v50 }
0x2521   :  { %9398 = vmatprep.subr.mxu0 %v10792_v1 }
0x2544   :  { %v6180_v49 = vpop.xlane.xlu0 %6179 }
0x2545   :  { %10511 = vrcp.f32 %v6180_v49 }
0x2548   :  { %v6183_v7 = vpop.xlane.xlu0 %6182  ;;  %v6186_v31 = vpop.xlane.xlu1 %6185 }
0x2549   :  { %10513 = vrcp.f32 %v6183_v7 }
0x254a   :  { %10515 = vrcp.f32 %v6186_v31 }
0x254c   :  { %v6206_v47 = vpop.permute.xlu0 %6205  ;;  %v6436_v32 = vpop.permute.xlu1 %6435 }
0x254d   :  { %9399 = vmatpush3.msk.msra.mxu0 %vm940_vm14, %v6206_v47 }
0x254e   :  { %9401 = vmatmul.mubr.msk.f32.vlgmr.msra.gmra.mrb[190].mxu0 %vm854_vm4, %v6192_v14  ;;  %9858 = vmatprep.subr.bf16.mxu0 %v10790_v0 }
0x254f   :  { %9403 = vmatprep.mubr.msk.f32.mxu0 %vm10791_vm0, %v10792_v1  ;;  %v10512_v63 = vpop.eup %10511 }
0x2550   :  { %v10219_v18 = vpop.permute.xlu0 %10218  ;;  %v6194_v27 = vmul.f32 %v10512_v63, %v10502_v4 }
0x2551   :  { %v10221_v20 = vunpack.i.h.bf16 %v10219_v18  ;;  %v10220_v6 = vunpack.i.l.bf16 %v10219_v18 }
0x2552   :  { %9404 = vmatmul.mubr.msk.f32.gmra.mrb[192].mxu0 %vm854_vm4, %v6193_v33 }
0x2553   :  { %v9859_v53 = vpack.c.bf16 %v10221_v20, %v10220_v6  ;;  %9406 = vmatprep.mubr.msk.f32.mxu0 %vm10791_vm0, %v10792_v1  ;;  %v10514_v21 = vpop.eup %10513 }
0x2554   :  { %v10224_v39 = vpop.permute.xlu0 %10223  ;;  %v6195_v11 = vmul.f32 %v10514_v21, %v12875_v37  ;;  %v10516_v56 = vpop.eup %10515 }
0x2555   :  { %9861 = vmatpush3.bf16.xpose.msk.msra.mxu0 %vm11220_vm9, %v9859_v53  ;;  %v10226_v51 = vunpack.i.h.bf16 %v10224_v39  ;;  %v10225_v46 = vunpack.i.l.bf16 %v10224_v39  ;;  %v6196_v4 = vmul.f32 %v10516_v56, %v12878_v26 }
0x2556   :  { %9407 = vmatmul.mubr.msk.f32.gmra.mrb[194].mxu0 %vm854_vm4, %v6194_v27  ;;  %9862 = vmatprep.subr.bf16.mxu0 %v10790_v0 }
0x2557   :  { %9409 = vmatprep.mubr.msk.f32.mxu0 %vm10791_vm0, %v10792_v1  ;;  %v9863_v61 = vpack.c.bf16 %v10226_v51, %v10225_v46 }
0x2558   :  { %v6448_v62 = vpop.permute.xlu0 %6447 }
0x255a   :  { %9410 = vmatmul.mubr.msk.f32.gmra.mrb[196].mxu0 %vm854_vm4, %v6195_v11 }
0x255b   :  { %9412 = vmatprep.mubr.msk.f32.mxu0 %vm10791_vm0, %v10792_v1 }
0x255c   :  { %v6430_v37 = vpop.permute.xlu0 %6429 }
0x255d   :  { %9865 = vmatpush3.bf16.xpose.msk.msra.mxu0 %vm11220_vm9, %v9863_v61 }
0x255e   :  { %9413 = vmatmul.mubr.msk.f32.gmra.mrb[198].mxu0 %vm854_vm4, %v6196_v4  ;;  %9440 = vmatprep.subr.mxu0 %v10792_v1 }
0x255f   :  { %9442 = vmatprep.mubr.msk.f32.mxu0 %vm10791_vm0, %v10792_v1 }
0x2560   :  { %v6432_v26 = vpop.permute.xlu0 %6431 }
0x2564   :  { %v6434_v42 = vpop.permute.xlu0 %6433 }
0x2565   :  { %9441 = vmatpush3.xpose.msk.msra.mxu0 %vm738_vm8, %v6448_v62 }
0x2566   :  { %9482 = vmatprep.subr.mxu0 %v10792_v1 }
0x2568   :  { %9443 = vmatmul.mubr.msk.f32.vlgmr.msra.gmra.mrb[200].mxu0 %vm738_vm8, %v6430_v37  ;;  %v6438_v45 = vpop.permute.xlu0 %6437 }
0x2569   :  { %9445 = vmatprep.mubr.msk.f32.mxu0 %vm10791_vm0, %v10792_v1 }
0x256c   :  { %9446 = vmatmul.mubr.msk.f32.gmra.mrb[202].mxu0 %vm738_vm8, %v6432_v26 }
0x256d   :  { %9448 = vmatprep.mubr.msk.f32.mxu0 %vm10791_vm0, %v10792_v1 }
0x2570   :  { %9449 = vmatmul.mubr.msk.f32.gmra.mrb[204].mxu0 %vm738_vm8, %v6434_v42 }
0x2571   :  { %9451 = vmatprep.mubr.msk.f32.mxu0 %vm10791_vm0, %v10792_v1 }
0x2574   :  { %9452 = vmatmul.mubr.msk.f32.gmra.mrb[206].mxu0 %vm738_vm8, %v6436_v32 }
0x2575   :  { %9454 = vmatprep.mubr.msk.f32.mxu0 %vm10791_vm0, %v10792_v1 }
0x2578   :  { %9455 = vmatmul.mubr.msk.f32.gmra.mrb[208].mxu0 %vm738_vm8, %v6438_v45 }
0x2579   :  { %9484 = vmatprep.mubr.msk.f32.mxu0 %vm10791_vm0, %v10792_v1 }
0x2621   :  { %v6294_v44 = vpop.f32.mrb[190].mxu0 }
0x2622   :  { %v9402_v59 = vpop.f32.mrb[191].mxu0  ;;  %9418 = vmatmul.mubr.msk.f32.vlgmr.msra.gmra.mrb[200].mxu1 %vm738_vm8, %v6294_v44 }
0x2623   :  { %9420 = vmatprep.mubr.msk.f32.mxu1 %vm10791_vm0, %v10792_v1 }
0x2625   :  { %v6299_v38 = vpop.f32.mrb[192].mxu0 }
0x2626   :  { %v9405_v57 = vpop.f32.mrb[193].mxu0  ;;  %9421 = vmatmul.mubr.msk.f32.gmra.mrb[202].mxu1 %vm738_vm8, %v6299_v38 }
0x2627   :  { %9423 = vmatprep.mubr.msk.f32.mxu1 %vm10791_vm0, %v10792_v1 }
0x2629   :  { %v6304_v41 = vpop.f32.mrb[194].mxu0 }
0x262a   :  { %v9408_v40 = vpop.f32.mrb[195].mxu0  ;;  %9424 = vmatmul.mubr.msk.f32.gmra.mrb[204].mxu1 %vm738_vm8, %v6304_v41 }
0x262b   :  { %9426 = vmatprep.mubr.msk.f32.mxu1 %vm10791_vm0, %v10792_v1 }
0x262d   :  { %v6309_v50 = vpop.f32.mrb[196].mxu0 }
0x262e   :  { %v9411_v49 = vpop.f32.mrb[197].mxu0  ;;  %9427 = vmatmul.mubr.msk.f32.gmra.mrb[206].mxu1 %vm738_vm8, %v6309_v50 }
0x262f   :  { %9429 = vmatprep.mubr.msk.f32.mxu1 %vm10791_vm0, %v10792_v1 }
0x2631   :  { %v6314_v7 = vpop.f32.mrb[198].mxu0 }
0x2632   :  { %v9414_v24 = vpop.f32.mrb[199].mxu0  ;;  %9430 = vmatmul.mubr.msk.f32.gmra.mrb[208].mxu1 %vm738_vm8, %v6314_v7 }
0x2633   :  { %9467 = vmatprep.mubr.msk.f32.mxu1 %vm10791_vm0, %v10792_v1 }
0x263b   :  { %v6535_v14 = vpop.f32.mrb[200].mxu0 }
0x263c   :  { %v6536_v31 = vadd.f32 %v6535_v14, %v11285_v5  ;;  %v9444_v47 = vpop.f32.mrb[201].mxu0 }
0x263e   :  { %v6559_v9 = vsel %vm854_vm4, %v6536_v31, -inf }
0x263f   :  { %6560 = vmax.xlane.f32.xlu0 %v6559_v9  ;;  %v6540_v18 = vpop.f32.mrb[202].mxu0 }
0x2640   :  { %v6541_v33 = vadd.f32 %v6540_v18, %v11285_v5  ;;  %v9447_v63 = vpop.f32.mrb[203].mxu0 }
0x2642   :  { %v6562_v20 = vsel %vm854_vm4, %v6541_v33, -inf }
0x2643   :  { %6563 = vmax.xlane.f32.xlu1 %v6562_v20  ;;  %v6545_v6 = vpop.f32.mrb[204].mxu0 }
0x2644   :  { %v6546_v53 = vadd.f32 %v6545_v6, %v11296_v12  ;;  %v9450_v39 = vpop.f32.mrb[205].mxu0 }
0x2646   :  { %v6565_v27 = vsel %vm854_vm4, %v6546_v53, -inf }
0x2647   :  { %6566 = vmax.xlane.f32.xlu0 %v6565_v27  ;;  %v6550_v21 = vpop.f32.mrb[206].mxu0 }
0x2648   :  { %v6551_v51 = vadd.f32 %v6550_v21, %v11306_v19  ;;  %v9453_v46 = vpop.f32.mrb[207].mxu0 }
0x2649   :  { %v10571_v46 = vld [vmem:[#allocation2 + $0x20] sm:$0x3] }
0x264a   :  { %v6568_v11 = vsel %vm854_vm4, %v6551_v51, -inf }
0x264b   :  { %6569 = vmax.xlane.f32.xlu0 %v6568_v11  ;;  %v6555_v56 = vpop.f32.mrb[208].mxu0 }
0x264c   :  { %v6556_v5 = vadd.f32 %v6555_v56, %v11312_v25  ;;  %v9456_v61 = vpop.f32.mrb[209].mxu0 }
0x264e   :  { %v6571_v4 = vsel %vm867_vm11, %v6556_v5, -inf }
0x264f   :  { %6572 = vmax.xlane.f32.xlu0 %v6571_v4 }
0x2665   :  { %10228 = vrot.lane.b32.xlu0 %v12528_v35, %s10804_s6 }
0x26cc   :  { %v6561_v12 = vpop.xlane.xlu0 %6560 }
0x26cd   :  { %v6574_v62 = vsub.f32 %v6536_v31, %v6561_v12 }
0x26cf   :  { %v6579_v37 = vmul.f32 1.442695, %v6574_v62 }
0x26d0   :  { %v6564_v26 = vpop.xlane.xlu1 %6563 }
0x26d1   :  { %10517 = vpow2.f32 %v6579_v37  ;;  %v6575_v19 = vsub.f32 %v6541_v33, %v6564_v26  ;;  %v6735_v37 = vld [vmem:[%s13287_s9 + $0x18] sm:$0xff] }
0x26d2   :  { %9483 = vmatpush3.msra.mxu0 %v6735_v37 }
0x26d3   :  { %v6581_v42 = vmul.f32 1.442695, %v6575_v19  ;;  %9878 = vmatprep.subr.bf16.mxu0 %v10790_v0 }
0x26d4   :  { %v6567_v32 = vpop.xlane.xlu0 %6566 }
0x26d5   :  { %10519 = vpow2.f32 %v6581_v42  ;;  %v6576_v45 = vsub.f32 %v6546_v53, %v6567_v32 }
0x26d7   :  { %v6583_v43 = vmul.f32 1.442695, %v6576_v45 }
0x26d8   :  { %v6570_v44 = vpop.xlane.xlu0 %6569 }
0x26d9   :  { %10521 = vpow2.f32 %v6583_v43  ;;  %v6577_v25 = vsub.f32 %v6551_v51, %v6570_v44 }
0x26db   :  { %v12976_v59 = vpop.eup %10517  ;;  %v6585_v38 = vmul.f32 1.442695, %v6577_v25 }
0x26dc   :  { %v6573_v57 = vpop.xlane.xlu0 %6572  ;;  %v6589_v35 = vsel %vm854_vm4, %v12976_v59, 0.0 }
0x26dd   :  { %10523 = vpow2.f32 %v6585_v38  ;;  %v6578_v41 = vsub.f32 %v6556_v5, %v6573_v57  ;;  %6590 = vadd.xlane.f32.xlu0 %v6589_v35 }
0x26df   :  { %v12980_v40 = vpop.eup %10519  ;;  %v6587_v50 = vmul.f32 1.442695, %v6578_v41 }
0x26e0   :  { %v10229_v49 = vpop.permute.xlu0 %10228  ;;  %v6592_v7 = vsel %vm854_vm4, %v12980_v40, 0.0 }
0x26e1   :  { %10525 = vpow2.f32 %v6587_v50  ;;  %v10231_v24 = vunpack.i.h.bf16 %v10229_v49  ;;  %v10230_v14 = vunpack.i.l.bf16 %v10229_v49  ;;  %6593 = vadd.xlane.f32.xlu1 %v6592_v7 }
0x26e3   :  { %v10522_v31 = vpop.eup %10521  ;;  %v9867_v47 = vpack.c.bf16 %v10231_v24, %v10230_v14 }
0x26e4   :  { %v6595_v9 = vsel %vm854_vm4, %v10522_v31, 0.0 }
0x26e5   :  { %6596 = vadd.xlane.f32.xlu0 %v6595_v9  ;;  %9868 = vmatpush3.bf16.msra.mxu1 %v9867_v47 }
0x26e6   :  { %9869 = vmatprep.subr.bf16.mxu1 %v10790_v0 }
0x26e7   :  { %v10524_v18 = vpop.eup %10523 }
0x26e8   :  { %v6598_v33 = vsel %vm854_vm4, %v10524_v18, 0.0 }
0x26e9   :  { %6599 = vadd.xlane.f32.xlu1 %v6598_v33 }
0x26eb   :  { %v10526_v63 = vpop.eup %10525 }
0x26ec   :  { %v6601_v20 = vsel %vm867_vm11, %v10526_v63, 0.0 }
0x26ed   :  { %6602 = vadd.xlane.f32.xlu1 %v6601_v20 }
0x26f5   :  { %v6400_v6 = vpop.f32.mrb[200].mxu1 }
0x26f6   :  { %v12989_v53 = vadd.f32 %v6400_v6, %v12846_v3  ;;  %v9419_v39 = vpop.f32.mrb[201].mxu1 }
0x26f9   :  { %v6405_v27 = vpop.f32.mrb[202].mxu1 }
0x26fa   :  { %v12992_v21 = vadd.f32 %v6405_v27, %v12848_v8  ;;  %v9422_v51 = vpop.f32.mrb[203].mxu1 }
0x26fb   :  { %6622 = vrot.lane.b32.xlu0 %v10571_v46, %s10804_s6  ;;  %v7975_v51 = vld [vmem:[%s13288_s13] ss:$0 sm:$0xff] }
0x26fd   :  { %v6410_v11 = vpop.f32.mrb[204].mxu1 }
0x26fe   :  { %v12996_v56 = vadd.f32 %v6410_v11, %v12850_v30  ;;  %v9425_v5 = vpop.f32.mrb[205].mxu1  ;;  %10233 = vrot.lane.b32.xlu1 %v12540_v36, %s10804_s6 }
0x2701   :  { %v6415_v3 = vpop.f32.mrb[206].mxu1 }
0x2702   :  { %v13001_v61 = vadd.f32 %v6415_v3, %v12852_v58  ;;  %v9428_v4 = vpop.f32.mrb[207].mxu1 }
0x2705   :  { %v6420_v12 = vpop.f32.mrb[208].mxu1 }
0x2706   :  { %v13004_v8 = vadd.f32 %v6420_v12, %v12854_v16  ;;  %v9431_v62 = vpop.f32.mrb[209].mxu1 }
0x276a   :  { %v6591_v26 = vpop.xlane.xlu0 %6590 }
0x276b   :  { %10527 = vrcp.f32 %v6591_v26 }
0x276e   :  { %v6594_v30 = vpop.xlane.xlu1 %6593 }
0x276f   :  { %10529 = vrcp.f32 %v6594_v30 }
0x2772   :  { %v6597_v36 = vpop.xlane.xlu0 %6596 }
0x2773   :  { %10531 = vrcp.f32 %v6597_v36 }
0x2775   :  { %v10528_v44 = vpop.eup %10527 }
0x2776   :  { %v6600_v19 = vpop.xlane.xlu1 %6599  ;;  %v6609_v16 = vmul.f32 %v10528_v44, %v12976_v59  ;;  %v6623_v25 = vpop.permute.xlu0 %6622 }
0x2777   :  { %10533 = vrcp.f32 %v6600_v19 }
0x2779   :  { %v10530_v38 = vpop.eup %10529 }
0x277a   :  { %v6603_v42 = vpop.xlane.xlu1 %6602  ;;  %v6610_v57 = vmul.f32 %v10530_v38, %v12980_v40 }
0x277b   :  { %10535 = vrcp.f32 %v6603_v42 }
0x277d   :  { %v10532_v35 = vpop.eup %10531 }
0x277e   :  { %v10234_v32 = vpop.permute.xlu1 %10233  ;;  %v6611_v59 = vmul.f32 %v10532_v35, %v10522_v31 }
0x277f   :  { %v10236_v58 = vunpack.i.h.bf16 %v10234_v32  ;;  %v10235_v45 = vunpack.i.l.bf16 %v10234_v32 }
0x2781   :  { %v9870_v43 = vpack.c.bf16 %v10236_v58, %v10235_v45  ;;  %v10534_v41 = vpop.eup %10533 }
0x2782   :  { %v6612_v50 = vmul.f32 %v10534_v41, %v10524_v18 }
0x2783   :  { %9871 = vmatpush3.bf16.msra.mxu1 %v9870_v43 }
0x2784   :  { %9465 = vmatprep.subr.mxu1 %v10792_v1 }
0x2785   :  { %v10536_v49 = vpop.eup %10535 }
0x2786   :  { %v6613_v40 = vmul.f32 %v10536_v49, %v10526_v63 }
0x2787   :  { %9466 = vmatpush3.msk.msra.mxu1 %vm940_vm14, %v6623_v25 }
0x2788   :  { %9468 = vmatmul.mubr.msk.f32.vlgmr.msra.gmra.mrb[210].mxu1 %vm854_vm4, %v6609_v16  ;;  %9872 = vmatprep.subr.bf16.mxu1 %v10790_v0 }
0x2789   :  { %9470 = vmatprep.mubr.msk.f32.mxu1 %vm10791_vm0, %v10792_v1 }
0x278c   :  { %9471 = vmatmul.mubr.msk.f32.gmra.mrb[212].mxu1 %vm854_vm4, %v6610_v57 }
0x278d   :  { %9473 = vmatprep.mubr.msk.f32.mxu1 %vm10791_vm0, %v10792_v1 }
0x2790   :  { %9474 = vmatmul.mubr.msk.f32.gmra.mrb[214].mxu1 %vm854_vm4, %v6611_v59 }
0x2791   :  { %9476 = vmatprep.mubr.msk.f32.mxu1 %vm10791_vm0, %v10792_v1 }
0x2794   :  { %9477 = vmatmul.mubr.msk.f32.gmra.mrb[216].mxu1 %vm854_vm4, %v6612_v50 }
0x2795   :  { %9479 = vmatprep.mubr.msk.f32.mxu1 %vm10791_vm0, %v10792_v1 }
0x2798   :  { %9480 = vmatmul.mubr.msk.f32.gmra.mrb[218].mxu1 %vm854_vm4, %v6613_v40 }
0x2799   :  { %9507 = vmatprep.mubr.msk.f32.mxu1 %vm10791_vm0, %v10792_v1 }
0x285b   :  { %v6711_v7 = vpop.f32.mrb[210].mxu1 }
0x285c   :  { %v9469_v24 = vpop.f32.mrb[211].mxu1  ;;  %9485 = vmatmul.mubr.msk.f32.vlgmr.msra.gmra.mrb[210].mxu0 %vm738_vm8, %v6711_v7 }
0x285d   :  { %9487 = vmatprep.mubr.msk.f32.mxu0 %vm10791_vm0, %v10792_v1 }
0x285f   :  { %v6716_v14 = vpop.f32.mrb[212].mxu1 }
0x2860   :  { %v9472_v31 = vpop.f32.mrb[213].mxu1  ;;  %9488 = vmatmul.mubr.msk.f32.gmra.mrb[212].mxu0 %vm738_vm8, %v6716_v14 }
0x2861   :  { %9490 = vmatprep.mubr.msk.f32.mxu0 %vm10791_vm0, %v10792_v1 }
0x2863   :  { %v6721_v47 = vpop.f32.mrb[214].mxu1 }
0x2864   :  { %v9475_v9 = vpop.f32.mrb[215].mxu1  ;;  %9491 = vmatmul.mubr.msk.f32.gmra.mrb[214].mxu0 %vm738_vm8, %v6721_v47 }
0x2865   :  { %9493 = vmatprep.mubr.msk.f32.mxu0 %vm10791_vm0, %v10792_v1 }
0x2867   :  { %v6726_v18 = vpop.f32.mrb[216].mxu1 }
0x2868   :  { %v9478_v33 = vpop.f32.mrb[217].mxu1  ;;  %9494 = vmatmul.mubr.msk.f32.gmra.mrb[216].mxu0 %vm738_vm8, %v6726_v18 }
0x2869   :  { %9496 = vmatprep.mubr.msk.f32.mxu0 %vm10791_vm0, %v10792_v1 }
0x286b   :  { %v6731_v63 = vpop.f32.mrb[218].mxu1 }
0x286c   :  { %v9481_v20 = vpop.f32.mrb[219].mxu1  ;;  %9497 = vmatmul.mubr.msk.f32.gmra.mrb[218].mxu0 %vm738_vm8, %v6731_v63 }
0x286d   :  { %9554 = vmatprep.mubr.msk.f32.mxu0 %vm10791_vm0, %v10792_v1 }
0x292f   :  { %v6817_v6 = vpop.f32.mrb[210].mxu0 }
0x2930   :  { %v6841_v39 = vadd.f32 %v6817_v6, %v12989_v53  ;;  %v9486_v27 = vpop.f32.mrb[211].mxu0 }
0x2932   :  { %v6846_v46 = vadd.f32 %v6841_v39, %v11816_v55 }
0x2933   :  { %v6822_v11 = vpop.f32.mrb[212].mxu0 }
0x2934   :  { %v13046_v5 = vadd.f32 %v7975_v51, %v6846_v46  ;;  %v6842_v3 = vadd.f32 %v6822_v11, %v12992_v21  ;;  %v9489_v4 = vpop.f32.mrb[213].mxu0  ;;  %v6952_v46 = vld [vmem:[%s13289_s17] sm:$0xff]  ;;  %v6953_v11 = vld [vmem:[%s13289_s17 + $0x8] sm:$0xff] }
0x2935   :  { %v6954_v4 = vld [vmem:[%s13289_s17 + $0x10] sm:$0xff] }
0x2936   :  { %v6847_v12 = vadd.f32 %v6842_v3, %v11821_v22  ;;  %v6865_v62 = vsel %vm500_vm3, %v13046_v5, 0.0  ;;  %v9873_v3 = vpack.c.bf16 %v6953_v11, %v6952_v46  ;;  %v7119_v46 = vld [vmem:[%s13290_s21 + $0x30] sm:$0xff]  ;;  %v7120_v11 = vld [vmem:[%s13290_s21 + $0x38] sm:$0xff] }
0x2937   :  { %6866 = vadd.xlane.f32.xlu1 %v6865_v62  ;;  %v6827_v37 = vpop.f32.mrb[214].mxu0 }
0x2938   :  { %v13052_v30 = vadd.f32 %v7975_v51, %v6847_v12  ;;  %v6843_v53 = vadd.f32 %v6827_v37, %v12996_v56  ;;  %v9492_v26 = vpop.f32.mrb[215].mxu0  ;;  %9874 = vmatpush3.bf16.msra.mxu1 %v9873_v3  ;;  %v6955_v12 = vld [vmem:[%s13289_s17 + $0x18] sm:$0xff]  ;;  %v7113_v37 = vld [vmem:[%s13290_s21] sm:$0xff]  ;;  %v9888_v3 = vpack.c.bf16 %v7120_v11, %v7119_v46 }
0x2939   :  { %9875 = vmatprep.subr.bf16.mxu1 %v10790_v0  ;;  %v9876_v62 = vpack.c.bf16 %v6955_v12, %v6954_v4  ;;  %v7121_v4 = vld [vmem:[%s13290_s21 + $0x40] sm:$0xff]  ;;  %v7122_v12 = vld [vmem:[%s13290_s21 + $0x48] sm:$0xff] }
0x293a   :  { %v6848_v55 = vadd.f32 %v6843_v53, %v11826_v10  ;;  %v6868_v19 = vsel %vm500_vm3, %v13052_v30, 0.0  ;;  %v7114_v53 = vld [vmem:[%s13290_s21 + $0x8] sm:$0xff] }
0x293b   :  { %6869 = vadd.xlane.f32.xlu0 %v6868_v19  ;;  %v6832_v21 = vpop.f32.mrb[216].mxu0  ;;  %v9879_v26 = vpack.c.bf16 %v7114_v53, %v7113_v37  ;;  %v7123_v37 = vld [vmem:[%s13290_s21 + $0x50] sm:$0xff]  ;;  %v7124_v53 = vld [vmem:[%s13290_s21 + $0x58] sm:$0xff] }
0x293c   :  { %v13058_v42 = vadd.f32 %v7975_v51, %v6848_v55  ;;  %v6844_v22 = vadd.f32 %v6832_v21, %v13001_v61  ;;  %v9495_v36 = vpop.f32.mrb[217].mxu0  ;;  %9877 = vmatpush3.bf16.msra.mxu1 %v9876_v62  ;;  %v9891_v62 = vpack.c.bf16 %v7122_v12, %v7121_v4 }
0x293d   :  { %9902 = vmatprep.subr.bf16.mxu1 %v10790_v0  ;;  %9880 = vmatpush3.bf16.msra.mxu0 %v9879_v26  ;;  %v9894_v26 = vpack.c.bf16 %v7124_v53, %v7123_v37 }
0x293e   :  { %v6849_v32 = vadd.f32 %v6844_v22, %v11831_v48  ;;  %v6871_v58 = vsel %vm500_vm3, %v13058_v42, 0.0  ;;  %9881 = vmatprep.subr.bf16.mxu0 %v10790_v0 }
0x293f   :  { %6872 = vadd.xlane.f32.xlu0 %v6871_v58  ;;  %v6837_v56 = vpop.f32.mrb[218].mxu0 }
0x2940   :  { %v13064_v45 = vadd.f32 %v7975_v51, %v6849_v32  ;;  %v6845_v10 = vadd.f32 %v6837_v56, %v13004_v8  ;;  %v9498_v43 = vpop.f32.mrb[219].mxu0 }
0x2942   :  { %v6850_v44 = vadd.f32 %v6845_v10, %v11836_v52  ;;  %v6874_v16 = vsel %vm500_vm3, %v13064_v45, 0.0 }
0x2943   :  { %6875 = vadd.xlane.f32.xlu1 %v6874_v16 }
0x2944   :  { %v13070_v61 = vadd.f32 %v7975_v51, %v6850_v44 }
0x2946   :  { %v6877_v48 = vsel %vm513_vm5, %v13070_v61, 0.0 }
0x2947   :  { %6878 = vadd.xlane.f32.xlu0 %v6877_v48  ;;  %v7976_v48 = vld [vmem:[%s13291_s25] ss:$0 sm:$0xff] }
0x29c4   :  { %v6867_v25 = vpop.xlane.xlu1 %6866 }
0x29c5   :  { %v6880_v38 = vmul.f32 0.03125, %v6867_v25 }
0x29c7   :  { %v6885_v57 = vsub.f32 %v13046_v5, %v6880_v38 }
0x29c8   :  { %v6870_v35 = vpop.xlane.xlu0 %6869 }
0x29c9   :  { %v6881_v59 = vmul.f32 0.03125, %v6870_v35  ;;  %v6890_v8 = vmul.f32 %v6885_v57, %v6885_v57 }
0x29cb   :  { %v13076_v41 = vsub.f32 %v13052_v30, %v6881_v59  ;;  %v6895_v52 = vsel %vm500_vm3, %v6890_v8, 0.0  ;;  %v7977_v59 = vld [vmem:[%s13292_s29] ss:$0 sm:$0xff] }
0x29cc   :  { %v6873_v50 = vpop.xlane.xlu0 %6872  ;;  %6896 = vadd.xlane.f32.xlu1 %v6895_v52 }
0x29cd   :  { %v6882_v49 = vmul.f32 0.03125, %v6873_v50  ;;  %v6891_v40 = vmul.f32 %v13076_v41, %v13076_v41 }
0x29cf   :  { %v13082_v7 = vsub.f32 %v13058_v42, %v6882_v49  ;;  %v6898_v24 = vsel %vm500_vm3, %v6891_v40, 0.0 }
0x29d0   :  { %v6876_v14 = vpop.xlane.xlu1 %6875  ;;  %6899 = vadd.xlane.f32.xlu0 %v6898_v24 }
0x29d1   :  { %v6883_v31 = vmul.f32 0.03125, %v6876_v14  ;;  %v6892_v47 = vmul.f32 %v13082_v7, %v13082_v7 }
0x29d3   :  { %v13088_v9 = vsub.f32 %v13064_v45, %v6883_v31  ;;  %v6901_v18 = vsel %vm500_vm3, %v6892_v47, 0.0 }
0x29d4   :  { %6902 = vadd.xlane.f32.xlu1 %v6901_v18  ;;  %v6879_v33 = vpop.xlane.xlu0 %6878  ;;  %v10572_v18 = vld [vmem:[%s13286_s5] ss:$0 sm:$0xff] }
0x29d5   :  { %v6884_v63 = vmul.f32 0.03125, %v6879_v33  ;;  %v6893_v20 = vmul.f32 %v13088_v9, %v13088_v9 }
0x29d7   :  { %v13094_v6 = vsub.f32 %v13070_v61, %v6884_v63  ;;  %v6904_v39 = vsel %vm500_vm3, %v6893_v20, 0.0  ;;  %v7115_v20 = vld [vmem:[%s13290_s21 + $0x10] sm:$0xff] }
0x29d8   :  { %6905 = vadd.xlane.f32.xlu0 %v6904_v39  ;;  %v7117_v39 = vld [vmem:[%s13290_s21 + $0x20] sm:$0xff] }
0x29d9   :  { %v6894_v27 = vmul.f32 %v13094_v6, %v13094_v6 }
0x29db   :  { %v6907_v51 = vsel %vm513_vm5, %v6894_v27, 0.0  ;;  %v7118_v27 = vld [vmem:[%s13290_s21 + $0x28] sm:$0xff] }
0x29dc   :  { %6908 = vadd.xlane.f32.xlu1 %v6907_v51  ;;  %v9885_v51 = vpack.c.bf16 %v7118_v27, %v7117_v39 }
0x2a59   :  { %v6897_v55 = vpop.xlane.xlu1 %6896 }
0x2a5a   :  { %v6910_v19 = vmul.f32 0.03125, %v6897_v55  ;;  %v7125_v55 = vld [vmem:[%s13290_s21 + $0x60] sm:$0xff] }
0x2a5c   :  { %v6915_v21 = vadd.f32 1e-06, %v6910_v19  ;;  %v7126_v19 = vld [vmem:[%s13290_s21 + $0x68] sm:$0xff] }
0x2a5d   :  { %v6900_v22 = vpop.xlane.xlu0 %6899 }
0x2a5e   :  { %10537 = vrsqrt.f32 %v6915_v21  ;;  %v6911_v36 = vmul.f32 0.03125, %v6900_v22  ;;  %v9897_v21 = vpack.c.bf16 %v7126_v19, %v7125_v55  ;;  %v7127_v22 = vld [vmem:[%s13290_s21 + $0x70] sm:$0xff] }
0x2a60   :  { %v6916_v32 = vadd.f32 1e-06, %v6911_v36  ;;  %v7128_v36 = vld [vmem:[%s13290_s21 + $0x78] sm:$0xff] }
0x2a61   :  { %v6903_v58 = vpop.xlane.xlu1 %6902 }
0x2a62   :  { %10539 = vrsqrt.f32 %v6916_v32  ;;  %v6912_v56 = vmul.f32 0.03125, %v6903_v58  ;;  %v9900_v32 = vpack.c.bf16 %v7128_v36, %v7127_v22  ;;  %v7978_v58 = vld [vmem:[%s13293_s3] ss:$0 sm:$0xff] }
0x2a64   :  { %v6917_v10 = vadd.f32 1e-06, %v6912_v56 }
0x2a65   :  { %v6906_v43 = vpop.xlane.xlu0 %6905 }
0x2a66   :  { %10541 = vrsqrt.f32 %v6917_v10  ;;  %v6913_v44 = vmul.f32 0.03125, %v6906_v43 }
0x2a68   :  { %v10538_v16 = vpop.eup %10537  ;;  %v6918_v25 = vadd.f32 1e-06, %v6913_v44 }
0x2a69   :  { %v6925_v38 = vmul.f32 %v10538_v16, %v6885_v57  ;;  %v6909_v35 = vpop.xlane.xlu1 %6908 }
0x2a6a   :  { %10543 = vrsqrt.f32 %v6918_v25  ;;  %v6914_v8 = vmul.f32 0.03125, %v6909_v35 }
0x2a6b   :  { %v6936_v52 = vmul.f32 %v7976_v48, %v6925_v38 }
0x2a6c   :  { %v10540_v50 = vpop.eup %10539  ;;  %v6919_v49 = vadd.f32 1e-06, %v6914_v8 }
0x2a6d   :  { %v6947_v40 = vadd.f32 %v7977_v59, %v6936_v52  ;;  %v6926_v24 = vmul.f32 %v10540_v50, %v13076_v41  ;;  %v5025_v41 = vadd.f32 %v10572_v18, %v12641_v28 }
0x2a6e   :  { %10545 = vrsqrt.f32 %v6919_v49 }
0x2a6f   :  { %9508 = vmatmul.mubr.msk.f32.vlgmr.msra.gmra.mrb[220].mxu1 %vm500_vm3, %v6947_v40  ;;  %v6937_v14 = vmul.f32 %v7976_v48, %v6926_v24 }
0x2a70   :  { %v10542_v31 = vpop.eup %10541  ;;  %9904 = vmatpush3.bf16.msra.mxu1 %v9903_v34  ;;  %9510 = vmatprep.mubr.msk.f32.mxu1 %vm10791_vm0, %v10792_v1  ;;  %v5032_v34 = vadd.f32 %v5025_v41, %v12403_v60 }
0x2a71   :  { %9905 = vmatprep.subr.bf16.mxu1 %v10790_v0  ;;  %v6948_v57 = vadd.f32 %v7977_v59, %v6937_v14  ;;  %v6927_v47 = vmul.f32 %v10542_v31, %v13082_v7 }
0x2a73   :  { %9511 = vmatmul.mubr.msk.f32.gmra.mrb[222].mxu1 %vm500_vm3, %v6948_v57  ;;  %v6938_v33 = vmul.f32 %v7976_v48, %v6927_v47 }
0x2a74   :  { %v10544_v63 = vpop.eup %10543  ;;  %9907 = vmatpush3.bf16.msra.mxu1 %v9906_v13  ;;  %9513 = vmatprep.mubr.msk.f32.mxu1 %vm10791_vm0, %v10792_v1  ;;  %v7231_v13 = vmul.u32 17, %v11106_v17 }
0x2a75   :  { %9577 = vmatprep.subr.mxu1 %v10792_v1  ;;  %v6949_v29 = vadd.f32 %v7977_v59, %v6938_v33  ;;  %v6928_v23 = vmul.f32 %v10544_v63, %v13088_v9 }
0x2a76   :  { %vm7232_vm6 = vcmp.eq.s32.totalorder %v11276_v2, %v7231_v13  ;;  %v7116_v2 = vld [vmem:[%s13290_s21 + $0x18] sm:$0xff] }
0x2a77   :  { %9514 = vmatmul.mubr.msk.f32.gmra.mrb[224].mxu1 %vm500_vm3, %v6949_v29  ;;  %v6939_v28 = vmul.f32 %v7976_v48, %v6928_v23  ;;  %v13146_v17 = vsel %vm7232_vm6, 1.0, %v10792_v1 }
0x2a78   :  { %v10546_v7 = vpop.eup %10545  ;;  %9578 = vmatpush3.msk.msra.mxu1 %vm940_vm14, %v5032_v34  ;;  %9516 = vmatprep.mubr.msk.f32.mxu1 %vm10791_vm0, %v10792_v1 }
0x2a79   :  { %v6950_v54 = vadd.f32 %v7977_v59, %v6939_v28  ;;  %v6929_v15 = vmul.f32 %v10546_v7, %v13094_v6  ;;  %9908 = vmatprep.subr.bf16.mxu1 %v10790_v0  ;;  %v9882_v6 = vpack.c.bf16 %v7116_v2, %v7115_v20 }
0x2a7b   :  { %9517 = vmatmul.mubr.msk.f32.gmra.mrb[226].mxu1 %vm500_vm3, %v6950_v54  ;;  %v6940_v60 = vmul.f32 %v7976_v48, %v6929_v15  ;;  %9883 = vmatpush3.bf16.msra.mxu0 %v9882_v6 }
0x2a7c   :  { %9519 = vmatprep.mubr.msk.f32.mxu1 %vm10791_vm0, %v10792_v1  ;;  %9884 = vmatprep.subr.bf16.mxu0 %v10790_v0 }
0x2a7d   :  { %v6951_v9 = vadd.f32 %v7977_v59, %v6940_v60 }
0x2a7f   :  { %9520 = vmatmul.mubr.msk.f32.gmra.mrb[228].mxu1 %vm500_vm3, %v6951_v9  ;;  %9886 = vmatpush3.bf16.msra.mxu0 %v9885_v51 }
0x2a80   :  { %9579 = vmatprep.mubr.msk.f32.mxu1 %vm10791_vm0, %v10792_v1  ;;  %9887 = vmatprep.subr.bf16.mxu0 %v10790_v0 }
0x2a83   :  { %9580 = vmatmul.mubr.msk.f32.vlgmr.msra.gmra.mrb[230].mxu1 %vm854_vm4, %v13146_v17  ;;  %9889 = vmatpush3.bf16.msra.mxu0 %v9888_v3 }
0x2a84   :  { %9592 = vmatprep.mubr.msk.f32.mxu1 %vm10791_vm0, %v10792_v1  ;;  %9890 = vmatprep.subr.bf16.mxu0 %v10790_v0 }
0x2a87   :  { %9892 = vmatpush3.bf16.msra.mxu0 %v9891_v62 }
0x2a88   :  { %9893 = vmatprep.subr.bf16.mxu0 %v10790_v0 }
0x2a8b   :  { %9895 = vmatpush3.bf16.msra.mxu0 %v9894_v26 }
0x2a8c   :  { %9896 = vmatprep.subr.bf16.mxu0 %v10790_v0 }
0x2a8f   :  { %9898 = vmatpush3.bf16.msra.mxu0 %v9897_v21 }
0x2a90   :  { %9899 = vmatprep.subr.bf16.mxu0 %v10790_v0 }
0x2a93   :  { %9901 = vmatpush3.bf16.msra.mxu0 %v9900_v32 }
0x2a94   :  { %9920 = vmatprep.subr.bf16.mxu0 %v10790_v0 }
0x2b42   :  { %v7044_v56 = vpop.f32.mrb[220].mxu1 }
0x2b43   :  { %v7045_v10 = vadd.f32 %v7978_v58, %v7044_v56  ;;  %v9509_v43 = vpop.f32.mrb[221].mxu1 }
0x2b45   :  { %v7073_v44 = vmul.f32 0.044715, %v7045_v10  ;;  %v7068_v3 = vmul.f32 0.5, %v7045_v10 }
0x2b46   :  { %v7049_v16 = vpop.f32.mrb[222].mxu1 }
0x2b47   :  { %v7078_v48 = vmul.f32 %v7073_v44, %v7045_v10  ;;  %v7050_v25 = vadd.f32 %v7978_v58, %v7049_v16  ;;  %v9512_v38 = vpop.f32.mrb[223].mxu1 }
0x2b49   :  { %v7083_v35 = vmul.f32 %v7078_v48, %v7045_v10  ;;  %v7074_v59 = vmul.f32 0.044715, %v7050_v25  ;;  %v7069_v26 = vmul.f32 0.5, %v7050_v25 }
0x2b4a   :  { %v7054_v8 = vpop.f32.mrb[224].mxu1 }
0x2b4b   :  { %v7088_v52 = vadd.f32 %v7083_v35, %v7045_v10  ;;  %v7079_v50 = vmul.f32 %v7074_v59, %v7050_v25  ;;  %v7055_v49 = vadd.f32 %v7978_v58, %v7054_v8  ;;  %v9515_v40 = vpop.f32.mrb[225].mxu1 }
0x2b4d   :  { %v7093_v24 = vmul.f32 0.7978846, %v7088_v52  ;;  %v7075_v14 = vmul.f32 0.044715, %v7055_v49  ;;  %v7084_v31 = vmul.f32 %v7079_v50, %v7050_v25  ;;  %v7070_v22 = vmul.f32 0.5, %v7055_v49 }
0x2b4e   :  { %v7059_v57 = vpop.f32.mrb[226].mxu1  ;;  %v7984_v50 = vld [vmem:[#allocation3] ss:$0 sm:$0xff] }
0x2b4f   :  { %10547 = vtanh.f32 %v7093_v24  ;;  %v7080_v47 = vmul.f32 %v7075_v14, %v7055_v49  ;;  %v7060_v18 = vadd.f32 %v7978_v58, %v7059_v57  ;;  %v9518_v41 = vpop.f32.mrb[227].mxu1  ;;  %v7089_v33 = vadd.f32 %v7084_v31, %v7050_v25 }
0x2b51   :  { %v7076_v63 = vmul.f32 0.044715, %v7060_v18  ;;  %v7094_v29 = vmul.f32 0.7978846, %v7089_v33  ;;  %v7085_v23 = vmul.f32 %v7080_v47, %v7055_v49  ;;  %v7071_v56 = vmul.f32 0.5, %v7060_v18 }
0x2b52   :  { %v7064_v34 = vpop.f32.mrb[228].mxu1 }
0x2b53   :  { %v7081_v28 = vmul.f32 %v7076_v63, %v7060_v18  ;;  %v7065_v7 = vadd.f32 %v7978_v58, %v7064_v34  ;;  %v9521_v54 = vpop.f32.mrb[229].mxu1  ;;  %10549 = vtanh.f32 %v7094_v29  ;;  %v7090_v15 = vadd.f32 %v7085_v23, %v7055_v49 }
0x2b55   :  { %v7077_v13 = vmul.f32 0.044715, %v7065_v7  ;;  %v7095_v60 = vmul.f32 0.7978846, %v7090_v15  ;;  %v7086_v9 = vmul.f32 %v7081_v28, %v7060_v18  ;;  %v7072_v16 = vmul.f32 0.5, %v7065_v7 }
0x2b56   :  { %v7307_v20 = vpop.f32.mrb[230].mxu1 }
0x2b57   :  { %v7082_v2 = vmul.f32 %v7077_v13, %v7065_v7  ;;  %10551 = vtanh.f32 %v7095_v60  ;;  %v7091_v6 = vadd.f32 %v7086_v9, %v7060_v18  ;;  %v7386_v39 = vsel %vm513_vm5, %v7307_v20, 0.0  ;;  %v9581_v27 = vpop.f32.mrb[231].mxu1 }
0x2b58   :  { %7387 = vadd.xlane.f32.xlu0 %v7386_v39  ;;  %v7990_v39 = vld [vmem:[#allocation6] ss:$0 sm:$0xff] }
0x2b59   :  { %v10548_v51 = vpop.eup %10547  ;;  %v7096_v46 = vmul.f32 0.7978846, %v7091_v6  ;;  %v7087_v11 = vmul.f32 %v7082_v2, %v7065_v7  ;;  %v7443_v6 = vld [vmem:[%s11039_s20] sm:$0xff] }
0x2b5a   :  { %v7103_v4 = vadd.f32 1.0, %v10548_v51 }
0x2b5b   :  { %10553 = vtanh.f32 %v7096_v46  ;;  %v7092_v12 = vadd.f32 %v7087_v11, %v7065_v7  ;;  %v7446_v46 = vld [vmem:[%s11039_s20 + $0x18] sm:$0xff] }
0x2b5c   :  { %v7108_v62 = vmul.f32 %v7103_v4, %v7068_v3 }
0x2b5d   :  { %v10550_v37 = vpop.eup %10549  ;;  %v7097_v53 = vmul.f32 0.7978846, %v7092_v12 }
0x2b5e   :  { %9555 = vmatmul.mubr.f32.vlgmr.msra.gmra.mrb[220].mxu0 %v7108_v62  ;;  %v7104_v55 = vadd.f32 1.0, %v10550_v37 }
0x2b5f   :  { %9557 = vmatprep.mubr.msk.f32.mxu0 %vm10791_vm0, %v10792_v1  ;;  %10555 = vtanh.f32 %v7097_v53 }
0x2b60   :  { %v7109_v19 = vmul.f32 %v7104_v55, %v7069_v26 }
0x2b61   :  { %v10552_v21 = vpop.eup %10551 }
0x2b62   :  { %9558 = vmatmul.mubr.f32.gmra.mrb[222].mxu0 %v7109_v19  ;;  %v7105_v36 = vadd.f32 1.0, %v10552_v21 }
0x2b63   :  { %9560 = vmatprep.mubr.msk.f32.mxu0 %vm10791_vm0, %v10792_v1 }
0x2b64   :  { %v7110_v32 = vmul.f32 %v7105_v36, %v7070_v22  ;;  %v7527_v36 = vld [vmem:[%s11039_s20 + $0x20] sm:$0xff] }
0x2b65   :  { %v10554_v58 = vpop.eup %10553 }
0x2b66   :  { %9561 = vmatmul.mubr.f32.gmra.mrb[224].mxu0 %v7110_v32  ;;  %v7106_v10 = vadd.f32 1.0, %v10554_v58  ;;  %v7528_v32 = vld [vmem:[%s11039_s20 + $0x28] sm:$0xff] }
0x2b67   :  { %9563 = vmatprep.mubr.msk.f32.mxu0 %vm10791_vm0, %v10792_v1  ;;  %v9921_v58 = vpack.c.bf16 %v7528_v32, %v7527_v36 }
0x2b68   :  { %v7111_v43 = vmul.f32 %v7106_v10, %v7071_v56  ;;  %v7529_v56 = vld [vmem:[%s11039_s20 + $0x30] sm:$0xff]  ;;  %v7530_v10 = vld [vmem:[%s11039_s20 + $0x38] sm:$0xff] }
0x2b69   :  { %v10556_v44 = vpop.eup %10555  ;;  %9922 = vmatpush3.bf16.msra.mxu0 %v9921_v58 }
0x2b6a   :  { %9564 = vmatmul.mubr.f32.gmra.mrb[226].mxu0 %v7111_v43  ;;  %v7107_v48 = vadd.f32 1.0, %v10556_v44  ;;  %9923 = vmatprep.subr.bf16.mxu0 %v10790_v0  ;;  %v9924_v43 = vpack.c.bf16 %v7530_v10, %v7529_v56 }
0x2b6b   :  { %9566 = vmatprep.mubr.msk.f32.mxu0 %vm10791_vm0, %v10792_v1 }
0x2b6c   :  { %v7112_v25 = vmul.f32 %v7107_v48, %v7072_v16 }
0x2b6d   :  { %9925 = vmatpush3.bf16.msra.mxu0 %v9924_v43 }
0x2b6e   :  { %9567 = vmatmul.mubr.f32.gmra.mrb[228].mxu0 %v7112_v25 }
0x2b6f   :  { %9614 = vmatprep.mubr.msk.f32.mxu0 %vm10791_vm0, %v10792_v1 }
0x2be5   :  { %v7388_v38 = vpop.xlane.xlu0 %7387 }
0x2be6   :  { %v7389_v35 = vmul.f32 0.03125, %v7388_v38  ;;  %v7992_v38 = vld [vmem:[#allocation9] ss:$0 sm:$0xff] }
0x2be8   :  { %v7390_v59 = vsub.f32 %v7307_v20, %v7389_v35 }
0x2bea   :  { %v7391_v8 = vmul.f32 %v7390_v59, %v7390_v59 }
0x2bec   :  { %v7392_v52 = vsel %vm513_vm5, %v7391_v8, 0.0 }
0x2bed   :  { %7393 = vadd.xlane.f32.xlu0 %v7392_v52 }
0x2c31   :  { %v7202_v49 = vpop.f32.mrb[220].mxu0 }
0x2c32   :  { %v9556_v40 = vpop.f32.mrb[221].mxu0  ;;  %v7203_v24 = vadd.f32 %v7984_v50, %v7202_v49 }
0x2c34   :  { %v7226_v47 = vadd.f32 %v7203_v24, %v13046_v5 }
0x2c35   :  { %v7207_v14 = vpop.f32.mrb[222].mxu0 }
0x2c36   :  { %v7208_v31 = vadd.f32 %v7984_v50, %v7207_v14  ;;  %v9559_v57 = vpop.f32.mrb[223].mxu0 }
0x2c38   :  { %v7227_v18 = vadd.f32 %v7208_v31, %v13052_v30 }
0x2c39   :  { %v7212_v41 = vpop.f32.mrb[224].mxu0 }
0x2c3a   :  { %v9909_v33 = vpack.c.bf16 %v7227_v18, %v7226_v47  ;;  %v9562_v63 = vpop.f32.mrb[225].mxu0  ;;  %v7213_v29 = vadd.f32 %v7984_v50, %v7212_v41 }
0x2c3c   :  { %9910 = vmatpush3.bf16.msra.mxu1 %v9909_v33  ;;  %v7228_v7 = vadd.f32 %v7213_v29, %v13058_v42 }
0x2c3d   :  { %v7217_v23 = vpop.f32.mrb[226].mxu0  ;;  %9911 = vmatprep.subr.bf16.mxu1 %v10790_v0 }
0x2c3e   :  { %v7218_v34 = vadd.f32 %v7984_v50, %v7217_v23  ;;  %v9565_v28 = vpop.f32.mrb[227].mxu0 }
0x2c40   :  { %v7229_v54 = vadd.f32 %v7218_v34, %v13064_v45 }
0x2c41   :  { %v7222_v15 = vpop.f32.mrb[228].mxu0 }
0x2c42   :  { %v9912_v13 = vpack.c.bf16 %v7229_v54, %v7228_v7  ;;  %v7223_v5 = vadd.f32 %v7984_v50, %v7222_v15  ;;  %v9568_v30 = vpop.f32.mrb[229].mxu0  ;;  %v7995_v50 = vld [vmem:[#allocation12] ss:$0 sm:$0xff] }
0x2c44   :  { %9913 = vmatpush3.bf16.msra.mxu1 %v9912_v13  ;;  %v7230_v60 = vadd.f32 %v7223_v5, %v13070_v61  ;;  %v7444_v61 = vld [vmem:[%s11039_s20 + $0x8] sm:$0xff] }
0x2c45   :  { %9590 = vmatprep.subr.mxu1 %v10792_v1  ;;  %v9915_v27 = vpack.c.bf16 %v7444_v61, %v7443_v6 }
0x2c48   :  { %9591 = vmatpush3.msk.msra.mxu1 %vm940_vm14, %v7230_v60 }
0x2c49   :  { %9593 = vmatmul.mubr.msk.f32.vlgmr.msra.gmra.mrb[232].mxu1 %vm854_vm4, %v13146_v17  ;;  %9914 = vmatprep.subr.bf16.mxu1 %v10790_v0  ;;  %v7445_v17 = vld [vmem:[%s11039_s20 + $0x10] sm:$0xff]  ;;  %s10705_s20 = scalar_lea.vmem %s7614_s24, 32 }
0x2c4a   :  { %9603 = vmatprep.mubr.msk.f32.mxu1 %vm10791_vm0, %v10792_v1  ;;  %9916 = vmatpush3.bf16.msra.mxu1 %v9915_v27  ;;  %v9918_v11 = vpack.c.bf16 %v7446_v46, %v7445_v17  ;;  %v7991_v1 = vld [vmem:[#allocation8] ss:$0 sm:$0xff]  ;;  %vm7605_vm0 = vcmask 74752   ;;  %p10706_p6 = scmp.ne.s32.totalorder %s7614_s24, %s10705_s20  ;;  %p10711_p8 = scmp.lt.s32.totalorder %s10705_s20, %s10705_s20 }
0x2c4b   :  { %9917 = vmatprep.subr.bf16.mxu1 %v10790_v0 }
0x2c4c   :  { %p10712_p9 = por %p10711_p8, %p10710_p7 }
0x2c4e   :  { %9919 = vmatpush3.bf16.msra.mxu1 %v9918_v11  ;;  %p10713_p10 = pnand %p10712_p9, %p10706_p6 }
0x2c7a   :  { %v7394_v42 = vpop.xlane.xlu0 %7393 }
0x2c7b   :  { %v7395_v45 = vmul.f32 0.03125, %v7394_v42 }
0x2c7d   :  { %v7396_v9 = vadd.f32 1e-06, %v7395_v45 }
0x2c7f   :  { %10557 = vrsqrt.f32 %v7396_v9 }
0x2c89   :  { %v10558_v20 = vpop.eup %10557 }
0x2c8a   :  { %v7398_v2 = vmul.f32 %v10558_v20, %v7390_v59  ;;  %v7993_v59 = vld [vmem:[#allocation11] ss:$0 sm:$0xff] }
0x2c8c   :  { %v7405_v51 = vmul.f32 %v7990_v39, %v7398_v2 }
0x2c8e   :  { %v7412_v3 = vadd.f32 %v7991_v1, %v7405_v51 }
0x2c90   :  { %9604 = vmatmul.mubr.msk.f32.vlgmr.msra.gmra.mrb[234].mxu1 %vm500_vm3, %v7412_v3 }
0x2d1c   :  { %v7380_v4 = vpop.f32.mrb[232].mxu1 }
0x2d1d   :  { %v7415_v12 = vsel %vm513_vm5, %v7380_v4, 0.0  ;;  %v9594_v62 = vpop.f32.mrb[233].mxu1 }
0x2d1e   :  { %7416 = vadd.xlane.f32.xlu1 %v7415_v12 }
0x2d63   :  { %v7516_v37 = vpop.f32.mrb[234].mxu1 }
0x2d64   :  { %v9605_v53 = vpop.f32.mrb[235].mxu1  ;;  %v7526_v0 = vadd.f32 %v7995_v50, %v7516_v37 }
0x2dab   :  { %v7417_v26 = vpop.xlane.xlu1 %7416 }
0x2dac   :  { %v7418_v55 = vmul.f32 0.03125, %v7417_v26 }
0x2dae   :  { %v7419_v19 = vsub.f32 %v7380_v4, %v7418_v55 }
0x2db0   :  { %v7420_v21 = vmul.f32 %v7419_v19, %v7419_v19 }
0x2db2   :  { %v7421_v22 = vsel %vm513_vm5, %v7420_v21, 0.0 }
0x2db3   :  { %7422 = vadd.xlane.f32.xlu1 %v7421_v22 }
0x2e40   :  { %v7423_v44 = vpop.xlane.xlu1 %7422 }
0x2e41   :  { %v7424_v16 = vmul.f32 0.03125, %v7423_v44 }
0x2e43   :  { %v7425_v48 = vadd.f32 1e-06, %v7424_v16 }
0x2e45   :  { %10559 = vrsqrt.f32 %v7425_v48 }
0x2e4f   :  { %v10560_v25 = vpop.eup %10559 }
0x2e50   :  { %v7427_v35 = vmul.f32 %v10560_v25, %v7419_v19 }
0x2e52   :  { %v7434_v8 = vmul.f32 %v7992_v38, %v7427_v35 }
0x2e54   :  { %v7441_v52 = vadd.f32 %v7993_v59, %v7434_v8 }
0x2e56   :  { %9615 = vmatmul.mubr.msk.f32.vlgmr.msra.gmra.mrb[230].mxu0 %vm500_vm3, %v7441_v52 }
0x2f29   :  { %v7600_v49 = vpop.f32.mrb[230].mxu0 }
0x2f2a   :  { %v7604_v40 = vadd.f32 %v7600_v49, %v7526_v0  ;;  %v9616_v24 = vpop.f32.mrb[231].mxu0 }
0x2f2c   :  { %7606 = vst.msk [vmem:[#allocation14] sm:$0x3] %vm7605_vm0, %v7604_v40 }
0x2f2d   :  { %10716 = shalt.err (!%p10713_p10)
}
0x2f2e   :  { %s10717_s6 = scalar_lea.hbm %s11049_s19, 32 }
0x2f2f   :  { %p10718_p11 = scmp.ne.s32.totalorder %s11049_s19, %s10717_s6  ;;  %p10721_p12 = scmp.lt.u32.totalorder %s10717_s6, %s11049_s19 }
0x2f31   :  { %p10723_p13 = pnand %p10721_p12, %p10718_p11 }
0x2f33   :  { %10726 = shalt.err (!%p10723_p13)
}
0x2f34   :  { %7616 = dma.vmem_to_hbm [thread:$0]  %s7614_s24, 32, %s11049_s19, [#allocation5]  }
0x2f35   :  { %10735 = dma.done.wait [#allocation5], 32  }
0x2f36   :  { %10736 = vsyncadd [#allocation5], 4294967264 }
0x2f37   :  { %7620 = vsyncpa [#allocation4], 1 }
0x2f38   :  { %7621 = vsyncpa [#allocation7], 1 }
0x2f39   :  { %7622 = vsyncpa [#allocation10], 1 }
0x2f3a   :  { %7623 = vsyncpa [#allocation13], 1 }
0x2f3b   :  { %7624 = vsyncpa [#allocation5], 1 }

</bundles_post_ra>
